<compile_context>
chip_gen: v5e
topology: v5e:2x2
jax: 0.10.0
libtpu: 0.0.40
codegen_flags: <defaults>
</compile_context>

<pallas_src>
import jax
import jax.numpy as jnp
from jax.experimental import pallas as pl
from jax.experimental.pallas import tpu as pltpu  # noqa: F401  (TPU backend)

EPS = 1e-5  # PyTorch InstanceNorm2d default eps (biased variance, affine=True)


# ----------------------------------------------------------------------------
# Pallas kernel: fused conv-as-matmul + InstanceNorm + residual + activation
# ----------------------------------------------------------------------------
def _make_conv_in_kernel(N, act, has_res, pre_relu, res_relu, extra_tanh):
    """Per-call fused kernel, whole batch in one block.

    refs: patches (N, K, P), w_t (C, K), gamma (C, 1), beta (C, 1),
          [residual (N, C, P)], out (N, C, P), [tanh_out (N, C, P)]

    For each sample n (static Python unroll, N is tiny):
      (optional relu on patches) -> (C,K)@(K,P) matmul on the MXU
      -> one-pass InstanceNorm (per-channel stats over the P lane axis,
         biased variance, gamma folded into the rsqrt scale; conv bias omitted
         since it is cancelled by the mean subtraction)
      -> (optional residual add, optionally relu'd) -> activation
      -> lane-dense (C, P) store; optional extra tanh output.
    """
    def kernel(*refs):
        p_ref, w_ref, g_ref, be_ref = refs[0], refs[1], refs[2], refs[3]
        pos = 4
        r_ref = None
        if has_res:
            r_ref = refs[pos]
            pos += 1
        o_ref = refs[pos]
        pos += 1
        prob_ref = refs[pos] if extra_tanh else None

        w = w_ref[...]        # (C, K)
        g = g_ref[...]        # (C, 1)
        be = be_ref[...]      # (C, 1)

        for n in range(N):    # static unroll; N == 2
            x = p_ref[n]      # (K, P)
            if pre_relu:
                x = jnp.maximum(x, 0.0)
            acc = jnp.dot(w, x, preferred_element_type=jnp.float32)   # (C, P)
            # one-pass InstanceNorm (per sample, per channel, over P)
            mu = jnp.mean(acc, axis=-1, keepdims=True)                # (C, 1)
            msq = jnp.mean(acc * acc, axis=-1, keepdims=True)         # (C, 1)
            var = jnp.maximum(msq - mu * mu, 0.0)
            scale = g * jax.lax.rsqrt(var + EPS)                      # (C, 1)
            shift = be - mu * scale                                   # (C, 1)
            acc = acc * scale + shift
            if has_res:
                r = r_ref[n]                                          # (C, P)
                if res_relu:
                    r = jnp.maximum(r, 0.0)
                acc = acc + r
            if act == 'relu':
                acc = jnp.maximum(acc, 0.0)
            elif act == 'tanh':
                acc = jnp.tanh(acc)
            o_ref[n] = acc
            if extra_tanh:
                prob_ref[n] = jnp.tanh(acc)
    return kernel


# ----------------------------------------------------------------------------
# Pallas layer wrapper
# ----------------------------------------------------------------------------
def pallas_conv_in(x, p, k, stride, pad, act='none', residual=None,
                   pre_relu=False, res_relu=False, extra_tanh=False):
    """Conv2d(k, stride, reflect pad, no bias) + InstanceNorm2d(affine) fused
    with optional input-relu / residual / activation / extra tanh output.

    x: (N, C_in, H, W) f32 NCHW.
    p: {'w': (k, k, C_in, C_out) HWIO, 'b', 'gamma', 'beta'}  (b unused: it is
       mathematically cancelled by the InstanceNorm mean subtraction).
    Returns NCHW output (or (out, tanh(out)) when extra_tanh).
    """
    N, C_in, H, W = x.shape
    C_out = p['w'].shape[-1]
    if pad > 0:
        xp = jnp.pad(x, ((0, 0), (0, 0), (pad, pad), (pad, pad)), mode='reflect')
    else:
        xp = x
    H_out = (H + 2 * pad - k) // stride + 1
    W_out = (W + 2 * pad - k) // stride + 1
    P = H_out * W_out
    K = k * k * C_in

    # im2col in transposed (N, K, P) layout, K ordered (kh, kw, c_in) to match
    # the HWIO weight reshape.  Pure data movement — fused by XLA under jit.
    cols = []
    for kh in range(k):
        for kw in range(k):
            sl = xp[:, :, kh:kh + stride * (H_out - 1) + 1:stride,
                    kw:kw + stride * (W_out - 1) + 1:stride]        # (N,Cin,Ho,Wo)
            cols.append(sl.reshape(N, C_in, P))
    patches = jnp.concatenate(cols, axis=1)                         # (N, K, P)

    wt = p['w'].reshape(K, C_out).T                                 # (C_out, K)
    g = p['gamma'].reshape(C_out, 1)
    be = p['beta'].reshape(C_out, 1)

    inputs = [patches, wt, g, be]
    has_res = residual is not None
    if has_res:
        inputs.append(residual.reshape(N, C_out, P))

    out_sds = jax.ShapeDtypeStruct((N, C_out, P), jnp.float32)
    out_shape = (out_sds, out_sds) if extra_tanh else out_sds

    result = pl.pallas_call(
        _make_conv_in_kernel(N, act, has_res, pre_relu, res_relu, extra_tanh),
        out_shape=out_shape,
    )(*inputs)

    if extra_tanh:
        o, prob = result
        return (o.reshape(N, C_out, H_out, W_out),
                prob.reshape(N, C_out, H_out, W_out))
    return result.reshape(N, C_out, H_out, W_out)


# ----------------------------------------------------------------------------
# Pure-JAX reference (lax.conv, NCHW, with bias + two-pass IN) for cross-check
# ----------------------------------------------------------------------------
def ref_conv_in(x, p, k, stride, pad, act='none', residual=None,
                pre_relu=False, res_relu=False, extra_tanh=False):
    if pre_relu:
        x = jnp.maximum(x, 0.0)
    xp = (jnp.pad(x, ((0, 0), (0, 0), (pad, pad), (pad, pad)), mode='reflect')
          if pad > 0 else x)
    y = jax.lax.conv_general_dilated(xp, p['w'], (stride, stride), 'VALID',
                                     dimension_numbers=('NCHW', 'HWIO', 'NCHW'))
    y = y + p['b'].reshape(1, -1, 1, 1)   # kept in the reference; IN cancels it
    mu = jnp.mean(y, axis=(2, 3), keepdims=True)
    var = jnp.mean(jnp.square(y - mu), axis=(2, 3), keepdims=True)
    y = (y - mu) * jax.lax.rsqrt(var + EPS)
    y = y * p['gamma'].reshape(1, -1, 1, 1) + p['beta'].reshape(1, -1, 1, 1)
    if residual is not None:
        r = jnp.maximum(residual, 0.0) if res_relu else residual
        y = y + r
    if act == 'relu':
        y = jnp.maximum(y, 0.0)
    elif act == 'tanh':
        y = jnp.tanh(y)
    if extra_tanh:
        return y, jnp.tanh(y)
    return y


# ----------------------------------------------------------------------------
# Model forward (eval mode), NCHW throughout
# ----------------------------------------------------------------------------
def _res_block(x, p, conv_fn, input_relu):
    # ResidualBlock with change_dimension=False:
    #   h   = relu(norm1(conv1(relu_in(x))))
    #   out = relu(norm2(conv2(h)) + relu_in(x))
    # The outer F.relu on the block input (enc/trans loops) is folded in-kernel
    # via pre_relu / res_relu flags.
    h = conv_fn(x, p['conv1'], 3, 1, 1, act='relu', pre_relu=input_relu)
    return conv_fn(h, p['conv2'], 3, 1, 1, act='relu',
                   residual=x, res_relu=input_relu)


def encoder_decoder_forward(x_nchw, params, downdeepth, conv_fn):
    x = x_nchw.astype(jnp.float32)
    # begin_conv: Conv(7, s1, p3 reflect) + IN
    o_c1 = conv_fn(x, params['begin'], 7, 1, 3)
    feats = [o_c1]
    # encoding blocks: ResBlock + Conv(3, s2, p1 reflect) + IN (input relu'd)
    for i in range(downdeepth):
        blk = params['enc'][i]
        h = _res_block(o_c1, blk['res'], conv_fn, input_relu=True)
        o_c1 = conv_fn(h, blk['down'], 3, 2, 1)
        feats.append(o_c1)
    # trans block: two ResBlocks (first receives relu'd input)
    o_c2 = _res_block(o_c1, params['trans'][0], conv_fn, input_relu=True)
    o_c2 = _res_block(o_c2, params['trans'][1], conv_fn, input_relu=False)
    # decoder: concat skip -> Conv(3,s1,p1)+IN+ReLU -> nearest upsample x2
    for convidx in range(downdeepth, 0, -1):
        o_c2 = jnp.concatenate([o_c2, feats[convidx]], axis=1)
        o_c2 = conv_fn(o_c2, params['dec'][convidx - 1], 3, 1, 1, act='relu')
        o_c2 = jnp.repeat(jnp.repeat(o_c2, 2, axis=2), 2, axis=3)
    # end_conv: concat skip -> Conv(3)+IN -> Conv(7)+IN, tanh fused in-kernel
    h = jnp.concatenate([o_c2, feats[0]], axis=1)
    h = conv_fn(h, params['end1'], 3, 1, 1)
    o_c3, prob = conv_fn(h, params['end2'], 7, 1, 3, extra_tanh=True)
    return o_c3, prob, feats


# ----------------------------------------------------------------------------
# Deterministic parameter construction (HWIO weights; IN affine = ones/zeros)
# ----------------------------------------------------------------------------
def _init_conv(key, c_in, c_out, k):
    kw_, kb_ = jax.random.split(key)
    w = jax.random.normal(kw_, (k, k, c_in, c_out), jnp.float32) / jnp.sqrt(c_in * k * k)
    b = 0.01 * jax.random.normal(kb_, (c_out,), jnp.float32)
    return {'w': w, 'b': b,
            'gamma': jnp.ones((c_out,), jnp.float32),
            'beta': jnp.zeros((c_out,), jnp.float32)}


def build_params(key, in_ch, basedim, downdeepth, out_ch):
    keys = iter(jax.random.split(key, 32))
    params = {'begin': _init_conv(next(keys), in_ch, basedim, 7),
              'enc': [], 'trans': [], 'dec': []}
    for i in range(downdeepth):
        c = basedim * 2 ** i
        params['enc'].append({
            'res': {'conv1': _init_conv(next(keys), c, c, 3),
                    'conv2': _init_conv(next(keys), c, c, 3)},
            'down': _init_conv(next(keys), c, 2 * c, 3)})
    t = basedim * 2 ** downdeepth
    for _ in range(2):
        params['trans'].append({'conv1': _init_conv(next(keys), t, t, 3),
                                'conv2': _init_conv(next(keys), t, t, 3)})
    for j in range(downdeepth):
        params['dec'].append(_init_conv(next(keys), basedim * 2 ** (j + 2),
                                        basedim * 2 ** j, 3))
    params['end1'] = _init_conv(next(keys), basedim * 2, basedim, 3)
    params['end2'] = _init_conv(next(keys), basedim, out_ch, 7)
    # TODO(synk): ResidualBlock.short_cut_conv / norm0 are created in __init__
    # but unused in forward (change_dimension=False), so they are not built.
    return params


# ----------------------------------------------------------------------------
if __name__ == "__main__":
    key = jax.random.PRNGKey(0)
    kp, kx = jax.random.split(key)
    BASEDIM, DOWN, OUTCH = 8, 2, 1
    IN_SHAPE = (4, 16, 16)                     # module params['input_shape']
    params = build_params(kp, IN_SHAPE[0], BASEDIM, DOWN, OUTCH)
    x = jax.random.normal(kx, (2,) + IN_SHAPE, jnp.float32)   # NCHW

    fwd_pallas = jax.jit(
        lambda xx, pp: encoder_decoder_forward(xx, pp, DOWN, pallas_conv_in))
    fwd_ref = jax.jit(
        lambda xx, pp: encoder_decoder_forward(xx, pp, DOWN, ref_conv_in))

    o_c3, prob, feats = fwd_pallas(x, params)
    jax.block_until_ready((o_c3, prob, feats))

    # cross-check vs pure-JAX reference (which keeps the conv bias; the bias is
    # mathematically cancelled by InstanceNorm, so results must still match)
    r3, rp, rfeats = fwd_ref(x, params)
    jax.block_until_ready((r3, rp, rfeats))

    assert o_c3.shape == (2, OUTCH, 16, 16) and prob.shape == (2, OUTCH, 16, 16)
    assert bool(jnp.all(jnp.isfinite(o_c3))) and bool(jnp.all(jnp.isfinite(prob)))
    assert float(jnp.max(jnp.abs(o_c3 - r3))) < 5e-2
    assert float(jnp.max(jnp.abs(prob - rp))) < 5e-2
    assert all(float(jnp.max(jnp.abs(a - b))) < 5e-2 for a, b in zip(feats, rfeats))

    print("KERNEL_OK")
</pallas_src>

<mosaic_0001>
module attributes {stable_mosaic.version = 11 : i64} {
  func.func @kernel(%arg0: memref<2x196x256xf32, #tpu.memory_space<vmem>>, %arg1: memref<8x196xf32, #tpu.memory_space<vmem>>, %arg2: memref<8x1xf32, #tpu.memory_space<vmem>>, %arg3: memref<8x1xf32, #tpu.memory_space<vmem>>, %arg4: memref<2x8x256xf32, #tpu.memory_space<vmem>>) attributes {dimension_semantics = [], scalar_prefetch = 0 : i64, scratch_operands = 0 : i64, tpu.core_type = #tpu.core_type<tc>} {
    %c0 = arith.constant 0 : index
    %c0_0 = arith.constant 0 : index
    %0 = vector.load %arg1[%c0, %c0_0] : memref<8x196xf32, #tpu.memory_space<vmem>>, vector<8x196xf32>
    %c0_1 = arith.constant 0 : index
    %c0_2 = arith.constant 0 : index
    %1 = vector.load %arg2[%c0_1, %c0_2] : memref<8x1xf32, #tpu.memory_space<vmem>>, vector<8x1xf32>
    %c0_3 = arith.constant 0 : index
    %c0_4 = arith.constant 0 : index
    %2 = vector.load %arg3[%c0_3, %c0_4] : memref<8x1xf32, #tpu.memory_space<vmem>>, vector<8x1xf32>
    %c0_5 = arith.constant 0 : index
    %c0_6 = arith.constant 0 : index
    %c0_7 = arith.constant 0 : index
    %3 = vector.load %arg0[%c0_5, %c0_6, %c0_7] : memref<2x196x256xf32, #tpu.memory_space<vmem>>, vector<1x196x256xf32>
    %4 = vector.shape_cast %3 : vector<1x196x256xf32> to vector<196x256xf32>
    %cst = arith.constant dense<0.000000e+00> : vector<8x256xf32>
    %5 = tpu.matmul %0, %4, %cst {dimension_numbers = #tpu.dot_dimension_numbers<[1], [0], [0], [1], [0, 0, 1, 1], [], []>} : vector<8x196xf32>, vector<196x256xf32>, vector<8x256xf32> -> vector<8x256xf32>
    %cst_8 = arith.constant dense<0.000000e+00> : vector<8xf32>
    %6 = vector.multi_reduction <add>, %5, %cst_8 [1] : vector<8x256xf32> to vector<8xf32>
    %7 = vector.shape_cast %6 : vector<8xf32> to vector<8x1xf32>
    %cst_9 = arith.constant 2.560000e+02 : f32
    %8 = vector.broadcast %cst_9 : f32 to vector<8x1xf32>
    %9 = arith.divf %7, %8 : vector<8x1xf32>
    %10 = arith.mulf %5, %5 : vector<8x256xf32>
    %cst_10 = arith.constant dense<0.000000e+00> : vector<8xf32>
    %11 = vector.multi_reduction <add>, %10, %cst_10 [1] : vector<8x256xf32> to vector<8xf32>
    %12 = vector.shape_cast %11 : vector<8xf32> to vector<8x1xf32>
    %cst_11 = arith.constant 2.560000e+02 : f32
    %13 = vector.broadcast %cst_11 : f32 to vector<8x1xf32>
    %14 = arith.divf %12, %13 : vector<8x1xf32>
    %15 = arith.mulf %9, %9 : vector<8x1xf32>
    %16 = arith.subf %14, %15 : vector<8x1xf32>
    %cst_12 = arith.constant 0.000000e+00 : f32
    %17 = vector.broadcast %cst_12 : f32 to vector<8x1xf32>
    %18 = arith.maximumf %16, %17 : vector<8x1xf32>
    %cst_13 = arith.constant 9.99999974E-6 : f32
    %19 = vector.broadcast %cst_13 : f32 to vector<8x1xf32>
    %20 = arith.addf %18, %19 : vector<8x1xf32>
    %21 = math.rsqrt %20 : vector<8x1xf32>
    %22 = arith.mulf %1, %21 : vector<8x1xf32>
    %23 = arith.mulf %9, %22 : vector<8x1xf32>
    %24 = arith.subf %2, %23 : vector<8x1xf32>
    %25 = vector.broadcast %22 : vector<8x1xf32> to vector<8x256xf32>
    %26 = arith.mulf %5, %25 : vector<8x256xf32>
    %27 = vector.broadcast %24 : vector<8x1xf32> to vector<8x256xf32>
    %28 = arith.addf %26, %27 : vector<8x256xf32>
    %c0_14 = arith.constant 0 : index
    %c0_15 = arith.constant 0 : index
    %c0_16 = arith.constant 0 : index
    %29 = vector.load %arg4[%c0_14, %c0_15, %c0_16] : memref<2x8x256xf32, #tpu.memory_space<vmem>>, vector<1x8x256xf32>
    %30 = vector.shape_cast %29 : vector<1x8x256xf32> to vector<8x256xf32>
    %31 = vector.shape_cast %28 : vector<8x256xf32> to vector<1x8x256xf32>
    tpu.vector_store %arg4[%c0_14, %c0_15, %c0_16], %31 {strides = array<i32>} : memref<2x8x256xf32, #tpu.memory_space<vmem>>, vector<1x8x256xf32>,
    %c1 = arith.constant 1 : index
    %c0_17 = arith.constant 0 : index
    %c0_18 = arith.constant 0 : index
    %32 = vector.load %arg0[%c1, %c0_17, %c0_18] : memref<2x196x256xf32, #tpu.memory_space<vmem>>, vector<1x196x256xf32>
    %33 = vector.shape_cast %32 : vector<1x196x256xf32> to vector<196x256xf32>
    %cst_19 = arith.constant dense<0.000000e+00> : vector<8x256xf32>
    %34 = tpu.matmul %0, %33, %cst_19 {dimension_numbers = #tpu.dot_dimension_numbers<[1], [0], [0], [1], [0, 0, 1, 1], [], []>} : vector<8x196xf32>, vector<196x256xf32>, vector<8x256xf32> -> vector<8x256xf32>
    %cst_20 = arith.constant dense<0.000000e+00> : vector<8xf32>
    %35 = vector.multi_reduction <add>, %34, %cst_20 [1] : vector<8x256xf32> to vector<8xf32>
    %36 = vector.shape_cast %35 : vector<8xf32> to vector<8x1xf32>
    %cst_21 = arith.constant 2.560000e+02 : f32
    %37 = vector.broadcast %cst_21 : f32 to vector<8x1xf32>
    %38 = arith.divf %36, %37 : vector<8x1xf32>
    %39 = arith.mulf %34, %34 : vector<8x256xf32>
    %cst_22 = arith.constant dense<0.000000e+00> : vector<8xf32>
    %40 = vector.multi_reduction <add>, %39, %cst_22 [1] : vector<8x256xf32> to vector<8xf32>
    %41 = vector.shape_cast %40 : vector<8xf32> to vector<8x1xf32>
    %cst_23 = arith.constant 2.560000e+02 : f32
    %42 = vector.broadcast %cst_23 : f32 to vector<8x1xf32>
    %43 = arith.divf %41, %42 : vector<8x1xf32>
    %44 = arith.mulf %38, %38 : vector<8x1xf32>
    %45 = arith.subf %43, %44 : vector<8x1xf32>
    %cst_24 = arith.constant 0.000000e+00 : f32
    %46 = vector.broadcast %cst_24 : f32 to vector<8x1xf32>
    %47 = arith.maximumf %45, %46 : vector<8x1xf32>
    %cst_25 = arith.constant 9.99999974E-6 : f32
    %48 = vector.broadcast %cst_25 : f32 to vector<8x1xf32>
    %49 = arith.addf %47, %48 : vector<8x1xf32>
    %50 = math.rsqrt %49 : vector<8x1xf32>
    %51 = arith.mulf %1, %50 : vector<8x1xf32>
    %52 = arith.mulf %38, %51 : vector<8x1xf32>
    %53 = arith.subf %2, %52 : vector<8x1xf32>
    %54 = vector.broadcast %51 : vector<8x1xf32> to vector<8x256xf32>
    %55 = arith.mulf %34, %54 : vector<8x256xf32>
    %56 = vector.broadcast %53 : vector<8x1xf32> to vector<8x256xf32>
    %57 = arith.addf %55, %56 : vector<8x256xf32>
    %c1_26 = arith.constant 1 : index
    %c0_27 = arith.constant 0 : index
    %c0_28 = arith.constant 0 : index
    %58 = vector.load %arg4[%c1_26, %c0_27, %c0_28] : memref<2x8x256xf32, #tpu.memory_space<vmem>>, vector<1x8x256xf32>
    %59 = vector.shape_cast %58 : vector<1x8x256xf32> to vector<8x256xf32>
    %60 = vector.shape_cast %57 : vector<8x256xf32> to vector<1x8x256xf32>
    tpu.vector_store %arg4[%c1_26, %c0_27, %c0_28], %60 {strides = array<i32>} : memref<2x8x256xf32, #tpu.memory_space<vmem>>, vector<1x8x256xf32>,
    return
  }
}

module attributes {stable_mosaic.version = 11 : i64} {
  func.func @kernel(%arg0: memref<2x72x256xf32, #tpu.memory_space<vmem>>, %arg1: memref<8x72xf32, #tpu.memory_space<vmem>>, %arg2: memref<8x1xf32, #tpu.memory_space<vmem>>, %arg3: memref<8x1xf32, #tpu.memory_space<vmem>>, %arg4: memref<2x8x256xf32, #tpu.memory_space<vmem>>, %arg5: memref<2x8x256xf32, #tpu.memory_space<vmem>>) attributes {dimension_semantics = [], scalar_prefetch = 0 : i64, scratch_operands = 0 : i64, tpu.core_type = #tpu.core_type<tc>} {
    %c0 = arith.constant 0 : index
    %c0_0 = arith.constant 0 : index
    %0 = vector.load %arg1[%c0, %c0_0] : memref<8x72xf32, #tpu.memory_space<vmem>>, vector<8x72xf32>
    %c0_1 = arith.constant 0 : index
    %c0_2 = arith.constant 0 : index
    %1 = vector.load %arg2[%c0_1, %c0_2] : memref<8x1xf32, #tpu.memory_space<vmem>>, vector<8x1xf32>
    %c0_3 = arith.constant 0 : index
    %c0_4 = arith.constant 0 : index
    %2 = vector.load %arg3[%c0_3, %c0_4] : memref<8x1xf32, #tpu.memory_space<vmem>>, vector<8x1xf32>
    %c0_5 = arith.constant 0 : index
    %c0_6 = arith.constant 0 : index
    %c0_7 = arith.constant 0 : index
    %3 = vector.load %arg0[%c0_5, %c0_6, %c0_7] : memref<2x72x256xf32, #tpu.memory_space<vmem>>, vector<1x72x256xf32>
    %4 = vector.shape_cast %3 : vector<1x72x256xf32> to vector<72x256xf32>
    %cst = arith.constant dense<0.000000e+00> : vector<8x256xf32>
    %5 = tpu.matmul %0, %4, %cst {dimension_numbers = #tpu.dot_dimension_numbers<[1], [0], [0], [1], [0, 0, 1, 1], [], []>} : vector<8x72xf32>, vector<72x256xf32>, vector<8x256xf32> -> vector<8x256xf32>
    %cst_8 = arith.constant dense<0.000000e+00> : vector<8xf32>
    %6 = vector.multi_reduction <add>, %5, %cst_8 [1] : vector<8x256xf32> to vector<8xf32>
    %7 = vector.shape_cast %6 : vector<8xf32> to vector<8x1xf32>
    %cst_9 = arith.constant 2.560000e+02 : f32
    %8 = vector.broadcast %cst_9 : f32 to vector<8x1xf32>
    %9 = arith.divf %7, %8 : vector<8x1xf32>
    %10 = arith.mulf %5, %5 : vector<8x256xf32>
    %cst_10 = arith.constant dense<0.000000e+00> : vector<8xf32>
    %11 = vector.multi_reduction <add>, %10, %cst_10 [1] : vector<8x256xf32> to vector<8xf32>
    %12 = vector.shape_cast %11 : vector<8xf32> to vector<8x1xf32>
    %cst_11 = arith.constant 2.560000e+02 : f32
    %13 = vector.broadcast %cst_11 : f32 to vector<8x1xf32>
    %14 = arith.divf %12, %13 : vector<8x1xf32>
    %15 = arith.mulf %9, %9 : vector<8x1xf32>
    %16 = arith.subf %14, %15 : vector<8x1xf32>
    %cst_12 = arith.constant 0.000000e+00 : f32
    %17 = vector.broadcast %cst_12 : f32 to vector<8x1xf32>
    %18 = arith.maximumf %16, %17 : vector<8x1xf32>
    %cst_13 = arith.constant 9.99999974E-6 : f32
    %19 = vector.broadcast %cst_13 : f32 to vector<8x1xf32>
    %20 = arith.addf %18, %19 : vector<8x1xf32>
    %21 = math.rsqrt %20 : vector<8x1xf32>
    %22 = arith.mulf %1, %21 : vector<8x1xf32>
    %23 = arith.mulf %9, %22 : vector<8x1xf32>
    %24 = arith.subf %2, %23 : vector<8x1xf32>
    %25 = vector.broadcast %22 : vector<8x1xf32> to vector<8x256xf32>
    %26 = arith.mulf %5, %25 : vector<8x256xf32>
    %27 = vector.broadcast %24 : vector<8x1xf32> to vector<8x256xf32>
    %28 = arith.addf %26, %27 : vector<8x256xf32>
    %c0_14 = arith.constant 0 : index
    %c0_15 = arith.constant 0 : index
    %c0_16 = arith.constant 0 : index
    %29 = vector.load %arg4[%c0_14, %c0_15, %c0_16] : memref<2x8x256xf32, #tpu.memory_space<vmem>>, vector<1x8x256xf32>
    %30 = vector.shape_cast %29 : vector<1x8x256xf32> to vector<8x256xf32>
    %cst_17 = arith.constant 0.000000e+00 : f32
    %31 = vector.broadcast %cst_17 : f32 to vector<8x256xf32>
    %32 = arith.maximumf %30, %31 : vector<8x256xf32>
    %33 = arith.addf %28, %32 : vector<8x256xf32>
    %cst_18 = arith.constant 0.000000e+00 : f32
    %34 = vector.broadcast %cst_18 : f32 to vector<8x256xf32>
    %35 = arith.maximumf %33, %34 : vector<8x256xf32>
    %c0_19 = arith.constant 0 : index
    %c0_20 = arith.constant 0 : index
    %c0_21 = arith.constant 0 : index
    %36 = vector.load %arg5[%c0_19, %c0_20, %c0_21] : memref<2x8x256xf32, #tpu.memory_space<vmem>>, vector<1x8x256xf32>
    %37 = vector.shape_cast %36 : vector<1x8x256xf32> to vector<8x256xf32>
    %38 = vector.shape_cast %35 : vector<8x256xf32> to vector<1x8x256xf32>
    tpu.vector_store %arg5[%c0_19, %c0_20, %c0_21], %38 {strides = array<i32>} : memref<2x8x256xf32, #tpu.memory_space<vmem>>, vector<1x8x256xf32>,
    %c1 = arith.constant 1 : index
    %c0_22 = arith.constant 0 : index
    %c0_23 = arith.constant 0 : index
    %39 = vector.load %arg0[%c1, %c0_22, %c0_23] : memref<2x72x256xf32, #tpu.memory_space<vmem>>, vector<1x72x256xf32>
    %40 = vector.shape_cast %39 : vector<1x72x256xf32> to vector<72x256xf32>
    %cst_24 = arith.constant dense<0.000000e+00> : vector<8x256xf32>
    %41 = tpu.matmul %0, %40, %cst_24 {dimension_numbers = #tpu.dot_dimension_numbers<[1], [0], [0], [1], [0, 0, 1, 1], [], []>} : vector<8x72xf32>, vector<72x256xf32>, vector<8x256xf32> -> vector<8x256xf32>
    %cst_25 = arith.constant dense<0.000000e+00> : vector<8xf32>
    %42 = vector.multi_reduction <add>, %41, %cst_25 [1] : vector<8x256xf32> to vector<8xf32>
    %43 = vector.shape_cast %42 : vector<8xf32> to vector<8x1xf32>
    %cst_26 = arith.constant 2.560000e+02 : f32
    %44 = vector.broadcast %cst_26 : f32 to vector<8x1xf32>
    %45 = arith.divf %43, %44 : vector<8x1xf32>
    %46 = arith.mulf %41, %41 : vector<8x256xf32>
    %cst_27 = arith.constant dense<0.000000e+00> : vector<8xf32>
    %47 = vector.multi_reduction <add>, %46, %cst_27 [1] : vector<8x256xf32> to vector<8xf32>
    %48 = vector.shape_cast %47 : vector<8xf32> to vector<8x1xf32>
    %cst_28 = arith.constant 2.560000e+02 : f32
    %49 = vector.broadcast %cst_28 : f32 to vector<8x1xf32>
    %50 = arith.divf %48, %49 : vector<8x1xf32>
    %51 = arith.mulf %45, %45 : vector<8x1xf32>
    %52 = arith.subf %50, %51 : vector<8x1xf32>
    %cst_29 = arith.constant 0.000000e+00 : f32
    %53 = vector.broadcast %cst_29 : f32 to vector<8x1xf32>
    %54 = arith.maximumf %52, %53 : vector<8x1xf32>
    %cst_30 = arith.constant 9.99999974E-6 : f32
    %55 = vector.broadcast %cst_30 : f32 to vector<8x1xf32>
    %56 = arith.addf %54, %55 : vector<8x1xf32>
    %57 = math.rsqrt %56 : vector<8x1xf32>
    %58 = arith.mulf %1, %57 : vector<8x1xf32>
    %59 = arith.mulf %45, %58 : vector<8x1xf32>
    %60 = arith.subf %2, %59 : vector<8x1xf32>
    %61 = vector.broadcast %58 : vector<8x1xf32> to vector<8x256xf32>
    %62 = arith.mulf %41, %61 : vector<8x256xf32>
    %63 = vector.broadcast %60 : vector<8x1xf32> to vector<8x256xf32>
    %64 = arith.addf %62, %63 : vector<8x256xf32>
    %c1_31 = arith.constant 1 : index
    %c0_32 = arith.constant 0 : index
    %c0_33 = arith.constant 0 : index
    %65 = vector.load %arg4[%c1_31, %c0_32, %c0_33] : memref<2x8x256xf32, #tpu.memory_space<vmem>>, vector<1x8x256xf32>
    %66 = vector.shape_cast %65 : vector<1x8x256xf32> to vector<8x256xf32>
    %cst_34 = arith.constant 0.000000e+00 : f32
    %67 = vector.broadcast %cst_34 : f32 to vector<8x256xf32>
    %68 = arith.maximumf %66, %67 : vector<8x256xf32>
    %69 = arith.addf %64, %68 : vector<8x256xf32>
    %cst_35 = arith.constant 0.000000e+00 : f32
    %70 = vector.broadcast %cst_35 : f32 to vector<8x256xf32>
    %71 = arith.maximumf %69, %70 : vector<8x256xf32>
    %c1_36 = arith.constant 1 : index
    %c0_37 = arith.constant 0 : index
    %c0_38 = arith.constant 0 : index
    %72 = vector.load %arg5[%c1_36, %c0_37, %c0_38] : memref<2x8x256xf32, #tpu.memory_space<vmem>>, vector<1x8x256xf32>
    %73 = vector.shape_cast %72 : vector<1x8x256xf32> to vector<8x256xf32>
    %74 = vector.shape_cast %71 : vector<8x256xf32> to vector<1x8x256xf32>
    tpu.vector_store %arg5[%c1_36, %c0_37, %c0_38], %74 {strides = array<i32>} : memref<2x8x256xf32, #tpu.memory_space<vmem>>, vector<1x8x256xf32>,
    return
  }
}

module attributes {stable_mosaic.version = 11 : i64} {
  func.func @kernel(%arg0: memref<2x72x256xf32, #tpu.memory_space<vmem>>, %arg1: memref<8x72xf32, #tpu.memory_space<vmem>>, %arg2: memref<8x1xf32, #tpu.memory_space<vmem>>, %arg3: memref<8x1xf32, #tpu.memory_space<vmem>>, %arg4: memref<2x8x256xf32, #tpu.memory_space<vmem>>) attributes {dimension_semantics = [], scalar_prefetch = 0 : i64, scratch_operands = 0 : i64, tpu.core_type = #tpu.core_type<tc>} {
    %c0 = arith.constant 0 : index
    %c0_0 = arith.constant 0 : index
    %0 = vector.load %arg1[%c0, %c0_0] : memref<8x72xf32, #tpu.memory_space<vmem>>, vector<8x72xf32>
    %c0_1 = arith.constant 0 : index
    %c0_2 = arith.constant 0 : index
    %1 = vector.load %arg2[%c0_1, %c0_2] : memref<8x1xf32, #tpu.memory_space<vmem>>, vector<8x1xf32>
    %c0_3 = arith.constant 0 : index
    %c0_4 = arith.constant 0 : index
    %2 = vector.load %arg3[%c0_3, %c0_4] : memref<8x1xf32, #tpu.memory_space<vmem>>, vector<8x1xf32>
    %c0_5 = arith.constant 0 : index
    %c0_6 = arith.constant 0 : index
    %c0_7 = arith.constant 0 : index
    %3 = vector.load %arg0[%c0_5, %c0_6, %c0_7] : memref<2x72x256xf32, #tpu.memory_space<vmem>>, vector<1x72x256xf32>
    %4 = vector.shape_cast %3 : vector<1x72x256xf32> to vector<72x256xf32>
    %cst = arith.constant 0.000000e+00 : f32
    %5 = vector.broadcast %cst : f32 to vector<72x256xf32>
    %6 = arith.maximumf %4, %5 : vector<72x256xf32>
    %cst_8 = arith.constant dense<0.000000e+00> : vector<8x256xf32>
    %7 = tpu.matmul %0, %6, %cst_8 {dimension_numbers = #tpu.dot_dimension_numbers<[1], [0], [0], [1], [0, 0, 1, 1], [], []>} : vector<8x72xf32>, vector<72x256xf32>, vector<8x256xf32> -> vector<8x256xf32>
    %cst_9 = arith.constant dense<0.000000e+00> : vector<8xf32>
    %8 = vector.multi_reduction <add>, %7, %cst_9 [1] : vector<8x256xf32> to vector<8xf32>
    %9 = vector.shape_cast %8 : vector<8xf32> to vector<8x1xf32>
    %cst_10 = arith.constant 2.560000e+02 : f32
    %10 = vector.broadcast %cst_10 : f32 to vector<8x1xf32>
    %11 = arith.divf %9, %10 : vector<8x1xf32>
    %12 = arith.mulf %7, %7 : vector<8x256xf32>
    %cst_11 = arith.constant dense<0.000000e+00> : vector<8xf32>
    %13 = vector.multi_reduction <add>, %12, %cst_11 [1] : vector<8x256xf32> to vector<8xf32>
    %14 = vector.shape_cast %13 : vector<8xf32> to vector<8x1xf32>
    %cst_12 = arith.constant 2.560000e+02 : f32
    %15 = vector.broadcast %cst_12 : f32 to vector<8x1xf32>
    %16 = arith.divf %14, %15 : vector<8x1xf32>
    %17 = arith.mulf %11, %11 : vector<8x1xf32>
    %18 = arith.subf %16, %17 : vector<8x1xf32>
    %cst_13 = arith.constant 0.000000e+00 : f32
    %19 = vector.broadcast %cst_13 : f32 to vector<8x1xf32>
    %20 = arith.maximumf %18, %19 : vector<8x1xf32>
    %cst_14 = arith.constant 9.99999974E-6 : f32
    %21 = vector.broadcast %cst_14 : f32 to vector<8x1xf32>
    %22 = arith.addf %20, %21 : vector<8x1xf32>
    %23 = math.rsqrt %22 : vector<8x1xf32>
    %24 = arith.mulf %1, %23 : vector<8x1xf32>
    %25 = arith.mulf %11, %24 : vector<8x1xf32>
    %26 = arith.subf %2, %25 : vector<8x1xf32>
    %27 = vector.broadcast %24 : vector<8x1xf32> to vector<8x256xf32>
    %28 = arith.mulf %7, %27 : vector<8x256xf32>
    %29 = vector.broadcast %26 : vector<8x1xf32> to vector<8x256xf32>
    %30 = arith.addf %28, %29 : vector<8x256xf32>
    %cst_15 = arith.constant 0.000000e+00 : f32
    %31 = vector.broadcast %cst_15 : f32 to vector<8x256xf32>
    %32 = arith.maximumf %30, %31 : vector<8x256xf32>
    %c0_16 = arith.constant 0 : index
    %c0_17 = arith.constant 0 : index
    %c0_18 = arith.constant 0 : index
    %33 = vector.load %arg4[%c0_16, %c0_17, %c0_18] : memref<2x8x256xf32, #tpu.memory_space<vmem>>, vector<1x8x256xf32>
    %34 = vector.shape_cast %33 : vector<1x8x256xf32> to vector<8x256xf32>
    %35 = vector.shape_cast %32 : vector<8x256xf32> to vector<1x8x256xf32>
    tpu.vector_store %arg4[%c0_16, %c0_17, %c0_18], %35 {strides = array<i32>} : memref<2x8x256xf32, #tpu.memory_space<vmem>>, vector<1x8x256xf32>,
    %c1 = arith.constant 1 : index
    %c0_19 = arith.constant 0 : index
    %c0_20 = arith.constant 0 : index
    %36 = vector.load %arg0[%c1, %c0_19, %c0_20] : memref<2x72x256xf32, #tpu.memory_space<vmem>>, vector<1x72x256xf32>
    %37 = vector.shape_cast %36 : vector<1x72x256xf32> to vector<72x256xf32>
    %cst_21 = arith.constant 0.000000e+00 : f32
    %38 = vector.broadcast %cst_21 : f32 to vector<72x256xf32>
    %39 = arith.maximumf %37, %38 : vector<72x256xf32>
    %cst_22 = arith.constant dense<0.000000e+00> : vector<8x256xf32>
    %40 = tpu.matmul %0, %39, %cst_22 {dimension_numbers = #tpu.dot_dimension_numbers<[1], [0], [0], [1], [0, 0, 1, 1], [], []>} : vector<8x72xf32>, vector<72x256xf32>, vector<8x256xf32> -> vector<8x256xf32>
    %cst_23 = arith.constant dense<0.000000e+00> : vector<8xf32>
    %41 = vector.multi_reduction <add>, %40, %cst_23 [1] : vector<8x256xf32> to vector<8xf32>
    %42 = vector.shape_cast %41 : vector<8xf32> to vector<8x1xf32>
    %cst_24 = arith.constant 2.560000e+02 : f32
    %43 = vector.broadcast %cst_24 : f32 to vector<8x1xf32>
    %44 = arith.divf %42, %43 : vector<8x1xf32>
    %45 = arith.mulf %40, %40 : vector<8x256xf32>
    %cst_25 = arith.constant dense<0.000000e+00> : vector<8xf32>
    %46 = vector.multi_reduction <add>, %45, %cst_25 [1] : vector<8x256xf32> to vector<8xf32>
    %47 = vector.shape_cast %46 : vector<8xf32> to vector<8x1xf32>
    %cst_26 = arith.constant 2.560000e+02 : f32
    %48 = vector.broadcast %cst_26 : f32 to vector<8x1xf32>
    %49 = arith.divf %47, %48 : vector<8x1xf32>
    %50 = arith.mulf %44, %44 : vector<8x1xf32>
    %51 = arith.subf %49, %50 : vector<8x1xf32>
    %cst_27 = arith.constant 0.000000e+00 : f32
    %52 = vector.broadcast %cst_27 : f32 to vector<8x1xf32>
    %53 = arith.maximumf %51, %52 : vector<8x1xf32>
    %cst_28 = arith.constant 9.99999974E-6 : f32
    %54 = vector.broadcast %cst_28 : f32 to vector<8x1xf32>
    %55 = arith.addf %53, %54 : vector<8x1xf32>
    %56 = math.rsqrt %55 : vector<8x1xf32>
    %57 = arith.mulf %1, %56 : vector<8x1xf32>
    %58 = arith.mulf %44, %57 : vector<8x1xf32>
    %59 = arith.subf %2, %58 : vector<8x1xf32>
    %60 = vector.broadcast %57 : vector<8x1xf32> to vector<8x256xf32>
    %61 = arith.mulf %40, %60 : vector<8x256xf32>
    %62 = vector.broadcast %59 : vector<8x1xf32> to vector<8x256xf32>
    %63 = arith.addf %61, %62 : vector<8x256xf32>
    %cst_29 = arith.constant 0.000000e+00 : f32
    %64 = vector.broadcast %cst_29 : f32 to vector<8x256xf32>
    %65 = arith.maximumf %63, %64 : vector<8x256xf32>
    %c1_30 = arith.constant 1 : index
    %c0_31 = arith.constant 0 : index
    %c0_32 = arith.constant 0 : index
    %66 = vector.load %arg4[%c1_30, %c0_31, %c0_32] : memref<2x8x256xf32, #tpu.memory_space<vmem>>, vector<1x8x256xf32>
    %67 = vector.shape_cast %66 : vector<1x8x256xf32> to vector<8x256xf32>
    %68 = vector.shape_cast %65 : vector<8x256xf32> to vector<1x8x256xf32>
    tpu.vector_store %arg4[%c1_30, %c0_31, %c0_32], %68 {strides = array<i32>} : memref<2x8x256xf32, #tpu.memory_space<vmem>>, vector<1x8x256xf32>,
    return
  }
}

module attributes {stable_mosaic.version = 11 : i64} {
  func.func @kernel(%arg0: memref<2x72x64xf32, #tpu.memory_space<vmem>>, %arg1: memref<16x72xf32, #tpu.memory_space<vmem>>, %arg2: memref<16x1xf32, #tpu.memory_space<vmem>>, %arg3: memref<16x1xf32, #tpu.memory_space<vmem>>, %arg4: memref<2x16x64xf32, #tpu.memory_space<vmem>>) attributes {dimension_semantics = [], scalar_prefetch = 0 : i64, scratch_operands = 0 : i64, tpu.core_type = #tpu.core_type<tc>} {
    %c0 = arith.constant 0 : index
    %c0_0 = arith.constant 0 : index
    %0 = vector.load %arg1[%c0, %c0_0] : memref<16x72xf32, #tpu.memory_space<vmem>>, vector<16x72xf32>
    %c0_1 = arith.constant 0 : index
    %c0_2 = arith.constant 0 : index
    %1 = vector.load %arg2[%c0_1, %c0_2] : memref<16x1xf32, #tpu.memory_space<vmem>>, vector<16x1xf32>
    %c0_3 = arith.constant 0 : index
    %c0_4 = arith.constant 0 : index
    %2 = vector.load %arg3[%c0_3, %c0_4] : memref<16x1xf32, #tpu.memory_space<vmem>>, vector<16x1xf32>
    %c0_5 = arith.constant 0 : index
    %c0_6 = arith.constant 0 : index
    %c0_7 = arith.constant 0 : index
    %3 = vector.load %arg0[%c0_5, %c0_6, %c0_7] : memref<2x72x64xf32, #tpu.memory_space<vmem>>, vector<1x72x64xf32>
    %4 = vector.shape_cast %3 : vector<1x72x64xf32> to vector<72x64xf32>
    %cst = arith.constant dense<0.000000e+00> : vector<16x64xf32>
    %5 = tpu.matmul %0, %4, %cst {dimension_numbers = #tpu.dot_dimension_numbers<[1], [0], [0], [1], [0, 0, 1, 1], [], []>} : vector<16x72xf32>, vector<72x64xf32>, vector<16x64xf32> -> vector<16x64xf32>
    %cst_8 = arith.constant dense<0.000000e+00> : vector<16xf32>
    %6 = vector.multi_reduction <add>, %5, %cst_8 [1] : vector<16x64xf32> to vector<16xf32>
    %7 = vector.shape_cast %6 : vector<16xf32> to vector<16x1xf32>
    %cst_9 = arith.constant 6.400000e+01 : f32
    %8 = vector.broadcast %cst_9 : f32 to vector<16x1xf32>
    %9 = arith.divf %7, %8 : vector<16x1xf32>
    %10 = arith.mulf %5, %5 : vector<16x64xf32>
    %cst_10 = arith.constant dense<0.000000e+00> : vector<16xf32>
    %11 = vector.multi_reduction <add>, %10, %cst_10 [1] : vector<16x64xf32> to vector<16xf32>
    %12 = vector.shape_cast %11 : vector<16xf32> to vector<16x1xf32>
    %cst_11 = arith.constant 6.400000e+01 : f32
    %13 = vector.broadcast %cst_11 : f32 to vector<16x1xf32>
    %14 = arith.divf %12, %13 : vector<16x1xf32>
    %15 = arith.mulf %9, %9 : vector<16x1xf32>
    %16 = arith.subf %14, %15 : vector<16x1xf32>
    %cst_12 = arith.constant 0.000000e+00 : f32
    %17 = vector.broadcast %cst_12 : f32 to vector<16x1xf32>
    %18 = arith.maximumf %16, %17 : vector<16x1xf32>
    %cst_13 = arith.constant 9.99999974E-6 : f32
    %19 = vector.broadcast %cst_13 : f32 to vector<16x1xf32>
    %20 = arith.addf %18, %19 : vector<16x1xf32>
    %21 = math.rsqrt %20 : vector<16x1xf32>
    %22 = arith.mulf %1, %21 : vector<16x1xf32>
    %23 = arith.mulf %9, %22 : vector<16x1xf32>
    %24 = arith.subf %2, %23 : vector<16x1xf32>
    %25 = vector.broadcast %22 : vector<16x1xf32> to vector<16x64xf32>
    %26 = arith.mulf %5, %25 : vector<16x64xf32>
    %27 = vector.broadcast %24 : vector<16x1xf32> to vector<16x64xf32>
    %28 = arith.addf %26, %27 : vector<16x64xf32>
    %c0_14 = arith.constant 0 : index
    %c0_15 = arith.constant 0 : index
    %c0_16 = arith.constant 0 : index
    %29 = vector.load %arg4[%c0_14, %c0_15, %c0_16] : memref<2x16x64xf32, #tpu.memory_space<vmem>>, vector<1x16x64xf32>
    %30 = vector.shape_cast %29 : vector<1x16x64xf32> to vector<16x64xf32>
    %31 = vector.shape_cast %28 : vector<16x64xf32> to vector<1x16x64xf32>
    tpu.vector_store %arg4[%c0_14, %c0_15, %c0_16], %31 {strides = array<i32>} : memref<2x16x64xf32, #tpu.memory_space<vmem>>, vector<1x16x64xf32>,
    %c1 = arith.constant 1 : index
    %c0_17 = arith.constant 0 : index
    %c0_18 = arith.constant 0 : index
    %32 = vector.load %arg0[%c1, %c0_17, %c0_18] : memref<2x72x64xf32, #tpu.memory_space<vmem>>, vector<1x72x64xf32>
    %33 = vector.shape_cast %32 : vector<1x72x64xf32> to vector<72x64xf32>
    %cst_19 = arith.constant dense<0.000000e+00> : vector<16x64xf32>
    %34 = tpu.matmul %0, %33, %cst_19 {dimension_numbers = #tpu.dot_dimension_numbers<[1], [0], [0], [1], [0, 0, 1, 1], [], []>} : vector<16x72xf32>, vector<72x64xf32>, vector<16x64xf32> -> vector<16x64xf32>
    %cst_20 = arith.constant dense<0.000000e+00> : vector<16xf32>
    %35 = vector.multi_reduction <add>, %34, %cst_20 [1] : vector<16x64xf32> to vector<16xf32>
    %36 = vector.shape_cast %35 : vector<16xf32> to vector<16x1xf32>
    %cst_21 = arith.constant 6.400000e+01 : f32
    %37 = vector.broadcast %cst_21 : f32 to vector<16x1xf32>
    %38 = arith.divf %36, %37 : vector<16x1xf32>
    %39 = arith.mulf %34, %34 : vector<16x64xf32>
    %cst_22 = arith.constant dense<0.000000e+00> : vector<16xf32>
    %40 = vector.multi_reduction <add>, %39, %cst_22 [1] : vector<16x64xf32> to vector<16xf32>
    %41 = vector.shape_cast %40 : vector<16xf32> to vector<16x1xf32>
    %cst_23 = arith.constant 6.400000e+01 : f32
    %42 = vector.broadcast %cst_23 : f32 to vector<16x1xf32>
    %43 = arith.divf %41, %42 : vector<16x1xf32>
    %44 = arith.mulf %38, %38 : vector<16x1xf32>
    %45 = arith.subf %43, %44 : vector<16x1xf32>
    %cst_24 = arith.constant 0.000000e+00 : f32
    %46 = vector.broadcast %cst_24 : f32 to vector<16x1xf32>
    %47 = arith.maximumf %45, %46 : vector<16x1xf32>
    %cst_25 = arith.constant 9.99999974E-6 : f32
    %48 = vector.broadcast %cst_25 : f32 to vector<16x1xf32>
    %49 = arith.addf %47, %48 : vector<16x1xf32>
    %50 = math.rsqrt %49 : vector<16x1xf32>
    %51 = arith.mulf %1, %50 : vector<16x1xf32>
    %52 = arith.mulf %38, %51 : vector<16x1xf32>
    %53 = arith.subf %2, %52 : vector<16x1xf32>
    %54 = vector.broadcast %51 : vector<16x1xf32> to vector<16x64xf32>
    %55 = arith.mulf %34, %54 : vector<16x64xf32>
    %56 = vector.broadcast %53 : vector<16x1xf32> to vector<16x64xf32>
    %57 = arith.addf %55, %56 : vector<16x64xf32>
    %c1_26 = arith.constant 1 : index
    %c0_27 = arith.constant 0 : index
    %c0_28 = arith.constant 0 : index
    %58 = vector.load %arg4[%c1_26, %c0_27, %c0_28] : memref<2x16x64xf32, #tpu.memory_space<vmem>>, vector<1x16x64xf32>
    %59 = vector.shape_cast %58 : vector<1x16x64xf32> to vector<16x64xf32>
    %60 = vector.shape_cast %57 : vector<16x64xf32> to vector<1x16x64xf32>
    tpu.vector_store %arg4[%c1_26, %c0_27, %c0_28], %60 {strides = array<i32>} : memref<2x16x64xf32, #tpu.memory_space<vmem>>, vector<1x16x64xf32>,
    return
  }
}

module attributes {stable_mosaic.version = 11 : i64} {
  func.func @kernel(%arg0: memref<2x144x64xf32, #tpu.memory_space<vmem>>, %arg1: memref<16x144xf32, #tpu.memory_space<vmem>>, %arg2: memref<16x1xf32, #tpu.memory_space<vmem>>, %arg3: memref<16x1xf32, #tpu.memory_space<vmem>>, %arg4: memref<2x16x64xf32, #tpu.memory_space<vmem>>, %arg5: memref<2x16x64xf32, #tpu.memory_space<vmem>>) attributes {dimension_semantics = [], scalar_prefetch = 0 : i64, scratch_operands = 0 : i64, tpu.core_type = #tpu.core_type<tc>} {
    %c0 = arith.constant 0 : index
    %c0_0 = arith.constant 0 : index
    %0 = vector.load %arg1[%c0, %c0_0] : memref<16x144xf32, #tpu.memory_space<vmem>>, vector<16x144xf32>
    %c0_1 = arith.constant 0 : index
    %c0_2 = arith.constant 0 : index
    %1 = vector.load %arg2[%c0_1, %c0_2] : memref<16x1xf32, #tpu.memory_space<vmem>>, vector<16x1xf32>
    %c0_3 = arith.constant 0 : index
    %c0_4 = arith.constant 0 : index
    %2 = vector.load %arg3[%c0_3, %c0_4] : memref<16x1xf32, #tpu.memory_space<vmem>>, vector<16x1xf32>
    %c0_5 = arith.constant 0 : index
    %c0_6 = arith.constant 0 : index
    %c0_7 = arith.constant 0 : index
    %3 = vector.load %arg0[%c0_5, %c0_6, %c0_7] : memref<2x144x64xf32, #tpu.memory_space<vmem>>, vector<1x144x64xf32>
    %4 = vector.shape_cast %3 : vector<1x144x64xf32> to vector<144x64xf32>
    %cst = arith.constant dense<0.000000e+00> : vector<16x64xf32>
    %5 = tpu.matmul %0, %4, %cst {dimension_numbers = #tpu.dot_dimension_numbers<[1], [0], [0], [1], [0, 0, 1, 1], [], []>} : vector<16x144xf32>, vector<144x64xf32>, vector<16x64xf32> -> vector<16x64xf32>
    %cst_8 = arith.constant dense<0.000000e+00> : vector<16xf32>
    %6 = vector.multi_reduction <add>, %5, %cst_8 [1] : vector<16x64xf32> to vector<16xf32>
    %7 = vector.shape_cast %6 : vector<16xf32> to vector<16x1xf32>
    %cst_9 = arith.constant 6.400000e+01 : f32
    %8 = vector.broadcast %cst_9 : f32 to vector<16x1xf32>
    %9 = arith.divf %7, %8 : vector<16x1xf32>
    %10 = arith.mulf %5, %5 : vector<16x64xf32>
    %cst_10 = arith.constant dense<0.000000e+00> : vector<16xf32>
    %11 = vector.multi_reduction <add>, %10, %cst_10 [1] : vector<16x64xf32> to vector<16xf32>
    %12 = vector.shape_cast %11 : vector<16xf32> to vector<16x1xf32>
    %cst_11 = arith.constant 6.400000e+01 : f32
    %13 = vector.broadcast %cst_11 : f32 to vector<16x1xf32>
    %14 = arith.divf %12, %13 : vector<16x1xf32>
    %15 = arith.mulf %9, %9 : vector<16x1xf32>
    %16 = arith.subf %14, %15 : vector<16x1xf32>
    %cst_12 = arith.constant 0.000000e+00 : f32
    %17 = vector.broadcast %cst_12 : f32 to vector<16x1xf32>
    %18 = arith.maximumf %16, %17 : vector<16x1xf32>
    %cst_13 = arith.constant 9.99999974E-6 : f32
    %19 = vector.broadcast %cst_13 : f32 to vector<16x1xf32>
    %20 = arith.addf %18, %19 : vector<16x1xf32>
    %21 = math.rsqrt %20 : vector<16x1xf32>
    %22 = arith.mulf %1, %21 : vector<16x1xf32>
    %23 = arith.mulf %9, %22 : vector<16x1xf32>
    %24 = arith.subf %2, %23 : vector<16x1xf32>
    %25 = vector.broadcast %22 : vector<16x1xf32> to vector<16x64xf32>
    %26 = arith.mulf %5, %25 : vector<16x64xf32>
    %27 = vector.broadcast %24 : vector<16x1xf32> to vector<16x64xf32>
    %28 = arith.addf %26, %27 : vector<16x64xf32>
    %c0_14 = arith.constant 0 : index
    %c0_15 = arith.constant 0 : index
    %c0_16 = arith.constant 0 : index
    %29 = vector.load %arg4[%c0_14, %c0_15, %c0_16] : memref<2x16x64xf32, #tpu.memory_space<vmem>>, vector<1x16x64xf32>
    %30 = vector.shape_cast %29 : vector<1x16x64xf32> to vector<16x64xf32>
    %cst_17 = arith.constant 0.000000e+00 : f32
    %31 = vector.broadcast %cst_17 : f32 to vector<16x64xf32>
    %32 = arith.maximumf %30, %31 : vector<16x64xf32>
    %33 = arith.addf %28, %32 : vector<16x64xf32>
    %cst_18 = arith.constant 0.000000e+00 : f32
    %34 = vector.broadcast %cst_18 : f32 to vector<16x64xf32>
    %35 = arith.maximumf %33, %34 : vector<16x64xf32>
    %c0_19 = arith.constant 0 : index
    %c0_20 = arith.constant 0 : index
    %c0_21 = arith.constant 0 : index
    %36 = vector.load %arg5[%c0_19, %c0_20, %c0_21] : memref<2x16x64xf32, #tpu.memory_space<vmem>>, vector<1x16x64xf32>
    %37 = vector.shape_cast %36 : vector<1x16x64xf32> to vector<16x64xf32>
    %38 = vector.shape_cast %35 : vector<16x64xf32> to vector<1x16x64xf32>
    tpu.vector_store %arg5[%c0_19, %c0_20, %c0_21], %38 {strides = array<i32>} : memref<2x16x64xf32, #tpu.memory_space<vmem>>, vector<1x16x64xf32>,
    %c1 = arith.constant 1 : index
    %c0_22 = arith.constant 0 : index
    %c0_23 = arith.constant 0 : index
    %39 = vector.load %arg0[%c1, %c0_22, %c0_23] : memref<2x144x64xf32, #tpu.memory_space<vmem>>, vector<1x144x64xf32>
    %40 = vector.shape_cast %39 : vector<1x144x64xf32> to vector<144x64xf32>
    %cst_24 = arith.constant dense<0.000000e+00> : vector<16x64xf32>
    %41 = tpu.matmul %0, %40, %cst_24 {dimension_numbers = #tpu.dot_dimension_numbers<[1], [0], [0], [1], [0, 0, 1, 1], [], []>} : vector<16x144xf32>, vector<144x64xf32>, vector<16x64xf32> -> vector<16x64xf32>
    %cst_25 = arith.constant dense<0.000000e+00> : vector<16xf32>
    %42 = vector.multi_reduction <add>, %41, %cst_25 [1] : vector<16x64xf32> to vector<16xf32>
    %43 = vector.shape_cast %42 : vector<16xf32> to vector<16x1xf32>
    %cst_26 = arith.constant 6.400000e+01 : f32
    %44 = vector.broadcast %cst_26 : f32 to vector<16x1xf32>
    %45 = arith.divf %43, %44 : vector<16x1xf32>
    %46 = arith.mulf %41, %41 : vector<16x64xf32>
    %cst_27 = arith.constant dense<0.000000e+00> : vector<16xf32>
    %47 = vector.multi_reduction <add>, %46, %cst_27 [1] : vector<16x64xf32> to vector<16xf32>
    %48 = vector.shape_cast %47 : vector<16xf32> to vector<16x1xf32>
    %cst_28 = arith.constant 6.400000e+01 : f32
    %49 = vector.broadcast %cst_28 : f32 to vector<16x1xf32>
    %50 = arith.divf %48, %49 : vector<16x1xf32>
    %51 = arith.mulf %45, %45 : vector<16x1xf32>
    %52 = arith.subf %50, %51 : vector<16x1xf32>
    %cst_29 = arith.constant 0.000000e+00 : f32
    %53 = vector.broadcast %cst_29 : f32 to vector<16x1xf32>
    %54 = arith.maximumf %52, %53 : vector<16x1xf32>
    %cst_30 = arith.constant 9.99999974E-6 : f32
    %55 = vector.broadcast %cst_30 : f32 to vector<16x1xf32>
    %56 = arith.addf %54, %55 : vector<16x1xf32>
    %57 = math.rsqrt %56 : vector<16x1xf32>
    %58 = arith.mulf %1, %57 : vector<16x1xf32>
    %59 = arith.mulf %45, %58 : vector<16x1xf32>
    %60 = arith.subf %2, %59 : vector<16x1xf32>
    %61 = vector.broadcast %58 : vector<16x1xf32> to vector<16x64xf32>
    %62 = arith.mulf %41, %61 : vector<16x64xf32>
    %63 = vector.broadcast %60 : vector<16x1xf32> to vector<16x64xf32>
    %64 = arith.addf %62, %63 : vector<16x64xf32>
    %c1_31 = arith.constant 1 : index
    %c0_32 = arith.constant 0 : index
    %c0_33 = arith.constant 0 : index
    %65 = vector.load %arg4[%c1_31, %c0_32, %c0_33] : memref<2x16x64xf32, #tpu.memory_space<vmem>>, vector<1x16x64xf32>
    %66 = vector.shape_cast %65 : vector<1x16x64xf32> to vector<16x64xf32>
    %cst_34 = arith.constant 0.000000e+00 : f32
    %67 = vector.broadcast %cst_34 : f32 to vector<16x64xf32>
    %68 = arith.maximumf %66, %67 : vector<16x64xf32>
    %69 = arith.addf %64, %68 : vector<16x64xf32>
    %cst_35 = arith.constant 0.000000e+00 : f32
    %70 = vector.broadcast %cst_35 : f32 to vector<16x64xf32>
    %71 = arith.maximumf %69, %70 : vector<16x64xf32>
    %c1_36 = arith.constant 1 : index
    %c0_37 = arith.constant 0 : index
    %c0_38 = arith.constant 0 : index
    %72 = vector.load %arg5[%c1_36, %c0_37, %c0_38] : memref<2x16x64xf32, #tpu.memory_space<vmem>>, vector<1x16x64xf32>
    %73 = vector.shape_cast %72 : vector<1x16x64xf32> to vector<16x64xf32>
    %74 = vector.shape_cast %71 : vector<16x64xf32> to vector<1x16x64xf32>
    tpu.vector_store %arg5[%c1_36, %c0_37, %c0_38], %74 {strides = array<i32>} : memref<2x16x64xf32, #tpu.memory_space<vmem>>, vector<1x16x64xf32>,
    return
  }
}

module attributes {stable_mosaic.version = 11 : i64} {
  func.func @kernel(%arg0: memref<2x144x64xf32, #tpu.memory_space<vmem>>, %arg1: memref<16x144xf32, #tpu.memory_space<vmem>>, %arg2: memref<16x1xf32, #tpu.memory_space<vmem>>, %arg3: memref<16x1xf32, #tpu.memory_space<vmem>>, %arg4: memref<2x16x64xf32, #tpu.memory_space<vmem>>) attributes {dimension_semantics = [], scalar_prefetch = 0 : i64, scratch_operands = 0 : i64, tpu.core_type = #tpu.core_type<tc>} {
    %c0 = arith.constant 0 : index
    %c0_0 = arith.constant 0 : index
    %0 = vector.load %arg1[%c0, %c0_0] : memref<16x144xf32, #tpu.memory_space<vmem>>, vector<16x144xf32>
    %c0_1 = arith.constant 0 : index
    %c0_2 = arith.constant 0 : index
    %1 = vector.load %arg2[%c0_1, %c0_2] : memref<16x1xf32, #tpu.memory_space<vmem>>, vector<16x1xf32>
    %c0_3 = arith.constant 0 : index
    %c0_4 = arith.constant 0 : index
    %2 = vector.load %arg3[%c0_3, %c0_4] : memref<16x1xf32, #tpu.memory_space<vmem>>, vector<16x1xf32>
    %c0_5 = arith.constant 0 : index
    %c0_6 = arith.constant 0 : index
    %c0_7 = arith.constant 0 : index
    %3 = vector.load %arg0[%c0_5, %c0_6, %c0_7] : memref<2x144x64xf32, #tpu.memory_space<vmem>>, vector<1x144x64xf32>
    %4 = vector.shape_cast %3 : vector<1x144x64xf32> to vector<144x64xf32>
    %cst = arith.constant 0.000000e+00 : f32
    %5 = vector.broadcast %cst : f32 to vector<144x64xf32>
    %6 = arith.maximumf %4, %5 : vector<144x64xf32>
    %cst_8 = arith.constant dense<0.000000e+00> : vector<16x64xf32>
    %7 = tpu.matmul %0, %6, %cst_8 {dimension_numbers = #tpu.dot_dimension_numbers<[1], [0], [0], [1], [0, 0, 1, 1], [], []>} : vector<16x144xf32>, vector<144x64xf32>, vector<16x64xf32> -> vector<16x64xf32>
    %cst_9 = arith.constant dense<0.000000e+00> : vector<16xf32>
    %8 = vector.multi_reduction <add>, %7, %cst_9 [1] : vector<16x64xf32> to vector<16xf32>
    %9 = vector.shape_cast %8 : vector<16xf32> to vector<16x1xf32>
    %cst_10 = arith.constant 6.400000e+01 : f32
    %10 = vector.broadcast %cst_10 : f32 to vector<16x1xf32>
    %11 = arith.divf %9, %10 : vector<16x1xf32>
    %12 = arith.mulf %7, %7 : vector<16x64xf32>
    %cst_11 = arith.constant dense<0.000000e+00> : vector<16xf32>
    %13 = vector.multi_reduction <add>, %12, %cst_11 [1] : vector<16x64xf32> to vector<16xf32>
    %14 = vector.shape_cast %13 : vector<16xf32> to vector<16x1xf32>
    %cst_12 = arith.constant 6.400000e+01 : f32
    %15 = vector.broadcast %cst_12 : f32 to vector<16x1xf32>
    %16 = arith.divf %14, %15 : vector<16x1xf32>
    %17 = arith.mulf %11, %11 : vector<16x1xf32>
    %18 = arith.subf %16, %17 : vector<16x1xf32>
    %cst_13 = arith.constant 0.000000e+00 : f32
    %19 = vector.broadcast %cst_13 : f32 to vector<16x1xf32>
    %20 = arith.maximumf %18, %19 : vector<16x1xf32>
    %cst_14 = arith.constant 9.99999974E-6 : f32
    %21 = vector.broadcast %cst_14 : f32 to vector<16x1xf32>
    %22 = arith.addf %20, %21 : vector<16x1xf32>
    %23 = math.rsqrt %22 : vector<16x1xf32>
    %24 = arith.mulf %1, %23 : vector<16x1xf32>
    %25 = arith.mulf %11, %24 : vector<16x1xf32>
    %26 = arith.subf %2, %25 : vector<16x1xf32>
    %27 = vector.broadcast %24 : vector<16x1xf32> to vector<16x64xf32>
    %28 = arith.mulf %7, %27 : vector<16x64xf32>
    %29 = vector.broadcast %26 : vector<16x1xf32> to vector<16x64xf32>
    %30 = arith.addf %28, %29 : vector<16x64xf32>
    %cst_15 = arith.constant 0.000000e+00 : f32
    %31 = vector.broadcast %cst_15 : f32 to vector<16x64xf32>
    %32 = arith.maximumf %30, %31 : vector<16x64xf32>
    %c0_16 = arith.constant 0 : index
    %c0_17 = arith.constant 0 : index
    %c0_18 = arith.constant 0 : index
    %33 = vector.load %arg4[%c0_16, %c0_17, %c0_18] : memref<2x16x64xf32, #tpu.memory_space<vmem>>, vector<1x16x64xf32>
    %34 = vector.shape_cast %33 : vector<1x16x64xf32> to vector<16x64xf32>
    %35 = vector.shape_cast %32 : vector<16x64xf32> to vector<1x16x64xf32>
    tpu.vector_store %arg4[%c0_16, %c0_17, %c0_18], %35 {strides = array<i32>} : memref<2x16x64xf32, #tpu.memory_space<vmem>>, vector<1x16x64xf32>,
    %c1 = arith.constant 1 : index
    %c0_19 = arith.constant 0 : index
    %c0_20 = arith.constant 0 : index
    %36 = vector.load %arg0[%c1, %c0_19, %c0_20] : memref<2x144x64xf32, #tpu.memory_space<vmem>>, vector<1x144x64xf32>
    %37 = vector.shape_cast %36 : vector<1x144x64xf32> to vector<144x64xf32>
    %cst_21 = arith.constant 0.000000e+00 : f32
    %38 = vector.broadcast %cst_21 : f32 to vector<144x64xf32>
    %39 = arith.maximumf %37, %38 : vector<144x64xf32>
    %cst_22 = arith.constant dense<0.000000e+00> : vector<16x64xf32>
    %40 = tpu.matmul %0, %39, %cst_22 {dimension_numbers = #tpu.dot_dimension_numbers<[1], [0], [0], [1], [0, 0, 1, 1], [], []>} : vector<16x144xf32>, vector<144x64xf32>, vector<16x64xf32> -> vector<16x64xf32>
    %cst_23 = arith.constant dense<0.000000e+00> : vector<16xf32>
    %41 = vector.multi_reduction <add>, %40, %cst_23 [1] : vector<16x64xf32> to vector<16xf32>
    %42 = vector.shape_cast %41 : vector<16xf32> to vector<16x1xf32>
    %cst_24 = arith.constant 6.400000e+01 : f32
    %43 = vector.broadcast %cst_24 : f32 to vector<16x1xf32>
    %44 = arith.divf %42, %43 : vector<16x1xf32>
    %45 = arith.mulf %40, %40 : vector<16x64xf32>
    %cst_25 = arith.constant dense<0.000000e+00> : vector<16xf32>
    %46 = vector.multi_reduction <add>, %45, %cst_25 [1] : vector<16x64xf32> to vector<16xf32>
    %47 = vector.shape_cast %46 : vector<16xf32> to vector<16x1xf32>
    %cst_26 = arith.constant 6.400000e+01 : f32
    %48 = vector.broadcast %cst_26 : f32 to vector<16x1xf32>
    %49 = arith.divf %47, %48 : vector<16x1xf32>
    %50 = arith.mulf %44, %44 : vector<16x1xf32>
    %51 = arith.subf %49, %50 : vector<16x1xf32>
    %cst_27 = arith.constant 0.000000e+00 : f32
    %52 = vector.broadcast %cst_27 : f32 to vector<16x1xf32>
    %53 = arith.maximumf %51, %52 : vector<16x1xf32>
    %cst_28 = arith.constant 9.99999974E-6 : f32
    %54 = vector.broadcast %cst_28 : f32 to vector<16x1xf32>
    %55 = arith.addf %53, %54 : vector<16x1xf32>
    %56 = math.rsqrt %55 : vector<16x1xf32>
    %57 = arith.mulf %1, %56 : vector<16x1xf32>
    %58 = arith.mulf %44, %57 : vector<16x1xf32>
    %59 = arith.subf %2, %58 : vector<16x1xf32>
    %60 = vector.broadcast %57 : vector<16x1xf32> to vector<16x64xf32>
    %61 = arith.mulf %40, %60 : vector<16x64xf32>
    %62 = vector.broadcast %59 : vector<16x1xf32> to vector<16x64xf32>
    %63 = arith.addf %61, %62 : vector<16x64xf32>
    %cst_29 = arith.constant 0.000000e+00 : f32
    %64 = vector.broadcast %cst_29 : f32 to vector<16x64xf32>
    %65 = arith.maximumf %63, %64 : vector<16x64xf32>
    %c1_30 = arith.constant 1 : index
    %c0_31 = arith.constant 0 : index
    %c0_32 = arith.constant 0 : index
    %66 = vector.load %arg4[%c1_30, %c0_31, %c0_32] : memref<2x16x64xf32, #tpu.memory_space<vmem>>, vector<1x16x64xf32>
    %67 = vector.shape_cast %66 : vector<1x16x64xf32> to vector<16x64xf32>
    %68 = vector.shape_cast %65 : vector<16x64xf32> to vector<1x16x64xf32>
    tpu.vector_store %arg4[%c1_30, %c0_31, %c0_32], %68 {strides = array<i32>} : memref<2x16x64xf32, #tpu.memory_space<vmem>>, vector<1x16x64xf32>,
    return
  }
}

module attributes {stable_mosaic.version = 11 : i64} {
  func.func @kernel(%arg0: memref<2x144x16xf32, #tpu.memory_space<vmem>>, %arg1: memref<32x144xf32, #tpu.memory_space<vmem>>, %arg2: memref<32x1xf32, #tpu.memory_space<vmem>>, %arg3: memref<32x1xf32, #tpu.memory_space<vmem>>, %arg4: memref<2x32x16xf32, #tpu.memory_space<vmem>>) attributes {dimension_semantics = [], scalar_prefetch = 0 : i64, scratch_operands = 0 : i64, tpu.core_type = #tpu.core_type<tc>} {
    %c0 = arith.constant 0 : index
    %c0_0 = arith.constant 0 : index
    %0 = vector.load %arg1[%c0, %c0_0] : memref<32x144xf32, #tpu.memory_space<vmem>>, vector<32x144xf32>
    %c0_1 = arith.constant 0 : index
    %c0_2 = arith.constant 0 : index
    %1 = vector.load %arg2[%c0_1, %c0_2] : memref<32x1xf32, #tpu.memory_space<vmem>>, vector<32x1xf32>
    %c0_3 = arith.constant 0 : index
    %c0_4 = arith.constant 0 : index
    %2 = vector.load %arg3[%c0_3, %c0_4] : memref<32x1xf32, #tpu.memory_space<vmem>>, vector<32x1xf32>
    %c0_5 = arith.constant 0 : index
    %c0_6 = arith.constant 0 : index
    %c0_7 = arith.constant 0 : index
    %3 = vector.load %arg0[%c0_5, %c0_6, %c0_7] : memref<2x144x16xf32, #tpu.memory_space<vmem>>, vector<1x144x16xf32>
    %4 = vector.shape_cast %3 : vector<1x144x16xf32> to vector<144x16xf32>
    %cst = arith.constant dense<0.000000e+00> : vector<32x16xf32>
    %5 = tpu.matmul %0, %4, %cst {dimension_numbers = #tpu.dot_dimension_numbers<[1], [0], [0], [1], [0, 0, 1, 1], [], []>} : vector<32x144xf32>, vector<144x16xf32>, vector<32x16xf32> -> vector<32x16xf32>
    %cst_8 = arith.constant dense<0.000000e+00> : vector<32xf32>
    %6 = vector.multi_reduction <add>, %5, %cst_8 [1] : vector<32x16xf32> to vector<32xf32>
    %7 = vector.shape_cast %6 : vector<32xf32> to vector<32x1xf32>
    %cst_9 = arith.constant 1.600000e+01 : f32
    %8 = vector.broadcast %cst_9 : f32 to vector<32x1xf32>
    %9 = arith.divf %7, %8 : vector<32x1xf32>
    %10 = arith.mulf %5, %5 : vector<32x16xf32>
    %cst_10 = arith.constant dense<0.000000e+00> : vector<32xf32>
    %11 = vector.multi_reduction <add>, %10, %cst_10 [1] : vector<32x16xf32> to vector<32xf32>
    %12 = vector.shape_cast %11 : vector<32xf32> to vector<32x1xf32>
    %cst_11 = arith.constant 1.600000e+01 : f32
    %13 = vector.broadcast %cst_11 : f32 to vector<32x1xf32>
    %14 = arith.divf %12, %13 : vector<32x1xf32>
    %15 = arith.mulf %9, %9 : vector<32x1xf32>
    %16 = arith.subf %14, %15 : vector<32x1xf32>
    %cst_12 = arith.constant 0.000000e+00 : f32
    %17 = vector.broadcast %cst_12 : f32 to vector<32x1xf32>
    %18 = arith.maximumf %16, %17 : vector<32x1xf32>
    %cst_13 = arith.constant 9.99999974E-6 : f32
    %19 = vector.broadcast %cst_13 : f32 to vector<32x1xf32>
    %20 = arith.addf %18, %19 : vector<32x1xf32>
    %21 = math.rsqrt %20 : vector<32x1xf32>
    %22 = arith.mulf %1, %21 : vector<32x1xf32>
    %23 = arith.mulf %9, %22 : vector<32x1xf32>
    %24 = arith.subf %2, %23 : vector<32x1xf32>
    %25 = vector.broadcast %22 : vector<32x1xf32> to vector<32x16xf32>
    %26 = arith.mulf %5, %25 : vector<32x16xf32>
    %27 = vector.broadcast %24 : vector<32x1xf32> to vector<32x16xf32>
    %28 = arith.addf %26, %27 : vector<32x16xf32>
    %c0_14 = arith.constant 0 : index
    %c0_15 = arith.constant 0 : index
    %c0_16 = arith.constant 0 : index
    %29 = vector.load %arg4[%c0_14, %c0_15, %c0_16] : memref<2x32x16xf32, #tpu.memory_space<vmem>>, vector<1x32x16xf32>
    %30 = vector.shape_cast %29 : vector<1x32x16xf32> to vector<32x16xf32>
    %31 = vector.shape_cast %28 : vector<32x16xf32> to vector<1x32x16xf32>
    tpu.vector_store %arg4[%c0_14, %c0_15, %c0_16], %31 {strides = array<i32>} : memref<2x32x16xf32, #tpu.memory_space<vmem>>, vector<1x32x16xf32>,
    %c1 = arith.constant 1 : index
    %c0_17 = arith.constant 0 : index
    %c0_18 = arith.constant 0 : index
    %32 = vector.load %arg0[%c1, %c0_17, %c0_18] : memref<2x144x16xf32, #tpu.memory_space<vmem>>, vector<1x144x16xf32>
    %33 = vector.shape_cast %32 : vector<1x144x16xf32> to vector<144x16xf32>
    %cst_19 = arith.constant dense<0.000000e+00> : vector<32x16xf32>
    %34 = tpu.matmul %0, %33, %cst_19 {dimension_numbers = #tpu.dot_dimension_numbers<[1], [0], [0], [1], [0, 0, 1, 1], [], []>} : vector<32x144xf32>, vector<144x16xf32>, vector<32x16xf32> -> vector<32x16xf32>
    %cst_20 = arith.constant dense<0.000000e+00> : vector<32xf32>
    %35 = vector.multi_reduction <add>, %34, %cst_20 [1] : vector<32x16xf32> to vector<32xf32>
    %36 = vector.shape_cast %35 : vector<32xf32> to vector<32x1xf32>
    %cst_21 = arith.constant 1.600000e+01 : f32
    %37 = vector.broadcast %cst_21 : f32 to vector<32x1xf32>
    %38 = arith.divf %36, %37 : vector<32x1xf32>
    %39 = arith.mulf %34, %34 : vector<32x16xf32>
    %cst_22 = arith.constant dense<0.000000e+00> : vector<32xf32>
    %40 = vector.multi_reduction <add>, %39, %cst_22 [1] : vector<32x16xf32> to vector<32xf32>
    %41 = vector.shape_cast %40 : vector<32xf32> to vector<32x1xf32>
    %cst_23 = arith.constant 1.600000e+01 : f32
    %42 = vector.broadcast %cst_23 : f32 to vector<32x1xf32>
    %43 = arith.divf %41, %42 : vector<32x1xf32>
    %44 = arith.mulf %38, %38 : vector<32x1xf32>
    %45 = arith.subf %43, %44 : vector<32x1xf32>
    %cst_24 = arith.constant 0.000000e+00 : f32
    %46 = vector.broadcast %cst_24 : f32 to vector<32x1xf32>
    %47 = arith.maximumf %45, %46 : vector<32x1xf32>
    %cst_25 = arith.constant 9.99999974E-6 : f32
    %48 = vector.broadcast %cst_25 : f32 to vector<32x1xf32>
    %49 = arith.addf %47, %48 : vector<32x1xf32>
    %50 = math.rsqrt %49 : vector<32x1xf32>
    %51 = arith.mulf %1, %50 : vector<32x1xf32>
    %52 = arith.mulf %38, %51 : vector<32x1xf32>
    %53 = arith.subf %2, %52 : vector<32x1xf32>
    %54 = vector.broadcast %51 : vector<32x1xf32> to vector<32x16xf32>
    %55 = arith.mulf %34, %54 : vector<32x16xf32>
    %56 = vector.broadcast %53 : vector<32x1xf32> to vector<32x16xf32>
    %57 = arith.addf %55, %56 : vector<32x16xf32>
    %c1_26 = arith.constant 1 : index
    %c0_27 = arith.constant 0 : index
    %c0_28 = arith.constant 0 : index
    %58 = vector.load %arg4[%c1_26, %c0_27, %c0_28] : memref<2x32x16xf32, #tpu.memory_space<vmem>>, vector<1x32x16xf32>
    %59 = vector.shape_cast %58 : vector<1x32x16xf32> to vector<32x16xf32>
    %60 = vector.shape_cast %57 : vector<32x16xf32> to vector<1x32x16xf32>
    tpu.vector_store %arg4[%c1_26, %c0_27, %c0_28], %60 {strides = array<i32>} : memref<2x32x16xf32, #tpu.memory_space<vmem>>, vector<1x32x16xf32>,
    return
  }
}

module attributes {stable_mosaic.version = 11 : i64} {
  func.func @kernel(%arg0: memref<2x288x16xf32, #tpu.memory_space<vmem>>, %arg1: memref<32x288xf32, #tpu.memory_space<vmem>>, %arg2: memref<32x1xf32, #tpu.memory_space<vmem>>, %arg3: memref<32x1xf32, #tpu.memory_space<vmem>>, %arg4: memref<2x32x16xf32, #tpu.memory_space<vmem>>) attributes {dimension_semantics = [], scalar_prefetch = 0 : i64, scratch_operands = 0 : i64, tpu.core_type = #tpu.core_type<tc>} {
    %c0 = arith.constant 0 : index
    %c0_0 = arith.constant 0 : index
    %0 = vector.load %arg1[%c0, %c0_0] : memref<32x288xf32, #tpu.memory_space<vmem>>, vector<32x288xf32>
    %c0_1 = arith.constant 0 : index
    %c0_2 = arith.constant 0 : index
    %1 = vector.load %arg2[%c0_1, %c0_2] : memref<32x1xf32, #tpu.memory_space<vmem>>, vector<32x1xf32>
    %c0_3 = arith.constant 0 : index
    %c0_4 = arith.constant 0 : index
    %2 = vector.load %arg3[%c0_3, %c0_4] : memref<32x1xf32, #tpu.memory_space<vmem>>, vector<32x1xf32>
    %c0_5 = arith.constant 0 : index
    %c0_6 = arith.constant 0 : index
    %c0_7 = arith.constant 0 : index
    %3 = vector.load %arg0[%c0_5, %c0_6, %c0_7] : memref<2x288x16xf32, #tpu.memory_space<vmem>>, vector<1x288x16xf32>
    %4 = vector.shape_cast %3 : vector<1x288x16xf32> to vector<288x16xf32>
    %cst = arith.constant 0.000000e+00 : f32
    %5 = vector.broadcast %cst : f32 to vector<288x16xf32>
    %6 = arith.maximumf %4, %5 : vector<288x16xf32>
    %cst_8 = arith.constant dense<0.000000e+00> : vector<32x16xf32>
    %7 = tpu.matmul %0, %6, %cst_8 {dimension_numbers = #tpu.dot_dimension_numbers<[1], [0], [0], [1], [0, 0, 1, 1], [], []>} : vector<32x288xf32>, vector<288x16xf32>, vector<32x16xf32> -> vector<32x16xf32>
    %cst_9 = arith.constant dense<0.000000e+00> : vector<32xf32>
    %8 = vector.multi_reduction <add>, %7, %cst_9 [1] : vector<32x16xf32> to vector<32xf32>
    %9 = vector.shape_cast %8 : vector<32xf32> to vector<32x1xf32>
    %cst_10 = arith.constant 1.600000e+01 : f32
    %10 = vector.broadcast %cst_10 : f32 to vector<32x1xf32>
    %11 = arith.divf %9, %10 : vector<32x1xf32>
    %12 = arith.mulf %7, %7 : vector<32x16xf32>
    %cst_11 = arith.constant dense<0.000000e+00> : vector<32xf32>
    %13 = vector.multi_reduction <add>, %12, %cst_11 [1] : vector<32x16xf32> to vector<32xf32>
    %14 = vector.shape_cast %13 : vector<32xf32> to vector<32x1xf32>
    %cst_12 = arith.constant 1.600000e+01 : f32
    %15 = vector.broadcast %cst_12 : f32 to vector<32x1xf32>
    %16 = arith.divf %14, %15 : vector<32x1xf32>
    %17 = arith.mulf %11, %11 : vector<32x1xf32>
    %18 = arith.subf %16, %17 : vector<32x1xf32>
    %cst_13 = arith.constant 0.000000e+00 : f32
    %19 = vector.broadcast %cst_13 : f32 to vector<32x1xf32>
    %20 = arith.maximumf %18, %19 : vector<32x1xf32>
    %cst_14 = arith.constant 9.99999974E-6 : f32
    %21 = vector.broadcast %cst_14 : f32 to vector<32x1xf32>
    %22 = arith.addf %20, %21 : vector<32x1xf32>
    %23 = math.rsqrt %22 : vector<32x1xf32>
    %24 = arith.mulf %1, %23 : vector<32x1xf32>
    %25 = arith.mulf %11, %24 : vector<32x1xf32>
    %26 = arith.subf %2, %25 : vector<32x1xf32>
    %27 = vector.broadcast %24 : vector<32x1xf32> to vector<32x16xf32>
    %28 = arith.mulf %7, %27 : vector<32x16xf32>
    %29 = vector.broadcast %26 : vector<32x1xf32> to vector<32x16xf32>
    %30 = arith.addf %28, %29 : vector<32x16xf32>
    %cst_15 = arith.constant 0.000000e+00 : f32
    %31 = vector.broadcast %cst_15 : f32 to vector<32x16xf32>
    %32 = arith.maximumf %30, %31 : vector<32x16xf32>
    %c0_16 = arith.constant 0 : index
    %c0_17 = arith.constant 0 : index
    %c0_18 = arith.constant 0 : index
    %33 = vector.load %arg4[%c0_16, %c0_17, %c0_18] : memref<2x32x16xf32, #tpu.memory_space<vmem>>, vector<1x32x16xf32>
    %34 = vector.shape_cast %33 : vector<1x32x16xf32> to vector<32x16xf32>
    %35 = vector.shape_cast %32 : vector<32x16xf32> to vector<1x32x16xf32>
    tpu.vector_store %arg4[%c0_16, %c0_17, %c0_18], %35 {strides = array<i32>} : memref<2x32x16xf32, #tpu.memory_space<vmem>>, vector<1x32x16xf32>,
    %c1 = arith.constant 1 : index
    %c0_19 = arith.constant 0 : index
    %c0_20 = arith.constant 0 : index
    %36 = vector.load %arg0[%c1, %c0_19, %c0_20] : memref<2x288x16xf32, #tpu.memory_space<vmem>>, vector<1x288x16xf32>
    %37 = vector.shape_cast %36 : vector<1x288x16xf32> to vector<288x16xf32>
    %cst_21 = arith.constant 0.000000e+00 : f32
    %38 = vector.broadcast %cst_21 : f32 to vector<288x16xf32>
    %39 = arith.maximumf %37, %38 : vector<288x16xf32>
    %cst_22 = arith.constant dense<0.000000e+00> : vector<32x16xf32>
    %40 = tpu.matmul %0, %39, %cst_22 {dimension_numbers = #tpu.dot_dimension_numbers<[1], [0], [0], [1], [0, 0, 1, 1], [], []>} : vector<32x288xf32>, vector<288x16xf32>, vector<32x16xf32> -> vector<32x16xf32>
    %cst_23 = arith.constant dense<0.000000e+00> : vector<32xf32>
    %41 = vector.multi_reduction <add>, %40, %cst_23 [1] : vector<32x16xf32> to vector<32xf32>
    %42 = vector.shape_cast %41 : vector<32xf32> to vector<32x1xf32>
    %cst_24 = arith.constant 1.600000e+01 : f32
    %43 = vector.broadcast %cst_24 : f32 to vector<32x1xf32>
    %44 = arith.divf %42, %43 : vector<32x1xf32>
    %45 = arith.mulf %40, %40 : vector<32x16xf32>
    %cst_25 = arith.constant dense<0.000000e+00> : vector<32xf32>
    %46 = vector.multi_reduction <add>, %45, %cst_25 [1] : vector<32x16xf32> to vector<32xf32>
    %47 = vector.shape_cast %46 : vector<32xf32> to vector<32x1xf32>
    %cst_26 = arith.constant 1.600000e+01 : f32
    %48 = vector.broadcast %cst_26 : f32 to vector<32x1xf32>
    %49 = arith.divf %47, %48 : vector<32x1xf32>
    %50 = arith.mulf %44, %44 : vector<32x1xf32>
    %51 = arith.subf %49, %50 : vector<32x1xf32>
    %cst_27 = arith.constant 0.000000e+00 : f32
    %52 = vector.broadcast %cst_27 : f32 to vector<32x1xf32>
    %53 = arith.maximumf %51, %52 : vector<32x1xf32>
    %cst_28 = arith.constant 9.99999974E-6 : f32
    %54 = vector.broadcast %cst_28 : f32 to vector<32x1xf32>
    %55 = arith.addf %53, %54 : vector<32x1xf32>
    %56 = math.rsqrt %55 : vector<32x1xf32>
    %57 = arith.mulf %1, %56 : vector<32x1xf32>
    %58 = arith.mulf %44, %57 : vector<32x1xf32>
    %59 = arith.subf %2, %58 : vector<32x1xf32>
    %60 = vector.broadcast %57 : vector<32x1xf32> to vector<32x16xf32>
    %61 = arith.mulf %40, %60 : vector<32x16xf32>
    %62 = vector.broadcast %59 : vector<32x1xf32> to vector<32x16xf32>
    %63 = arith.addf %61, %62 : vector<32x16xf32>
    %cst_29 = arith.constant 0.000000e+00 : f32
    %64 = vector.broadcast %cst_29 : f32 to vector<32x16xf32>
    %65 = arith.maximumf %63, %64 : vector<32x16xf32>
    %c1_30 = arith.constant 1 : index
    %c0_31 = arith.constant 0 : index
    %c0_32 = arith.constant 0 : index
    %66 = vector.load %arg4[%c1_30, %c0_31, %c0_32] : memref<2x32x16xf32, #tpu.memory_space<vmem>>, vector<1x32x16xf32>
    %67 = vector.shape_cast %66 : vector<1x32x16xf32> to vector<32x16xf32>
    %68 = vector.shape_cast %65 : vector<32x16xf32> to vector<1x32x16xf32>
    tpu.vector_store %arg4[%c1_30, %c0_31, %c0_32], %68 {strides = array<i32>} : memref<2x32x16xf32, #tpu.memory_space<vmem>>, vector<1x32x16xf32>,
    return
  }
}

module attributes {stable_mosaic.version = 11 : i64} {
  func.func @kernel(%arg0: memref<2x288x16xf32, #tpu.memory_space<vmem>>, %arg1: memref<32x288xf32, #tpu.memory_space<vmem>>, %arg2: memref<32x1xf32, #tpu.memory_space<vmem>>, %arg3: memref<32x1xf32, #tpu.memory_space<vmem>>, %arg4: memref<2x32x16xf32, #tpu.memory_space<vmem>>) attributes {dimension_semantics = [], scalar_prefetch = 0 : i64, scratch_operands = 0 : i64, tpu.core_type = #tpu.core_type<tc>} {
    %c0 = arith.constant 0 : index
    %c0_0 = arith.constant 0 : index
    %0 = vector.load %arg1[%c0, %c0_0] : memref<32x288xf32, #tpu.memory_space<vmem>>, vector<32x288xf32>
    %c0_1 = arith.constant 0 : index
    %c0_2 = arith.constant 0 : index
    %1 = vector.load %arg2[%c0_1, %c0_2] : memref<32x1xf32, #tpu.memory_space<vmem>>, vector<32x1xf32>
    %c0_3 = arith.constant 0 : index
    %c0_4 = arith.constant 0 : index
    %2 = vector.load %arg3[%c0_3, %c0_4] : memref<32x1xf32, #tpu.memory_space<vmem>>, vector<32x1xf32>
    %c0_5 = arith.constant 0 : index
    %c0_6 = arith.constant 0 : index
    %c0_7 = arith.constant 0 : index
    %3 = vector.load %arg0[%c0_5, %c0_6, %c0_7] : memref<2x288x16xf32, #tpu.memory_space<vmem>>, vector<1x288x16xf32>
    %4 = vector.shape_cast %3 : vector<1x288x16xf32> to vector<288x16xf32>
    %cst = arith.constant dense<0.000000e+00> : vector<32x16xf32>
    %5 = tpu.matmul %0, %4, %cst {dimension_numbers = #tpu.dot_dimension_numbers<[1], [0], [0], [1], [0, 0, 1, 1], [], []>} : vector<32x288xf32>, vector<288x16xf32>, vector<32x16xf32> -> vector<32x16xf32>
    %cst_8 = arith.constant dense<0.000000e+00> : vector<32xf32>
    %6 = vector.multi_reduction <add>, %5, %cst_8 [1] : vector<32x16xf32> to vector<32xf32>
    %7 = vector.shape_cast %6 : vector<32xf32> to vector<32x1xf32>
    %cst_9 = arith.constant 1.600000e+01 : f32
    %8 = vector.broadcast %cst_9 : f32 to vector<32x1xf32>
    %9 = arith.divf %7, %8 : vector<32x1xf32>
    %10 = arith.mulf %5, %5 : vector<32x16xf32>
    %cst_10 = arith.constant dense<0.000000e+00> : vector<32xf32>
    %11 = vector.multi_reduction <add>, %10, %cst_10 [1] : vector<32x16xf32> to vector<32xf32>
    %12 = vector.shape_cast %11 : vector<32xf32> to vector<32x1xf32>
    %cst_11 = arith.constant 1.600000e+01 : f32
    %13 = vector.broadcast %cst_11 : f32 to vector<32x1xf32>
    %14 = arith.divf %12, %13 : vector<32x1xf32>
    %15 = arith.mulf %9, %9 : vector<32x1xf32>
    %16 = arith.subf %14, %15 : vector<32x1xf32>
    %cst_12 = arith.constant 0.000000e+00 : f32
    %17 = vector.broadcast %cst_12 : f32 to vector<32x1xf32>
    %18 = arith.maximumf %16, %17 : vector<32x1xf32>
    %cst_13 = arith.constant 9.99999974E-6 : f32
    %19 = vector.broadcast %cst_13 : f32 to vector<32x1xf32>
    %20 = arith.addf %18, %19 : vector<32x1xf32>
    %21 = math.rsqrt %20 : vector<32x1xf32>
    %22 = arith.mulf %1, %21 : vector<32x1xf32>
    %23 = arith.mulf %9, %22 : vector<32x1xf32>
    %24 = arith.subf %2, %23 : vector<32x1xf32>
    %25 = vector.broadcast %22 : vector<32x1xf32> to vector<32x16xf32>
    %26 = arith.mulf %5, %25 : vector<32x16xf32>
    %27 = vector.broadcast %24 : vector<32x1xf32> to vector<32x16xf32>
    %28 = arith.addf %26, %27 : vector<32x16xf32>
    %cst_14 = arith.constant 0.000000e+00 : f32
    %29 = vector.broadcast %cst_14 : f32 to vector<32x16xf32>
    %30 = arith.maximumf %28, %29 : vector<32x16xf32>
    %c0_15 = arith.constant 0 : index
    %c0_16 = arith.constant 0 : index
    %c0_17 = arith.constant 0 : index
    %31 = vector.load %arg4[%c0_15, %c0_16, %c0_17] : memref<2x32x16xf32, #tpu.memory_space<vmem>>, vector<1x32x16xf32>
    %32 = vector.shape_cast %31 : vector<1x32x16xf32> to vector<32x16xf32>
    %33 = vector.shape_cast %30 : vector<32x16xf32> to vector<1x32x16xf32>
    tpu.vector_store %arg4[%c0_15, %c0_16, %c0_17], %33 {strides = array<i32>} : memref<2x32x16xf32, #tpu.memory_space<vmem>>, vector<1x32x16xf32>,
    %c1 = arith.constant 1 : index
    %c0_18 = arith.constant 0 : index
    %c0_19 = arith.constant 0 : index
    %34 = vector.load %arg0[%c1, %c0_18, %c0_19] : memref<2x288x16xf32, #tpu.memory_space<vmem>>, vector<1x288x16xf32>
    %35 = vector.shape_cast %34 : vector<1x288x16xf32> to vector<288x16xf32>
    %cst_20 = arith.constant dense<0.000000e+00> : vector<32x16xf32>
    %36 = tpu.matmul %0, %35, %cst_20 {dimension_numbers = #tpu.dot_dimension_numbers<[1], [0], [0], [1], [0, 0, 1, 1], [], []>} : vector<32x288xf32>, vector<288x16xf32>, vector<32x16xf32> -> vector<32x16xf32>
    %cst_21 = arith.constant dense<0.000000e+00> : vector<32xf32>
    %37 = vector.multi_reduction <add>, %36, %cst_21 [1] : vector<32x16xf32> to vector<32xf32>
    %38 = vector.shape_cast %37 : vector<32xf32> to vector<32x1xf32>
    %cst_22 = arith.constant 1.600000e+01 : f32
    %39 = vector.broadcast %cst_22 : f32 to vector<32x1xf32>
    %40 = arith.divf %38, %39 : vector<32x1xf32>
    %41 = arith.mulf %36, %36 : vector<32x16xf32>
    %cst_23 = arith.constant dense<0.000000e+00> : vector<32xf32>
    %42 = vector.multi_reduction <add>, %41, %cst_23 [1] : vector<32x16xf32> to vector<32xf32>
    %43 = vector.shape_cast %42 : vector<32xf32> to vector<32x1xf32>
    %cst_24 = arith.constant 1.600000e+01 : f32
    %44 = vector.broadcast %cst_24 : f32 to vector<32x1xf32>
    %45 = arith.divf %43, %44 : vector<32x1xf32>
    %46 = arith.mulf %40, %40 : vector<32x1xf32>
    %47 = arith.subf %45, %46 : vector<32x1xf32>
    %cst_25 = arith.constant 0.000000e+00 : f32
    %48 = vector.broadcast %cst_25 : f32 to vector<32x1xf32>
    %49 = arith.maximumf %47, %48 : vector<32x1xf32>
    %cst_26 = arith.constant 9.99999974E-6 : f32
    %50 = vector.broadcast %cst_26 : f32 to vector<32x1xf32>
    %51 = arith.addf %49, %50 : vector<32x1xf32>
    %52 = math.rsqrt %51 : vector<32x1xf32>
    %53 = arith.mulf %1, %52 : vector<32x1xf32>
    %54 = arith.mulf %40, %53 : vector<32x1xf32>
    %55 = arith.subf %2, %54 : vector<32x1xf32>
    %56 = vector.broadcast %53 : vector<32x1xf32> to vector<32x16xf32>
    %57 = arith.mulf %36, %56 : vector<32x16xf32>
    %58 = vector.broadcast %55 : vector<32x1xf32> to vector<32x16xf32>
    %59 = arith.addf %57, %58 : vector<32x16xf32>
    %cst_27 = arith.constant 0.000000e+00 : f32
    %60 = vector.broadcast %cst_27 : f32 to vector<32x16xf32>
    %61 = arith.maximumf %59, %60 : vector<32x16xf32>
    %c1_28 = arith.constant 1 : index
    %c0_29 = arith.constant 0 : index
    %c0_30 = arith.constant 0 : index
    %62 = vector.load %arg4[%c1_28, %c0_29, %c0_30] : memref<2x32x16xf32, #tpu.memory_space<vmem>>, vector<1x32x16xf32>
    %63 = vector.shape_cast %62 : vector<1x32x16xf32> to vector<32x16xf32>
    %64 = vector.shape_cast %61 : vector<32x16xf32> to vector<1x32x16xf32>
    tpu.vector_store %arg4[%c1_28, %c0_29, %c0_30], %64 {strides = array<i32>} : memref<2x32x16xf32, #tpu.memory_space<vmem>>, vector<1x32x16xf32>,
    return
  }
}

module attributes {stable_mosaic.version = 11 : i64} {
  func.func @kernel(%arg0: memref<2x288x16xf32, #tpu.memory_space<vmem>>, %arg1: memref<32x288xf32, #tpu.memory_space<vmem>>, %arg2: memref<32x1xf32, #tpu.memory_space<vmem>>, %arg3: memref<32x1xf32, #tpu.memory_space<vmem>>, %arg4: memref<2x32x16xf32, #tpu.memory_space<vmem>>, %arg5: memref<2x32x16xf32, #tpu.memory_space<vmem>>) attributes {dimension_semantics = [], scalar_prefetch = 0 : i64, scratch_operands = 0 : i64, tpu.core_type = #tpu.core_type<tc>} {
    %c0 = arith.constant 0 : index
    %c0_0 = arith.constant 0 : index
    %0 = vector.load %arg1[%c0, %c0_0] : memref<32x288xf32, #tpu.memory_space<vmem>>, vector<32x288xf32>
    %c0_1 = arith.constant 0 : index
    %c0_2 = arith.constant 0 : index
    %1 = vector.load %arg2[%c0_1, %c0_2] : memref<32x1xf32, #tpu.memory_space<vmem>>, vector<32x1xf32>
    %c0_3 = arith.constant 0 : index
    %c0_4 = arith.constant 0 : index
    %2 = vector.load %arg3[%c0_3, %c0_4] : memref<32x1xf32, #tpu.memory_space<vmem>>, vector<32x1xf32>
    %c0_5 = arith.constant 0 : index
    %c0_6 = arith.constant 0 : index
    %c0_7 = arith.constant 0 : index
    %3 = vector.load %arg0[%c0_5, %c0_6, %c0_7] : memref<2x288x16xf32, #tpu.memory_space<vmem>>, vector<1x288x16xf32>
    %4 = vector.shape_cast %3 : vector<1x288x16xf32> to vector<288x16xf32>
    %cst = arith.constant dense<0.000000e+00> : vector<32x16xf32>
    %5 = tpu.matmul %0, %4, %cst {dimension_numbers = #tpu.dot_dimension_numbers<[1], [0], [0], [1], [0, 0, 1, 1], [], []>} : vector<32x288xf32>, vector<288x16xf32>, vector<32x16xf32> -> vector<32x16xf32>
    %cst_8 = arith.constant dense<0.000000e+00> : vector<32xf32>
    %6 = vector.multi_reduction <add>, %5, %cst_8 [1] : vector<32x16xf32> to vector<32xf32>
    %7 = vector.shape_cast %6 : vector<32xf32> to vector<32x1xf32>
    %cst_9 = arith.constant 1.600000e+01 : f32
    %8 = vector.broadcast %cst_9 : f32 to vector<32x1xf32>
    %9 = arith.divf %7, %8 : vector<32x1xf32>
    %10 = arith.mulf %5, %5 : vector<32x16xf32>
    %cst_10 = arith.constant dense<0.000000e+00> : vector<32xf32>
    %11 = vector.multi_reduction <add>, %10, %cst_10 [1] : vector<32x16xf32> to vector<32xf32>
    %12 = vector.shape_cast %11 : vector<32xf32> to vector<32x1xf32>
    %cst_11 = arith.constant 1.600000e+01 : f32
    %13 = vector.broadcast %cst_11 : f32 to vector<32x1xf32>
    %14 = arith.divf %12, %13 : vector<32x1xf32>
    %15 = arith.mulf %9, %9 : vector<32x1xf32>
    %16 = arith.subf %14, %15 : vector<32x1xf32>
    %cst_12 = arith.constant 0.000000e+00 : f32
    %17 = vector.broadcast %cst_12 : f32 to vector<32x1xf32>
    %18 = arith.maximumf %16, %17 : vector<32x1xf32>
    %cst_13 = arith.constant 9.99999974E-6 : f32
    %19 = vector.broadcast %cst_13 : f32 to vector<32x1xf32>
    %20 = arith.addf %18, %19 : vector<32x1xf32>
    %21 = math.rsqrt %20 : vector<32x1xf32>
    %22 = arith.mulf %1, %21 : vector<32x1xf32>
    %23 = arith.mulf %9, %22 : vector<32x1xf32>
    %24 = arith.subf %2, %23 : vector<32x1xf32>
    %25 = vector.broadcast %22 : vector<32x1xf32> to vector<32x16xf32>
    %26 = arith.mulf %5, %25 : vector<32x16xf32>
    %27 = vector.broadcast %24 : vector<32x1xf32> to vector<32x16xf32>
    %28 = arith.addf %26, %27 : vector<32x16xf32>
    %c0_14 = arith.constant 0 : index
    %c0_15 = arith.constant 0 : index
    %c0_16 = arith.constant 0 : index
    %29 = vector.load %arg4[%c0_14, %c0_15, %c0_16] : memref<2x32x16xf32, #tpu.memory_space<vmem>>, vector<1x32x16xf32>
    %30 = vector.shape_cast %29 : vector<1x32x16xf32> to vector<32x16xf32>
    %cst_17 = arith.constant 0.000000e+00 : f32
    %31 = vector.broadcast %cst_17 : f32 to vector<32x16xf32>
    %32 = arith.maximumf %30, %31 : vector<32x16xf32>
    %33 = arith.addf %28, %32 : vector<32x16xf32>
    %cst_18 = arith.constant 0.000000e+00 : f32
    %34 = vector.broadcast %cst_18 : f32 to vector<32x16xf32>
    %35 = arith.maximumf %33, %34 : vector<32x16xf32>
    %c0_19 = arith.constant 0 : index
    %c0_20 = arith.constant 0 : index
    %c0_21 = arith.constant 0 : index
    %36 = vector.load %arg5[%c0_19, %c0_20, %c0_21] : memref<2x32x16xf32, #tpu.memory_space<vmem>>, vector<1x32x16xf32>
    %37 = vector.shape_cast %36 : vector<1x32x16xf32> to vector<32x16xf32>
    %38 = vector.shape_cast %35 : vector<32x16xf32> to vector<1x32x16xf32>
    tpu.vector_store %arg5[%c0_19, %c0_20, %c0_21], %38 {strides = array<i32>} : memref<2x32x16xf32, #tpu.memory_space<vmem>>, vector<1x32x16xf32>,
    %c1 = arith.constant 1 : index
    %c0_22 = arith.constant 0 : index
    %c0_23 = arith.constant 0 : index
    %39 = vector.load %arg0[%c1, %c0_22, %c0_23] : memref<2x288x16xf32, #tpu.memory_space<vmem>>, vector<1x288x16xf32>
    %40 = vector.shape_cast %39 : vector<1x288x16xf32> to vector<288x16xf32>
    %cst_24 = arith.constant dense<0.000000e+00> : vector<32x16xf32>
    %41 = tpu.matmul %0, %40, %cst_24 {dimension_numbers = #tpu.dot_dimension_numbers<[1], [0], [0], [1], [0, 0, 1, 1], [], []>} : vector<32x288xf32>, vector<288x16xf32>, vector<32x16xf32> -> vector<32x16xf32>
    %cst_25 = arith.constant dense<0.000000e+00> : vector<32xf32>
    %42 = vector.multi_reduction <add>, %41, %cst_25 [1] : vector<32x16xf32> to vector<32xf32>
    %43 = vector.shape_cast %42 : vector<32xf32> to vector<32x1xf32>
    %cst_26 = arith.constant 1.600000e+01 : f32
    %44 = vector.broadcast %cst_26 : f32 to vector<32x1xf32>
    %45 = arith.divf %43, %44 : vector<32x1xf32>
    %46 = arith.mulf %41, %41 : vector<32x16xf32>
    %cst_27 = arith.constant dense<0.000000e+00> : vector<32xf32>
    %47 = vector.multi_reduction <add>, %46, %cst_27 [1] : vector<32x16xf32> to vector<32xf32>
    %48 = vector.shape_cast %47 : vector<32xf32> to vector<32x1xf32>
    %cst_28 = arith.constant 1.600000e+01 : f32
    %49 = vector.broadcast %cst_28 : f32 to vector<32x1xf32>
    %50 = arith.divf %48, %49 : vector<32x1xf32>
    %51 = arith.mulf %45, %45 : vector<32x1xf32>
    %52 = arith.subf %50, %51 : vector<32x1xf32>
    %cst_29 = arith.constant 0.000000e+00 : f32
    %53 = vector.broadcast %cst_29 : f32 to vector<32x1xf32>
    %54 = arith.maximumf %52, %53 : vector<32x1xf32>
    %cst_30 = arith.constant 9.99999974E-6 : f32
    %55 = vector.broadcast %cst_30 : f32 to vector<32x1xf32>
    %56 = arith.addf %54, %55 : vector<32x1xf32>
    %57 = math.rsqrt %56 : vector<32x1xf32>
    %58 = arith.mulf %1, %57 : vector<32x1xf32>
    %59 = arith.mulf %45, %58 : vector<32x1xf32>
    %60 = arith.subf %2, %59 : vector<32x1xf32>
    %61 = vector.broadcast %58 : vector<32x1xf32> to vector<32x16xf32>
    %62 = arith.mulf %41, %61 : vector<32x16xf32>
    %63 = vector.broadcast %60 : vector<32x1xf32> to vector<32x16xf32>
    %64 = arith.addf %62, %63 : vector<32x16xf32>
    %c1_31 = arith.constant 1 : index
    %c0_32 = arith.constant 0 : index
    %c0_33 = arith.constant 0 : index
    %65 = vector.load %arg4[%c1_31, %c0_32, %c0_33] : memref<2x32x16xf32, #tpu.memory_space<vmem>>, vector<1x32x16xf32>
    %66 = vector.shape_cast %65 : vector<1x32x16xf32> to vector<32x16xf32>
    %cst_34 = arith.constant 0.000000e+00 : f32
    %67 = vector.broadcast %cst_34 : f32 to vector<32x16xf32>
    %68 = arith.maximumf %66, %67 : vector<32x16xf32>
    %69 = arith.addf %64, %68 : vector<32x16xf32>
    %cst_35 = arith.constant 0.000000e+00 : f32
    %70 = vector.broadcast %cst_35 : f32 to vector<32x16xf32>
    %71 = arith.maximumf %69, %70 : vector<32x16xf32>
    %c1_36 = arith.constant 1 : index
    %c0_37 = arith.constant 0 : index
    %c0_38 = arith.constant 0 : index
    %72 = vector.load %arg5[%c1_36, %c0_37, %c0_38] : memref<2x32x16xf32, #tpu.memory_space<vmem>>, vector<1x32x16xf32>
    %73 = vector.shape_cast %72 : vector<1x32x16xf32> to vector<32x16xf32>
    %74 = vector.shape_cast %71 : vector<32x16xf32> to vector<1x32x16xf32>
    tpu.vector_store %arg5[%c1_36, %c0_37, %c0_38], %74 {strides = array<i32>} : memref<2x32x16xf32, #tpu.memory_space<vmem>>, vector<1x32x16xf32>,
    return
  }
}

module attributes {stable_mosaic.version = 11 : i64} {
  func.func @kernel(%arg0: memref<2x288x16xf32, #tpu.memory_space<vmem>>, %arg1: memref<32x288xf32, #tpu.memory_space<vmem>>, %arg2: memref<32x1xf32, #tpu.memory_space<vmem>>, %arg3: memref<32x1xf32, #tpu.memory_space<vmem>>, %arg4: memref<2x32x16xf32, #tpu.memory_space<vmem>>, %arg5: memref<2x32x16xf32, #tpu.memory_space<vmem>>) attributes {dimension_semantics = [], scalar_prefetch = 0 : i64, scratch_operands = 0 : i64, tpu.core_type = #tpu.core_type<tc>} {
    %c0 = arith.constant 0 : index
    %c0_0 = arith.constant 0 : index
    %0 = vector.load %arg1[%c0, %c0_0] : memref<32x288xf32, #tpu.memory_space<vmem>>, vector<32x288xf32>
    %c0_1 = arith.constant 0 : index
    %c0_2 = arith.constant 0 : index
    %1 = vector.load %arg2[%c0_1, %c0_2] : memref<32x1xf32, #tpu.memory_space<vmem>>, vector<32x1xf32>
    %c0_3 = arith.constant 0 : index
    %c0_4 = arith.constant 0 : index
    %2 = vector.load %arg3[%c0_3, %c0_4] : memref<32x1xf32, #tpu.memory_space<vmem>>, vector<32x1xf32>
    %c0_5 = arith.constant 0 : index
    %c0_6 = arith.constant 0 : index
    %c0_7 = arith.constant 0 : index
    %3 = vector.load %arg0[%c0_5, %c0_6, %c0_7] : memref<2x288x16xf32, #tpu.memory_space<vmem>>, vector<1x288x16xf32>
    %4 = vector.shape_cast %3 : vector<1x288x16xf32> to vector<288x16xf32>
    %cst = arith.constant dense<0.000000e+00> : vector<32x16xf32>
    %5 = tpu.matmul %0, %4, %cst {dimension_numbers = #tpu.dot_dimension_numbers<[1], [0], [0], [1], [0, 0, 1, 1], [], []>} : vector<32x288xf32>, vector<288x16xf32>, vector<32x16xf32> -> vector<32x16xf32>
    %cst_8 = arith.constant dense<0.000000e+00> : vector<32xf32>
    %6 = vector.multi_reduction <add>, %5, %cst_8 [1] : vector<32x16xf32> to vector<32xf32>
    %7 = vector.shape_cast %6 : vector<32xf32> to vector<32x1xf32>
    %cst_9 = arith.constant 1.600000e+01 : f32
    %8 = vector.broadcast %cst_9 : f32 to vector<32x1xf32>
    %9 = arith.divf %7, %8 : vector<32x1xf32>
    %10 = arith.mulf %5, %5 : vector<32x16xf32>
    %cst_10 = arith.constant dense<0.000000e+00> : vector<32xf32>
    %11 = vector.multi_reduction <add>, %10, %cst_10 [1] : vector<32x16xf32> to vector<32xf32>
    %12 = vector.shape_cast %11 : vector<32xf32> to vector<32x1xf32>
    %cst_11 = arith.constant 1.600000e+01 : f32
    %13 = vector.broadcast %cst_11 : f32 to vector<32x1xf32>
    %14 = arith.divf %12, %13 : vector<32x1xf32>
    %15 = arith.mulf %9, %9 : vector<32x1xf32>
    %16 = arith.subf %14, %15 : vector<32x1xf32>
    %cst_12 = arith.constant 0.000000e+00 : f32
    %17 = vector.broadcast %cst_12 : f32 to vector<32x1xf32>
    %18 = arith.maximumf %16, %17 : vector<32x1xf32>
    %cst_13 = arith.constant 9.99999974E-6 : f32
    %19 = vector.broadcast %cst_13 : f32 to vector<32x1xf32>
    %20 = arith.addf %18, %19 : vector<32x1xf32>
    %21 = math.rsqrt %20 : vector<32x1xf32>
    %22 = arith.mulf %1, %21 : vector<32x1xf32>
    %23 = arith.mulf %9, %22 : vector<32x1xf32>
    %24 = arith.subf %2, %23 : vector<32x1xf32>
    %25 = vector.broadcast %22 : vector<32x1xf32> to vector<32x16xf32>
    %26 = arith.mulf %5, %25 : vector<32x16xf32>
    %27 = vector.broadcast %24 : vector<32x1xf32> to vector<32x16xf32>
    %28 = arith.addf %26, %27 : vector<32x16xf32>
    %c0_14 = arith.constant 0 : index
    %c0_15 = arith.constant 0 : index
    %c0_16 = arith.constant 0 : index
    %29 = vector.load %arg4[%c0_14, %c0_15, %c0_16] : memref<2x32x16xf32, #tpu.memory_space<vmem>>, vector<1x32x16xf32>
    %30 = vector.shape_cast %29 : vector<1x32x16xf32> to vector<32x16xf32>
    %31 = arith.addf %28, %30 : vector<32x16xf32>
    %cst_17 = arith.constant 0.000000e+00 : f32
    %32 = vector.broadcast %cst_17 : f32 to vector<32x16xf32>
    %33 = arith.maximumf %31, %32 : vector<32x16xf32>
    %c0_18 = arith.constant 0 : index
    %c0_19 = arith.constant 0 : index
    %c0_20 = arith.constant 0 : index
    %34 = vector.load %arg5[%c0_18, %c0_19, %c0_20] : memref<2x32x16xf32, #tpu.memory_space<vmem>>, vector<1x32x16xf32>
    %35 = vector.shape_cast %34 : vector<1x32x16xf32> to vector<32x16xf32>
    %36 = vector.shape_cast %33 : vector<32x16xf32> to vector<1x32x16xf32>
    tpu.vector_store %arg5[%c0_18, %c0_19, %c0_20], %36 {strides = array<i32>} : memref<2x32x16xf32, #tpu.memory_space<vmem>>, vector<1x32x16xf32>,
    %c1 = arith.constant 1 : index
    %c0_21 = arith.constant 0 : index
    %c0_22 = arith.constant 0 : index
    %37 = vector.load %arg0[%c1, %c0_21, %c0_22] : memref<2x288x16xf32, #tpu.memory_space<vmem>>, vector<1x288x16xf32>
    %38 = vector.shape_cast %37 : vector<1x288x16xf32> to vector<288x16xf32>
    %cst_23 = arith.constant dense<0.000000e+00> : vector<32x16xf32>
    %39 = tpu.matmul %0, %38, %cst_23 {dimension_numbers = #tpu.dot_dimension_numbers<[1], [0], [0], [1], [0, 0, 1, 1], [], []>} : vector<32x288xf32>, vector<288x16xf32>, vector<32x16xf32> -> vector<32x16xf32>
    %cst_24 = arith.constant dense<0.000000e+00> : vector<32xf32>
    %40 = vector.multi_reduction <add>, %39, %cst_24 [1] : vector<32x16xf32> to vector<32xf32>
    %41 = vector.shape_cast %40 : vector<32xf32> to vector<32x1xf32>
    %cst_25 = arith.constant 1.600000e+01 : f32
    %42 = vector.broadcast %cst_25 : f32 to vector<32x1xf32>
    %43 = arith.divf %41, %42 : vector<32x1xf32>
    %44 = arith.mulf %39, %39 : vector<32x16xf32>
    %cst_26 = arith.constant dense<0.000000e+00> : vector<32xf32>
    %45 = vector.multi_reduction <add>, %44, %cst_26 [1] : vector<32x16xf32> to vector<32xf32>
    %46 = vector.shape_cast %45 : vector<32xf32> to vector<32x1xf32>
    %cst_27 = arith.constant 1.600000e+01 : f32
    %47 = vector.broadcast %cst_27 : f32 to vector<32x1xf32>
    %48 = arith.divf %46, %47 : vector<32x1xf32>
    %49 = arith.mulf %43, %43 : vector<32x1xf32>
    %50 = arith.subf %48, %49 : vector<32x1xf32>
    %cst_28 = arith.constant 0.000000e+00 : f32
    %51 = vector.broadcast %cst_28 : f32 to vector<32x1xf32>
    %52 = arith.maximumf %50, %51 : vector<32x1xf32>
    %cst_29 = arith.constant 9.99999974E-6 : f32
    %53 = vector.broadcast %cst_29 : f32 to vector<32x1xf32>
    %54 = arith.addf %52, %53 : vector<32x1xf32>
    %55 = math.rsqrt %54 : vector<32x1xf32>
    %56 = arith.mulf %1, %55 : vector<32x1xf32>
    %57 = arith.mulf %43, %56 : vector<32x1xf32>
    %58 = arith.subf %2, %57 : vector<32x1xf32>
    %59 = vector.broadcast %56 : vector<32x1xf32> to vector<32x16xf32>
    %60 = arith.mulf %39, %59 : vector<32x16xf32>
    %61 = vector.broadcast %58 : vector<32x1xf32> to vector<32x16xf32>
    %62 = arith.addf %60, %61 : vector<32x16xf32>
    %c1_30 = arith.constant 1 : index
    %c0_31 = arith.constant 0 : index
    %c0_32 = arith.constant 0 : index
    %63 = vector.load %arg4[%c1_30, %c0_31, %c0_32] : memref<2x32x16xf32, #tpu.memory_space<vmem>>, vector<1x32x16xf32>
    %64 = vector.shape_cast %63 : vector<1x32x16xf32> to vector<32x16xf32>
    %65 = arith.addf %62, %64 : vector<32x16xf32>
    %cst_33 = arith.constant 0.000000e+00 : f32
    %66 = vector.broadcast %cst_33 : f32 to vector<32x16xf32>
    %67 = arith.maximumf %65, %66 : vector<32x16xf32>
    %c1_34 = arith.constant 1 : index
    %c0_35 = arith.constant 0 : index
    %c0_36 = arith.constant 0 : index
    %68 = vector.load %arg5[%c1_34, %c0_35, %c0_36] : memref<2x32x16xf32, #tpu.memory_space<vmem>>, vector<1x32x16xf32>
    %69 = vector.shape_cast %68 : vector<1x32x16xf32> to vector<32x16xf32>
    %70 = vector.shape_cast %67 : vector<32x16xf32> to vector<1x32x16xf32>
    tpu.vector_store %arg5[%c1_34, %c0_35, %c0_36], %70 {strides = array<i32>} : memref<2x32x16xf32, #tpu.memory_space<vmem>>, vector<1x32x16xf32>,
    return
  }
}

module attributes {stable_mosaic.version = 11 : i64} {
  func.func @kernel(%arg0: memref<2x576x16xf32, #tpu.memory_space<vmem>>, %arg1: memref<16x576xf32, #tpu.memory_space<vmem>>, %arg2: memref<16x1xf32, #tpu.memory_space<vmem>>, %arg3: memref<16x1xf32, #tpu.memory_space<vmem>>, %arg4: memref<2x16x16xf32, #tpu.memory_space<vmem>>) attributes {dimension_semantics = [], scalar_prefetch = 0 : i64, scratch_operands = 0 : i64, tpu.core_type = #tpu.core_type<tc>} {
    %c0 = arith.constant 0 : index
    %c0_0 = arith.constant 0 : index
    %0 = vector.load %arg1[%c0, %c0_0] : memref<16x576xf32, #tpu.memory_space<vmem>>, vector<16x576xf32>
    %c0_1 = arith.constant 0 : index
    %c0_2 = arith.constant 0 : index
    %1 = vector.load %arg2[%c0_1, %c0_2] : memref<16x1xf32, #tpu.memory_space<vmem>>, vector<16x1xf32>
    %c0_3 = arith.constant 0 : index
    %c0_4 = arith.constant 0 : index
    %2 = vector.load %arg3[%c0_3, %c0_4] : memref<16x1xf32, #tpu.memory_space<vmem>>, vector<16x1xf32>
    %c0_5 = arith.constant 0 : index
    %c0_6 = arith.constant 0 : index
    %c0_7 = arith.constant 0 : index
    %3 = vector.load %arg0[%c0_5, %c0_6, %c0_7] : memref<2x576x16xf32, #tpu.memory_space<vmem>>, vector<1x576x16xf32>
    %4 = vector.shape_cast %3 : vector<1x576x16xf32> to vector<576x16xf32>
    %cst = arith.constant dense<0.000000e+00> : vector<16x16xf32>
    %5 = tpu.matmul %0, %4, %cst {dimension_numbers = #tpu.dot_dimension_numbers<[1], [0], [0], [1], [0, 0, 1, 1], [], []>} : vector<16x576xf32>, vector<576x16xf32>, vector<16x16xf32> -> vector<16x16xf32>
    %cst_8 = arith.constant dense<0.000000e+00> : vector<16xf32>
    %6 = vector.multi_reduction <add>, %5, %cst_8 [1] : vector<16x16xf32> to vector<16xf32>
    %7 = vector.shape_cast %6 : vector<16xf32> to vector<16x1xf32>
    %cst_9 = arith.constant 1.600000e+01 : f32
    %8 = vector.broadcast %cst_9 : f32 to vector<16x1xf32>
    %9 = arith.divf %7, %8 : vector<16x1xf32>
    %10 = arith.mulf %5, %5 : vector<16x16xf32>
    %cst_10 = arith.constant dense<0.000000e+00> : vector<16xf32>
    %11 = vector.multi_reduction <add>, %10, %cst_10 [1] : vector<16x16xf32> to vector<16xf32>
    %12 = vector.shape_cast %11 : vector<16xf32> to vector<16x1xf32>
    %cst_11 = arith.constant 1.600000e+01 : f32
    %13 = vector.broadcast %cst_11 : f32 to vector<16x1xf32>
    %14 = arith.divf %12, %13 : vector<16x1xf32>
    %15 = arith.mulf %9, %9 : vector<16x1xf32>
    %16 = arith.subf %14, %15 : vector<16x1xf32>
    %cst_12 = arith.constant 0.000000e+00 : f32
    %17 = vector.broadcast %cst_12 : f32 to vector<16x1xf32>
    %18 = arith.maximumf %16, %17 : vector<16x1xf32>
    %cst_13 = arith.constant 9.99999974E-6 : f32
    %19 = vector.broadcast %cst_13 : f32 to vector<16x1xf32>
    %20 = arith.addf %18, %19 : vector<16x1xf32>
    %21 = math.rsqrt %20 : vector<16x1xf32>
    %22 = arith.mulf %1, %21 : vector<16x1xf32>
    %23 = arith.mulf %9, %22 : vector<16x1xf32>
    %24 = arith.subf %2, %23 : vector<16x1xf32>
    %25 = vector.broadcast %22 : vector<16x1xf32> to vector<16x16xf32>
    %26 = arith.mulf %5, %25 : vector<16x16xf32>
    %27 = vector.broadcast %24 : vector<16x1xf32> to vector<16x16xf32>
    %28 = arith.addf %26, %27 : vector<16x16xf32>
    %cst_14 = arith.constant 0.000000e+00 : f32
    %29 = vector.broadcast %cst_14 : f32 to vector<16x16xf32>
    %30 = arith.maximumf %28, %29 : vector<16x16xf32>
    %c0_15 = arith.constant 0 : index
    %c0_16 = arith.constant 0 : index
    %c0_17 = arith.constant 0 : index
    %31 = vector.load %arg4[%c0_15, %c0_16, %c0_17] : memref<2x16x16xf32, #tpu.memory_space<vmem>>, vector<1x16x16xf32>
    %32 = vector.shape_cast %31 : vector<1x16x16xf32> to vector<16x16xf32>
    %33 = vector.shape_cast %30 : vector<16x16xf32> to vector<1x16x16xf32>
    tpu.vector_store %arg4[%c0_15, %c0_16, %c0_17], %33 {strides = array<i32>} : memref<2x16x16xf32, #tpu.memory_space<vmem>>, vector<1x16x16xf32>,
    %c1 = arith.constant 1 : index
    %c0_18 = arith.constant 0 : index
    %c0_19 = arith.constant 0 : index
    %34 = vector.load %arg0[%c1, %c0_18, %c0_19] : memref<2x576x16xf32, #tpu.memory_space<vmem>>, vector<1x576x16xf32>
    %35 = vector.shape_cast %34 : vector<1x576x16xf32> to vector<576x16xf32>
    %cst_20 = arith.constant dense<0.000000e+00> : vector<16x16xf32>
    %36 = tpu.matmul %0, %35, %cst_20 {dimension_numbers = #tpu.dot_dimension_numbers<[1], [0], [0], [1], [0, 0, 1, 1], [], []>} : vector<16x576xf32>, vector<576x16xf32>, vector<16x16xf32> -> vector<16x16xf32>
    %cst_21 = arith.constant dense<0.000000e+00> : vector<16xf32>
    %37 = vector.multi_reduction <add>, %36, %cst_21 [1] : vector<16x16xf32> to vector<16xf32>
    %38 = vector.shape_cast %37 : vector<16xf32> to vector<16x1xf32>
    %cst_22 = arith.constant 1.600000e+01 : f32
    %39 = vector.broadcast %cst_22 : f32 to vector<16x1xf32>
    %40 = arith.divf %38, %39 : vector<16x1xf32>
    %41 = arith.mulf %36, %36 : vector<16x16xf32>
    %cst_23 = arith.constant dense<0.000000e+00> : vector<16xf32>
    %42 = vector.multi_reduction <add>, %41, %cst_23 [1] : vector<16x16xf32> to vector<16xf32>
    %43 = vector.shape_cast %42 : vector<16xf32> to vector<16x1xf32>
    %cst_24 = arith.constant 1.600000e+01 : f32
    %44 = vector.broadcast %cst_24 : f32 to vector<16x1xf32>
    %45 = arith.divf %43, %44 : vector<16x1xf32>
    %46 = arith.mulf %40, %40 : vector<16x1xf32>
    %47 = arith.subf %45, %46 : vector<16x1xf32>
    %cst_25 = arith.constant 0.000000e+00 : f32
    %48 = vector.broadcast %cst_25 : f32 to vector<16x1xf32>
    %49 = arith.maximumf %47, %48 : vector<16x1xf32>
    %cst_26 = arith.constant 9.99999974E-6 : f32
    %50 = vector.broadcast %cst_26 : f32 to vector<16x1xf32>
    %51 = arith.addf %49, %50 : vector<16x1xf32>
    %52 = math.rsqrt %51 : vector<16x1xf32>
    %53 = arith.mulf %1, %52 : vector<16x1xf32>
    %54 = arith.mulf %40, %53 : vector<16x1xf32>
    %55 = arith.subf %2, %54 : vector<16x1xf32>
    %56 = vector.broadcast %53 : vector<16x1xf32> to vector<16x16xf32>
    %57 = arith.mulf %36, %56 : vector<16x16xf32>
    %58 = vector.broadcast %55 : vector<16x1xf32> to vector<16x16xf32>
    %59 = arith.addf %57, %58 : vector<16x16xf32>
    %cst_27 = arith.constant 0.000000e+00 : f32
    %60 = vector.broadcast %cst_27 : f32 to vector<16x16xf32>
    %61 = arith.maximumf %59, %60 : vector<16x16xf32>
    %c1_28 = arith.constant 1 : index
    %c0_29 = arith.constant 0 : index
    %c0_30 = arith.constant 0 : index
    %62 = vector.load %arg4[%c1_28, %c0_29, %c0_30] : memref<2x16x16xf32, #tpu.memory_space<vmem>>, vector<1x16x16xf32>
    %63 = vector.shape_cast %62 : vector<1x16x16xf32> to vector<16x16xf32>
    %64 = vector.shape_cast %61 : vector<16x16xf32> to vector<1x16x16xf32>
    tpu.vector_store %arg4[%c1_28, %c0_29, %c0_30], %64 {strides = array<i32>} : memref<2x16x16xf32, #tpu.memory_space<vmem>>, vector<1x16x16xf32>,
    return
  }
}

module attributes {stable_mosaic.version = 11 : i64} {
  func.func @kernel(%arg0: memref<2x288x64xf32, #tpu.memory_space<vmem>>, %arg1: memref<8x288xf32, #tpu.memory_space<vmem>>, %arg2: memref<8x1xf32, #tpu.memory_space<vmem>>, %arg3: memref<8x1xf32, #tpu.memory_space<vmem>>, %arg4: memref<2x8x64xf32, #tpu.memory_space<vmem>>) attributes {dimension_semantics = [], scalar_prefetch = 0 : i64, scratch_operands = 0 : i64, tpu.core_type = #tpu.core_type<tc>} {
    %c0 = arith.constant 0 : index
    %c0_0 = arith.constant 0 : index
    %0 = vector.load %arg1[%c0, %c0_0] : memref<8x288xf32, #tpu.memory_space<vmem>>, vector<8x288xf32>
    %c0_1 = arith.constant 0 : index
    %c0_2 = arith.constant 0 : index
    %1 = vector.load %arg2[%c0_1, %c0_2] : memref<8x1xf32, #tpu.memory_space<vmem>>, vector<8x1xf32>
    %c0_3 = arith.constant 0 : index
    %c0_4 = arith.constant 0 : index
    %2 = vector.load %arg3[%c0_3, %c0_4] : memref<8x1xf32, #tpu.memory_space<vmem>>, vector<8x1xf32>
    %c0_5 = arith.constant 0 : index
    %c0_6 = arith.constant 0 : index
    %c0_7 = arith.constant 0 : index
    %3 = vector.load %arg0[%c0_5, %c0_6, %c0_7] : memref<2x288x64xf32, #tpu.memory_space<vmem>>, vector<1x288x64xf32>
    %4 = vector.shape_cast %3 : vector<1x288x64xf32> to vector<288x64xf32>
    %cst = arith.constant dense<0.000000e+00> : vector<8x64xf32>
    %5 = tpu.matmul %0, %4, %cst {dimension_numbers = #tpu.dot_dimension_numbers<[1], [0], [0], [1], [0, 0, 1, 1], [], []>} : vector<8x288xf32>, vector<288x64xf32>, vector<8x64xf32> -> vector<8x64xf32>
    %cst_8 = arith.constant dense<0.000000e+00> : vector<8xf32>
    %6 = vector.multi_reduction <add>, %5, %cst_8 [1] : vector<8x64xf32> to vector<8xf32>
    %7 = vector.shape_cast %6 : vector<8xf32> to vector<8x1xf32>
    %cst_9 = arith.constant 6.400000e+01 : f32
    %8 = vector.broadcast %cst_9 : f32 to vector<8x1xf32>
    %9 = arith.divf %7, %8 : vector<8x1xf32>
    %10 = arith.mulf %5, %5 : vector<8x64xf32>
    %cst_10 = arith.constant dense<0.000000e+00> : vector<8xf32>
    %11 = vector.multi_reduction <add>, %10, %cst_10 [1] : vector<8x64xf32> to vector<8xf32>
    %12 = vector.shape_cast %11 : vector<8xf32> to vector<8x1xf32>
    %cst_11 = arith.constant 6.400000e+01 : f32
    %13 = vector.broadcast %cst_11 : f32 to vector<8x1xf32>
    %14 = arith.divf %12, %13 : vector<8x1xf32>
    %15 = arith.mulf %9, %9 : vector<8x1xf32>
    %16 = arith.subf %14, %15 : vector<8x1xf32>
    %cst_12 = arith.constant 0.000000e+00 : f32
    %17 = vector.broadcast %cst_12 : f32 to vector<8x1xf32>
    %18 = arith.maximumf %16, %17 : vector<8x1xf32>
    %cst_13 = arith.constant 9.99999974E-6 : f32
    %19 = vector.broadcast %cst_13 : f32 to vector<8x1xf32>
    %20 = arith.addf %18, %19 : vector<8x1xf32>
    %21 = math.rsqrt %20 : vector<8x1xf32>
    %22 = arith.mulf %1, %21 : vector<8x1xf32>
    %23 = arith.mulf %9, %22 : vector<8x1xf32>
    %24 = arith.subf %2, %23 : vector<8x1xf32>
    %25 = vector.broadcast %22 : vector<8x1xf32> to vector<8x64xf32>
    %26 = arith.mulf %5, %25 : vector<8x64xf32>
    %27 = vector.broadcast %24 : vector<8x1xf32> to vector<8x64xf32>
    %28 = arith.addf %26, %27 : vector<8x64xf32>
    %cst_14 = arith.constant 0.000000e+00 : f32
    %29 = vector.broadcast %cst_14 : f32 to vector<8x64xf32>
    %30 = arith.maximumf %28, %29 : vector<8x64xf32>
    %c0_15 = arith.constant 0 : index
    %c0_16 = arith.constant 0 : index
    %c0_17 = arith.constant 0 : index
    %31 = vector.load %arg4[%c0_15, %c0_16, %c0_17] : memref<2x8x64xf32, #tpu.memory_space<vmem>>, vector<1x8x64xf32>
    %32 = vector.shape_cast %31 : vector<1x8x64xf32> to vector<8x64xf32>
    %33 = vector.shape_cast %30 : vector<8x64xf32> to vector<1x8x64xf32>
    tpu.vector_store %arg4[%c0_15, %c0_16, %c0_17], %33 {strides = array<i32>} : memref<2x8x64xf32, #tpu.memory_space<vmem>>, vector<1x8x64xf32>,
    %c1 = arith.constant 1 : index
    %c0_18 = arith.constant 0 : index
    %c0_19 = arith.constant 0 : index
    %34 = vector.load %arg0[%c1, %c0_18, %c0_19] : memref<2x288x64xf32, #tpu.memory_space<vmem>>, vector<1x288x64xf32>
    %35 = vector.shape_cast %34 : vector<1x288x64xf32> to vector<288x64xf32>
    %cst_20 = arith.constant dense<0.000000e+00> : vector<8x64xf32>
    %36 = tpu.matmul %0, %35, %cst_20 {dimension_numbers = #tpu.dot_dimension_numbers<[1], [0], [0], [1], [0, 0, 1, 1], [], []>} : vector<8x288xf32>, vector<288x64xf32>, vector<8x64xf32> -> vector<8x64xf32>
    %cst_21 = arith.constant dense<0.000000e+00> : vector<8xf32>
    %37 = vector.multi_reduction <add>, %36, %cst_21 [1] : vector<8x64xf32> to vector<8xf32>
    %38 = vector.shape_cast %37 : vector<8xf32> to vector<8x1xf32>
    %cst_22 = arith.constant 6.400000e+01 : f32
    %39 = vector.broadcast %cst_22 : f32 to vector<8x1xf32>
    %40 = arith.divf %38, %39 : vector<8x1xf32>
    %41 = arith.mulf %36, %36 : vector<8x64xf32>
    %cst_23 = arith.constant dense<0.000000e+00> : vector<8xf32>
    %42 = vector.multi_reduction <add>, %41, %cst_23 [1] : vector<8x64xf32> to vector<8xf32>
    %43 = vector.shape_cast %42 : vector<8xf32> to vector<8x1xf32>
    %cst_24 = arith.constant 6.400000e+01 : f32
    %44 = vector.broadcast %cst_24 : f32 to vector<8x1xf32>
    %45 = arith.divf %43, %44 : vector<8x1xf32>
    %46 = arith.mulf %40, %40 : vector<8x1xf32>
    %47 = arith.subf %45, %46 : vector<8x1xf32>
    %cst_25 = arith.constant 0.000000e+00 : f32
    %48 = vector.broadcast %cst_25 : f32 to vector<8x1xf32>
    %49 = arith.maximumf %47, %48 : vector<8x1xf32>
    %cst_26 = arith.constant 9.99999974E-6 : f32
    %50 = vector.broadcast %cst_26 : f32 to vector<8x1xf32>
    %51 = arith.addf %49, %50 : vector<8x1xf32>
    %52 = math.rsqrt %51 : vector<8x1xf32>
    %53 = arith.mulf %1, %52 : vector<8x1xf32>
    %54 = arith.mulf %40, %53 : vector<8x1xf32>
    %55 = arith.subf %2, %54 : vector<8x1xf32>
    %56 = vector.broadcast %53 : vector<8x1xf32> to vector<8x64xf32>
    %57 = arith.mulf %36, %56 : vector<8x64xf32>
    %58 = vector.broadcast %55 : vector<8x1xf32> to vector<8x64xf32>
    %59 = arith.addf %57, %58 : vector<8x64xf32>
    %cst_27 = arith.constant 0.000000e+00 : f32
    %60 = vector.broadcast %cst_27 : f32 to vector<8x64xf32>
    %61 = arith.maximumf %59, %60 : vector<8x64xf32>
    %c1_28 = arith.constant 1 : index
    %c0_29 = arith.constant 0 : index
    %c0_30 = arith.constant 0 : index
    %62 = vector.load %arg4[%c1_28, %c0_29, %c0_30] : memref<2x8x64xf32, #tpu.memory_space<vmem>>, vector<1x8x64xf32>
    %63 = vector.shape_cast %62 : vector<1x8x64xf32> to vector<8x64xf32>
    %64 = vector.shape_cast %61 : vector<8x64xf32> to vector<1x8x64xf32>
    tpu.vector_store %arg4[%c1_28, %c0_29, %c0_30], %64 {strides = array<i32>} : memref<2x8x64xf32, #tpu.memory_space<vmem>>, vector<1x8x64xf32>,
    return
  }
}

module attributes {stable_mosaic.version = 11 : i64} {
  func.func @kernel(%arg0: memref<2x144x256xf32, #tpu.memory_space<vmem>>, %arg1: memref<8x144xf32, #tpu.memory_space<vmem>>, %arg2: memref<8x1xf32, #tpu.memory_space<vmem>>, %arg3: memref<8x1xf32, #tpu.memory_space<vmem>>, %arg4: memref<2x8x256xf32, #tpu.memory_space<vmem>>) attributes {dimension_semantics = [], scalar_prefetch = 0 : i64, scratch_operands = 0 : i64, tpu.core_type = #tpu.core_type<tc>} {
    %c0 = arith.constant 0 : index
    %c0_0 = arith.constant 0 : index
    %0 = vector.load %arg1[%c0, %c0_0] : memref<8x144xf32, #tpu.memory_space<vmem>>, vector<8x144xf32>
    %c0_1 = arith.constant 0 : index
    %c0_2 = arith.constant 0 : index
    %1 = vector.load %arg2[%c0_1, %c0_2] : memref<8x1xf32, #tpu.memory_space<vmem>>, vector<8x1xf32>
    %c0_3 = arith.constant 0 : index
    %c0_4 = arith.constant 0 : index
    %2 = vector.load %arg3[%c0_3, %c0_4] : memref<8x1xf32, #tpu.memory_space<vmem>>, vector<8x1xf32>
    %c0_5 = arith.constant 0 : index
    %c0_6 = arith.constant 0 : index
    %c0_7 = arith.constant 0 : index
    %3 = vector.load %arg0[%c0_5, %c0_6, %c0_7] : memref<2x144x256xf32, #tpu.memory_space<vmem>>, vector<1x144x256xf32>
    %4 = vector.shape_cast %3 : vector<1x144x256xf32> to vector<144x256xf32>
    %cst = arith.constant dense<0.000000e+00> : vector<8x256xf32>
    %5 = tpu.matmul %0, %4, %cst {dimension_numbers = #tpu.dot_dimension_numbers<[1], [0], [0], [1], [0, 0, 1, 1], [], []>} : vector<8x144xf32>, vector<144x256xf32>, vector<8x256xf32> -> vector<8x256xf32>
    %cst_8 = arith.constant dense<0.000000e+00> : vector<8xf32>
    %6 = vector.multi_reduction <add>, %5, %cst_8 [1] : vector<8x256xf32> to vector<8xf32>
    %7 = vector.shape_cast %6 : vector<8xf32> to vector<8x1xf32>
    %cst_9 = arith.constant 2.560000e+02 : f32
    %8 = vector.broadcast %cst_9 : f32 to vector<8x1xf32>
    %9 = arith.divf %7, %8 : vector<8x1xf32>
    %10 = arith.mulf %5, %5 : vector<8x256xf32>
    %cst_10 = arith.constant dense<0.000000e+00> : vector<8xf32>
    %11 = vector.multi_reduction <add>, %10, %cst_10 [1] : vector<8x256xf32> to vector<8xf32>
    %12 = vector.shape_cast %11 : vector<8xf32> to vector<8x1xf32>
    %cst_11 = arith.constant 2.560000e+02 : f32
    %13 = vector.broadcast %cst_11 : f32 to vector<8x1xf32>
    %14 = arith.divf %12, %13 : vector<8x1xf32>
    %15 = arith.mulf %9, %9 : vector<8x1xf32>
    %16 = arith.subf %14, %15 : vector<8x1xf32>
    %cst_12 = arith.constant 0.000000e+00 : f32
    %17 = vector.broadcast %cst_12 : f32 to vector<8x1xf32>
    %18 = arith.maximumf %16, %17 : vector<8x1xf32>
    %cst_13 = arith.constant 9.99999974E-6 : f32
    %19 = vector.broadcast %cst_13 : f32 to vector<8x1xf32>
    %20 = arith.addf %18, %19 : vector<8x1xf32>
    %21 = math.rsqrt %20 : vector<8x1xf32>
    %22 = arith.mulf %1, %21 : vector<8x1xf32>
    %23 = arith.mulf %9, %22 : vector<8x1xf32>
    %24 = arith.subf %2, %23 : vector<8x1xf32>
    %25 = vector.broadcast %22 : vector<8x1xf32> to vector<8x256xf32>
    %26 = arith.mulf %5, %25 : vector<8x256xf32>
    %27 = vector.broadcast %24 : vector<8x1xf32> to vector<8x256xf32>
    %28 = arith.addf %26, %27 : vector<8x256xf32>
    %c0_14 = arith.constant 0 : index
    %c0_15 = arith.constant 0 : index
    %c0_16 = arith.constant 0 : index
    %29 = vector.load %arg4[%c0_14, %c0_15, %c0_16] : memref<2x8x256xf32, #tpu.memory_space<vmem>>, vector<1x8x256xf32>
    %30 = vector.shape_cast %29 : vector<1x8x256xf32> to vector<8x256xf32>
    %31 = vector.shape_cast %28 : vector<8x256xf32> to vector<1x8x256xf32>
    tpu.vector_store %arg4[%c0_14, %c0_15, %c0_16], %31 {strides = array<i32>} : memref<2x8x256xf32, #tpu.memory_space<vmem>>, vector<1x8x256xf32>,
    %c1 = arith.constant 1 : index
    %c0_17 = arith.constant 0 : index
    %c0_18 = arith.constant 0 : index
    %32 = vector.load %arg0[%c1, %c0_17, %c0_18] : memref<2x144x256xf32, #tpu.memory_space<vmem>>, vector<1x144x256xf32>
    %33 = vector.shape_cast %32 : vector<1x144x256xf32> to vector<144x256xf32>
    %cst_19 = arith.constant dense<0.000000e+00> : vector<8x256xf32>
    %34 = tpu.matmul %0, %33, %cst_19 {dimension_numbers = #tpu.dot_dimension_numbers<[1], [0], [0], [1], [0, 0, 1, 1], [], []>} : vector<8x144xf32>, vector<144x256xf32>, vector<8x256xf32> -> vector<8x256xf32>
    %cst_20 = arith.constant dense<0.000000e+00> : vector<8xf32>
    %35 = vector.multi_reduction <add>, %34, %cst_20 [1] : vector<8x256xf32> to vector<8xf32>
    %36 = vector.shape_cast %35 : vector<8xf32> to vector<8x1xf32>
    %cst_21 = arith.constant 2.560000e+02 : f32
    %37 = vector.broadcast %cst_21 : f32 to vector<8x1xf32>
    %38 = arith.divf %36, %37 : vector<8x1xf32>
    %39 = arith.mulf %34, %34 : vector<8x256xf32>
    %cst_22 = arith.constant dense<0.000000e+00> : vector<8xf32>
    %40 = vector.multi_reduction <add>, %39, %cst_22 [1] : vector<8x256xf32> to vector<8xf32>
    %41 = vector.shape_cast %40 : vector<8xf32> to vector<8x1xf32>
    %cst_23 = arith.constant 2.560000e+02 : f32
    %42 = vector.broadcast %cst_23 : f32 to vector<8x1xf32>
    %43 = arith.divf %41, %42 : vector<8x1xf32>
    %44 = arith.mulf %38, %38 : vector<8x1xf32>
    %45 = arith.subf %43, %44 : vector<8x1xf32>
    %cst_24 = arith.constant 0.000000e+00 : f32
    %46 = vector.broadcast %cst_24 : f32 to vector<8x1xf32>
    %47 = arith.maximumf %45, %46 : vector<8x1xf32>
    %cst_25 = arith.constant 9.99999974E-6 : f32
    %48 = vector.broadcast %cst_25 : f32 to vector<8x1xf32>
    %49 = arith.addf %47, %48 : vector<8x1xf32>
    %50 = math.rsqrt %49 : vector<8x1xf32>
    %51 = arith.mulf %1, %50 : vector<8x1xf32>
    %52 = arith.mulf %38, %51 : vector<8x1xf32>
    %53 = arith.subf %2, %52 : vector<8x1xf32>
    %54 = vector.broadcast %51 : vector<8x1xf32> to vector<8x256xf32>
    %55 = arith.mulf %34, %54 : vector<8x256xf32>
    %56 = vector.broadcast %53 : vector<8x1xf32> to vector<8x256xf32>
    %57 = arith.addf %55, %56 : vector<8x256xf32>
    %c1_26 = arith.constant 1 : index
    %c0_27 = arith.constant 0 : index
    %c0_28 = arith.constant 0 : index
    %58 = vector.load %arg4[%c1_26, %c0_27, %c0_28] : memref<2x8x256xf32, #tpu.memory_space<vmem>>, vector<1x8x256xf32>
    %59 = vector.shape_cast %58 : vector<1x8x256xf32> to vector<8x256xf32>
    %60 = vector.shape_cast %57 : vector<8x256xf32> to vector<1x8x256xf32>
    tpu.vector_store %arg4[%c1_26, %c0_27, %c0_28], %60 {strides = array<i32>} : memref<2x8x256xf32, #tpu.memory_space<vmem>>, vector<1x8x256xf32>,
    return
  }
}

module attributes {stable_mosaic.version = 11 : i64} {
  func.func @kernel(%arg0: memref<2x392x256xf32, #tpu.memory_space<vmem>>, %arg1: memref<1x392xf32, #tpu.memory_space<vmem>>, %arg2: memref<1x1xf32, #tpu.memory_space<vmem>>, %arg3: memref<1x1xf32, #tpu.memory_space<vmem>>, %arg4: memref<2x1x256xf32, #tpu.memory_space<vmem>>, %arg5: memref<2x1x256xf32, #tpu.memory_space<vmem>>) attributes {dimension_semantics = [], scalar_prefetch = 0 : i64, scratch_operands = 0 : i64, tpu.core_type = #tpu.core_type<tc>} {
    %c0 = arith.constant 0 : index
    %c0_0 = arith.constant 0 : index
    %0 = vector.load %arg1[%c0, %c0_0] : memref<1x392xf32, #tpu.memory_space<vmem>>, vector<1x392xf32>
    %c0_1 = arith.constant 0 : index
    %c0_2 = arith.constant 0 : index
    %1 = vector.load %arg2[%c0_1, %c0_2] : memref<1x1xf32, #tpu.memory_space<vmem>>, vector<1x1xf32>
    %c0_3 = arith.constant 0 : index
    %c0_4 = arith.constant 0 : index
    %2 = vector.load %arg3[%c0_3, %c0_4] : memref<1x1xf32, #tpu.memory_space<vmem>>, vector<1x1xf32>
    %c0_5 = arith.constant 0 : index
    %c0_6 = arith.constant 0 : index
    %c0_7 = arith.constant 0 : index
    %3 = vector.load %arg0[%c0_5, %c0_6, %c0_7] : memref<2x392x256xf32, #tpu.memory_space<vmem>>, vector<1x392x256xf32>
    %4 = vector.shape_cast %3 : vector<1x392x256xf32> to vector<392x256xf32>
    %cst = arith.constant dense<0.000000e+00> : vector<1x256xf32>
    %5 = tpu.matmul %0, %4, %cst {dimension_numbers = #tpu.dot_dimension_numbers<[1], [0], [0], [1], [0, 0, 1, 1], [], []>} : vector<1x392xf32>, vector<392x256xf32>, vector<1x256xf32> -> vector<1x256xf32>
    %cst_8 = arith.constant dense<0.000000e+00> : vector<1xf32>
    %6 = vector.multi_reduction <add>, %5, %cst_8 [1] : vector<1x256xf32> to vector<1xf32>
    %7 = vector.shape_cast %6 : vector<1xf32> to vector<1x1xf32>
    %cst_9 = arith.constant 2.560000e+02 : f32
    %8 = vector.broadcast %cst_9 : f32 to vector<1x1xf32>
    %9 = arith.divf %7, %8 : vector<1x1xf32>
    %10 = arith.mulf %5, %5 : vector<1x256xf32>
    %cst_10 = arith.constant dense<0.000000e+00> : vector<1xf32>
    %11 = vector.multi_reduction <add>, %10, %cst_10 [1] : vector<1x256xf32> to vector<1xf32>
    %12 = vector.shape_cast %11 : vector<1xf32> to vector<1x1xf32>
    %cst_11 = arith.constant 2.560000e+02 : f32
    %13 = vector.broadcast %cst_11 : f32 to vector<1x1xf32>
    %14 = arith.divf %12, %13 : vector<1x1xf32>
    %15 = arith.mulf %9, %9 : vector<1x1xf32>
    %16 = arith.subf %14, %15 : vector<1x1xf32>
    %cst_12 = arith.constant 0.000000e+00 : f32
    %17 = vector.broadcast %cst_12 : f32 to vector<1x1xf32>
    %18 = arith.maximumf %16, %17 : vector<1x1xf32>
    %cst_13 = arith.constant 9.99999974E-6 : f32
    %19 = vector.broadcast %cst_13 : f32 to vector<1x1xf32>
    %20 = arith.addf %18, %19 : vector<1x1xf32>
    %21 = math.rsqrt %20 : vector<1x1xf32>
    %22 = arith.mulf %1, %21 : vector<1x1xf32>
    %23 = arith.mulf %9, %22 : vector<1x1xf32>
    %24 = arith.subf %2, %23 : vector<1x1xf32>
    %25 = vector.broadcast %22 : vector<1x1xf32> to vector<1x256xf32>
    %26 = arith.mulf %5, %25 : vector<1x256xf32>
    %27 = vector.broadcast %24 : vector<1x1xf32> to vector<1x256xf32>
    %28 = arith.addf %26, %27 : vector<1x256xf32>
    %c0_14 = arith.constant 0 : index
    %c0_15 = arith.constant 0 : index
    %c0_16 = arith.constant 0 : index
    %29 = vector.load %arg4[%c0_14, %c0_15, %c0_16] : memref<2x1x256xf32, #tpu.memory_space<vmem>>, vector<1x1x256xf32>
    %30 = vector.shape_cast %29 : vector<1x1x256xf32> to vector<1x256xf32>
    %31 = vector.shape_cast %28 : vector<1x256xf32> to vector<1x1x256xf32>
    tpu.vector_store %arg4[%c0_14, %c0_15, %c0_16], %31 {strides = array<i32>} : memref<2x1x256xf32, #tpu.memory_space<vmem>>, vector<1x1x256xf32>,
    %32 = math.tanh %28 : vector<1x256xf32>
    %c0_17 = arith.constant 0 : index
    %c0_18 = arith.constant 0 : index
    %c0_19 = arith.constant 0 : index
    %33 = vector.load %arg5[%c0_17, %c0_18, %c0_19] : memref<2x1x256xf32, #tpu.memory_space<vmem>>, vector<1x1x256xf32>
    %34 = vector.shape_cast %33 : vector<1x1x256xf32> to vector<1x256xf32>
    %35 = vector.shape_cast %32 : vector<1x256xf32> to vector<1x1x256xf32>
    tpu.vector_store %arg5[%c0_17, %c0_18, %c0_19], %35 {strides = array<i32>} : memref<2x1x256xf32, #tpu.memory_space<vmem>>, vector<1x1x256xf32>,
    %c1 = arith.constant 1 : index
    %c0_20 = arith.constant 0 : index
    %c0_21 = arith.constant 0 : index
    %36 = vector.load %arg0[%c1, %c0_20, %c0_21] : memref<2x392x256xf32, #tpu.memory_space<vmem>>, vector<1x392x256xf32>
    %37 = vector.shape_cast %36 : vector<1x392x256xf32> to vector<392x256xf32>
    %cst_22 = arith.constant dense<0.000000e+00> : vector<1x256xf32>
    %38 = tpu.matmul %0, %37, %cst_22 {dimension_numbers = #tpu.dot_dimension_numbers<[1], [0], [0], [1], [0, 0, 1, 1], [], []>} : vector<1x392xf32>, vector<392x256xf32>, vector<1x256xf32> -> vector<1x256xf32>
    %cst_23 = arith.constant dense<0.000000e+00> : vector<1xf32>
    %39 = vector.multi_reduction <add>, %38, %cst_23 [1] : vector<1x256xf32> to vector<1xf32>
    %40 = vector.shape_cast %39 : vector<1xf32> to vector<1x1xf32>
    %cst_24 = arith.constant 2.560000e+02 : f32
    %41 = vector.broadcast %cst_24 : f32 to vector<1x1xf32>
    %42 = arith.divf %40, %41 : vector<1x1xf32>
    %43 = arith.mulf %38, %38 : vector<1x256xf32>
    %cst_25 = arith.constant dense<0.000000e+00> : vector<1xf32>
    %44 = vector.multi_reduction <add>, %43, %cst_25 [1] : vector<1x256xf32> to vector<1xf32>
    %45 = vector.shape_cast %44 : vector<1xf32> to vector<1x1xf32>
    %cst_26 = arith.constant 2.560000e+02 : f32
    %46 = vector.broadcast %cst_26 : f32 to vector<1x1xf32>
    %47 = arith.divf %45, %46 : vector<1x1xf32>
    %48 = arith.mulf %42, %42 : vector<1x1xf32>
    %49 = arith.subf %47, %48 : vector<1x1xf32>
    %cst_27 = arith.constant 0.000000e+00 : f32
    %50 = vector.broadcast %cst_27 : f32 to vector<1x1xf32>
    %51 = arith.maximumf %49, %50 : vector<1x1xf32>
    %cst_28 = arith.constant 9.99999974E-6 : f32
    %52 = vector.broadcast %cst_28 : f32 to vector<1x1xf32>
    %53 = arith.addf %51, %52 : vector<1x1xf32>
    %54 = math.rsqrt %53 : vector<1x1xf32>
    %55 = arith.mulf %1, %54 : vector<1x1xf32>
    %56 = arith.mulf %42, %55 : vector<1x1xf32>
    %57 = arith.subf %2, %56 : vector<1x1xf32>
    %58 = vector.broadcast %55 : vector<1x1xf32> to vector<1x256xf32>
    %59 = arith.mulf %38, %58 : vector<1x256xf32>
    %60 = vector.broadcast %57 : vector<1x1xf32> to vector<1x256xf32>
    %61 = arith.addf %59, %60 : vector<1x256xf32>
    %c1_29 = arith.constant 1 : index
    %c0_30 = arith.constant 0 : index
    %c0_31 = arith.constant 0 : index
    %62 = vector.load %arg4[%c1_29, %c0_30, %c0_31] : memref<2x1x256xf32, #tpu.memory_space<vmem>>, vector<1x1x256xf32>
    %63 = vector.shape_cast %62 : vector<1x1x256xf32> to vector<1x256xf32>
    %64 = vector.shape_cast %61 : vector<1x256xf32> to vector<1x1x256xf32>
    tpu.vector_store %arg4[%c1_29, %c0_30, %c0_31], %64 {strides = array<i32>} : memref<2x1x256xf32, #tpu.memory_space<vmem>>, vector<1x1x256xf32>,
    %65 = math.tanh %61 : vector<1x256xf32>
    %c1_32 = arith.constant 1 : index
    %c0_33 = arith.constant 0 : index
    %c0_34 = arith.constant 0 : index
    %66 = vector.load %arg5[%c1_32, %c0_33, %c0_34] : memref<2x1x256xf32, #tpu.memory_space<vmem>>, vector<1x1x256xf32>
    %67 = vector.shape_cast %66 : vector<1x1x256xf32> to vector<1x256xf32>
    %68 = vector.shape_cast %65 : vector<1x256xf32> to vector<1x1x256xf32>
    tpu.vector_store %arg5[%c1_32, %c0_33, %c0_34], %68 {strides = array<i32>} : memref<2x1x256xf32, #tpu.memory_space<vmem>>, vector<1x1x256xf32>,
    return
  }
}

</mosaic_0001>

<bundles_post_ra>
// kernel: _lambda_.15
= control target key start
LH: loop header
LB: loop body
LE: loop exit
PB: predicated region body
PF: predicated region fallthrough
CT: control target
= control target key end

     0   :  { %vm75_vm0 = vcmask 1043456   ;;  %vm71_vm1 = vcmask 556032   ;;  %s863_s0 = inlined_call_operand.vmem [shape: f32[2,196,256], index: 0, kind: input, shape index: {}]   ;;  %s864_s1 = inlined_call_operand.vmem [shape: f32[8,196], index: 1, kind: input, shape index: {}]   ;;  %s865_s2 = inlined_call_operand.vmem [shape: f32[8,1], index: 2, kind: input, shape index: {}]   ;;  %s866_s3 = inlined_call_operand.vmem [shape: f32[8,1], index: 3, kind: input, shape index: {}]   ;;  %s867_s4 = inlined_call_operand.vmem [shape: f32[2,8,256], index: 4, kind: output, shape index: {}]  }
   0x1   :  { %v51_v0 = vld [vmem:[%s863_s0 + $0xf0] sm:$0xff]  ;;  %v52_v1 = vld [vmem:[%s863_s0 + $0xf8] sm:$0xff]  ;;  %v49_v2 = vld [vmem:[%s863_s0 + $0xe0] sm:$0xff] }
   0x2   :  { %82 = vmatpush.msra.mxu0 %v51_v0  ;;  %122 = vmatpush.msra.mxu2 %v52_v1  ;;  %v50_v3 = vld [vmem:[%s863_s0 + $0xe8] sm:$0xff]  ;;  %v47_v4 = vld [vmem:[%s863_s0 + $0xd0] sm:$0xff]  ;;  %v48_v5 = vld [vmem:[%s863_s0 + $0xd8] sm:$0xff] }
   0x3   :  { %v45_v6 = vld [vmem:[%s863_s0 + $0xc0] sm:$0xff]  ;;  %v46_v7 = vld [vmem:[%s863_s0 + $0xc8] sm:$0xff]  ;;  %v43_v10 = vld [vmem:[%s863_s0 + $0xb0] sm:$0xff] }
   0x4   :  { %83 = vmatpush.msra.mxu0 %v49_v2  ;;  %123 = vmatpush.msra.mxu2 %v50_v3  ;;  %v69_v8 = vld [vmem:[%s863_s0 + $0x180] sm:$0xf]  ;;  %v70_v9 = vld [vmem:[%s863_s0 + $0x188] sm:$0xf]  ;;  %v44_v11 = vld [vmem:[%s863_s0 + $0xb8] sm:$0xff] }
   0x5   :  { %397 = vmatpush.msk.msra.mxu1 %vm75_vm0, %v69_v8  ;;  %399 = vmatpush.msk.msra.mxu3 %vm75_vm0, %v70_v9  ;;  %v67_v12 = vld [vmem:[%s863_s0 + $0x170] sm:$0xff]  ;;  %v68_v13 = vld [vmem:[%s863_s0 + $0x178] sm:$0xff]  ;;  %v65_v14 = vld [vmem:[%s863_s0 + $0x160] sm:$0xff] }
   0x6   :  { %84 = vmatpush.msra.mxu0 %v47_v4  ;;  %124 = vmatpush.msra.mxu2 %v48_v5  ;;  %v41_v15 = vld [vmem:[%s863_s0 + $0xa0] sm:$0xff]  ;;  %v42_v16 = vld [vmem:[%s863_s0 + $0xa8] sm:$0xff]  ;;  %v63_v18 = vld [vmem:[%s863_s0 + $0x150] sm:$0xff] }
   0x7   :  { %110 = vmatpush.msra.mxu1 %v67_v12  ;;  %150 = vmatpush.msra.mxu3 %v68_v13  ;;  %v66_v17 = vld [vmem:[%s863_s0 + $0x168] sm:$0xff]  ;;  %v64_v19 = vld [vmem:[%s863_s0 + $0x158] sm:$0xff]  ;;  %v39_v20 = vld [vmem:[%s863_s0 + $0x90] sm:$0xff] }
   0x8   :  { %85 = vmatpush.msra.mxu0 %v45_v6  ;;  %125 = vmatpush.msra.mxu2 %v46_v7  ;;  %v40_v21 = vld [vmem:[%s863_s0 + $0x98] sm:$0xff]  ;;  %v61_v22 = vld [vmem:[%s863_s0 + $0x140] sm:$0xff]  ;;  %v62_v23 = vld [vmem:[%s863_s0 + $0x148] sm:$0xff] }
   0x9   :  { %111 = vmatpush.msra.mxu1 %v65_v14  ;;  %151 = vmatpush.msra.mxu3 %v66_v17  ;;  %v37_v24 = vld [vmem:[%s863_s0 + $0x80] sm:$0xff]  ;;  %v38_v25 = vld [vmem:[%s863_s0 + $0x88] sm:$0xff]  ;;  %v59_v26 = vld [vmem:[%s863_s0 + $0x130] sm:$0xff] }
   0xa   :  { %86 = vmatpush.msra.mxu0 %v43_v10  ;;  %126 = vmatpush.msra.mxu2 %v44_v11  ;;  %v60_v27 = vld [vmem:[%s863_s0 + $0x138] sm:$0xff]  ;;  %v35_v28 = vld [vmem:[%s863_s0 + $0x70] sm:$0xff]  ;;  %v57_v30 = vld [vmem:[%s863_s0 + $0x120] sm:$0xff] }
   0xb   :  { %112 = vmatpush.msra.mxu1 %v63_v18  ;;  %152 = vmatpush.msra.mxu3 %v64_v19  ;;  %v36_v29 = vld [vmem:[%s863_s0 + $0x78] sm:$0xff]  ;;  %v58_v31 = vld [vmem:[%s863_s0 + $0x128] sm:$0xff]  ;;  %v33_v32 = vld [vmem:[%s863_s0 + $0x60] sm:$0xff] }
   0xc   :  { %87 = vmatpush.msra.mxu0 %v41_v15  ;;  %127 = vmatpush.msra.mxu2 %v42_v16  ;;  %v34_v33 = vld [vmem:[%s863_s0 + $0x68] sm:$0xff]  ;;  %v55_v34 = vld [vmem:[%s863_s0 + $0x110] sm:$0xff]  ;;  %v56_v35 = vld [vmem:[%s863_s0 + $0x118] sm:$0xff] }
   0xd   :  { %113 = vmatpush.msra.mxu1 %v61_v22  ;;  %153 = vmatpush.msra.mxu3 %v62_v23  ;;  %v31_v36 = vld [vmem:[%s863_s0 + $0x50] sm:$0xff]  ;;  %v32_v37 = vld [vmem:[%s863_s0 + $0x58] sm:$0xff]  ;;  %v53_v38 = vld [vmem:[%s863_s0 + $0x100] sm:$0xff] }
   0xe   :  { %88 = vmatpush.msra.mxu0 %v39_v20  ;;  %128 = vmatpush.msra.mxu2 %v40_v21  ;;  %v54_v39 = vld [vmem:[%s863_s0 + $0x108] sm:$0xff]  ;;  %v29_v40 = vld [vmem:[%s863_s0 + $0x40] sm:$0xff]  ;;  %v27_v44 = vld [vmem:[%s863_s0 + $0x30] sm:$0xff] }
   0xf   :  { %114 = vmatpush.msra.mxu1 %v59_v26  ;;  %154 = vmatpush.msra.mxu3 %v60_v27  ;;  %v30_v41 = vld [vmem:[%s863_s0 + $0x48] sm:$0xff]  ;;  %v431_v43 = vld [vmem:[%s863_s0 + $0x280] sm:$0xff]  ;;  %v28_v45 = vld [vmem:[%s863_s0 + $0x38] sm:$0xff] }
  0x10   :  { %89 = vmatpush.msra.mxu0 %v37_v24  ;;  %129 = vmatpush.msra.mxu2 %v38_v25  ;;  %v626_v42 = vld [vmem:[%s864_s1 + $0x8] sm:$0xff]  ;;  %v429_v46 = vld [vmem:[%s863_s0 + $0x270] sm:$0xff]  ;;  %v25_v48 = vld [vmem:[%s863_s0 + $0x20] sm:$0xff] }
  0x11   :  { %115 = vmatpush.msra.mxu1 %v57_v30  ;;  %155 = vmatpush.msra.mxu3 %v58_v31  ;;  %v449_v47 = vld [vmem:[%s863_s0 + $0x310] sm:$0xf]  ;;  %v26_v49 = vld [vmem:[%s863_s0 + $0x28] sm:$0xff]  ;;  %v427_v50 = vld [vmem:[%s863_s0 + $0x260] sm:$0xff] }
  0x12   :  { %90 = vmatpush.msra.mxu0 %v35_v28  ;;  %130 = vmatpush.msra.mxu2 %v36_v29  ;;  %v447_v51 = vld [vmem:[%s863_s0 + $0x300] sm:$0xff]  ;;  %v23_v52 = vld [vmem:[%s863_s0 + $0x10] sm:$0xff]  ;;  %v24_v53 = vld [vmem:[%s863_s0 + $0x18] sm:$0xff] }
  0x13   :  { %116 = vmatpush.msra.mxu1 %v55_v34  ;;  %156 = vmatpush.msra.mxu3 %v56_v35  ;;  %v445_v54 = vld [vmem:[%s863_s0 + $0x2f0] sm:$0xff]  ;;  %v21_v55 = vld [vmem:[%s863_s0] sm:$0xff]  ;;  %v22_v56 = vld [vmem:[%s863_s0 + $0x8] sm:$0xff] }
  0x14   :  { %91 = vmatpush.msra.mxu0 %v33_v32  ;;  %131 = vmatpush.msra.mxu2 %v34_v33  ;;  %v676_v57 = vld [vmem:[%s864_s1] sm:$0xff]  ;;  %v432_v58 = vld [vmem:[%s863_s0 + $0x288] sm:$0xff]  ;;  %v425_v59 = vld [vmem:[%s863_s0 + $0x250] sm:$0xff] }
  0x15   :  { %117 = vmatpush.msra.mxu1 %v53_v38  ;;  %157 = vmatpush.msra.mxu3 %v54_v39  ;;  %v430_v60 = vld [vmem:[%s863_s0 + $0x278] sm:$0xff]  ;;  %v423_v62 = vld [vmem:[%s863_s0 + $0x240] sm:$0xff]  ;;  %v428_v0 = vld [vmem:[%s863_s0 + $0x268] sm:$0xff] }
  0x16   :  { %92 = vmatpush.msra.mxu0 %v31_v36  ;;  %132 = vmatpush.msra.mxu2 %v32_v37  ;;  %v450_v61 = vld [vmem:[%s863_s0 + $0x318] sm:$0xf]  ;;  %v443_v63 = vld [vmem:[%s863_s0 + $0x2e0] sm:$0xff]  ;;  %v448_v1 = vld [vmem:[%s863_s0 + $0x308] sm:$0xff] }
  0x17   :  { %400 = vmatmul.msk.f32.vlgmr.msra.gmra.mxu3 %vm71_vm1, %v626_v42  ;;  %269 = vmatpush.msrb.mxu1 %v431_v43  ;;  %v421_v2 = vld [vmem:[%s863_s0 + $0x230] sm:$0xff]  ;;  %v426_v4 = vld [vmem:[%s863_s0 + $0x258] sm:$0xff]  ;;  %v419_v6 = vld [vmem:[%s863_s0 + $0x220] sm:$0xff] }
  0x18   :  { %93 = vmatpush.msra.mxu0 %v29_v40  ;;  %133 = vmatpush.msra.mxu2 %v30_v41  ;;  %v441_v3 = vld [vmem:[%s863_s0 + $0x2d0] sm:$0xff]  ;;  %v446_v5 = vld [vmem:[%s863_s0 + $0x2f8] sm:$0xff]  ;;  %v439_v7 = vld [vmem:[%s863_s0 + $0x2c0] sm:$0xff] }
  0x19   :  { %270 = vmatpush.msrb.mxu1 %v429_v46  ;;  %451 = vmatpush.msk.msrb.mxu3 %vm75_vm0, %v449_v47  ;;  %v424_v8 = vld [vmem:[%s863_s0 + $0x248] sm:$0xff]  ;;  %v417_v10 = vld [vmem:[%s863_s0 + $0x210] sm:$0xff]  ;;  %v422_v12 = vld [vmem:[%s863_s0 + $0x238] sm:$0xff] }
  0x1a   :  { %94 = vmatpush.msra.mxu0 %v27_v44  ;;  %134 = vmatpush.msra.mxu2 %v28_v45  ;;  %v444_v9 = vld [vmem:[%s863_s0 + $0x2e8] sm:$0xff]  ;;  %v437_v11 = vld [vmem:[%s863_s0 + $0x2b0] sm:$0xff]  ;;  %v442_v13 = vld [vmem:[%s863_s0 + $0x2d8] sm:$0xff] }
  0x1b   :  { %271 = vmatpush.msrb.mxu1 %v427_v50  ;;  %297 = vmatpush.msrb.mxu3 %v447_v51  ;;  %v415_v14 = vld [vmem:[%s863_s0 + $0x200] sm:$0xff]  ;;  %v420_v16 = vld [vmem:[%s863_s0 + $0x228] sm:$0xff]  ;;  %v413_v18 = vld [vmem:[%s863_s0 + $0x1f0] sm:$0xff] }
  0x1c   :  { %95 = vmatpush.msra.mxu0 %v25_v48  ;;  %135 = vmatpush.msra.mxu2 %v26_v49  ;;  %v435_v15 = vld [vmem:[%s863_s0 + $0x2a0] sm:$0xff]  ;;  %v440_v17 = vld [vmem:[%s863_s0 + $0x2c8] sm:$0xff]  ;;  %v433_v19 = vld [vmem:[%s863_s0 + $0x290] sm:$0xff] }
  0x1d   :  { %398 = vmatmul.msk.f32.vlgmr.msra.gmra.mxu1 %vm71_vm1, %v626_v42  ;;  %298 = vmatpush.msrb.mxu3 %v445_v54  ;;  %v418_v20 = vld [vmem:[%s863_s0 + $0x218] sm:$0xff]  ;;  %v411_v22 = vld [vmem:[%s863_s0 + $0x1e0] sm:$0xff]  ;;  %v416_v23 = vld [vmem:[%s863_s0 + $0x208] sm:$0xff] }
  0x1e   :  { %96 = vmatpush.msra.mxu0 %v23_v52  ;;  %136 = vmatpush.msra.mxu2 %v24_v53  ;;  %v438_v21 = vld [vmem:[%s863_s0 + $0x2b8] sm:$0xff]  ;;  %v436_v24 = vld [vmem:[%s863_s0 + $0x2a8] sm:$0xff]  ;;  %v409_v25 = vld [vmem:[%s863_s0 + $0x1d0] sm:$0xff] }
  0x1f   :  { %272 = vmatpush.msrb.mxu1 %v425_v59  ;;  %299 = vmatpush.msrb.mxu3 %v443_v63  ;;  %v414_v26 = vld [vmem:[%s863_s0 + $0x1f8] sm:$0xff]  ;;  %v407_v28 = vld [vmem:[%s863_s0 + $0x1c0] sm:$0xff]  ;;  %v412_v29 = vld [vmem:[%s863_s0 + $0x1e8] sm:$0xff] }
  0x20   :  { %97 = vmatpush.msra.mxu0 %v21_v55  ;;  %137 = vmatpush.msra.mxu2 %v22_v56  ;;  %v434_v27 = vld [vmem:[%s863_s0 + $0x298] sm:$0xff]  ;;  %v405_v30 = vld [vmem:[%s863_s0 + $0x1b0] sm:$0xff]  ;;  %v403_v32 = vld [vmem:[%s863_s0 + $0x1a0] sm:$0xff] }
  0x21   :  { %138 = vmatmul.f32.vlgmr.msra.gmra.mxu2 %v676_v57  ;;  %98 = vmatmul.f32.vlgmr.msra.gmra.mxu0 %v676_v57  ;;  %v410_v31 = vld [vmem:[%s863_s0 + $0x1d8] sm:$0xff]  ;;  %v408_v33 = vld [vmem:[%s863_s0 + $0x1c8] sm:$0xff]  ;;  %v401_v34 = vld [vmem:[%s863_s0 + $0x190] sm:$0xff] }
  0x22   :  { %309 = vmatpush.msrb.mxu0 %v432_v58  ;;  %453 = vmatpush.msk.msrb.mxu2 %vm75_vm0, %v450_v61  ;;  %v406_v35 = vld [vmem:[%s863_s0 + $0x1b8] sm:$0xff]  ;;  %v404_v36 = vld [vmem:[%s863_s0 + $0x1a8] sm:$0xff]  ;;  %v468_v58 = vmov 256.0  }
  0x23   :  { %273 = vmatpush.msrb.mxu1 %v423_v62  ;;  %300 = vmatpush.msrb.mxu3 %v441_v3  ;;  %v402_v37 = vld [vmem:[%s863_s0 + $0x198] sm:$0xff]  ;;  %462 = vrcp.f32 %v468_v58 }
  0x24   :  { %310 = vmatpush.msrb.mxu0 %v430_v60  ;;  %337 = vmatpush.msrb.mxu2 %v448_v1  ;;  %v469_v1 = vmov 0  }
  0x25   :  { %274 = vmatpush.msrb.mxu1 %v421_v2  ;;  %301 = vmatpush.msrb.mxu3 %v439_v7 }
  0x26   :  { %311 = vmatpush.msrb.mxu0 %v428_v0  ;;  %338 = vmatpush.msrb.mxu2 %v446_v5 }
  0x27   :  { %275 = vmatpush.msrb.mxu1 %v419_v6  ;;  %302 = vmatpush.msrb.mxu3 %v437_v11 }
  0x28   :  { %312 = vmatpush.msrb.mxu0 %v426_v4  ;;  %339 = vmatpush.msrb.mxu2 %v444_v9 }
  0x29   :  { %276 = vmatpush.msrb.mxu1 %v417_v10  ;;  %303 = vmatpush.msrb.mxu3 %v435_v15  ;;  %v463_v59 = vpop.eup %462 }
  0x2a   :  { %313 = vmatpush.msrb.mxu0 %v424_v8  ;;  %340 = vmatpush.msrb.mxu2 %v442_v13  ;;  %v166_v60 = vmul.f32 256.0, %v463_v59  ;;  %vm170_vm2 = vweird.f32 %v463_v59 }
  0x2b   :  { %277 = vmatpush.msrb.mxu1 %v415_v14  ;;  %304 = vmatpush.msrb.mxu3 %v433_v19 }
  0x2c   :  { %314 = vmatpush.msrb.mxu0 %v422_v12  ;;  %341 = vmatpush.msrb.mxu2 %v440_v17  ;;  %v167_v61 = vsub.f32 1.0, %v166_v60  ;;  %v19_v17 = vld [vmem:[%s865_s2] sm:$0xff] }
  0x2d   :  { %278 = vmatpush.msrb.mxu1 %v413_v18  ;;  %452 = vmatmul.msk.f32.vlgmr.msrb.gmra.mxu3 %vm71_vm1, %v626_v42 }
  0x2e   :  { %315 = vmatpush.msrb.mxu0 %v420_v16  ;;  %342 = vmatpush.msrb.mxu2 %v438_v21  ;;  %v168_v62 = vmul.f32 %v463_v59, %v167_v61 }
  0x2f   :  { %279 = vmatpush.msrb.mxu1 %v411_v22  ;;  %459 = vset.pattern.permute.xlu2 %v469_v1 }
  0x30   :  { %316 = vmatpush.msrb.mxu0 %v418_v20  ;;  %343 = vmatpush.msrb.mxu2 %v436_v24  ;;  %v169_v63 = vadd.f32 %v463_v59, %v168_v62 }
  0x31   :  { %280 = vmatpush.msrb.mxu1 %v409_v25  ;;  %460 = vset.pattern.permute.xlu0 %v469_v1  ;;  %v20_v25 = vld [vmem:[%s866_s3] sm:$0xff] }
  0x32   :  { %317 = vmatpush.msrb.mxu0 %v416_v23  ;;  %344 = vmatpush.msrb.mxu2 %v434_v27  ;;  %v171_v0 = vsel %vm170_vm2, %v463_v59, %v169_v63 }
  0x33   :  { %281 = vmatpush.msrb.mxu1 %v407_v28  ;;  %454 = vmatmul.msk.f32.vlgmr.msrb.gmra.mxu2 %vm71_vm1, %v626_v42 }
  0x34   :  { %318 = vmatpush.msrb.mxu0 %v414_v26  ;;  %461 = vset.pattern.permute.xlu1 %v469_v1 }
  0x35   :  { %282 = vmatpush.msrb.mxu1 %v405_v30 }
  0x36   :  { %319 = vmatpush.msrb.mxu0 %v412_v29 }
  0x37   :  { %283 = vmatpush.msrb.mxu1 %v403_v32 }
  0x38   :  { %320 = vmatpush.msrb.mxu0 %v410_v31 }
  0x39   :  { %284 = vmatpush.msrb.mxu1 %v401_v34 }
  0x3a   :  { %321 = vmatpush.msrb.mxu0 %v408_v33  ;;  %285 = vmatmul.f32.vlgmr.msrb.gmra.mxu1 %v676_v57 }
  0x3c   :  { %322 = vmatpush.msrb.mxu0 %v406_v35 }
  0x3e   :  { %323 = vmatpush.msrb.mxu0 %v404_v36 }
  0x40   :  { %324 = vmatpush.msrb.mxu0 %v402_v37 }
  0x41   :  { %325 = vmatmul.f32.vlgmr.msrb.gmra.mxu0 %v676_v57 }
  0x9a   :  { %v119_v38 = vpop.f32.mrf.mxu1  ;;  %v159_v41 = vpop.f32.mrf.mxu3 }
  0x9e   :  { %v99_v39 = vpop.f32.mrf.mxu0 }
  0x9f   :  { %v821_v40 = vadd.f32 %v119_v38, %v99_v39 }
  0xa1   :  { %v173_v44 = vmul.f32 %v821_v40, %v821_v40 }
  0xa4   :  { %v139_v42 = vpop.f32.mrf.mxu2 }
  0xa5   :  { %v823_v43 = vadd.f32 %v159_v41, %v139_v42 }
  0xa7   :  { %v162_v45 = vadd.f32 %v823_v43, %v821_v40  ;;  %v174_v46 = vmul.f32 %v823_v43, %v823_v43 }
  0xa9   :  { %163 = vadd.xlane.f32.xlu0 %v162_v45  ;;  %v175_v47 = vadd.f32 %v174_v46, %v173_v44 }
  0xab   :  { %176 = vadd.xlane.f32.xlu1 %v175_v47 }
  0xb0   :  { %v306_v48 = vpop.f32.mrf.mxu3 }
  0xb6   :  { %v346_v51 = vpop.f32.mrf.mxu2 }
  0xb7   :  { %v286_v49 = vpop.f32.mrf.mxu1 }
  0xb8   :  { %v831_v50 = vadd.f32 %v306_v48, %v286_v49 }
  0xba   :  { %v353_v54 = vmul.f32 %v831_v50, %v831_v50 }
  0xbe   :  { %v326_v52 = vpop.f32.mrf.mxu0 }
  0xbf   :  { %v833_v53 = vadd.f32 %v346_v51, %v326_v52 }
  0xc1   :  { %v349_v55 = vadd.f32 %v833_v53, %v831_v50  ;;  %v354_v56 = vmul.f32 %v833_v53, %v833_v53 }
  0xc3   :  { %350 = vadd.xlane.f32.xlu0 %v349_v55  ;;  %v355_v57 = vadd.f32 %v354_v56, %v353_v54 }
  0xc5   :  { %356 = vadd.xlane.f32.xlu1 %v355_v57 }
 0x11c   :  { %v164_v2 = vpop.xlane.xlu0 %163 }
 0x11d   :  { %v172_v3 = vmul.f32 %v171_v0, %v164_v2 }
 0x11e   :  { %v177_v4 = vpop.xlane.xlu1 %176 }
 0x11f   :  { %v179_v5 = vmul.f32 %v172_v3, %v172_v3  ;;  %v178_v6 = vmul.f32 %v177_v4, %v171_v0 }
 0x121   :  { %v180_v7 = vsub.f32 %v178_v6, %v179_v5 }
 0x123   :  { %v181_v8 = vmax.f32 %v180_v7, 0.0 }
 0x125   :  { %v182_v9 = vadd.f32 1e-05, %v181_v8 }
 0x127   :  { %464 = vrsqrt.f32 %v182_v9  ;;  %vm189_vm3 = vweird.f32 %v182_v9 }
 0x12d   :  { %v465_v10 = vpop.eup %464 }
 0x12e   :  { %v184_v11 = vmul.f32 %v465_v10, %v182_v9  ;;  %vm190_vm4 = vweird.f32 %v465_v10 }
 0x12f   :  { %vm191_vm5 = vmor %vm189_vm3, %vm190_vm4 }
 0x130   :  { %v185_v12 = vmul.f32 %v465_v10, %v184_v11 }
 0x132   :  { %v186_v13 = vmul.f32 0.5, %v185_v12 }
 0x134   :  { %v187_v14 = vsub.f32 1.5, %v186_v13 }
 0x136   :  { %v351_v15 = vpop.xlane.xlu0 %350  ;;  %v188_v18 = vmul.f32 %v465_v10, %v187_v14 }
 0x137   :  { %v352_v16 = vmul.f32 %v351_v15, %v171_v0 }
 0x138   :  { %v357_v19 = vpop.xlane.xlu1 %356  ;;  %v192_v22 = vsel %vm191_vm5, %v465_v10, %v188_v18 }
 0x139   :  { %v359_v20 = vmul.f32 %v352_v16, %v352_v16  ;;  %v358_v21 = vmul.f32 %v357_v19, %v171_v0  ;;  %v193_v23 = vmul.f32 %v192_v22, %v19_v17 }
 0x13b   :  { %v360_v24 = vsub.f32 %v358_v21, %v359_v20  ;;  %198 = vperm.xlu2 %459, %v193_v23   ;;  %v194_v26 = vmul.f32 %v193_v23, %v172_v3 }
 0x13d   :  { %v361_v27 = vmax.f32 %v360_v24, 0.0  ;;  %v195_v28 = vsub.f32 %v20_v25, %v194_v26 }
 0x13f   :  { %v362_v29 = vadd.f32 1e-05, %v361_v27  ;;  %205 = vperm.xlu0 %460, %v195_v28  }
 0x141   :  { %466 = vrsqrt.f32 %v362_v29  ;;  %vm369_vm7 = vweird.f32 %v362_v29 }
 0x147   :  { %v467_v30 = vpop.eup %466 }
 0x148   :  { %v364_v31 = vmul.f32 %v467_v30, %v362_v29  ;;  %vm370_vm6 = vweird.f32 %v467_v30 }
 0x149   :  { %vm371_vm8 = vmor %vm369_vm7, %vm370_vm6 }
 0x14a   :  { %v365_v32 = vmul.f32 %v467_v30, %v364_v31 }
 0x14c   :  { %v366_v33 = vmul.f32 0.5, %v365_v32 }
 0x14e   :  { %v367_v34 = vsub.f32 1.5, %v366_v33 }
 0x150   :  { %v368_v35 = vmul.f32 %v467_v30, %v367_v34 }
 0x152   :  { %v372_v36 = vsel %vm371_vm8, %v467_v30, %v368_v35 }
 0x153   :  { %v373_v37 = vmul.f32 %v372_v36, %v19_v17 }
 0x155   :  { %v374_v38 = vmul.f32 %v373_v37, %v352_v16  ;;  %378 = vperm.xlu2 %459, %v373_v37  }
 0x157   :  { %v375_v39 = vsub.f32 %v20_v25, %v374_v38 }
 0x159   :  { %385 = vperm.xlu1 %461, %v375_v39  }
 0x195   :  { %v199_v41 = vpop.permute.xlu2 %198 }
 0x196   :  { %v201_v42 = vmul.f32 %v199_v41, %v821_v40  ;;  %v202_v44 = vmul.f32 %v199_v41, %v823_v43 }
 0x1af   :  { %v379_v48 = vpop.permute.xlu2 %378 }
 0x1b0   :  { %v381_v49 = vmul.f32 %v379_v48, %v831_v50  ;;  %v382_v51 = vmul.f32 %v379_v48, %v833_v53 }
 0x1b1   :  { %v206_v45 = vpop.permute.xlu0 %205 }
 0x1b2   :  { %v208_v46 = vadd.f32 %v206_v45, %v201_v42  ;;  %v209_v47 = vadd.f32 %v206_v45, %v202_v44 }
 0x1b4   :  { %210 = vst [vmem:[%s867_s4] sm:$0xff] %v208_v46 }
 0x1b5   :  { %211 = vst [vmem:[%s867_s4 + $0x8] sm:$0xff] %v209_v47 }
 0x1cb   :  { %v386_v52 = vpop.permute.xlu1 %385 }
 0x1cc   :  { %v388_v40 = vadd.f32 %v386_v52, %v381_v49  ;;  %v389_v54 = vadd.f32 %v386_v52, %v382_v51 }
 0x1ce   :  { %455 = vst [vmem:[%s867_s4 + $0x10] sm:$0xff] %v388_v40 }
 0x1cf   :  { %456 = vst [vmem:[%s867_s4 + $0x18] sm:$0xff] %v389_v54 }

// kernel: _lambda_.17
= control target key start
LH: loop header
LB: loop body
LE: loop exit
PB: predicated region body
PF: predicated region fallthrough
CT: control target
= control target key end

     0   :  { %vm41_vm0 = vcmask 588800   ;;  %v296_v49 = vmov 256.0   ;;  %v297_v56 = vmov 0   ;;  %s493_s0 = inlined_call_operand.vmem [shape: f32[2,72,256], index: 0, kind: input, shape index: {}]   ;;  %s494_s1 = inlined_call_operand.vmem [shape: f32[8,72], index: 1, kind: input, shape index: {}]   ;;  %s495_s2 = inlined_call_operand.vmem [shape: f32[8,1], index: 2, kind: input, shape index: {}]   ;;  %s496_s3 = inlined_call_operand.vmem [shape: f32[8,1], index: 3, kind: input, shape index: {}]   ;;  %s497_s4 = inlined_call_operand.vmem [shape: f32[2,8,256], index: 4, kind: input, shape index: {}]   ;;  %s498_s5 = inlined_call_operand.vmem [shape: f32[2,8,256], index: 5, kind: output, shape index: {}]  }
   0x1   :  { %v39_v0 = vld [vmem:[%s493_s0 + $0x80] sm:$0xff]  ;;  %v40_v1 = vld [vmem:[%s493_s0 + $0x88] sm:$0xff]  ;;  %v37_v2 = vld [vmem:[%s493_s0 + $0x70] sm:$0xff]  ;;  %290 = vrcp.f32 %v296_v49  ;;  %287 = vset.pattern.permute.xlu2 %v297_v56  ;;  %288 = vset.pattern.permute.xlu0 %v297_v56 }
   0x2   :  { %52 = vmatpush.msra.mxu0 %v39_v0  ;;  %72 = vmatpush.msra.mxu1 %v40_v1  ;;  %v38_v3 = vld [vmem:[%s493_s0 + $0x78] sm:$0xff]  ;;  %v277_v4 = vld [vmem:[%s493_s0 + $0x110] sm:$0xff]  ;;  %v35_v6 = vld [vmem:[%s493_s0 + $0x60] sm:$0xff] }
   0x3   :  { %v278_v5 = vld [vmem:[%s493_s0 + $0x118] sm:$0xff]  ;;  %169 = vmatpush.msra.mxu2 %v277_v4  ;;  %v36_v7 = vld [vmem:[%s493_s0 + $0x68] sm:$0xff]  ;;  %v275_v8 = vld [vmem:[%s493_s0 + $0x100] sm:$0xff]  ;;  %289 = vset.pattern.permute.xlu1 %v297_v56 }
   0x4   :  { %189 = vmatpush.msra.mxu3 %v278_v5  ;;  %53 = vmatpush.msra.mxu0 %v37_v2  ;;  %v276_v9 = vld [vmem:[%s493_s0 + $0x108] sm:$0xff]  ;;  %v33_v10 = vld [vmem:[%s493_s0 + $0x50] sm:$0xff]  ;;  %v34_v11 = vld [vmem:[%s493_s0 + $0x58] sm:$0xff] }
   0x5   :  { %73 = vmatpush.msra.mxu1 %v38_v3  ;;  %170 = vmatpush.msra.mxu2 %v275_v8  ;;  %v273_v12 = vld [vmem:[%s493_s0 + $0xf0] sm:$0xff]  ;;  %v274_v13 = vld [vmem:[%s493_s0 + $0xf8] sm:$0xff]  ;;  %v271_v14 = vld [vmem:[%s493_s0 + $0xe0] sm:$0xff] }
   0x6   :  { %190 = vmatpush.msra.mxu3 %v276_v9  ;;  %54 = vmatpush.msra.mxu0 %v35_v6  ;;  %v272_v15 = vld [vmem:[%s493_s0 + $0xe8] sm:$0xff]  ;;  %v31_v16 = vld [vmem:[%s493_s0 + $0x40] sm:$0xff]  ;;  %v269_v18 = vld [vmem:[%s493_s0 + $0xd0] sm:$0xff] }
   0x7   :  { %74 = vmatpush.msra.mxu1 %v36_v7  ;;  %171 = vmatpush.msra.mxu2 %v273_v12  ;;  %v32_v17 = vld [vmem:[%s493_s0 + $0x48] sm:$0xff]  ;;  %v270_v19 = vld [vmem:[%s493_s0 + $0xd8] sm:$0xff]  ;;  %v29_v20 = vld [vmem:[%s493_s0 + $0x30] sm:$0xff]  ;;  %v291_v50 = vpop.eup %290 }
   0x8   :  { %191 = vmatpush.msra.mxu3 %v274_v13  ;;  %55 = vmatpush.msra.mxu0 %v33_v10  ;;  %v30_v21 = vld [vmem:[%s493_s0 + $0x38] sm:$0xff]  ;;  %v267_v22 = vld [vmem:[%s493_s0 + $0xc0] sm:$0xff]  ;;  %v268_v23 = vld [vmem:[%s493_s0 + $0xc8] sm:$0xff]  ;;  %v89_v51 = vmul.f32 256.0, %v291_v50  ;;  %vm93_vm1 = vweird.f32 %v291_v50 }
   0x9   :  { %75 = vmatpush.msra.mxu1 %v34_v11  ;;  %172 = vmatpush.msra.mxu2 %v271_v14  ;;  %v27_v24 = vld [vmem:[%s493_s0 + $0x20] sm:$0xff]  ;;  %v28_v25 = vld [vmem:[%s493_s0 + $0x28] sm:$0xff]  ;;  %v265_v26 = vld [vmem:[%s493_s0 + $0xb0] sm:$0xff] }
   0xa   :  { %192 = vmatpush.msra.mxu3 %v272_v15  ;;  %56 = vmatpush.msra.mxu0 %v31_v16  ;;  %v266_v27 = vld [vmem:[%s493_s0 + $0xb8] sm:$0xff]  ;;  %v25_v28 = vld [vmem:[%s493_s0 + $0x10] sm:$0xff]  ;;  %v263_v30 = vld [vmem:[%s493_s0 + $0xa0] sm:$0xff]  ;;  %v90_v52 = vsub.f32 1.0, %v89_v51 }
   0xb   :  { %76 = vmatpush.msra.mxu1 %v32_v17  ;;  %173 = vmatpush.msra.mxu2 %v269_v18  ;;  %v26_v29 = vld [vmem:[%s493_s0 + $0x18] sm:$0xff]  ;;  %v264_v31 = vld [vmem:[%s493_s0 + $0xa8] sm:$0xff]  ;;  %v23_v32 = vld [vmem:[%s493_s0] sm:$0xff] }
   0xc   :  { %193 = vmatpush.msra.mxu3 %v270_v19  ;;  %57 = vmatpush.msra.mxu0 %v29_v20  ;;  %v24_v33 = vld [vmem:[%s493_s0 + $0x8] sm:$0xff]  ;;  %v20_v34 = vld [vmem:[%s494_s1] sm:$0xff]  ;;  %v261_v35 = vld [vmem:[%s493_s0 + $0x90] sm:$0xff]  ;;  %v91_v53 = vmul.f32 %v291_v50, %v90_v52 }
   0xd   :  { %77 = vmatpush.msra.mxu1 %v30_v21  ;;  %174 = vmatpush.msra.mxu2 %v267_v22  ;;  %v262_v36 = vld [vmem:[%s493_s0 + $0x98] sm:$0xff]  ;;  %v21_v16 = vld [vmem:[%s495_s2] sm:$0xff] }
   0xe   :  { %194 = vmatpush.msra.mxu3 %v268_v23  ;;  %58 = vmatpush.msra.mxu0 %v27_v24  ;;  %v92_v54 = vadd.f32 %v291_v50, %v91_v53  ;;  %v22_v22 = vld [vmem:[%s496_s3] sm:$0xff]  ;;  %v282_v49 = vld [vmem:[%s497_s4 + $0x18] sm:$0xff] }
   0xf   :  { %78 = vmatpush.msra.mxu1 %v28_v25  ;;  %175 = vmatpush.msra.mxu2 %v265_v26  ;;  %v247_v53 = vmax.f32 %v282_v49, 0.0 }
  0x10   :  { %195 = vmatpush.msra.mxu3 %v266_v27  ;;  %59 = vmatpush.msra.mxu0 %v25_v28  ;;  %v94_v55 = vsel %vm93_vm1, %v291_v50, %v92_v54 }
  0x11   :  { %79 = vmatpush.msra.mxu1 %v26_v29  ;;  %176 = vmatpush.msra.mxu2 %v263_v30 }
  0x12   :  { %196 = vmatpush.msra.mxu3 %v264_v31  ;;  %60 = vmatpush.msra.mxu0 %v23_v32  ;;  %v133_v32 = vld [vmem:[%s497_s4] sm:$0xff] }
  0x13   :  { %80 = vmatpush.msra.mxu1 %v24_v33  ;;  %259 = vmatmul.msk.f32.vlgmr.msra.gmra.mxu0 %vm41_vm0, %v20_v34  ;;  %v134_v33 = vld [vmem:[%s497_s4 + $0x8] sm:$0xff] }
  0x14   :  { %260 = vmatmul.msk.f32.vlgmr.msra.gmra.mxu1 %vm41_vm0, %v20_v34  ;;  %177 = vmatpush.msra.mxu2 %v261_v35 }
  0x15   :  { %197 = vmatpush.msra.mxu3 %v262_v36  ;;  %279 = vmatmul.msk.f32.vlgmr.msra.gmra.mxu2 %vm41_vm0, %v20_v34  ;;  %v135_v36 = vmax.f32 %v133_v32, 0.0 }
  0x16   :  { %280 = vmatmul.msk.f32.vlgmr.msra.gmra.mxu3 %vm41_vm0, %v20_v34 }
  0x90   :  { %v439_v37 = vpop.f32.mrf.mxu0 }
  0x91   :  { %v441_v38 = vpop.f32.mrf.mxu1  ;;  %v96_v39 = vmul.f32 %v439_v37, %v439_v37 }
  0x92   :  { %v97_v40 = vmul.f32 %v441_v38, %v441_v38  ;;  %v85_v41 = vadd.f32 %v441_v38, %v439_v37 }
  0x94   :  { %86 = vadd.xlane.f32.xlu0 %v85_v41  ;;  %v98_v42 = vadd.f32 %v97_v40, %v96_v39  ;;  %v136_v39 = vmax.f32 %v134_v33, 0.0 }
  0x96   :  { %99 = vadd.xlane.f32.xlu1 %v98_v42 }
  0x98   :  { %v449_v43 = vpop.f32.mrf.mxu2 }
  0x99   :  { %v451_v44 = vpop.f32.mrf.mxu3  ;;  %v206_v45 = vmul.f32 %v449_v43, %v449_v43 }
  0x9a   :  { %v207_v46 = vmul.f32 %v451_v44, %v451_v44  ;;  %v202_v47 = vadd.f32 %v451_v44, %v449_v43 }
  0x9c   :  { %203 = vadd.xlane.f32.xlu0 %v202_v47  ;;  %v208_v48 = vadd.f32 %v207_v46, %v206_v45 }
  0x9e   :  { %209 = vadd.xlane.f32.xlu1 %v208_v48  ;;  %v281_v48 = vld [vmem:[%s497_s4 + $0x10] sm:$0xff] }
  0x9f   :  { %v246_v52 = vmax.f32 %v281_v48, 0.0 }
 0x107   :  { %v87_v57 = vpop.xlane.xlu0 %86 }
 0x108   :  { %v95_v58 = vmul.f32 %v94_v55, %v87_v57 }
 0x109   :  { %v100_v59 = vpop.xlane.xlu1 %99 }
 0x10a   :  { %v102_v60 = vmul.f32 %v95_v58, %v95_v58  ;;  %v101_v61 = vmul.f32 %v100_v59, %v94_v55 }
 0x10c   :  { %v103_v62 = vsub.f32 %v101_v61, %v102_v60 }
 0x10e   :  { %v104_v63 = vmax.f32 %v103_v62, 0.0 }
 0x10f   :  { %v204_v0 = vpop.xlane.xlu0 %203 }
 0x110   :  { %v105_v1 = vadd.f32 1e-05, %v104_v63  ;;  %v205_v2 = vmul.f32 %v204_v0, %v94_v55 }
 0x111   :  { %v210_v3 = vpop.xlane.xlu1 %209 }
 0x112   :  { %292 = vrsqrt.f32 %v105_v1  ;;  %v212_v4 = vmul.f32 %v205_v2, %v205_v2  ;;  %v211_v5 = vmul.f32 %v210_v3, %v94_v55  ;;  %vm112_vm3 = vweird.f32 %v105_v1 }
 0x114   :  { %v213_v6 = vsub.f32 %v211_v5, %v212_v4 }
 0x116   :  { %v214_v7 = vmax.f32 %v213_v6, 0.0 }
 0x118   :  { %v293_v8 = vpop.eup %292  ;;  %v215_v9 = vadd.f32 1e-05, %v214_v7 }
 0x119   :  { %v107_v10 = vmul.f32 %v293_v8, %v105_v1  ;;  %vm113_vm2 = vweird.f32 %v293_v8 }
 0x11a   :  { %294 = vrsqrt.f32 %v215_v9  ;;  %vm114_vm4 = vmor %vm112_vm3, %vm113_vm2  ;;  %vm222_vm6 = vweird.f32 %v215_v9 }
 0x11b   :  { %v108_v11 = vmul.f32 %v293_v8, %v107_v10 }
 0x11d   :  { %v109_v12 = vmul.f32 0.5, %v108_v11 }
 0x11f   :  { %v110_v13 = vsub.f32 1.5, %v109_v12 }
 0x120   :  { %v295_v14 = vpop.eup %294 }
 0x121   :  { %v217_v15 = vmul.f32 %v295_v14, %v215_v9  ;;  %v111_v17 = vmul.f32 %v293_v8, %v110_v13  ;;  %vm223_vm5 = vweird.f32 %v295_v14 }
 0x122   :  { %vm224_vm7 = vmor %vm222_vm6, %vm223_vm5 }
 0x123   :  { %v218_v18 = vmul.f32 %v295_v14, %v217_v15  ;;  %v115_v19 = vsel %vm114_vm4, %v293_v8, %v111_v17 }
 0x124   :  { %v116_v20 = vmul.f32 %v115_v19, %v21_v16 }
 0x125   :  { %v219_v21 = vmul.f32 0.5, %v218_v18 }
 0x126   :  { %121 = vperm.xlu2 %287, %v116_v20   ;;  %v117_v23 = vmul.f32 %v116_v20, %v95_v58 }
 0x127   :  { %v220_v24 = vsub.f32 1.5, %v219_v21 }
 0x128   :  { %v118_v25 = vsub.f32 %v22_v22, %v117_v23 }
 0x129   :  { %v221_v26 = vmul.f32 %v295_v14, %v220_v24 }
 0x12a   :  { %128 = vperm.xlu0 %288, %v118_v25  }
 0x12b   :  { %v225_v27 = vsel %vm224_vm7, %v295_v14, %v221_v26 }
 0x12c   :  { %v226_v28 = vmul.f32 %v225_v27, %v21_v16 }
 0x12e   :  { %v227_v29 = vmul.f32 %v226_v28, %v205_v2  ;;  %231 = vperm.xlu2 %287, %v226_v28  }
 0x130   :  { %v228_v30 = vsub.f32 %v22_v22, %v227_v29 }
 0x132   :  { %238 = vperm.xlu1 %289, %v228_v30  }
 0x180   :  { %v122_v31 = vpop.permute.xlu2 %121 }
 0x181   :  { %v124_v34 = vmul.f32 %v122_v31, %v439_v37  ;;  %v125_v35 = vmul.f32 %v122_v31, %v441_v38 }
 0x188   :  { %v232_v47 = vpop.permute.xlu2 %231 }
 0x189   :  { %v234_v38 = vmul.f32 %v232_v47, %v449_v43  ;;  %v235_v51 = vmul.f32 %v232_v47, %v451_v44 }
 0x19c   :  { %v129_v40 = vpop.permute.xlu0 %128 }
 0x19d   :  { %v131_v41 = vadd.f32 %v129_v40, %v124_v34  ;;  %v132_v42 = vadd.f32 %v129_v40, %v125_v35 }
 0x19f   :  { %v137_v45 = vadd.f32 %v135_v36, %v131_v41  ;;  %v138_v46 = vadd.f32 %v136_v39, %v132_v42 }
 0x1a1   :  { %v139_v50 = vmax.f32 %v137_v45, 0.0  ;;  %v140_v37 = vmax.f32 %v138_v46, 0.0 }
 0x1a3   :  { %141 = vst [vmem:[%s498_s5] sm:$0xff] %v139_v50 }
 0x1a4   :  { %142 = vst [vmem:[%s498_s5 + $0x8] sm:$0xff] %v140_v37  ;;  %v239_v54 = vpop.permute.xlu1 %238 }
 0x1a5   :  { %v241_v55 = vadd.f32 %v239_v54, %v234_v38  ;;  %v242_v56 = vadd.f32 %v239_v54, %v235_v51 }
 0x1a7   :  { %v248_v57 = vadd.f32 %v246_v52, %v241_v55  ;;  %v249_v58 = vadd.f32 %v247_v53, %v242_v56 }
 0x1a9   :  { %v250_v59 = vmax.f32 %v248_v57, 0.0  ;;  %v251_v60 = vmax.f32 %v249_v58, 0.0 }
 0x1ab   :  { %283 = vst [vmem:[%s498_s5 + $0x10] sm:$0xff] %v250_v59 }
 0x1ac   :  { %284 = vst [vmem:[%s498_s5 + $0x18] sm:$0xff] %v251_v60 }

// kernel: _lambda_.16
= control target key start
LH: loop header
LB: loop body
LE: loop exit
PB: predicated region body
PF: predicated region fallthrough
CT: control target
= control target key end

     0   :  { %vm56_vm0 = vcmask 588800   ;;  %s494_s0 = inlined_call_operand.vmem [shape: f32[2,72,256], index: 0, kind: input, shape index: {}]   ;;  %s495_s1 = inlined_call_operand.vmem [shape: f32[8,72], index: 1, kind: input, shape index: {}]   ;;  %s496_s2 = inlined_call_operand.vmem [shape: f32[8,1], index: 2, kind: input, shape index: {}]   ;;  %s497_s3 = inlined_call_operand.vmem [shape: f32[8,1], index: 3, kind: input, shape index: {}]   ;;  %s498_s4 = inlined_call_operand.vmem [shape: f32[2,8,256], index: 4, kind: output, shape index: {}]  }
   0x1   :  { %v36_v0 = vld [vmem:[%s494_s0 + $0x80] sm:$0xff]  ;;  %v37_v1 = vld [vmem:[%s494_s0 + $0x88] sm:$0xff]  ;;  %v34_v2 = vld [vmem:[%s494_s0 + $0x70] sm:$0xff] }
   0x2   :  { %v54_v3 = vmax.f32 %v36_v0, 0.0  ;;  %v55_v4 = vmax.f32 %v37_v1, 0.0  ;;  %v52_v5 = vmax.f32 %v34_v2, 0.0  ;;  %v35_v6 = vld [vmem:[%s494_s0 + $0x78] sm:$0xff]  ;;  %v297_v7 = vld [vmem:[%s494_s0 + $0x110] sm:$0xff]  ;;  %v32_v12 = vld [vmem:[%s494_s0 + $0x60] sm:$0xff] }
   0x3   :  { %v298_v8 = vld [vmem:[%s494_s0 + $0x118] sm:$0xff]  ;;  %v53_v9 = vmax.f32 %v35_v6, 0.0  ;;  %v187_v10 = vmax.f32 %v297_v7, 0.0  ;;  %v33_v13 = vld [vmem:[%s494_s0 + $0x68] sm:$0xff]  ;;  %v295_v14 = vld [vmem:[%s494_s0 + $0x100] sm:$0xff]  ;;  %v50_v15 = vmax.f32 %v32_v12, 0.0 }
   0x4   :  { %v188_v11 = vmax.f32 %v298_v8, 0.0  ;;  %67 = vmatpush.msra.mxu0 %v54_v3  ;;  %87 = vmatpush.msra.mxu1 %v55_v4  ;;  %v51_v16 = vmax.f32 %v33_v13, 0.0  ;;  %v185_v17 = vmax.f32 %v295_v14, 0.0  ;;  %v296_v18 = vld [vmem:[%s494_s0 + $0x108] sm:$0xff]  ;;  %v30_v19 = vld [vmem:[%s494_s0 + $0x50] sm:$0xff]  ;;  %v31_v20 = vld [vmem:[%s494_s0 + $0x58] sm:$0xff] }
   0x5   :  { %196 = vmatpush.msra.mxu2 %v187_v10  ;;  %v186_v21 = vmax.f32 %v296_v18, 0.0  ;;  %v48_v22 = vmax.f32 %v30_v19, 0.0  ;;  %v293_v23 = vld [vmem:[%s494_s0 + $0xf0] sm:$0xff]  ;;  %v294_v24 = vld [vmem:[%s494_s0 + $0xf8] sm:$0xff]  ;;  %v28_v25 = vld [vmem:[%s494_s0 + $0x40] sm:$0xff]  ;;  %v49_v26 = vmax.f32 %v31_v20, 0.0 }
   0x6   :  { %216 = vmatpush.msra.mxu3 %v188_v11  ;;  %68 = vmatpush.msra.mxu0 %v52_v5  ;;  %v183_v27 = vmax.f32 %v293_v23, 0.0  ;;  %v184_v28 = vmax.f32 %v294_v24, 0.0  ;;  %v29_v29 = vld [vmem:[%s494_s0 + $0x48] sm:$0xff]  ;;  %v291_v30 = vld [vmem:[%s494_s0 + $0xe0] sm:$0xff]  ;;  %v26_v34 = vld [vmem:[%s494_s0 + $0x30] sm:$0xff]  ;;  %v46_v37 = vmax.f32 %v28_v25, 0.0 }
   0x7   :  { %88 = vmatpush.msra.mxu1 %v53_v9  ;;  %v292_v31 = vld [vmem:[%s494_s0 + $0xe8] sm:$0xff]  ;;  %197 = vmatpush.msra.mxu2 %v185_v17  ;;  %v181_v32 = vmax.f32 %v291_v30, 0.0  ;;  %v27_v35 = vld [vmem:[%s494_s0 + $0x38] sm:$0xff]  ;;  %v289_v36 = vld [vmem:[%s494_s0 + $0xd0] sm:$0xff]  ;;  %v47_v38 = vmax.f32 %v29_v29, 0.0  ;;  %v44_v46 = vmax.f32 %v26_v34, 0.0 }
   0x8   :  { %217 = vmatpush.msra.mxu3 %v186_v21  ;;  %v182_v33 = vmax.f32 %v292_v31, 0.0  ;;  %69 = vmatpush.msra.mxu0 %v50_v15  ;;  %v290_v39 = vld [vmem:[%s494_s0 + $0xd8] sm:$0xff]  ;;  %v24_v40 = vld [vmem:[%s494_s0 + $0x20] sm:$0xff]  ;;  %v179_v41 = vmax.f32 %v289_v36, 0.0  ;;  %v25_v43 = vld [vmem:[%s494_s0 + $0x28] sm:$0xff]  ;;  %v45_v47 = vmax.f32 %v27_v35, 0.0 }
   0x9   :  { %89 = vmatpush.msra.mxu1 %v51_v16  ;;  %198 = vmatpush.msra.mxu2 %v183_v27  ;;  %v180_v42 = vmax.f32 %v290_v39, 0.0  ;;  %v287_v44 = vld [vmem:[%s494_s0 + $0xc0] sm:$0xff]  ;;  %v288_v45 = vld [vmem:[%s494_s0 + $0xc8] sm:$0xff]  ;;  %v285_v48 = vld [vmem:[%s494_s0 + $0xb0] sm:$0xff]  ;;  %v42_v54 = vmax.f32 %v24_v40, 0.0  ;;  %v43_v55 = vmax.f32 %v25_v43, 0.0 }
   0xa   :  { %218 = vmatpush.msra.mxu3 %v184_v28  ;;  %70 = vmatpush.msra.mxu0 %v48_v22  ;;  %v286_v49 = vld [vmem:[%s494_s0 + $0xb8] sm:$0xff]  ;;  %v177_v50 = vmax.f32 %v287_v44, 0.0  ;;  %v178_v51 = vmax.f32 %v288_v45, 0.0  ;;  %v22_v52 = vld [vmem:[%s494_s0 + $0x10] sm:$0xff]  ;;  %v283_v56 = vld [vmem:[%s494_s0 + $0xa0] sm:$0xff]  ;;  %v175_v58 = vmax.f32 %v285_v48, 0.0 }
   0xb   :  { %90 = vmatpush.msra.mxu1 %v49_v26  ;;  %199 = vmatpush.msra.mxu2 %v181_v32  ;;  %v23_v53 = vld [vmem:[%s494_s0 + $0x18] sm:$0xff]  ;;  %v284_v57 = vld [vmem:[%s494_s0 + $0xa8] sm:$0xff]  ;;  %v176_v59 = vmax.f32 %v286_v49, 0.0  ;;  %v20_v60 = vld [vmem:[%s494_s0] sm:$0xff]  ;;  %v40_v62 = vmax.f32 %v22_v52, 0.0  ;;  %v173_v0 = vmax.f32 %v283_v56, 0.0 }
   0xc   :  { %219 = vmatpush.msra.mxu3 %v182_v33  ;;  %71 = vmatpush.msra.mxu0 %v46_v37  ;;  %v21_v61 = vld [vmem:[%s494_s0 + $0x8] sm:$0xff]  ;;  %v41_v63 = vmax.f32 %v23_v53, 0.0  ;;  %v174_v1 = vmax.f32 %v284_v57, 0.0  ;;  %v281_v2 = vld [vmem:[%s494_s0 + $0x90] sm:$0xff]  ;;  %v282_v3 = vld [vmem:[%s494_s0 + $0x98] sm:$0xff]  ;;  %v38_v4 = vmax.f32 %v20_v60, 0.0 }
   0xd   :  { %91 = vmatpush.msra.mxu1 %v47_v38  ;;  %200 = vmatpush.msra.mxu2 %v179_v41  ;;  %v39_v5 = vmax.f32 %v21_v61, 0.0  ;;  %v17_v6 = vld [vmem:[%s495_s1] sm:$0xff]  ;;  %v171_v7 = vmax.f32 %v281_v2, 0.0  ;;  %v172_v8 = vmax.f32 %v282_v3, 0.0  ;;  %v314_v21 = vmov 256.0  }
   0xe   :  { %220 = vmatpush.msra.mxu3 %v180_v42  ;;  %72 = vmatpush.msra.mxu0 %v44_v46  ;;  %308 = vrcp.f32 %v314_v21  ;;  %v315_v28 = vmov 0   ;;  %v18_v52 = vld [vmem:[%s496_s2] sm:$0xff] }
   0xf   :  { %92 = vmatpush.msra.mxu1 %v45_v47  ;;  %201 = vmatpush.msra.mxu2 %v177_v50 }
  0x10   :  { %221 = vmatpush.msra.mxu3 %v178_v51  ;;  %73 = vmatpush.msra.mxu0 %v42_v54 }
  0x11   :  { %93 = vmatpush.msra.mxu1 %v43_v55  ;;  %202 = vmatpush.msra.mxu2 %v175_v58  ;;  %v19_v58 = vld [vmem:[%s497_s3] sm:$0xff] }
  0x12   :  { %222 = vmatpush.msra.mxu3 %v176_v59  ;;  %74 = vmatpush.msra.mxu0 %v40_v62 }
  0x13   :  { %94 = vmatpush.msra.mxu1 %v41_v63  ;;  %203 = vmatpush.msra.mxu2 %v173_v0 }
  0x14   :  { %223 = vmatpush.msra.mxu3 %v174_v1  ;;  %75 = vmatpush.msra.mxu0 %v38_v4  ;;  %v309_v22 = vpop.eup %308 }
  0x15   :  { %95 = vmatpush.msra.mxu1 %v39_v5  ;;  %279 = vmatmul.msk.f32.vlgmr.msra.gmra.mxu0 %vm56_vm0, %v17_v6  ;;  %v104_v23 = vmul.f32 256.0, %v309_v22  ;;  %vm108_vm1 = vweird.f32 %v309_v22 }
  0x16   :  { %280 = vmatmul.msk.f32.vlgmr.msra.gmra.mxu1 %vm56_vm0, %v17_v6  ;;  %204 = vmatpush.msra.mxu2 %v171_v7 }
  0x17   :  { %224 = vmatpush.msra.mxu3 %v172_v8  ;;  %299 = vmatmul.msk.f32.vlgmr.msra.gmra.mxu2 %vm56_vm0, %v17_v6  ;;  %v105_v24 = vsub.f32 1.0, %v104_v23 }
  0x18   :  { %300 = vmatmul.msk.f32.vlgmr.msra.gmra.mxu3 %vm56_vm0, %v17_v6  ;;  %305 = vset.pattern.permute.xlu2 %v315_v28 }
  0x19   :  { %v106_v25 = vmul.f32 %v309_v22, %v105_v24  ;;  %306 = vset.pattern.permute.xlu0 %v315_v28  ;;  %307 = vset.pattern.permute.xlu1 %v315_v28 }
  0x1b   :  { %v107_v26 = vadd.f32 %v309_v22, %v106_v25 }
  0x1d   :  { %v109_v27 = vsel %vm108_vm1, %v309_v22, %v107_v26 }
  0x92   :  { %v452_v9 = vpop.f32.mrf.mxu0 }
  0x93   :  { %v454_v10 = vpop.f32.mrf.mxu1  ;;  %v111_v11 = vmul.f32 %v452_v9, %v452_v9 }
  0x94   :  { %v112_v12 = vmul.f32 %v454_v10, %v454_v10  ;;  %v100_v13 = vadd.f32 %v454_v10, %v452_v9 }
  0x96   :  { %101 = vadd.xlane.f32.xlu0 %v100_v13  ;;  %v113_v14 = vadd.f32 %v112_v12, %v111_v11 }
  0x98   :  { %114 = vadd.xlane.f32.xlu1 %v113_v14 }
  0x9a   :  { %v462_v15 = vpop.f32.mrf.mxu2 }
  0x9b   :  { %v464_v16 = vpop.f32.mrf.mxu3  ;;  %v233_v17 = vmul.f32 %v462_v15, %v462_v15 }
  0x9c   :  { %v234_v18 = vmul.f32 %v464_v16, %v464_v16  ;;  %v229_v19 = vadd.f32 %v464_v16, %v462_v15 }
  0x9e   :  { %230 = vadd.xlane.f32.xlu0 %v229_v19  ;;  %v235_v20 = vadd.f32 %v234_v18, %v233_v17 }
  0xa0   :  { %236 = vadd.xlane.f32.xlu1 %v235_v20 }
 0x109   :  { %v102_v29 = vpop.xlane.xlu0 %101 }
 0x10a   :  { %v110_v30 = vmul.f32 %v109_v27, %v102_v29 }
 0x10b   :  { %v115_v31 = vpop.xlane.xlu1 %114 }
 0x10c   :  { %v117_v32 = vmul.f32 %v110_v30, %v110_v30  ;;  %v116_v33 = vmul.f32 %v115_v31, %v109_v27 }
 0x10e   :  { %v118_v34 = vsub.f32 %v116_v33, %v117_v32 }
 0x110   :  { %v119_v35 = vmax.f32 %v118_v34, 0.0 }
 0x111   :  { %v231_v36 = vpop.xlane.xlu0 %230 }
 0x112   :  { %v120_v37 = vadd.f32 1e-05, %v119_v35  ;;  %v232_v38 = vmul.f32 %v231_v36, %v109_v27 }
 0x113   :  { %v237_v39 = vpop.xlane.xlu1 %236 }
 0x114   :  { %310 = vrsqrt.f32 %v120_v37  ;;  %v239_v40 = vmul.f32 %v232_v38, %v232_v38  ;;  %v238_v41 = vmul.f32 %v237_v39, %v109_v27  ;;  %vm127_vm3 = vweird.f32 %v120_v37 }
 0x116   :  { %v240_v42 = vsub.f32 %v238_v41, %v239_v40 }
 0x118   :  { %v241_v43 = vmax.f32 %v240_v42, 0.0 }
 0x11a   :  { %v311_v44 = vpop.eup %310  ;;  %v242_v45 = vadd.f32 1e-05, %v241_v43 }
 0x11b   :  { %v122_v46 = vmul.f32 %v311_v44, %v120_v37  ;;  %vm128_vm2 = vweird.f32 %v311_v44 }
 0x11c   :  { %312 = vrsqrt.f32 %v242_v45  ;;  %vm129_vm4 = vmor %vm127_vm3, %vm128_vm2  ;;  %vm249_vm6 = vweird.f32 %v242_v45 }
 0x11d   :  { %v123_v47 = vmul.f32 %v311_v44, %v122_v46 }
 0x11f   :  { %v124_v48 = vmul.f32 0.5, %v123_v47 }
 0x121   :  { %v125_v49 = vsub.f32 1.5, %v124_v48 }
 0x122   :  { %v313_v50 = vpop.eup %312 }
 0x123   :  { %v244_v51 = vmul.f32 %v313_v50, %v242_v45  ;;  %v126_v53 = vmul.f32 %v311_v44, %v125_v49  ;;  %vm250_vm5 = vweird.f32 %v313_v50 }
 0x124   :  { %vm251_vm7 = vmor %vm249_vm6, %vm250_vm5 }
 0x125   :  { %v245_v54 = vmul.f32 %v313_v50, %v244_v51  ;;  %v130_v55 = vsel %vm129_vm4, %v311_v44, %v126_v53 }
 0x126   :  { %v131_v56 = vmul.f32 %v130_v55, %v18_v52 }
 0x127   :  { %v246_v57 = vmul.f32 0.5, %v245_v54 }
 0x128   :  { %136 = vperm.xlu2 %305, %v131_v56   ;;  %v132_v59 = vmul.f32 %v131_v56, %v110_v30 }
 0x129   :  { %v247_v60 = vsub.f32 1.5, %v246_v57 }
 0x12a   :  { %v133_v61 = vsub.f32 %v19_v58, %v132_v59 }
 0x12b   :  { %v248_v62 = vmul.f32 %v313_v50, %v247_v60 }
 0x12c   :  { %143 = vperm.xlu0 %306, %v133_v61  }
 0x12d   :  { %v252_v63 = vsel %vm251_vm7, %v313_v50, %v248_v62 }
 0x12e   :  { %v253_v0 = vmul.f32 %v252_v63, %v18_v52 }
 0x130   :  { %v254_v1 = vmul.f32 %v253_v0, %v232_v38  ;;  %258 = vperm.xlu2 %305, %v253_v0  }
 0x132   :  { %v255_v2 = vsub.f32 %v19_v58, %v254_v1 }
 0x134   :  { %265 = vperm.xlu1 %307, %v255_v2  }
 0x182   :  { %v137_v3 = vpop.permute.xlu2 %136 }
 0x183   :  { %v139_v4 = vmul.f32 %v137_v3, %v452_v9  ;;  %v140_v5 = vmul.f32 %v137_v3, %v454_v10 }
 0x18a   :  { %v259_v13 = vpop.permute.xlu2 %258 }
 0x18b   :  { %v261_v14 = vmul.f32 %v259_v13, %v462_v15  ;;  %v262_v9 = vmul.f32 %v259_v13, %v464_v16 }
 0x19e   :  { %v144_v6 = vpop.permute.xlu0 %143 }
 0x19f   :  { %v146_v7 = vadd.f32 %v144_v6, %v139_v4  ;;  %v147_v8 = vadd.f32 %v144_v6, %v140_v5 }
 0x1a1   :  { %v148_v11 = vmax.f32 %v146_v7, 0.0  ;;  %v149_v12 = vmax.f32 %v147_v8, 0.0 }
 0x1a3   :  { %150 = vst [vmem:[%s498_s4] sm:$0xff] %v148_v11 }
 0x1a4   :  { %151 = vst [vmem:[%s498_s4 + $0x8] sm:$0xff] %v149_v12 }
 0x1a6   :  { %v266_v17 = vpop.permute.xlu1 %265 }
 0x1a7   :  { %v268_v10 = vadd.f32 %v266_v17, %v261_v14  ;;  %v269_v18 = vadd.f32 %v266_v17, %v262_v9 }
 0x1a9   :  { %v270_v19 = vmax.f32 %v268_v10, 0.0  ;;  %v271_v20 = vmax.f32 %v269_v18, 0.0 }
 0x1ab   :  { %301 = vst [vmem:[%s498_s4 + $0x10] sm:$0xff] %v270_v19 }
 0x1ac   :  { %302 = vst [vmem:[%s498_s4 + $0x18] sm:$0xff] %v271_v20 }

// kernel: _lambda_.18
= control target key start
LH: loop header
LB: loop body
LE: loop exit
PB: predicated region body
PF: predicated region fallthrough
CT: control target
= control target key end

     0   :  { %vm32_vm0 = vcmask 588800   ;;  %vm62_vm1 = vcmask 523264   ;;  %v312_v36 = vmov 64.0   ;;  %v313_v43 = vmov 0   ;;  %s474_s0 = inlined_call_operand.vmem [shape: f32[2,72,64], index: 0, kind: input, shape index: {}]   ;;  %s475_s1 = inlined_call_operand.vmem [shape: f32[16,72], index: 1, kind: input, shape index: {}]   ;;  %s476_s2 = inlined_call_operand.vmem [shape: f32[16,1], index: 2, kind: input, shape index: {}]   ;;  %s477_s3 = inlined_call_operand.vmem [shape: f32[16,1], index: 3, kind: input, shape index: {}]   ;;  %s478_s4 = inlined_call_operand.vmem [shape: f32[2,16,64], index: 4, kind: output, shape index: {}]  }
   0x1   :  { %v31_v0 = vld [vmem:[%s474_s0 + $0x40] sm:$0xff]  ;;  %v274_v1 = vld [vmem:[%s474_s0 + $0x88] sm:$0xff]  ;;  %v30_v2 = vld [vmem:[%s474_s0 + $0x38] sm:$0xff]  ;;  %302 = vrcp.f32 %v312_v36  ;;  %299 = vset.pattern.permute.xlu2 %v313_v43  ;;  %301 = vset.pattern.permute.xlu1 %v313_v43 }
   0x2   :  { %46 = vmatpush.msra.mxu0 %v31_v0  ;;  %165 = vmatpush.msra.mxu1 %v274_v1  ;;  %v273_v3 = vld [vmem:[%s474_s0 + $0x80] sm:$0xff]  ;;  %v29_v4 = vld [vmem:[%s474_s0 + $0x30] sm:$0xff]  ;;  %v272_v5 = vld [vmem:[%s474_s0 + $0x78] sm:$0xff] }
   0x3   :  { %279 = vmatpush.msra.mxu2 %v31_v0  ;;  %288 = vmatpush.msra.mxu3 %v274_v1  ;;  %v28_v6 = vld [vmem:[%s474_s0 + $0x28] sm:$0xff]  ;;  %v271_v7 = vld [vmem:[%s474_s0 + $0x70] sm:$0xff]  ;;  %v27_v8 = vld [vmem:[%s474_s0 + $0x20] sm:$0xff] }
   0x4   :  { %47 = vmatpush.msra.mxu0 %v30_v2  ;;  %166 = vmatpush.msra.mxu1 %v273_v3  ;;  %v270_v9 = vld [vmem:[%s474_s0 + $0x68] sm:$0xff]  ;;  %v26_v10 = vld [vmem:[%s474_s0 + $0x18] sm:$0xff]  ;;  %v269_v11 = vld [vmem:[%s474_s0 + $0x60] sm:$0xff] }
   0x5   :  { %280 = vmatpush.msra.mxu2 %v30_v2  ;;  %289 = vmatpush.msra.mxu3 %v273_v3  ;;  %v25_v12 = vld [vmem:[%s474_s0 + $0x10] sm:$0xff]  ;;  %v268_v13 = vld [vmem:[%s474_s0 + $0x58] sm:$0xff]  ;;  %v24_v14 = vld [vmem:[%s474_s0 + $0x8] sm:$0xff] }
   0x6   :  { %48 = vmatpush.msra.mxu0 %v29_v4  ;;  %167 = vmatpush.msra.mxu1 %v272_v5  ;;  %v267_v15 = vld [vmem:[%s474_s0 + $0x50] sm:$0xff]  ;;  %v23_v16 = vld [vmem:[%s474_s0] sm:$0xff]  ;;  %v266_v17 = vld [vmem:[%s474_s0 + $0x48] sm:$0xff] }
   0x7   :  { %281 = vmatpush.msra.mxu2 %v29_v4  ;;  %290 = vmatpush.msra.mxu3 %v272_v5  ;;  %v17_v18 = vld [vmem:[%s475_s1] sm:$0xff]  ;;  %v18_v19 = vld [vmem:[%s475_s1 + $0x8] sm:$0xff]  ;;  %v303_v37 = vpop.eup %302 }
   0x8   :  { %49 = vmatpush.msra.mxu0 %v28_v6  ;;  %168 = vmatpush.msra.mxu1 %v271_v7  ;;  %v70_v38 = vmul.f32 64.0, %v303_v37  ;;  %vm74_vm2 = vweird.f32 %v303_v37 }
   0x9   :  { %282 = vmatpush.msra.mxu2 %v28_v6  ;;  %291 = vmatpush.msra.mxu3 %v271_v7 }
   0xa   :  { %50 = vmatpush.msra.mxu0 %v27_v8  ;;  %169 = vmatpush.msra.mxu1 %v270_v9  ;;  %v71_v39 = vsub.f32 1.0, %v70_v38 }
   0xb   :  { %283 = vmatpush.msra.mxu2 %v27_v8  ;;  %292 = vmatpush.msra.mxu3 %v270_v9 }
   0xc   :  { %51 = vmatpush.msra.mxu0 %v26_v10  ;;  %170 = vmatpush.msra.mxu1 %v269_v11  ;;  %v72_v40 = vmul.f32 %v303_v37, %v71_v39  ;;  %v20_v39 = vld [vmem:[%s476_s2 + $0x8] sm:$0xff] }
   0xd   :  { %284 = vmatpush.msra.mxu2 %v26_v10  ;;  %293 = vmatpush.msra.mxu3 %v269_v11 }
   0xe   :  { %52 = vmatpush.msra.mxu0 %v25_v12  ;;  %171 = vmatpush.msra.mxu1 %v268_v13  ;;  %v73_v41 = vadd.f32 %v303_v37, %v72_v40 }
   0xf   :  { %285 = vmatpush.msra.mxu2 %v25_v12  ;;  %294 = vmatpush.msra.mxu3 %v268_v13 }
  0x10   :  { %53 = vmatpush.msra.mxu0 %v24_v14  ;;  %172 = vmatpush.msra.mxu1 %v267_v15  ;;  %v75_v42 = vsel %vm74_vm2, %v303_v37, %v73_v41 }
  0x11   :  { %286 = vmatpush.msra.mxu2 %v24_v14  ;;  %295 = vmatpush.msra.mxu3 %v267_v15 }
  0x12   :  { %54 = vmatpush.msra.mxu0 %v23_v16  ;;  %173 = vmatpush.msra.mxu1 %v266_v17 }
  0x13   :  { %264 = vmatmul.msk.f32.vlgmr.msra.gmra.mxu0 %vm32_vm0, %v17_v18  ;;  %275 = vmatmul.msk.f32.vlgmr.msra.gmra.mxu1 %vm32_vm0, %v17_v18  ;;  %v19_v18 = vld [vmem:[%s476_s2] sm:$0xff] }
  0x14   :  { %287 = vmatpush.msra.mxu2 %v23_v16  ;;  %296 = vmatpush.msra.mxu3 %v266_v17 }
  0x15   :  { %265 = vmatmul.msk.f32.vlgmr.msra.gmra.mxu2 %vm32_vm0, %v18_v19  ;;  %276 = vmatmul.msk.f32.vlgmr.msra.gmra.mxu3 %vm32_vm0, %v18_v19 }
  0x16   :  { %300 = vset.pattern.permute.xlu0 %v313_v43 }
  0x90   :  { %v399_v20 = vpop.f32.mrf.mxu0  ;;  %v401_v21 = vpop.f32.mrf.mxu1 }
  0x91   :  { %v181_v22 = vsel %vm62_vm1, %v401_v21, 0.0  ;;  %v63_v23 = vsel %vm62_vm1, %v399_v20, 0.0  ;;  %v78_v24 = vmul.f32 %v399_v20, %v399_v20  ;;  %v189_v32 = vmul.f32 %v401_v21, %v401_v21 }
  0x92   :  { %182 = vadd.xlane.f32.xlu1 %v181_v22  ;;  %64 = vadd.xlane.f32.xlu0 %v63_v23 }
  0x93   :  { %v80_v25 = vsel %vm62_vm1, %v78_v24, 0.0  ;;  %v191_v35 = vsel %vm62_vm1, %v189_v32, 0.0 }
  0x94   :  { %81 = vadd.xlane.f32.xlu2 %v80_v25 }
  0x98   :  { %v410_v26 = vpop.f32.mrf.mxu2  ;;  %v412_v27 = vpop.f32.mrf.mxu3 }
  0x99   :  { %v79_v28 = vmul.f32 %v410_v26, %v410_v26  ;;  %v184_v29 = vsel %vm62_vm1, %v412_v27, 0.0  ;;  %v66_v30 = vsel %vm62_vm1, %v410_v26, 0.0  ;;  %v190_v33 = vmul.f32 %v412_v27, %v412_v27 }
  0x9a   :  { %185 = vadd.xlane.f32.xlu1 %v184_v29  ;;  %67 = vadd.xlane.f32.xlu0 %v66_v30 }
  0x9b   :  { %v83_v31 = vsel %vm62_vm1, %v79_v28, 0.0  ;;  %v194_v34 = vsel %vm62_vm1, %v190_v33, 0.0  ;;  %v21_v28 = vld [vmem:[%s477_s3] sm:$0xff] }
  0x9c   :  { %84 = vadd.xlane.f32.xlu2 %v83_v31 }
  0xa2   :  { %195 = vadd.xlane.f32.xlu1 %v194_v34  ;;  %192 = vadd.xlane.f32.xlu0 %v191_v35 }
 0x105   :  { %v183_v44 = vpop.xlane.xlu1 %182  ;;  %v65_v45 = vpop.xlane.xlu0 %64 }
 0x106   :  { %v76_v46 = vmul.f32 %v75_v42, %v65_v45  ;;  %v431_v59 = vmul.f32 %v183_v44, %v75_v42 }
 0x107   :  { %v82_v47 = vpop.xlane.xlu2 %81 }
 0x108   :  { %v88_v48 = vmul.f32 %v76_v46, %v76_v46  ;;  %v86_v49 = vmul.f32 %v82_v47, %v75_v42  ;;  %v199_v2 = vmul.f32 %v431_v59, %v431_v59 }
 0x10a   :  { %v90_v50 = vsub.f32 %v86_v49, %v88_v48 }
 0x10c   :  { %v92_v51 = vmax.f32 %v90_v50, 0.0 }
 0x10d   :  { %v186_v52 = vpop.xlane.xlu1 %185  ;;  %v68_v53 = vpop.xlane.xlu0 %67 }
 0x10e   :  { %v94_v54 = vadd.f32 1e-05, %v92_v51  ;;  %v427_v55 = vmul.f32 %v75_v42, %v68_v53  ;;  %v433_v60 = vmul.f32 %v186_v52, %v75_v42 }
 0x10f   :  { %v85_v56 = vpop.xlane.xlu2 %84 }
 0x110   :  { %304 = vrsqrt.f32 %v94_v54  ;;  %v89_v57 = vmul.f32 %v427_v55, %v427_v55  ;;  %v87_v58 = vmul.f32 %v85_v56, %v75_v42  ;;  %v200_v3 = vmul.f32 %v433_v60, %v433_v60  ;;  %v22_v56 = vld [vmem:[%s477_s3 + $0x8] sm:$0xff] }
 0x111   :  { %vm102_vm4 = vweird.f32 %v94_v54 }
 0x112   :  { %v91_v61 = vsub.f32 %v87_v58, %v89_v57 }
 0x114   :  { %v93_v62 = vmax.f32 %v91_v61, 0.0 }
 0x115   :  { %v196_v63 = vpop.xlane.xlu1 %195  ;;  %v193_v0 = vpop.xlane.xlu0 %192 }
 0x116   :  { %v305_v1 = vpop.eup %304  ;;  %v198_v4 = vmul.f32 %v196_v63, %v75_v42  ;;  %v197_v5 = vmul.f32 %v193_v0, %v75_v42  ;;  %v95_v7 = vadd.f32 1e-05, %v93_v62 }
 0x117   :  { %v97_v6 = vmul.f32 %v305_v1, %v94_v54  ;;  %vm103_vm3 = vweird.f32 %v305_v1 }
 0x118   :  { %v202_v8 = vsub.f32 %v198_v4, %v200_v3  ;;  %v201_v9 = vsub.f32 %v197_v5, %v199_v2  ;;  %306 = vrsqrt.f32 %v95_v7  ;;  %vm104_vm5 = vmor %vm102_vm4, %vm103_vm3  ;;  %vm112_vm6 = vweird.f32 %v95_v7 }
 0x119   :  { %v98_v10 = vmul.f32 %v305_v1, %v97_v6 }
 0x11a   :  { %v204_v11 = vmax.f32 %v202_v8, 0.0  ;;  %v203_v12 = vmax.f32 %v201_v9, 0.0 }
 0x11b   :  { %v99_v13 = vmul.f32 0.5, %v98_v10 }
 0x11c   :  { %v206_v14 = vadd.f32 1e-05, %v204_v11  ;;  %v205_v15 = vadd.f32 1e-05, %v203_v12 }
 0x11d   :  { %v100_v16 = vsub.f32 1.5, %v99_v13 }
 0x11e   :  { %308 = vrsqrt.f32 %v206_v14  ;;  %v307_v17 = vpop.eup %306  ;;  %vm223_vm11 = vweird.f32 %v206_v14  ;;  %vm213_vm12 = vweird.f32 %v205_v15 }
 0x11f   :  { %310 = vrsqrt.f32 %v205_v15  ;;  %v101_v19 = vmul.f32 %v305_v1, %v100_v16  ;;  %v107_v22 = vmul.f32 %v307_v17, %v95_v7  ;;  %vm113_vm7 = vweird.f32 %v307_v17 }
 0x120   :  { %vm114_vm8 = vmor %vm112_vm6, %vm113_vm7 }
 0x121   :  { %v105_v23 = vsel %vm104_vm5, %v305_v1, %v101_v19  ;;  %v108_v24 = vmul.f32 %v307_v17, %v107_v22 }
 0x122   :  { %v116_v25 = vmul.f32 %v105_v23, %v19_v18 }
 0x123   :  { %v109_v30 = vmul.f32 0.5, %v108_v24 }
 0x124   :  { %v309_v29 = vpop.eup %308  ;;  %124 = vperm.xlu2 %299, %v116_v25   ;;  %v118_v31 = vmul.f32 %v116_v25, %v76_v46 }
 0x125   :  { %v311_v32 = vpop.eup %310  ;;  %v218_v33 = vmul.f32 %v309_v29, %v206_v14  ;;  %v110_v34 = vsub.f32 1.5, %v109_v30  ;;  %vm224_vm9 = vweird.f32 %v309_v29 }
 0x126   :  { %v208_v35 = vmul.f32 %v311_v32, %v205_v15  ;;  %v120_v36 = vsub.f32 %v21_v28, %v118_v31  ;;  %vm214_vm10 = vweird.f32 %v311_v32  ;;  %vm225_vm13 = vmor %vm223_vm11, %vm224_vm9 }
 0x127   :  { %v219_v37 = vmul.f32 %v309_v29, %v218_v33  ;;  %v111_v40 = vmul.f32 %v307_v17, %v110_v34  ;;  %vm215_vm14 = vmor %vm213_vm12, %vm214_vm10 }
 0x128   :  { %v209_v38 = vmul.f32 %v311_v32, %v208_v35  ;;  %136 = vperm.xlu1 %301, %v120_v36  }
 0x129   :  { %v220_v41 = vmul.f32 0.5, %v219_v37  ;;  %v115_v43 = vsel %vm114_vm8, %v307_v17, %v111_v40 }
 0x12a   :  { %v210_v42 = vmul.f32 0.5, %v209_v38  ;;  %v117_v45 = vmul.f32 %v115_v43, %v20_v39 }
 0x12b   :  { %v221_v44 = vsub.f32 1.5, %v220_v41 }
 0x12c   :  { %v211_v46 = vsub.f32 1.5, %v210_v42  ;;  %129 = vperm.xlu0 %300, %v117_v45   ;;  %v119_v54 = vmul.f32 %v117_v45, %v427_v55 }
 0x12d   :  { %v222_v47 = vmul.f32 %v309_v29, %v221_v44 }
 0x12e   :  { %v212_v48 = vmul.f32 %v311_v32, %v211_v46  ;;  %v121_v58 = vsub.f32 %v22_v56, %v119_v54 }
 0x12f   :  { %v226_v49 = vsel %vm225_vm13, %v309_v29, %v222_v47 }
 0x130   :  { %v228_v50 = vmul.f32 %v226_v49, %v20_v39  ;;  %v216_v51 = vsel %vm215_vm14, %v311_v32, %v212_v48 }
 0x131   :  { %v227_v52 = vmul.f32 %v216_v51, %v19_v18 }
 0x132   :  { %240 = vperm.xlu1 %301, %v228_v50   ;;  %v230_v53 = vmul.f32 %v228_v50, %v433_v60 }
 0x133   :  { %235 = vperm.xlu2 %299, %v227_v52   ;;  %v229_v61 = vmul.f32 %v227_v52, %v431_v59 }
 0x134   :  { %v232_v57 = vsub.f32 %v22_v56, %v230_v53 }
 0x135   :  { %v231_v62 = vsub.f32 %v21_v28, %v229_v61 }
 0x13a   :  { %252 = vperm.xlu1 %301, %v232_v57  }
 0x13b   :  { %141 = vperm.xlu2 %299, %v121_v58  }
 0x143   :  { %247 = vperm.xlu2 %299, %v231_v62  }
 0x17e   :  { %v125_v63 = vpop.permute.xlu2 %124 }
 0x17f   :  { %v132_v2 = vmul.f32 %v125_v63, %v399_v20 }
 0x18d   :  { %v236_v0 = vpop.permute.xlu2 %235 }
 0x18e   :  { %v243_v55 = vmul.f32 %v236_v0, %v401_v21 }
 0x195   :  { %v142_v1 = vpop.permute.xlu2 %141 }
 0x19a   :  { %v137_v60 = vpop.permute.xlu1 %136 }
 0x19b   :  { %v144_v3 = vadd.f32 %v137_v60, %v132_v2 }
 0x19d   :  { %146 = vst.msk [vmem:[%s478_s4] sm:$0xff] %vm62_vm1, %v144_v3  ;;  %v248_v4 = vpop.permute.xlu2 %247 }
 0x19e   :  { %v255_v5 = vadd.f32 %v248_v4, %v243_v55  ;;  %v130_v6 = vpop.permute.xlu0 %129 }
 0x19f   :  { %v133_v59 = vmul.f32 %v130_v6, %v410_v26 }
 0x1a0   :  { %277 = vst.msk [vmem:[%s478_s4 + $0x10] sm:$0xff] %vm62_vm1, %v255_v5 }
 0x1a1   :  { %v145_v20 = vadd.f32 %v142_v1, %v133_v59 }
 0x1a3   :  { %147 = vst.msk [vmem:[%s478_s4 + $0x8] sm:$0xff] %vm62_vm1, %v145_v20 }
 0x1a4   :  { %v241_v21 = vpop.permute.xlu1 %240 }
 0x1a5   :  { %v244_v7 = vmul.f32 %v241_v21, %v412_v27 }
 0x1ac   :  { %v253_v8 = vpop.permute.xlu1 %252 }
 0x1ad   :  { %v256_v9 = vadd.f32 %v253_v8, %v244_v7 }
 0x1af   :  { %278 = vst.msk [vmem:[%s478_s4 + $0x18] sm:$0xff] %vm62_vm1, %v256_v9 }

// kernel: _lambda_.20
= control target key start
LH: loop header
LB: loop body
LE: loop exit
PB: predicated region body
PF: predicated region fallthrough
CT: control target
= control target key end

     0   :  { %vm46_vm0 = vcmask 130048   ;;  %vm99_vm1 = vcmask 523264   ;;  %s634_s0 = inlined_call_operand.vmem [shape: f32[2,144,64], index: 0, kind: input, shape index: {}]   ;;  %s635_s1 = inlined_call_operand.vmem [shape: f32[16,144], index: 1, kind: input, shape index: {}]   ;;  %s636_s2 = inlined_call_operand.vmem [shape: f32[16,1], index: 2, kind: input, shape index: {}]   ;;  %s637_s3 = inlined_call_operand.vmem [shape: f32[16,1], index: 3, kind: input, shape index: {}]   ;;  %s638_s4 = inlined_call_operand.vmem [shape: f32[2,16,64], index: 4, kind: input, shape index: {}]   ;;  %s639_s5 = inlined_call_operand.vmem [shape: f32[2,16,64], index: 5, kind: output, shape index: {}]  }
   0x1   :  { %v43_v0 = vld [vmem:[%s634_s0 + $0x78] sm:$0xff]  ;;  %v367_v1 = vld [vmem:[%s634_s0 + $0x108] sm:$0xff]  ;;  %v42_v2 = vld [vmem:[%s634_s0 + $0x70] sm:$0xff] }
   0x2   :  { %53 = vmatpush.msra.mxu0 %v43_v0  ;;  %212 = vmatpush.msra.mxu2 %v367_v1  ;;  %v366_v3 = vld [vmem:[%s634_s0 + $0x100] sm:$0xff]  ;;  %v41_v4 = vld [vmem:[%s634_s0 + $0x68] sm:$0xff]  ;;  %v365_v5 = vld [vmem:[%s634_s0 + $0xf8] sm:$0xff]  ;;  %v391_v0 = vmov 64.0  }
   0x3   :  { %v40_v6 = vld [vmem:[%s634_s0 + $0x60] sm:$0xff]  ;;  %v364_v7 = vld [vmem:[%s634_s0 + $0xf0] sm:$0xff]  ;;  %v39_v8 = vld [vmem:[%s634_s0 + $0x58] sm:$0xff]  ;;  %381 = vrcp.f32 %v391_v0 }
   0x4   :  { %54 = vmatpush.msra.mxu0 %v42_v2  ;;  %213 = vmatpush.msra.mxu2 %v366_v3  ;;  %v363_v9 = vld [vmem:[%s634_s0 + $0xe8] sm:$0xff]  ;;  %v38_v10 = vld [vmem:[%s634_s0 + $0x50] sm:$0xff]  ;;  %v362_v11 = vld [vmem:[%s634_s0 + $0xe0] sm:$0xff] }
   0x5   :  { %v45_v12 = vld [vmem:[%s634_s0 + $0x88] sm:$0xff]  ;;  %v361_v14 = vld [vmem:[%s634_s0 + $0xd8] sm:$0xff]  ;;  %v44_v16 = vld [vmem:[%s634_s0 + $0x80] sm:$0xff] }
   0x6   :  { %55 = vmatpush.msra.mxu0 %v41_v4  ;;  %214 = vmatpush.msra.mxu2 %v365_v5  ;;  %v37_v13 = vld [vmem:[%s634_s0 + $0x48] sm:$0xff]  ;;  %v369_v15 = vld [vmem:[%s634_s0 + $0x118] sm:$0xff]  ;;  %v368_v17 = vld [vmem:[%s634_s0 + $0x110] sm:$0xff] }
   0x7   :  { %90 = vmatpush.msra.mxu1 %v45_v12  ;;  %v36_v18 = vld [vmem:[%s634_s0 + $0x40] sm:$0xff]  ;;  %v360_v19 = vld [vmem:[%s634_s0 + $0xd0] sm:$0xff]  ;;  %249 = vmatpush.msra.mxu3 %v369_v15  ;;  %v21_v20 = vld [vmem:[%s635_s1 + $0x8] sm:$0xff] }
   0x8   :  { %56 = vmatpush.msra.mxu0 %v40_v6  ;;  %215 = vmatpush.msra.mxu2 %v364_v7  ;;  %v35_v21 = vld [vmem:[%s634_s0 + $0x38] sm:$0xff]  ;;  %v359_v22 = vld [vmem:[%s634_s0 + $0xc8] sm:$0xff]  ;;  %v34_v23 = vld [vmem:[%s634_s0 + $0x30] sm:$0xff]  ;;  %v392_v7 = vmov 0  }
   0x9   :  { %91 = vmatpush.msra.mxu1 %v44_v16  ;;  %250 = vmatpush.msra.mxu3 %v368_v17  ;;  %v358_v24 = vld [vmem:[%s634_s0 + $0xc0] sm:$0xff]  ;;  %v33_v25 = vld [vmem:[%s634_s0 + $0x28] sm:$0xff]  ;;  %v357_v26 = vld [vmem:[%s634_s0 + $0xb8] sm:$0xff]  ;;  %v382_v1 = vpop.eup %381 }
   0xa   :  { %57 = vmatpush.msra.mxu0 %v39_v8  ;;  %216 = vmatpush.msra.mxu2 %v363_v9  ;;  %v23_v27 = vld [vmem:[%s635_s1 + $0x18] sm:$0xff]  ;;  %v32_v28 = vld [vmem:[%s634_s0 + $0x20] sm:$0xff]  ;;  %v356_v29 = vld [vmem:[%s634_s0 + $0xb0] sm:$0xff]  ;;  %v107_v2 = vmul.f32 64.0, %v382_v1  ;;  %vm111_vm2 = vweird.f32 %v382_v1 }
   0xb   :  { %350 = vmatmul.msk.f32.vlgmr.msra.gmra.mxu1 %vm46_vm0, %v21_v20  ;;  %370 = vmatmul.msk.f32.vlgmr.msra.gmra.mxu3 %vm46_vm0, %v21_v20  ;;  %v31_v30 = vld [vmem:[%s634_s0 + $0x18] sm:$0xff]  ;;  %v355_v31 = vld [vmem:[%s634_s0 + $0xa8] sm:$0xff]  ;;  %v30_v32 = vld [vmem:[%s634_s0 + $0x10] sm:$0xff] }
   0xc   :  { %58 = vmatpush.msra.mxu0 %v38_v10  ;;  %217 = vmatpush.msra.mxu2 %v362_v11  ;;  %v354_v33 = vld [vmem:[%s634_s0 + $0xa0] sm:$0xff]  ;;  %v29_v34 = vld [vmem:[%s634_s0 + $0x8] sm:$0xff]  ;;  %v353_v35 = vld [vmem:[%s634_s0 + $0x98] sm:$0xff]  ;;  %v108_v3 = vsub.f32 1.0, %v107_v2 }
   0xd   :  { %v28_v36 = vld [vmem:[%s634_s0] sm:$0xff]  ;;  %v352_v37 = vld [vmem:[%s634_s0 + $0x90] sm:$0xff]  ;;  %378 = vset.pattern.permute.xlu2 %v392_v7  ;;  %380 = vset.pattern.permute.xlu1 %v392_v7  ;;  %v25_v0 = vld [vmem:[%s636_s2 + $0x8] sm:$0xff] }
   0xe   :  { %59 = vmatpush.msra.mxu0 %v37_v13  ;;  %218 = vmatpush.msra.mxu2 %v361_v14  ;;  %v20_v38 = vld [vmem:[%s635_s1] sm:$0xff]  ;;  %v22_v39 = vld [vmem:[%s635_s1 + $0x10] sm:$0xff]  ;;  %v109_v4 = vmul.f32 %v382_v1, %v108_v3 }
   0xf   :  { %379 = vset.pattern.permute.xlu0 %v392_v7 }
  0x10   :  { %60 = vmatpush.msra.mxu0 %v36_v18  ;;  %219 = vmatpush.msra.mxu2 %v360_v19  ;;  %v110_v5 = vadd.f32 %v382_v1, %v109_v4 }
  0x12   :  { %61 = vmatpush.msra.mxu0 %v35_v21  ;;  %220 = vmatpush.msra.mxu2 %v359_v22  ;;  %v112_v6 = vsel %vm111_vm2, %v382_v1, %v110_v5 }
  0x13   :  { %351 = vmatmul.msk.f32.gmra.mxu1 %vm46_vm0, %v23_v27  ;;  %371 = vmatmul.msk.f32.gmra.mxu3 %vm46_vm0, %v23_v27 }
  0x14   :  { %62 = vmatpush.msra.mxu0 %v34_v23  ;;  %221 = vmatpush.msra.mxu2 %v358_v24 }
  0x16   :  { %63 = vmatpush.msra.mxu0 %v33_v25  ;;  %222 = vmatpush.msra.mxu2 %v357_v26 }
  0x18   :  { %64 = vmatpush.msra.mxu0 %v32_v28  ;;  %223 = vmatpush.msra.mxu2 %v356_v29 }
  0x1a   :  { %65 = vmatpush.msra.mxu0 %v31_v30  ;;  %224 = vmatpush.msra.mxu2 %v355_v31 }
  0x1c   :  { %66 = vmatpush.msra.mxu0 %v30_v32  ;;  %225 = vmatpush.msra.mxu2 %v354_v33 }
  0x1e   :  { %67 = vmatpush.msra.mxu0 %v29_v34  ;;  %226 = vmatpush.msra.mxu2 %v353_v35 }
  0x20   :  { %68 = vmatpush.msra.mxu0 %v28_v36  ;;  %227 = vmatpush.msra.mxu2 %v352_v37 }
  0x21   :  { %69 = vmatmul.f32.vlgmr.msra.gmra.mxu0 %v20_v38  ;;  %228 = vmatmul.f32.vlgmr.msra.gmra.mxu2 %v20_v38 }
  0x29   :  { %72 = vmatmul.f32.gmra.mxu0 %v22_v39  ;;  %231 = vmatmul.f32.gmra.mxu2 %v22_v39 }
  0x88   :  { %v93_v40 = vpop.f32.mrf.mxu1 }
  0x8e   :  { %v252_v43 = vpop.f32.mrf.mxu3 }
  0x90   :  { %v96_v48 = vpop.f32.mrf.mxu1 }
  0x96   :  { %v255_v55 = vpop.f32.mrf.mxu3 }
  0x9e   :  { %v70_v41 = vpop.f32.mrf.mxu0 }
  0x9f   :  { %v547_v42 = vadd.f32 %v93_v40, %v70_v41 }
  0xa1   :  { %v100_v44 = vsel %vm99_vm1, %v547_v42, 0.0  ;;  %v115_v45 = vmul.f32 %v547_v42, %v547_v42 }
  0xa2   :  { %101 = vadd.xlane.f32.xlu0 %v100_v44 }
  0xa3   :  { %v117_v46 = vsel %vm99_vm1, %v115_v45, 0.0 }
  0xa4   :  { %v229_v47 = vpop.f32.mrf.mxu2  ;;  %118 = vadd.xlane.f32.xlu2 %v117_v46  ;;  %v24_v46 = vld [vmem:[%s636_s2] sm:$0xff] }
  0xa5   :  { %v554_v49 = vadd.f32 %v252_v43, %v229_v47 }
  0xa6   :  { %v73_v50 = vpop.f32.mrf.mxu0 }
  0xa7   :  { %v556_v51 = vadd.f32 %v96_v48, %v73_v50  ;;  %v258_v52 = vsel %vm99_vm1, %v554_v49, 0.0  ;;  %v266_v59 = vmul.f32 %v554_v49, %v554_v49 }
  0xa8   :  { %259 = vadd.xlane.f32.xlu1 %v258_v52 }
  0xa9   :  { %v103_v53 = vsel %vm99_vm1, %v556_v51, 0.0  ;;  %v116_v54 = vmul.f32 %v556_v51, %v556_v51  ;;  %v268_v61 = vsel %vm99_vm1, %v266_v59, 0.0 }
  0xaa   :  { %104 = vadd.xlane.f32.xlu0 %v103_v53 }
  0xab   :  { %v120_v56 = vsel %vm99_vm1, %v116_v54, 0.0 }
  0xac   :  { %v232_v57 = vpop.f32.mrf.mxu2  ;;  %121 = vadd.xlane.f32.xlu2 %v120_v56  ;;  %v26_v56 = vld [vmem:[%s637_s3] sm:$0xff] }
  0xad   :  { %v565_v58 = vadd.f32 %v255_v55, %v232_v57 }
  0xaf   :  { %v261_v60 = vsel %vm99_vm1, %v565_v58, 0.0  ;;  %v267_v62 = vmul.f32 %v565_v58, %v565_v58 }
  0xb0   :  { %262 = vadd.xlane.f32.xlu1 %v261_v60 }
  0xb1   :  { %v271_v63 = vsel %vm99_vm1, %v267_v62, 0.0 }
  0xb2   :  { %269 = vadd.xlane.f32.xlu0 %v268_v61 }
  0xb8   :  { %272 = vadd.xlane.f32.xlu1 %v271_v63 }
 0x115   :  { %v102_v8 = vpop.xlane.xlu0 %101 }
 0x116   :  { %v113_v9 = vmul.f32 %v112_v6, %v102_v8 }
 0x117   :  { %v119_v10 = vpop.xlane.xlu2 %118 }
 0x118   :  { %v125_v11 = vmul.f32 %v113_v9, %v113_v9  ;;  %v123_v12 = vmul.f32 %v119_v10, %v112_v6 }
 0x11a   :  { %v127_v13 = vsub.f32 %v123_v12, %v125_v11 }
 0x11b   :  { %v260_v14 = vpop.xlane.xlu1 %259 }
 0x11c   :  { %v129_v15 = vmax.f32 %v127_v13, 0.0  ;;  %v579_v22 = vmul.f32 %v260_v14, %v112_v6 }
 0x11d   :  { %v105_v16 = vpop.xlane.xlu0 %104 }
 0x11e   :  { %v131_v17 = vadd.f32 1e-05, %v129_v15  ;;  %v575_v18 = vmul.f32 %v112_v6, %v105_v16  ;;  %v276_v28 = vmul.f32 %v579_v22, %v579_v22 }
 0x11f   :  { %v122_v19 = vpop.xlane.xlu2 %121 }
 0x120   :  { %383 = vrsqrt.f32 %v131_v17  ;;  %v126_v20 = vmul.f32 %v575_v18, %v575_v18  ;;  %v124_v21 = vmul.f32 %v122_v19, %v112_v6  ;;  %vm139_vm3 = vweird.f32 %v131_v17 }
 0x122   :  { %v128_v23 = vsub.f32 %v124_v21, %v126_v20 }
 0x123   :  { %v263_v24 = vpop.xlane.xlu1 %262 }
 0x124   :  { %v130_v25 = vmax.f32 %v128_v23, 0.0  ;;  %v583_v32 = vmul.f32 %v263_v24, %v112_v6 }
 0x125   :  { %v270_v26 = vpop.xlane.xlu0 %269 }
 0x126   :  { %v384_v27 = vpop.eup %383  ;;  %v132_v29 = vadd.f32 1e-05, %v130_v25  ;;  %v274_v30 = vmul.f32 %v270_v26, %v112_v6  ;;  %v277_v38 = vmul.f32 %v583_v32, %v583_v32 }
 0x127   :  { %v134_v31 = vmul.f32 %v384_v27, %v131_v17  ;;  %vm140_vm4 = vweird.f32 %v384_v27  ;;  %v27_v17 = vld [vmem:[%s637_s3 + $0x8] sm:$0xff] }
 0x128   :  { %385 = vrsqrt.f32 %v132_v29  ;;  %v278_v33 = vsub.f32 %v274_v30, %v276_v28  ;;  %vm141_vm5 = vmor %vm139_vm3, %vm140_vm4  ;;  %vm149_vm6 = vweird.f32 %v132_v29  ;;  %v183_v28 = vld [vmem:[%s638_s4] sm:$0xff] }
 0x129   :  { %v135_v34 = vmul.f32 %v384_v27, %v134_v31  ;;  %v185_v31 = vmax.f32 %v183_v28, 0.0 }
 0x12a   :  { %v280_v35 = vmax.f32 %v278_v33, 0.0 }
 0x12b   :  { %v136_v36 = vmul.f32 0.5, %v135_v34  ;;  %v273_v37 = vpop.xlane.xlu1 %272 }
 0x12c   :  { %v282_v39 = vadd.f32 1e-05, %v280_v35  ;;  %v275_v40 = vmul.f32 %v273_v37, %v112_v6 }
 0x12d   :  { %v137_v41 = vsub.f32 1.5, %v136_v36  ;;  %v184_v36 = vld [vmem:[%s638_s4 + $0x8] sm:$0xff] }
 0x12e   :  { %v386_v43 = vpop.eup %385  ;;  %387 = vrsqrt.f32 %v282_v39  ;;  %v279_v44 = vsub.f32 %v275_v40, %v277_v38  ;;  %vm290_vm10 = vweird.f32 %v282_v39 }
 0x12f   :  { %v144_v45 = vmul.f32 %v386_v43, %v132_v29  ;;  %v138_v47 = vmul.f32 %v384_v27, %v137_v41  ;;  %vm150_vm7 = vweird.f32 %v386_v43  ;;  %v372_v29 = vld [vmem:[%s638_s4 + $0x10] sm:$0xff] }
 0x130   :  { %v281_v48 = vmax.f32 %v279_v44, 0.0  ;;  %vm151_vm8 = vmor %vm149_vm6, %vm150_vm7  ;;  %v337_v34 = vmax.f32 %v372_v29, 0.0 }
 0x131   :  { %v145_v50 = vmul.f32 %v386_v43, %v144_v45  ;;  %v142_v52 = vsel %vm141_vm5, %v384_v27, %v138_v47  ;;  %v373_v47 = vld [vmem:[%s638_s4 + $0x18] sm:$0xff] }
 0x132   :  { %v283_v53 = vadd.f32 1e-05, %v281_v48  ;;  %v153_v54 = vmul.f32 %v142_v52, %v24_v46 }
 0x133   :  { %v146_v55 = vmul.f32 0.5, %v145_v50  ;;  %v338_v50 = vmax.f32 %v373_v47, 0.0 }
 0x134   :  { %v388_v57 = vpop.eup %387  ;;  %389 = vrsqrt.f32 %v283_v53  ;;  %161 = vperm.xlu2 %378, %v153_v54   ;;  %v155_v59 = vmul.f32 %v153_v54, %v113_v9  ;;  %vm300_vm13 = vweird.f32 %v283_v53 }
 0x135   :  { %v147_v60 = vsub.f32 1.5, %v146_v55  ;;  %v285_v61 = vmul.f32 %v388_v57, %v282_v39  ;;  %vm291_vm9 = vweird.f32 %v388_v57 }
 0x136   :  { %v157_v62 = vsub.f32 %v26_v56, %v155_v59  ;;  %vm292_vm11 = vmor %vm290_vm10, %vm291_vm9 }
 0x137   :  { %v286_v63 = vmul.f32 %v388_v57, %v285_v61  ;;  %v148_v1 = vmul.f32 %v386_v43, %v147_v60 }
 0x138   :  { %173 = vperm.xlu1 %380, %v157_v62  }
 0x139   :  { %v287_v2 = vmul.f32 0.5, %v286_v63  ;;  %v152_v3 = vsel %vm151_vm8, %v386_v43, %v148_v1  ;;  %v186_v43 = vmax.f32 %v184_v36, 0.0 }
 0x13a   :  { %v390_v4 = vpop.eup %389  ;;  %v154_v5 = vmul.f32 %v152_v3, %v25_v0 }
 0x13b   :  { %v288_v6 = vsub.f32 1.5, %v287_v2  ;;  %v295_v7 = vmul.f32 %v390_v4, %v283_v53  ;;  %vm301_vm12 = vweird.f32 %v390_v4 }
 0x13c   :  { %166 = vperm.xlu0 %379, %v154_v5   ;;  %vm302_vm14 = vmor %vm300_vm13, %vm301_vm12  ;;  %v156_v15 = vmul.f32 %v154_v5, %v575_v18 }
 0x13d   :  { %v296_v8 = vmul.f32 %v390_v4, %v295_v7  ;;  %v289_v9 = vmul.f32 %v388_v57, %v288_v6 }
 0x13e   :  { %v158_v20 = vsub.f32 %v27_v17, %v156_v15 }
 0x13f   :  { %v297_v10 = vmul.f32 0.5, %v296_v8  ;;  %v293_v11 = vsel %vm292_vm11, %v388_v57, %v289_v9 }
 0x140   :  { %v304_v12 = vmul.f32 %v293_v11, %v24_v46 }
 0x141   :  { %v298_v13 = vsub.f32 1.5, %v297_v10 }
 0x142   :  { %312 = vperm.xlu2 %378, %v304_v12   ;;  %v306_v23 = vmul.f32 %v304_v12, %v579_v22 }
 0x143   :  { %v299_v14 = vmul.f32 %v390_v4, %v298_v13 }
 0x144   :  { %v308_v25 = vsub.f32 %v26_v56, %v306_v23 }
 0x145   :  { %v303_v16 = vsel %vm302_vm14, %v390_v4, %v299_v14 }
 0x146   :  { %v305_v19 = vmul.f32 %v303_v16, %v25_v0 }
 0x148   :  { %317 = vperm.xlu1 %380, %v305_v19   ;;  %v307_v21 = vmul.f32 %v305_v19, %v583_v32 }
 0x14a   :  { %178 = vperm.xlu2 %378, %v158_v20   ;;  %v309_v24 = vsub.f32 %v27_v17, %v307_v21 }
 0x150   :  { %329 = vperm.xlu1 %380, %v309_v24  }
 0x152   :  { %324 = vperm.xlu2 %378, %v308_v25  }
 0x18e   :  { %v162_v26 = vpop.permute.xlu2 %161 }
 0x18f   :  { %v169_v30 = vmul.f32 %v162_v26, %v547_v42 }
 0x19c   :  { %v313_v27 = vpop.permute.xlu2 %312 }
 0x19d   :  { %v320_v22 = vmul.f32 %v313_v27, %v554_v49 }
 0x1a4   :  { %v179_v18 = vpop.permute.xlu2 %178 }
 0x1aa   :  { %v174_v32 = vpop.permute.xlu1 %173 }
 0x1ab   :  { %v181_v33 = vadd.f32 %v174_v32, %v169_v30 }
 0x1ac   :  { %v325_v35 = vpop.permute.xlu2 %324 }
 0x1ad   :  { %v187_v37 = vadd.f32 %v185_v31, %v181_v33  ;;  %v332_v38 = vadd.f32 %v325_v35, %v320_v22 }
 0x1ae   :  { %v167_v39 = vpop.permute.xlu0 %166 }
 0x1af   :  { %v189_v40 = vmax.f32 %v187_v37, 0.0  ;;  %v339_v41 = vadd.f32 %v337_v34, %v332_v38  ;;  %v170_v44 = vmul.f32 %v167_v39, %v556_v51 }
 0x1b1   :  { %191 = vst.msk [vmem:[%s639_s5] sm:$0xff] %vm99_vm1, %v189_v40  ;;  %v341_v42 = vmax.f32 %v339_v41, 0.0  ;;  %v182_v49 = vadd.f32 %v179_v18, %v170_v44 }
 0x1b3   :  { %374 = vst.msk [vmem:[%s639_s5 + $0x10] sm:$0xff] %vm99_vm1, %v341_v42  ;;  %v188_v45 = vadd.f32 %v186_v43, %v182_v49 }
 0x1b5   :  { %v190_v46 = vmax.f32 %v188_v45, 0.0 }
 0x1b7   :  { %192 = vst.msk [vmem:[%s639_s5 + $0x8] sm:$0xff] %vm99_vm1, %v190_v46 }
 0x1ba   :  { %v318_v51 = vpop.permute.xlu1 %317 }
 0x1bb   :  { %v321_v48 = vmul.f32 %v318_v51, %v565_v58 }
 0x1c2   :  { %v330_v52 = vpop.permute.xlu1 %329 }
 0x1c3   :  { %v333_v53 = vadd.f32 %v330_v52, %v321_v48 }
 0x1c5   :  { %v340_v54 = vadd.f32 %v338_v50, %v333_v53 }
 0x1c7   :  { %v342_v55 = vmax.f32 %v340_v54, 0.0 }
 0x1c9   :  { %375 = vst.msk [vmem:[%s639_s5 + $0x18] sm:$0xff] %vm99_vm1, %v342_v55 }

// kernel: _lambda_.19
= control target key start
LH: loop header
LB: loop body
LE: loop exit
PB: predicated region body
PF: predicated region fallthrough
CT: control target
= control target key end

     0   :  { %vm61_vm0 = vcmask 130048   ;;  %vm114_vm1 = vcmask 523264   ;;  %s635_s0 = inlined_call_operand.vmem [shape: f32[2,144,64], index: 0, kind: input, shape index: {}]   ;;  %s636_s1 = inlined_call_operand.vmem [shape: f32[16,144], index: 1, kind: input, shape index: {}]   ;;  %s637_s2 = inlined_call_operand.vmem [shape: f32[16,1], index: 2, kind: input, shape index: {}]   ;;  %s638_s3 = inlined_call_operand.vmem [shape: f32[16,1], index: 3, kind: input, shape index: {}]   ;;  %s639_s4 = inlined_call_operand.vmem [shape: f32[2,16,64], index: 4, kind: output, shape index: {}]  }
   0x1   :  { %v40_v0 = vld [vmem:[%s635_s0 + $0x78] sm:$0xff]  ;;  %v387_v1 = vld [vmem:[%s635_s0 + $0x108] sm:$0xff]  ;;  %v39_v2 = vld [vmem:[%s635_s0 + $0x70] sm:$0xff] }
   0x2   :  { %v58_v3 = vmax.f32 %v40_v0, 0.0  ;;  %v236_v4 = vmax.f32 %v387_v1, 0.0  ;;  %v57_v5 = vmax.f32 %v39_v2, 0.0  ;;  %v386_v6 = vld [vmem:[%s635_s0 + $0x100] sm:$0xff]  ;;  %v38_v7 = vld [vmem:[%s635_s0 + $0x68] sm:$0xff]  ;;  %v385_v8 = vld [vmem:[%s635_s0 + $0xf8] sm:$0xff] }
   0x3   :  { %v235_v9 = vmax.f32 %v386_v6, 0.0  ;;  %v37_v10 = vld [vmem:[%s635_s0 + $0x60] sm:$0xff]  ;;  %v384_v11 = vld [vmem:[%s635_s0 + $0xf0] sm:$0xff]  ;;  %v56_v12 = vmax.f32 %v38_v7, 0.0  ;;  %v234_v13 = vmax.f32 %v385_v8, 0.0  ;;  %v36_v14 = vld [vmem:[%s635_s0 + $0x58] sm:$0xff] }
   0x4   :  { %68 = vmatpush.msra.mxu0 %v58_v3  ;;  %239 = vmatpush.msra.mxu2 %v236_v4  ;;  %v383_v15 = vld [vmem:[%s635_s0 + $0xe8] sm:$0xff]  ;;  %v55_v16 = vmax.f32 %v37_v10, 0.0  ;;  %v233_v17 = vmax.f32 %v384_v11, 0.0  ;;  %v35_v18 = vld [vmem:[%s635_s0 + $0x50] sm:$0xff]  ;;  %v382_v19 = vld [vmem:[%s635_s0 + $0xe0] sm:$0xff]  ;;  %v54_v20 = vmax.f32 %v36_v14, 0.0 }
   0x5   :  { %v232_v21 = vmax.f32 %v383_v15, 0.0  ;;  %v34_v22 = vld [vmem:[%s635_s0 + $0x48] sm:$0xff]  ;;  %v381_v23 = vld [vmem:[%s635_s0 + $0xd8] sm:$0xff]  ;;  %v53_v24 = vmax.f32 %v35_v18, 0.0  ;;  %v231_v25 = vmax.f32 %v382_v19, 0.0  ;;  %v33_v27 = vld [vmem:[%s635_s0 + $0x40] sm:$0xff] }
   0x6   :  { %69 = vmatpush.msra.mxu0 %v57_v5  ;;  %240 = vmatpush.msra.mxu2 %v235_v9  ;;  %v42_v26 = vld [vmem:[%s635_s0 + $0x88] sm:$0xff]  ;;  %v380_v28 = vld [vmem:[%s635_s0 + $0xd0] sm:$0xff]  ;;  %v389_v30 = vld [vmem:[%s635_s0 + $0x118] sm:$0xff]  ;;  %v52_v31 = vmax.f32 %v34_v22, 0.0  ;;  %v230_v32 = vmax.f32 %v381_v23, 0.0  ;;  %v51_v40 = vmax.f32 %v33_v27, 0.0 }
   0x7   :  { %v60_v29 = vmax.f32 %v42_v26, 0.0  ;;  %v238_v33 = vmax.f32 %v389_v30, 0.0  ;;  %v41_v34 = vld [vmem:[%s635_s0 + $0x80] sm:$0xff]  ;;  %v388_v35 = vld [vmem:[%s635_s0 + $0x110] sm:$0xff]  ;;  %v32_v36 = vld [vmem:[%s635_s0 + $0x38] sm:$0xff]  ;;  %v229_v41 = vmax.f32 %v380_v28, 0.0 }
   0x8   :  { %70 = vmatpush.msra.mxu0 %v56_v12  ;;  %241 = vmatpush.msra.mxu2 %v234_v13  ;;  %v379_v37 = vld [vmem:[%s635_s0 + $0xc8] sm:$0xff]  ;;  %v59_v38 = vmax.f32 %v41_v34, 0.0  ;;  %v237_v39 = vmax.f32 %v388_v35, 0.0  ;;  %v31_v43 = vld [vmem:[%s635_s0 + $0x30] sm:$0xff]  ;;  %v378_v44 = vld [vmem:[%s635_s0 + $0xc0] sm:$0xff]  ;;  %v50_v45 = vmax.f32 %v32_v36, 0.0 }
   0x9   :  { %105 = vmatpush.msra.mxu1 %v60_v29  ;;  %v18_v42 = vld [vmem:[%s636_s1 + $0x8] sm:$0xff]  ;;  %276 = vmatpush.msra.mxu3 %v238_v33  ;;  %v228_v46 = vmax.f32 %v379_v37, 0.0  ;;  %v377_v48 = vld [vmem:[%s635_s0 + $0xb8] sm:$0xff]  ;;  %v49_v49 = vmax.f32 %v31_v43, 0.0  ;;  %v227_v50 = vmax.f32 %v378_v44, 0.0  ;;  %v29_v51 = vld [vmem:[%s635_s0 + $0x20] sm:$0xff] }
   0xa   :  { %71 = vmatpush.msra.mxu0 %v55_v16  ;;  %242 = vmatpush.msra.mxu2 %v233_v17  ;;  %v30_v47 = vld [vmem:[%s635_s0 + $0x28] sm:$0xff]  ;;  %v376_v52 = vld [vmem:[%s635_s0 + $0xb0] sm:$0xff]  ;;  %v226_v54 = vmax.f32 %v377_v48, 0.0  ;;  %v28_v55 = vld [vmem:[%s635_s0 + $0x18] sm:$0xff]  ;;  %v47_v57 = vmax.f32 %v29_v51, 0.0  ;;  %v409_v36 = vmov 64.0  }
   0xb   :  { %106 = vmatpush.msra.mxu1 %v59_v38  ;;  %277 = vmatpush.msra.mxu3 %v237_v39  ;;  %v48_v53 = vmax.f32 %v30_v47, 0.0  ;;  %v375_v56 = vld [vmem:[%s635_s0 + $0xa8] sm:$0xff]  ;;  %v225_v58 = vmax.f32 %v376_v52, 0.0  ;;  %v20_v59 = vld [vmem:[%s636_s1 + $0x18] sm:$0xff]  ;;  %v27_v60 = vld [vmem:[%s635_s0 + $0x10] sm:$0xff]  ;;  %v46_v62 = vmax.f32 %v28_v55, 0.0  ;;  %399 = vrcp.f32 %v409_v36 }
   0xc   :  { %72 = vmatpush.msra.mxu0 %v54_v20  ;;  %243 = vmatpush.msra.mxu2 %v232_v21  ;;  %v374_v61 = vld [vmem:[%s635_s0 + $0xa0] sm:$0xff]  ;;  %v224_v63 = vmax.f32 %v375_v56, 0.0  ;;  %v26_v0 = vld [vmem:[%s635_s0 + $0x8] sm:$0xff]  ;;  %v373_v1 = vld [vmem:[%s635_s0 + $0x98] sm:$0xff]  ;;  %v45_v2 = vmax.f32 %v27_v60, 0.0  ;;  %v410_v43 = vmov 0  }
   0xd   :  { %370 = vmatmul.msk.f32.vlgmr.msra.gmra.mxu1 %vm61_vm0, %v18_v42  ;;  %390 = vmatmul.msk.f32.vlgmr.msra.gmra.mxu3 %vm61_vm0, %v18_v42  ;;  %v223_v3 = vmax.f32 %v374_v61, 0.0  ;;  %v25_v4 = vld [vmem:[%s635_s0] sm:$0xff]  ;;  %v372_v5 = vld [vmem:[%s635_s0 + $0x90] sm:$0xff]  ;;  %v44_v6 = vmax.f32 %v26_v0, 0.0  ;;  %v222_v7 = vmax.f32 %v373_v1, 0.0  ;;  %v22_v36 = vld [vmem:[%s637_s2 + $0x8] sm:$0xff] }
   0xe   :  { %73 = vmatpush.msra.mxu0 %v53_v24  ;;  %244 = vmatpush.msra.mxu2 %v231_v25  ;;  %v43_v8 = vmax.f32 %v25_v4, 0.0  ;;  %v221_v9 = vmax.f32 %v372_v5, 0.0  ;;  %v17_v10 = vld [vmem:[%s636_s1] sm:$0xff]  ;;  %v19_v11 = vld [vmem:[%s636_s1 + $0x10] sm:$0xff] }
   0xf   :  { %396 = vset.pattern.permute.xlu2 %v410_v43  ;;  %398 = vset.pattern.permute.xlu1 %v410_v43 }
  0x10   :  { %74 = vmatpush.msra.mxu0 %v52_v31  ;;  %245 = vmatpush.msra.mxu2 %v230_v32 }
  0x11   :  { %v400_v37 = vpop.eup %399  ;;  %397 = vset.pattern.permute.xlu0 %v410_v43 }
  0x12   :  { %75 = vmatpush.msra.mxu0 %v51_v40  ;;  %246 = vmatpush.msra.mxu2 %v229_v41  ;;  %v122_v38 = vmul.f32 64.0, %v400_v37  ;;  %vm126_vm2 = vweird.f32 %v400_v37 }
  0x14   :  { %76 = vmatpush.msra.mxu0 %v50_v45  ;;  %247 = vmatpush.msra.mxu2 %v228_v46  ;;  %v123_v39 = vsub.f32 1.0, %v122_v38 }
  0x15   :  { %371 = vmatmul.msk.f32.gmra.mxu1 %vm61_vm0, %v20_v59  ;;  %391 = vmatmul.msk.f32.gmra.mxu3 %vm61_vm0, %v20_v59 }
  0x16   :  { %77 = vmatpush.msra.mxu0 %v49_v49  ;;  %248 = vmatpush.msra.mxu2 %v227_v50  ;;  %v124_v40 = vmul.f32 %v400_v37, %v123_v39 }
  0x18   :  { %78 = vmatpush.msra.mxu0 %v48_v53  ;;  %249 = vmatpush.msra.mxu2 %v226_v54  ;;  %v125_v41 = vadd.f32 %v400_v37, %v124_v40 }
  0x1a   :  { %79 = vmatpush.msra.mxu0 %v47_v57  ;;  %250 = vmatpush.msra.mxu2 %v225_v58  ;;  %v127_v42 = vsel %vm126_vm2, %v400_v37, %v125_v41 }
  0x1c   :  { %80 = vmatpush.msra.mxu0 %v46_v62  ;;  %251 = vmatpush.msra.mxu2 %v224_v63 }
  0x1e   :  { %81 = vmatpush.msra.mxu0 %v45_v2  ;;  %252 = vmatpush.msra.mxu2 %v223_v3 }
  0x20   :  { %82 = vmatpush.msra.mxu0 %v44_v6  ;;  %253 = vmatpush.msra.mxu2 %v222_v7 }
  0x22   :  { %83 = vmatpush.msra.mxu0 %v43_v8  ;;  %254 = vmatpush.msra.mxu2 %v221_v9 }
  0x23   :  { %84 = vmatmul.f32.vlgmr.msra.gmra.mxu0 %v17_v10  ;;  %255 = vmatmul.f32.vlgmr.msra.gmra.mxu2 %v17_v10 }
  0x2b   :  { %87 = vmatmul.f32.gmra.mxu0 %v19_v11  ;;  %258 = vmatmul.f32.gmra.mxu2 %v19_v11 }
  0x8a   :  { %v108_v12 = vpop.f32.mrf.mxu1 }
  0x90   :  { %v279_v15 = vpop.f32.mrf.mxu3 }
  0x92   :  { %v111_v20 = vpop.f32.mrf.mxu1 }
  0x98   :  { %v282_v27 = vpop.f32.mrf.mxu3 }
  0xa0   :  { %v85_v13 = vpop.f32.mrf.mxu0 }
  0xa1   :  { %v560_v14 = vadd.f32 %v108_v12, %v85_v13 }
  0xa3   :  { %v115_v16 = vsel %vm114_vm1, %v560_v14, 0.0  ;;  %v130_v17 = vmul.f32 %v560_v14, %v560_v14 }
  0xa4   :  { %116 = vadd.xlane.f32.xlu0 %v115_v16 }
  0xa5   :  { %v132_v18 = vsel %vm114_vm1, %v130_v17, 0.0 }
  0xa6   :  { %v256_v19 = vpop.f32.mrf.mxu2  ;;  %133 = vadd.xlane.f32.xlu2 %v132_v18  ;;  %v21_v18 = vld [vmem:[%s637_s2] sm:$0xff] }
  0xa7   :  { %v567_v21 = vadd.f32 %v279_v15, %v256_v19 }
  0xa8   :  { %v88_v22 = vpop.f32.mrf.mxu0 }
  0xa9   :  { %v569_v23 = vadd.f32 %v111_v20, %v88_v22  ;;  %v285_v24 = vsel %vm114_vm1, %v567_v21, 0.0  ;;  %v293_v31 = vmul.f32 %v567_v21, %v567_v21 }
  0xaa   :  { %286 = vadd.xlane.f32.xlu1 %v285_v24 }
  0xab   :  { %v118_v25 = vsel %vm114_vm1, %v569_v23, 0.0  ;;  %v131_v26 = vmul.f32 %v569_v23, %v569_v23  ;;  %v295_v33 = vsel %vm114_vm1, %v293_v31, 0.0 }
  0xac   :  { %119 = vadd.xlane.f32.xlu0 %v118_v25 }
  0xad   :  { %v135_v28 = vsel %vm114_vm1, %v131_v26, 0.0 }
  0xae   :  { %v259_v29 = vpop.f32.mrf.mxu2  ;;  %136 = vadd.xlane.f32.xlu2 %v135_v28  ;;  %v23_v28 = vld [vmem:[%s638_s3] sm:$0xff] }
  0xaf   :  { %v578_v30 = vadd.f32 %v282_v27, %v259_v29 }
  0xb1   :  { %v288_v32 = vsel %vm114_vm1, %v578_v30, 0.0  ;;  %v294_v34 = vmul.f32 %v578_v30, %v578_v30 }
  0xb2   :  { %289 = vadd.xlane.f32.xlu1 %v288_v32 }
  0xb3   :  { %v298_v35 = vsel %vm114_vm1, %v294_v34, 0.0 }
  0xb4   :  { %296 = vadd.xlane.f32.xlu0 %v295_v33 }
  0xba   :  { %299 = vadd.xlane.f32.xlu1 %v298_v35 }
 0x117   :  { %v117_v44 = vpop.xlane.xlu0 %116 }
 0x118   :  { %v128_v45 = vmul.f32 %v127_v42, %v117_v44 }
 0x119   :  { %v134_v46 = vpop.xlane.xlu2 %133 }
 0x11a   :  { %v140_v47 = vmul.f32 %v128_v45, %v128_v45  ;;  %v138_v48 = vmul.f32 %v134_v46, %v127_v42 }
 0x11c   :  { %v142_v49 = vsub.f32 %v138_v48, %v140_v47 }
 0x11d   :  { %v287_v50 = vpop.xlane.xlu1 %286 }
 0x11e   :  { %v144_v51 = vmax.f32 %v142_v49, 0.0  ;;  %v592_v58 = vmul.f32 %v287_v50, %v127_v42 }
 0x11f   :  { %v120_v52 = vpop.xlane.xlu0 %119 }
 0x120   :  { %v146_v53 = vadd.f32 1e-05, %v144_v51  ;;  %v588_v54 = vmul.f32 %v127_v42, %v120_v52  ;;  %v303_v0 = vmul.f32 %v592_v58, %v592_v58 }
 0x121   :  { %v137_v55 = vpop.xlane.xlu2 %136 }
 0x122   :  { %401 = vrsqrt.f32 %v146_v53  ;;  %v141_v56 = vmul.f32 %v588_v54, %v588_v54  ;;  %v139_v57 = vmul.f32 %v137_v55, %v127_v42  ;;  %vm154_vm3 = vweird.f32 %v146_v53 }
 0x124   :  { %v143_v59 = vsub.f32 %v139_v57, %v141_v56 }
 0x125   :  { %v290_v60 = vpop.xlane.xlu1 %289 }
 0x126   :  { %v145_v61 = vmax.f32 %v143_v59, 0.0  ;;  %v596_v4 = vmul.f32 %v290_v60, %v127_v42 }
 0x127   :  { %v297_v62 = vpop.xlane.xlu0 %296 }
 0x128   :  { %v402_v63 = vpop.eup %401  ;;  %v147_v1 = vadd.f32 1e-05, %v145_v61  ;;  %v301_v2 = vmul.f32 %v297_v62, %v127_v42  ;;  %v304_v10 = vmul.f32 %v596_v4, %v596_v4 }
 0x129   :  { %v149_v3 = vmul.f32 %v402_v63, %v146_v53  ;;  %vm155_vm4 = vweird.f32 %v402_v63  ;;  %v24_v53 = vld [vmem:[%s638_s3 + $0x8] sm:$0xff] }
 0x12a   :  { %403 = vrsqrt.f32 %v147_v1  ;;  %v305_v5 = vsub.f32 %v301_v2, %v303_v0  ;;  %vm156_vm5 = vmor %vm154_vm3, %vm155_vm4  ;;  %vm164_vm6 = vweird.f32 %v147_v1 }
 0x12b   :  { %v150_v6 = vmul.f32 %v402_v63, %v149_v3 }
 0x12c   :  { %v307_v7 = vmax.f32 %v305_v5, 0.0 }
 0x12d   :  { %v151_v8 = vmul.f32 0.5, %v150_v6  ;;  %v300_v9 = vpop.xlane.xlu1 %299 }
 0x12e   :  { %v309_v11 = vadd.f32 1e-05, %v307_v7  ;;  %v302_v12 = vmul.f32 %v300_v9, %v127_v42 }
 0x12f   :  { %v152_v13 = vsub.f32 1.5, %v151_v8 }
 0x130   :  { %v404_v15 = vpop.eup %403  ;;  %405 = vrsqrt.f32 %v309_v11  ;;  %v306_v16 = vsub.f32 %v302_v12, %v304_v10  ;;  %vm317_vm10 = vweird.f32 %v309_v11 }
 0x131   :  { %v159_v17 = vmul.f32 %v404_v15, %v147_v1  ;;  %v153_v19 = vmul.f32 %v402_v63, %v152_v13  ;;  %vm165_vm7 = vweird.f32 %v404_v15 }
 0x132   :  { %v308_v20 = vmax.f32 %v306_v16, 0.0  ;;  %vm166_vm8 = vmor %vm164_vm6, %vm165_vm7 }
 0x133   :  { %v160_v22 = vmul.f32 %v404_v15, %v159_v17  ;;  %v157_v24 = vsel %vm156_vm5, %v402_v63, %v153_v19 }
 0x134   :  { %v310_v25 = vadd.f32 1e-05, %v308_v20  ;;  %v168_v26 = vmul.f32 %v157_v24, %v21_v18 }
 0x135   :  { %v161_v27 = vmul.f32 0.5, %v160_v22 }
 0x136   :  { %v406_v29 = vpop.eup %405  ;;  %407 = vrsqrt.f32 %v310_v25  ;;  %176 = vperm.xlu2 %396, %v168_v26   ;;  %v170_v31 = vmul.f32 %v168_v26, %v128_v45  ;;  %vm327_vm13 = vweird.f32 %v310_v25 }
 0x137   :  { %v162_v32 = vsub.f32 1.5, %v161_v27  ;;  %v312_v33 = vmul.f32 %v406_v29, %v309_v11  ;;  %vm318_vm9 = vweird.f32 %v406_v29 }
 0x138   :  { %v172_v34 = vsub.f32 %v23_v28, %v170_v31  ;;  %vm319_vm11 = vmor %vm317_vm10, %vm318_vm9 }
 0x139   :  { %v313_v35 = vmul.f32 %v406_v29, %v312_v33  ;;  %v163_v37 = vmul.f32 %v404_v15, %v162_v32 }
 0x13a   :  { %188 = vperm.xlu1 %398, %v172_v34  }
 0x13b   :  { %v314_v38 = vmul.f32 0.5, %v313_v35  ;;  %v167_v39 = vsel %vm166_vm8, %v404_v15, %v163_v37 }
 0x13c   :  { %v408_v40 = vpop.eup %407  ;;  %v169_v41 = vmul.f32 %v167_v39, %v22_v36 }
 0x13d   :  { %v315_v42 = vsub.f32 1.5, %v314_v38  ;;  %v322_v43 = vmul.f32 %v408_v40, %v310_v25  ;;  %vm328_vm12 = vweird.f32 %v408_v40 }
 0x13e   :  { %181 = vperm.xlu0 %397, %v169_v41   ;;  %vm329_vm14 = vmor %vm327_vm13, %vm328_vm12  ;;  %v171_v51 = vmul.f32 %v169_v41, %v588_v54 }
 0x13f   :  { %v323_v44 = vmul.f32 %v408_v40, %v322_v43  ;;  %v316_v45 = vmul.f32 %v406_v29, %v315_v42 }
 0x140   :  { %v173_v56 = vsub.f32 %v24_v53, %v171_v51 }
 0x141   :  { %v324_v46 = vmul.f32 0.5, %v323_v44  ;;  %v320_v47 = vsel %vm319_vm11, %v406_v29, %v316_v45 }
 0x142   :  { %v331_v48 = vmul.f32 %v320_v47, %v21_v18 }
 0x143   :  { %v325_v49 = vsub.f32 1.5, %v324_v46 }
 0x144   :  { %339 = vperm.xlu2 %396, %v331_v48   ;;  %v333_v59 = vmul.f32 %v331_v48, %v592_v58 }
 0x145   :  { %v326_v50 = vmul.f32 %v408_v40, %v325_v49 }
 0x146   :  { %v335_v61 = vsub.f32 %v23_v28, %v333_v59 }
 0x147   :  { %v330_v52 = vsel %vm329_vm14, %v408_v40, %v326_v50 }
 0x148   :  { %v332_v55 = vmul.f32 %v330_v52, %v22_v36 }
 0x14a   :  { %344 = vperm.xlu1 %398, %v332_v55   ;;  %v334_v57 = vmul.f32 %v332_v55, %v596_v4 }
 0x14c   :  { %193 = vperm.xlu2 %396, %v173_v56   ;;  %v336_v60 = vsub.f32 %v24_v53, %v334_v57 }
 0x152   :  { %356 = vperm.xlu1 %398, %v336_v60  }
 0x154   :  { %351 = vperm.xlu2 %396, %v335_v61  }
 0x190   :  { %v177_v62 = vpop.permute.xlu2 %176 }
 0x191   :  { %v184_v0 = vmul.f32 %v177_v62, %v560_v14 }
 0x19e   :  { %v340_v63 = vpop.permute.xlu2 %339 }
 0x19f   :  { %v347_v2 = vmul.f32 %v340_v63, %v567_v21 }
 0x1a6   :  { %v194_v54 = vpop.permute.xlu2 %193 }
 0x1ac   :  { %v189_v1 = vpop.permute.xlu1 %188 }
 0x1ad   :  { %v196_v3 = vadd.f32 %v189_v1, %v184_v0 }
 0x1ae   :  { %v352_v5 = vpop.permute.xlu2 %351 }
 0x1af   :  { %v198_v6 = vmax.f32 %v196_v3, 0.0  ;;  %v359_v7 = vadd.f32 %v352_v5, %v347_v2 }
 0x1b0   :  { %v182_v8 = vpop.permute.xlu0 %181 }
 0x1b1   :  { %200 = vst.msk [vmem:[%s639_s4] sm:$0xff] %vm114_vm1, %v198_v6  ;;  %v361_v58 = vmax.f32 %v359_v7, 0.0  ;;  %v185_v4 = vmul.f32 %v182_v8, %v569_v23 }
 0x1b3   :  { %392 = vst.msk [vmem:[%s639_s4 + $0x10] sm:$0xff] %vm114_vm1, %v361_v58  ;;  %v197_v14 = vadd.f32 %v194_v54, %v185_v4 }
 0x1b5   :  { %v199_v21 = vmax.f32 %v197_v14, 0.0 }
 0x1b7   :  { %201 = vst.msk [vmem:[%s639_s4 + $0x8] sm:$0xff] %vm114_vm1, %v199_v21 }
 0x1bc   :  { %v345_v9 = vpop.permute.xlu1 %344 }
 0x1bd   :  { %v348_v10 = vmul.f32 %v345_v9, %v578_v30 }
 0x1c4   :  { %v357_v11 = vpop.permute.xlu1 %356 }
 0x1c5   :  { %v360_v12 = vadd.f32 %v357_v11, %v348_v10 }
 0x1c7   :  { %v362_v13 = vmax.f32 %v360_v12, 0.0 }
 0x1c9   :  { %393 = vst.msk [vmem:[%s639_s4 + $0x18] sm:$0xff] %vm114_vm1, %v362_v13 }

// kernel: _lambda_.21
= control target key start
LH: loop header
LB: loop body
LE: loop exit
PB: predicated region body
PF: predicated region fallthrough
CT: control target
= control target key end

     0   :  { %vm51_vm0 = vcmask 130048   ;;  %s947_s0 = inlined_call_operand.vmem [shape: f32[2,144,16], index: 0, kind: input, shape index: {}]   ;;  %s948_s1 = inlined_call_operand.vmem [shape: f32[32,144], index: 1, kind: input, shape index: {}]   ;;  %s949_s2 = inlined_call_operand.vmem [shape: f32[32,1], index: 2, kind: input, shape index: {}]   ;;  %s950_s3 = inlined_call_operand.vmem [shape: f32[32,1], index: 3, kind: input, shape index: {}]   ;;  %s951_s4 = inlined_call_operand.vmem [shape: f32[2,32,16], index: 4, kind: output, shape index: {}]  }
   0x1   :  { %v48_v0 = vld [vmem:[%s947_s0 + $0x78] sm:$0xff]  ;;  %v542_v1 = vld [vmem:[%s947_s0 + $0x108] sm:$0xff]  ;;  %v47_v2 = vld [vmem:[%s947_s0 + $0x70] sm:$0xff] }
   0x2   :  { %64 = vmatpush.msra.mxu0 %v48_v0  ;;  %304 = vmatpush.msra.mxu2 %v542_v1  ;;  %v541_v3 = vld [vmem:[%s947_s0 + $0x100] sm:$0xff]  ;;  %v46_v4 = vld [vmem:[%s947_s0 + $0x68] sm:$0xff]  ;;  %v540_v5 = vld [vmem:[%s947_s0 + $0xf8] sm:$0xff] }
   0x3   :  { %v45_v6 = vld [vmem:[%s947_s0 + $0x60] sm:$0xff]  ;;  %v539_v7 = vld [vmem:[%s947_s0 + $0xf0] sm:$0xff]  ;;  %v44_v8 = vld [vmem:[%s947_s0 + $0x58] sm:$0xff] }
   0x4   :  { %65 = vmatpush.msra.mxu0 %v47_v2  ;;  %305 = vmatpush.msra.mxu2 %v541_v3  ;;  %v538_v9 = vld [vmem:[%s947_s0 + $0xe8] sm:$0xff]  ;;  %v43_v10 = vld [vmem:[%s947_s0 + $0x50] sm:$0xff]  ;;  %v537_v11 = vld [vmem:[%s947_s0 + $0xe0] sm:$0xff] }
   0x5   :  { %v50_v12 = vld [vmem:[%s947_s0 + $0x88] sm:$0xff]  ;;  %v536_v14 = vld [vmem:[%s947_s0 + $0xd8] sm:$0xff]  ;;  %v49_v16 = vld [vmem:[%s947_s0 + $0x80] sm:$0xff] }
   0x6   :  { %66 = vmatpush.msra.mxu0 %v46_v4  ;;  %306 = vmatpush.msra.mxu2 %v540_v5  ;;  %v42_v13 = vld [vmem:[%s947_s0 + $0x48] sm:$0xff]  ;;  %v544_v15 = vld [vmem:[%s947_s0 + $0x118] sm:$0xff]  ;;  %v543_v17 = vld [vmem:[%s947_s0 + $0x110] sm:$0xff] }
   0x7   :  { %107 = vmatpush.msra.mxu1 %v50_v12  ;;  %v41_v18 = vld [vmem:[%s947_s0 + $0x40] sm:$0xff]  ;;  %v535_v19 = vld [vmem:[%s947_s0 + $0xd0] sm:$0xff]  ;;  %347 = vmatpush.msra.mxu3 %v544_v15  ;;  %v18_v20 = vld [vmem:[%s948_s1 + $0x8] sm:$0xff] }
   0x8   :  { %67 = vmatpush.msra.mxu0 %v45_v6  ;;  %307 = vmatpush.msra.mxu2 %v539_v7  ;;  %v40_v21 = vld [vmem:[%s947_s0 + $0x38] sm:$0xff]  ;;  %v534_v22 = vld [vmem:[%s947_s0 + $0xc8] sm:$0xff]  ;;  %v39_v23 = vld [vmem:[%s947_s0 + $0x30] sm:$0xff] }
   0x9   :  { %108 = vmatpush.msra.mxu1 %v49_v16  ;;  %348 = vmatpush.msra.mxu3 %v543_v17  ;;  %v533_v24 = vld [vmem:[%s947_s0 + $0xc0] sm:$0xff]  ;;  %v38_v25 = vld [vmem:[%s947_s0 + $0x28] sm:$0xff]  ;;  %v532_v26 = vld [vmem:[%s947_s0 + $0xb8] sm:$0xff] }
   0xa   :  { %68 = vmatpush.msra.mxu0 %v44_v8  ;;  %308 = vmatpush.msra.mxu2 %v538_v9  ;;  %v37_v27 = vld [vmem:[%s947_s0 + $0x20] sm:$0xff]  ;;  %v531_v28 = vld [vmem:[%s947_s0 + $0xb0] sm:$0xff]  ;;  %v20_v29 = vld [vmem:[%s948_s1 + $0x18] sm:$0xff] }
   0xb   :  { %523 = vmatmul.msk.f32.vlgmr.msra.gmra.mxu1 %vm51_vm0, %v18_v20  ;;  %545 = vmatmul.msk.f32.vlgmr.msra.gmra.mxu3 %vm51_vm0, %v18_v20  ;;  %v36_v30 = vld [vmem:[%s947_s0 + $0x18] sm:$0xff]  ;;  %v530_v31 = vld [vmem:[%s947_s0 + $0xa8] sm:$0xff]  ;;  %v35_v32 = vld [vmem:[%s947_s0 + $0x10] sm:$0xff] }
   0xc   :  { %69 = vmatpush.msra.mxu0 %v43_v10  ;;  %309 = vmatpush.msra.mxu2 %v537_v11  ;;  %v529_v33 = vld [vmem:[%s947_s0 + $0xa0] sm:$0xff]  ;;  %v34_v34 = vld [vmem:[%s947_s0 + $0x8] sm:$0xff]  ;;  %v528_v35 = vld [vmem:[%s947_s0 + $0x98] sm:$0xff] }
   0xd   :  { %v33_v36 = vld [vmem:[%s947_s0] sm:$0xff]  ;;  %v527_v37 = vld [vmem:[%s947_s0 + $0x90] sm:$0xff]  ;;  %v22_v39 = vld [vmem:[%s948_s1 + $0x28] sm:$0xff] }
   0xe   :  { %70 = vmatpush.msra.mxu0 %v42_v13  ;;  %310 = vmatpush.msra.mxu2 %v536_v14  ;;  %v17_v38 = vld [vmem:[%s948_s1] sm:$0xff]  ;;  %v19_v40 = vld [vmem:[%s948_s1 + $0x10] sm:$0xff]  ;;  %v24_v41 = vld [vmem:[%s948_s1 + $0x38] sm:$0xff] }
   0xf   :  { %v21_v42 = vld [vmem:[%s948_s1 + $0x20] sm:$0xff]  ;;  %v23_v43 = vld [vmem:[%s948_s1 + $0x30] sm:$0xff] }
  0x10   :  { %71 = vmatpush.msra.mxu0 %v41_v18  ;;  %311 = vmatpush.msra.mxu2 %v535_v19 }
  0x12   :  { %72 = vmatpush.msra.mxu0 %v40_v21  ;;  %312 = vmatpush.msra.mxu2 %v534_v22 }
  0x13   :  { %524 = vmatmul.msk.f32.gmra.mxu1 %vm51_vm0, %v20_v29  ;;  %546 = vmatmul.msk.f32.gmra.mxu3 %vm51_vm0, %v20_v29 }
  0x14   :  { %73 = vmatpush.msra.mxu0 %v39_v23  ;;  %313 = vmatpush.msra.mxu2 %v533_v24 }
  0x16   :  { %74 = vmatpush.msra.mxu0 %v38_v25  ;;  %314 = vmatpush.msra.mxu2 %v532_v26 }
  0x18   :  { %75 = vmatpush.msra.mxu0 %v37_v27  ;;  %315 = vmatpush.msra.mxu2 %v531_v28  ;;  %v576_v28 = vmov 16.0  }
  0x19   :  { %558 = vrcp.f32 %v576_v28  ;;  %v836_v28 = vld [vmem:[%s950_s3] sm:$0xff] }
  0x1a   :  { %76 = vmatpush.msra.mxu0 %v36_v30  ;;  %316 = vmatpush.msra.mxu2 %v530_v31 }
  0x1b   :  { %525 = vmatmul.msk.f32.gmra.mxu1 %vm51_vm0, %v22_v39  ;;  %547 = vmatmul.msk.f32.gmra.mxu3 %vm51_vm0, %v22_v39 }
  0x1c   :  { %77 = vmatpush.msra.mxu0 %v35_v32  ;;  %317 = vmatpush.msra.mxu2 %v529_v33 }
  0x1e   :  { %78 = vmatpush.msra.mxu0 %v34_v34  ;;  %318 = vmatpush.msra.mxu2 %v528_v35  ;;  %v577_v35 = vmov 0  }
  0x1f   :  { %v559_v29 = vpop.eup %558  ;;  %555 = vset.pattern.permute.xlu2 %v577_v35  ;;  %556 = vset.pattern.permute.xlu0 %v577_v35 }
  0x20   :  { %79 = vmatpush.msra.mxu0 %v33_v36  ;;  %319 = vmatpush.msra.mxu2 %v527_v37  ;;  %v135_v30 = vmul.f32 16.0, %v559_v29  ;;  %vm139_vm1 = vweird.f32 %v559_v29 }
  0x21   :  { %80 = vmatmul.f32.vlgmr.msra.gmra.mxu0 %v17_v38  ;;  %320 = vmatmul.f32.vlgmr.msra.gmra.mxu2 %v17_v38 }
  0x22   :  { %v136_v31 = vsub.f32 1.0, %v135_v30  ;;  %557 = vset.pattern.permute.xlu1 %v577_v35 }
  0x23   :  { %526 = vmatmul.msk.f32.gmra.mxu1 %vm51_vm0, %v24_v41  ;;  %548 = vmatmul.msk.f32.gmra.mxu3 %vm51_vm0, %v24_v41 }
  0x24   :  { %v137_v32 = vmul.f32 %v559_v29, %v136_v31 }
  0x26   :  { %v138_v33 = vadd.f32 %v559_v29, %v137_v32 }
  0x28   :  { %v799_v34 = vsel %vm139_vm1, %v559_v29, %v138_v33 }
  0x29   :  { %323 = vmatmul.f32.gmra.mxu2 %v19_v40  ;;  %83 = vmatmul.f32.gmra.mxu0 %v19_v40 }
  0x31   :  { %326 = vmatmul.f32.gmra.mxu2 %v21_v42  ;;  %86 = vmatmul.f32.gmra.mxu0 %v21_v42 }
  0x39   :  { %329 = vmatmul.f32.gmra.mxu2 %v23_v43  ;;  %89 = vmatmul.f32.gmra.mxu0 %v23_v43 }
  0x88   :  { %v110_v44 = vpop.f32.mrf.mxu1 }
  0x8e   :  { %v350_v47 = vpop.f32.mrf.mxu3 }
  0x90   :  { %v113_v50 = vpop.f32.mrf.mxu1 }
  0x96   :  { %v353_v57 = vpop.f32.mrf.mxu3 }
  0x98   :  { %v116_v62 = vpop.f32.mrf.mxu1 }
  0x9e   :  { %v81_v45 = vpop.f32.mrf.mxu0  ;;  %v356_v4 = vpop.f32.mrf.mxu3 }
  0x9f   :  { %v743_v46 = vadd.f32 %v110_v44, %v81_v45 }
  0xa0   :  { %v119_v13 = vpop.f32.mrf.mxu1 }
  0xa1   :  { %v122_v48 = vsel %vm51_vm0, %v743_v46, 0.0  ;;  %v145_v49 = vmul.f32 %v743_v46, %v743_v46 }
  0xa2   :  { %123 = vadd.xlane.f32.xlu0 %v122_v48 }
  0xa3   :  { %v149_v51 = vsel %vm51_vm0, %v145_v49, 0.0 }
  0xa4   :  { %v321_v52 = vpop.f32.mrf.mxu2  ;;  %150 = vadd.xlane.f32.xlu2 %v149_v51 }
  0xa5   :  { %v750_v53 = vadd.f32 %v350_v47, %v321_v52 }
  0xa6   :  { %v84_v54 = vpop.f32.mrf.mxu0  ;;  %v359_v15 = vpop.f32.mrf.mxu3 }
  0xa7   :  { %v378_v55 = vmul.f32 %v750_v53, %v750_v53  ;;  %v754_v56 = vadd.f32 %v113_v50, %v84_v54  ;;  %v362_v60 = vsel %vm51_vm0, %v750_v53, 0.0 }
  0xa9   :  { %v382_v58 = vsel %vm51_vm0, %v378_v55, 0.0  ;;  %v125_v59 = vsel %vm51_vm0, %v754_v56, 0.0  ;;  %v146_v0 = vmul.f32 %v754_v56, %v754_v56 }
  0xaa   :  { %383 = vadd.xlane.f32.xlu1 %v382_v58  ;;  %126 = vadd.xlane.f32.xlu0 %v125_v59 }
  0xab   :  { %v152_v5 = vsel %vm51_vm0, %v146_v0, 0.0 }
  0xac   :  { %363 = vadd.xlane.f32.xlu2 %v362_v60  ;;  %v324_v61 = vpop.f32.mrf.mxu2 }
  0xad   :  { %v761_v63 = vadd.f32 %v353_v57, %v324_v61 }
  0xae   :  { %v87_v1 = vpop.f32.mrf.mxu0 }
  0xaf   :  { %v365_v2 = vsel %vm51_vm0, %v761_v63, 0.0  ;;  %v767_v3 = vadd.f32 %v116_v62, %v87_v1  ;;  %v379_v11 = vmul.f32 %v761_v63, %v761_v63 }
  0xb1   :  { %v147_v6 = vmul.f32 %v767_v3, %v767_v3  ;;  %v128_v10 = vsel %vm51_vm0, %v767_v3, 0.0  ;;  %v385_v16 = vsel %vm51_vm0, %v379_v11, 0.0 }
  0xb2   :  { %366 = vadd.xlane.f32.xlu1 %v365_v2 }
  0xb3   :  { %v155_v7 = vsel %vm51_vm0, %v147_v6, 0.0 }
  0xb4   :  { %153 = vadd.xlane.f32.xlu2 %v152_v5  ;;  %v327_v8 = vpop.f32.mrf.mxu2  ;;  %156 = vadd.xlane.f32.xlu0 %v155_v7 }
  0xb5   :  { %v773_v9 = vadd.f32 %v356_v4, %v327_v8 }
  0xb6   :  { %v90_v12 = vpop.f32.mrf.mxu0 }
  0xb7   :  { %v368_v14 = vsel %vm51_vm0, %v773_v9, 0.0  ;;  %v782_v17 = vadd.f32 %v119_v13, %v90_v12  ;;  %v380_v22 = vmul.f32 %v773_v9, %v773_v9  ;;  %v25_v13 = vld [vmem:[%s949_s2] sm:$0xff] }
  0xb9   :  { %v131_v20 = vsel %vm51_vm0, %v782_v17, 0.0  ;;  %v388_v24 = vsel %vm51_vm0, %v380_v22, 0.0  ;;  %v148_v26 = vmul.f32 %v782_v17, %v782_v17 }
  0xba   :  { %129 = vadd.xlane.f32.xlu1 %v128_v10 }
  0xbb   :  { %v158_v27 = vsel %vm51_vm0, %v148_v26, 0.0 }
  0xbc   :  { %386 = vadd.xlane.f32.xlu2 %v385_v16  ;;  %v330_v18 = vpop.f32.mrf.mxu2  ;;  %369 = vadd.xlane.f32.xlu0 %v368_v14 }
  0xbd   :  { %v784_v19 = vadd.f32 %v359_v15, %v330_v18 }
  0xbf   :  { %v371_v21 = vsel %vm51_vm0, %v784_v19, 0.0  ;;  %v381_v23 = vmul.f32 %v784_v19, %v784_v19 }
  0xc1   :  { %v391_v25 = vsel %vm51_vm0, %v381_v23, 0.0 }
  0xc2   :  { %132 = vadd.xlane.f32.xlu1 %v131_v20 }
  0xc4   :  { %372 = vadd.xlane.f32.xlu2 %v371_v21 }
  0xca   :  { %389 = vadd.xlane.f32.xlu1 %v388_v24 }
  0xcc   :  { %392 = vadd.xlane.f32.xlu2 %v391_v25 }
  0xd2   :  { %159 = vadd.xlane.f32.xlu1 %v158_v27 }
 0x115   :  { %v124_v36 = vpop.xlane.xlu0 %123 }
 0x116   :  { %v141_v37 = vmul.f32 %v799_v34, %v124_v36 }
 0x117   :  { %v151_v38 = vpop.xlane.xlu2 %150 }
 0x118   :  { %v165_v39 = vmul.f32 %v141_v37, %v141_v37  ;;  %v161_v40 = vmul.f32 %v151_v38, %v799_v34 }
 0x11a   :  { %v169_v41 = vsub.f32 %v161_v40, %v165_v39 }
 0x11c   :  { %v173_v42 = vmax.f32 %v169_v41, 0.0 }
 0x11d   :  { %v384_v43 = vpop.xlane.xlu1 %383  ;;  %v127_v47 = vpop.xlane.xlu0 %126 }
 0x11e   :  { %v177_v44 = vadd.f32 1e-05, %v173_v42  ;;  %v394_v49 = vmul.f32 %v384_v43, %v799_v34  ;;  %v810_v51 = vmul.f32 %v799_v34, %v127_v47 }
 0x11f   :  { %v364_v45 = vpop.xlane.xlu2 %363 }
 0x120   :  { %560 = vrsqrt.f32 %v177_v44  ;;  %v804_v48 = vmul.f32 %v364_v45, %v799_v34  ;;  %v166_v58 = vmul.f32 %v810_v51, %v810_v51  ;;  %vm187_vm2 = vweird.f32 %v177_v44 }
 0x122   :  { %v398_v50 = vmul.f32 %v804_v48, %v804_v48 }
 0x124   :  { %v402_v52 = vsub.f32 %v394_v49, %v398_v50 }
 0x125   :  { %v367_v54 = vpop.xlane.xlu1 %366 }
 0x126   :  { %v561_v55 = vpop.eup %560  ;;  %v406_v57 = vmax.f32 %v402_v52, 0.0  ;;  %v816_v5 = vmul.f32 %v367_v54, %v799_v34 }
 0x127   :  { %v182_v59 = vmul.f32 %v561_v55, %v177_v44  ;;  %v154_v60 = vpop.xlane.xlu2 %153  ;;  %v157_v4 = vpop.xlane.xlu0 %156  ;;  %vm188_vm3 = vweird.f32 %v561_v55 }
 0x128   :  { %v410_v61 = vadd.f32 1e-05, %v406_v57  ;;  %v162_v62 = vmul.f32 %v154_v60, %v799_v34  ;;  %v163_v12 = vmul.f32 %v157_v4, %v799_v34  ;;  %v399_v18 = vmul.f32 %v816_v5, %v816_v5  ;;  %vm189_vm4 = vmor %vm187_vm2, %vm188_vm3 }
 0x129   :  { %v183_v0 = vmul.f32 %v561_v55, %v182_v59 }
 0x12a   :  { %562 = vrsqrt.f32 %v410_v61  ;;  %v170_v1 = vsub.f32 %v162_v62, %v166_v58  ;;  %vm420_vm6 = vweird.f32 %v410_v61 }
 0x12b   :  { %v184_v2 = vmul.f32 0.5, %v183_v0 }
 0x12c   :  { %v174_v6 = vmax.f32 %v170_v1, 0.0  ;;  %v26_v1 = vld [vmem:[%s949_s2 + $0x8] sm:$0xff] }
 0x12d   :  { %v185_v7 = vsub.f32 1.5, %v184_v2  ;;  %v130_v8 = vpop.xlane.xlu1 %129 }
 0x12e   :  { %v818_v10 = vadd.f32 1e-05, %v174_v6  ;;  %v821_v11 = vmul.f32 %v799_v34, %v130_v8 }
 0x12f   :  { %v387_v14 = vpop.xlane.xlu2 %386  ;;  %v186_v15 = vmul.f32 %v561_v55, %v185_v7  ;;  %v370_v43 = vpop.xlane.xlu0 %369 }
 0x130   :  { %v563_v16 = vpop.eup %562  ;;  %564 = vrsqrt.f32 %v818_v10  ;;  %v167_v20 = vmul.f32 %v821_v11, %v821_v11  ;;  %v395_v21 = vmul.f32 %v387_v14, %v799_v34  ;;  %v850_v47 = vmul.f32 %v370_v43, %v799_v34 }
 0x131   :  { %v415_v22 = vmul.f32 %v563_v16, %v410_v61  ;;  %v190_v23 = vsel %vm189_vm4, %v561_v55, %v186_v15  ;;  %vm421_vm5 = vweird.f32 %v563_v16  ;;  %vm197_vm9 = vweird.f32 %v818_v10 }
 0x132   :  { %v403_v24 = vsub.f32 %v395_v21, %v399_v18  ;;  %v171_v25 = vsub.f32 %v163_v12, %v167_v20  ;;  %v221_v26 = vmul.f32 %v190_v23, %v25_v13  ;;  %vm422_vm7 = vmor %vm420_vm6, %vm421_vm5  ;;  %v400_v59 = vmul.f32 %v850_v47, %v850_v47  ;;  %v875_v23 = vld [vmem:[%s950_s3 + $0x8] sm:$0xff] }
 0x133   :  { %v416_v27 = vmul.f32 %v563_v16, %v415_v22 }
 0x134   :  { %v407_v29 = vmax.f32 %v403_v24, 0.0  ;;  %v175_v30 = vmax.f32 %v171_v25, 0.0  ;;  %235 = vperm.xlu2 %555, %v221_v26   ;;  %v225_v31 = vmul.f32 %v221_v26, %v141_v37 }
 0x135   :  { %v417_v32 = vmul.f32 0.5, %v416_v27  ;;  %v133_v33 = vpop.xlane.xlu1 %132 }
 0x136   :  { %v565_v35 = vpop.eup %564  ;;  %v838_v36 = vadd.f32 1e-05, %v407_v29  ;;  %v840_v38 = vadd.f32 1e-05, %v175_v30  ;;  %v229_v39 = vsub.f32 %v836_v28, %v225_v31  ;;  %v870_v18 = vmul.f32 %v799_v34, %v133_v33 }
 0x137   :  { %v418_v40 = vsub.f32 1.5, %v417_v32  ;;  %v192_v41 = vmul.f32 %v565_v35, %v818_v10  ;;  %v373_v42 = vpop.xlane.xlu2 %372  ;;  %vm198_vm8 = vweird.f32 %v565_v35 }
 0x138   :  { %566 = vrsqrt.f32 %v838_v36  ;;  %259 = vperm.xlu0 %556, %v229_v39   ;;  %v847_v45 = vmul.f32 %v373_v42, %v799_v34  ;;  %vm199_vm10 = vmor %vm197_vm9, %vm198_vm8  ;;  %v168_v31 = vmul.f32 %v870_v18, %v870_v18  ;;  %vm207_vm12 = vweird.f32 %v840_v38 }
 0x139   :  { %v419_v44 = vmul.f32 %v563_v16, %v418_v40  ;;  %v193_v37 = vmul.f32 %v565_v35, %v192_v41  ;;  %568 = vrsqrt.f32 %v840_v38  ;;  %vm430_vm15 = vweird.f32 %v838_v36 }
 0x13a   :  { %v401_v58 = vmul.f32 %v847_v45, %v847_v45 }
 0x13b   :  { %v423_v49 = vsel %vm422_vm7, %v563_v16, %v419_v44  ;;  %v194_v50 = vmul.f32 0.5, %v193_v37  ;;  %v31_v37 = vld [vmem:[%s950_s3 + $0x10] sm:$0xff] }
 0x13c   :  { %v454_v52 = vmul.f32 %v423_v49, %v25_v13 }
 0x13d   :  { %v195_v54 = vsub.f32 1.5, %v194_v50  ;;  %v390_v55 = vpop.xlane.xlu1 %389 }
 0x13e   :  { %v852_v57 = vpop.eup %566  ;;  %v396_v60 = vmul.f32 %v390_v55, %v799_v34  ;;  %468 = vperm.xlu1 %557, %v454_v52   ;;  %v458_v25 = vmul.f32 %v454_v52, %v804_v48  ;;  %v27_v48 = vld [vmem:[%s949_s2 + $0x10] sm:$0xff] }
 0x13f   :  { %v569_v61 = vpop.eup %568  ;;  %v425_v62 = vmul.f32 %v852_v57, %v838_v36  ;;  %v393_v0 = vpop.xlane.xlu2 %392  ;;  %v196_v2 = vmul.f32 %v565_v35, %v195_v54  ;;  %vm431_vm14 = vweird.f32 %v852_v57 }
 0x140   :  { %v202_v4 = vmul.f32 %v569_v61, %v840_v38  ;;  %v404_v6 = vsub.f32 %v396_v60, %v400_v59  ;;  %v397_v7 = vmul.f32 %v393_v0, %v799_v34  ;;  %vm208_vm11 = vweird.f32 %v569_v61  ;;  %vm432_vm1 = vmor %vm430_vm15, %vm431_vm14 }
 0x141   :  { %v426_v8 = vmul.f32 %v852_v57, %v425_v62  ;;  %v200_v12 = vsel %vm199_vm10, %v565_v35, %v196_v2  ;;  %vm209_vm13 = vmor %vm207_vm12, %vm208_vm11  ;;  %v462_v39 = vsub.f32 %v836_v28, %v458_v25 }
 0x142   :  { %v203_v10 = vmul.f32 %v569_v61, %v202_v4  ;;  %v408_v13 = vmax.f32 %v404_v6, 0.0  ;;  %v405_v14 = vsub.f32 %v397_v7, %v401_v58  ;;  %v222_v15 = vmul.f32 %v200_v12, %v26_v1 }
 0x143   :  { %v427_v16 = vmul.f32 0.5, %v426_v8 }
 0x144   :  { %v204_v20 = vmul.f32 0.5, %v203_v10  ;;  %v412_v21 = vadd.f32 1e-05, %v408_v13  ;;  %v409_v22 = vmax.f32 %v405_v14, 0.0  ;;  %240 = vperm.xlu0 %556, %v222_v15   ;;  %v226_v24 = vmul.f32 %v222_v15, %v810_v51 }
 0x145   :  { %v160_v26 = vpop.xlane.xlu1 %159  ;;  %v428_v30 = vsub.f32 1.5, %v427_v16 }
 0x146   :  { %v205_v27 = vsub.f32 1.5, %v204_v20  ;;  %570 = vrsqrt.f32 %v412_v21  ;;  %v413_v29 = vadd.f32 1e-05, %v409_v22  ;;  %v164_v32 = vmul.f32 %v160_v26, %v799_v34 }
 0x147   :  { %v230_v33 = vsub.f32 %v875_v23, %v226_v24  ;;  %v429_v34 = vmul.f32 %v852_v57, %v428_v30  ;;  %vm440_vm3 = vweird.f32 %v412_v21  ;;  %v32_v24 = vld [vmem:[%s950_s3 + $0x18] sm:$0xff] }
 0x148   :  { %v206_v35 = vmul.f32 %v569_v61, %v205_v27  ;;  %572 = vrsqrt.f32 %v413_v29  ;;  %v172_v51 = vsub.f32 %v164_v32, %v168_v31  ;;  %vm450_vm6 = vweird.f32 %v413_v29 }
 0x149   :  { %264 = vperm.xlu1 %557, %v230_v33   ;;  %v433_v54 = vsel %vm432_vm1, %v852_v57, %v429_v34  ;;  %v28_v57 = vld [vmem:[%s949_s2 + $0x18] sm:$0xff] }
 0x14a   :  { %v210_v40 = vsel %vm209_vm13, %v569_v61, %v206_v35  ;;  %v176_v41 = vmax.f32 %v172_v51, 0.0  ;;  %v455_v36 = vmul.f32 %v433_v54, %v26_v1 }
 0x14b   :  { %v223_v42 = vmul.f32 %v210_v40, %v27_v48 }
 0x14c   :  { %v571_v43 = vpop.eup %570  ;;  %492 = vperm.xlu0 %556, %v462_v39   ;;  %v180_v44 = vadd.f32 1e-05, %v176_v41  ;;  %v459_v26 = vmul.f32 %v455_v36, %v816_v5 }
 0x14d   :  { %v435_v38 = vmul.f32 %v571_v43, %v412_v21  ;;  %v227_v49 = vmul.f32 %v223_v42, %v821_v11  ;;  %vm441_vm2 = vweird.f32 %v571_v43 }
 0x14e   :  { %v573_v28 = vpop.eup %572  ;;  %574 = vrsqrt.f32 %v180_v44  ;;  %vm442_vm5 = vmor %vm440_vm3, %vm441_vm2  ;;  %vm217_vm9 = vweird.f32 %v180_v44  ;;  %v463_v27 = vsub.f32 %v875_v23, %v459_v26 }
 0x14f   :  { %v436_v50 = vmul.f32 %v571_v43, %v435_v38  ;;  %v445_v52 = vmul.f32 %v573_v28, %v413_v29  ;;  %v231_v55 = vsub.f32 %v31_v37, %v227_v49  ;;  %vm451_vm4 = vweird.f32 %v573_v28 }
 0x150   :  { %vm452_vm7 = vmor %vm450_vm6, %vm451_vm4 }
 0x151   :  { %v437_v58 = vmul.f32 0.5, %v436_v50  ;;  %v446_v59 = vmul.f32 %v573_v28, %v445_v52  ;;  %245 = vperm.xlu1 %557, %v223_v42   ;;  %269 = vperm.xlu2 %555, %v231_v55  }
 0x153   :  { %v438_v60 = vsub.f32 1.5, %v437_v58  ;;  %v447_v61 = vmul.f32 0.5, %v446_v59 }
 0x154   :  { %473 = vperm.xlu0 %556, %v455_v36   ;;  %v575_v62 = vpop.eup %574 }
 0x155   :  { %v448_v11 = vsub.f32 1.5, %v447_v61  ;;  %v439_v0 = vmul.f32 %v571_v43, %v438_v60  ;;  %v212_v2 = vmul.f32 %v575_v62, %v180_v44  ;;  %vm218_vm8 = vweird.f32 %v575_v62 }
 0x156   :  { %vm219_vm10 = vmor %vm217_vm9, %vm218_vm8 }
 0x157   :  { %v443_v4 = vsel %vm442_vm5, %v571_v43, %v439_v0  ;;  %v449_v6 = vmul.f32 %v573_v28, %v448_v11  ;;  %v213_v7 = vmul.f32 %v575_v62, %v212_v2 }
 0x158   :  { %v456_v1 = vmul.f32 %v443_v4, %v27_v48 }
 0x159   :  { %v453_v8 = vsel %vm452_vm7, %v573_v28, %v449_v6  ;;  %v214_v12 = vmul.f32 0.5, %v213_v7 }
 0x15a   :  { %478 = vperm.xlu2 %555, %v456_v1   ;;  %v457_v10 = vmul.f32 %v453_v8, %v28_v57  ;;  %v460_v15 = vmul.f32 %v456_v1, %v850_v47 }
 0x15b   :  { %v215_v13 = vsub.f32 1.5, %v214_v12 }
 0x15c   :  { %483 = vperm.xlu1 %557, %v457_v10   ;;  %v464_v21 = vsub.f32 %v31_v37, %v460_v15  ;;  %v461_v47 = vmul.f32 %v457_v10, %v847_v45 }
 0x15d   :  { %v216_v14 = vmul.f32 %v575_v62, %v215_v13 }
 0x15e   :  { %v465_v29 = vsub.f32 %v32_v24, %v461_v47 }
 0x15f   :  { %v220_v16 = vsel %vm219_vm10, %v575_v62, %v216_v14 }
 0x160   :  { %v224_v20 = vmul.f32 %v220_v16, %v28_v57 }
 0x162   :  { %250 = vperm.xlu2 %555, %v224_v20   ;;  %v228_v22 = vmul.f32 %v224_v20, %v870_v18 }
 0x164   :  { %502 = vperm.xlu1 %557, %v464_v21   ;;  %v232_v25 = vsub.f32 %v32_v24, %v228_v22 }
 0x166   :  { %274 = vperm.xlu0 %556, %v232_v25  }
 0x16a   :  { %497 = vperm.xlu2 %555, %v463_v27  }
 0x16e   :  { %507 = vperm.xlu0 %556, %v465_v29  }
 0x18e   :  { %v236_v30 = vpop.permute.xlu2 %235 }
 0x18f   :  { %v253_v31 = vmul.f32 %v236_v30, %v743_v46 }
 0x1aa   :  { %v260_v18 = vpop.permute.xlu0 %259 }
 0x1ab   :  { %v277_v32 = vadd.f32 %v260_v18, %v253_v31  ;;  %v270_v33 = vpop.permute.xlu2 %269 }
 0x1ad   :  { %281 = vst.msk [vmem:[%s951_s4] sm:$0xff] %vm51_vm0, %v277_v32 }
 0x1b0   :  { %v469_v5 = vpop.permute.xlu1 %468 }
 0x1b1   :  { %v486_v39 = vmul.f32 %v469_v5, %v750_v53 }
 0x1b4   :  { %v479_v35 = vpop.permute.xlu2 %478 }
 0x1b5   :  { %v488_v49 = vmul.f32 %v479_v35, %v773_v9 }
 0x1b6   :  { %v241_v48 = vpop.permute.xlu0 %240 }
 0x1b7   :  { %v254_v23 = vmul.f32 %v241_v48, %v754_v56 }
 0x1bb   :  { %v265_v45 = vpop.permute.xlu1 %264 }
 0x1bc   :  { %v278_v51 = vadd.f32 %v265_v45, %v254_v23  ;;  %v251_v46 = vpop.permute.xlu2 %250 }
 0x1bd   :  { %v256_v50 = vmul.f32 %v251_v46, %v782_v17 }
 0x1be   :  { %282 = vst.msk [vmem:[%s951_s4 + $0x8] sm:$0xff] %vm51_vm0, %v278_v51  ;;  %v493_v40 = vpop.permute.xlu0 %492 }
 0x1bf   :  { %v510_v41 = vadd.f32 %v493_v40, %v486_v39 }
 0x1c1   :  { %549 = vst.msk [vmem:[%s951_s4 + $0x20] sm:$0xff] %vm51_vm0, %v510_v41 }
 0x1c3   :  { %v246_v42 = vpop.permute.xlu1 %245 }
 0x1c4   :  { %v255_v56 = vmul.f32 %v246_v42, %v767_v3  ;;  %v498_v38 = vpop.permute.xlu2 %497 }
 0x1c6   :  { %v279_v34 = vadd.f32 %v270_v33, %v255_v56  ;;  %v474_v43 = vpop.permute.xlu0 %473 }
 0x1c7   :  { %v487_v53 = vmul.f32 %v474_v43, %v761_v63 }
 0x1c8   :  { %283 = vst.msk [vmem:[%s951_s4 + $0x10] sm:$0xff] %vm51_vm0, %v279_v34 }
 0x1c9   :  { %v511_v44 = vadd.f32 %v498_v38, %v487_v53 }
 0x1cb   :  { %550 = vst.msk [vmem:[%s951_s4 + $0x28] sm:$0xff] %vm51_vm0, %v511_v44 }
 0x1ce   :  { %v484_v37 = vpop.permute.xlu1 %483 }
 0x1cf   :  { %v489_v54 = vmul.f32 %v484_v37, %v784_v19 }
 0x1d6   :  { %v503_v3 = vpop.permute.xlu1 %502 }
 0x1d7   :  { %v512_v28 = vadd.f32 %v503_v3, %v488_v49 }
 0x1d8   :  { %v275_v63 = vpop.permute.xlu0 %274 }
 0x1d9   :  { %551 = vst.msk [vmem:[%s951_s4 + $0x30] sm:$0xff] %vm51_vm0, %v512_v28  ;;  %v280_v52 = vadd.f32 %v275_v63, %v256_v50 }
 0x1db   :  { %284 = vst.msk [vmem:[%s951_s4 + $0x18] sm:$0xff] %vm51_vm0, %v280_v52 }
 0x1e0   :  { %v508_v55 = vpop.permute.xlu0 %507 }
 0x1e1   :  { %v513_v9 = vadd.f32 %v508_v55, %v489_v54 }
 0x1e3   :  { %552 = vst.msk [vmem:[%s951_s4 + $0x38] sm:$0xff] %vm51_vm0, %v513_v9 }

// kernel: _lambda_.22
= control target key start
LH: loop header
LB: loop body
LE: loop exit
PB: predicated region body
PF: predicated region fallthrough
CT: control target
= control target key end

     0   :  { %vm109_vm0 = vcmask 261120   ;;  %vm209_vm1 = vcmask 130048   ;;  %s1281_s0 = inlined_call_operand.vmem [shape: f32[2,288,16], index: 0, kind: input, shape index: {}]   ;;  %s1282_s1 = inlined_call_operand.vmem [shape: f32[32,288], index: 1, kind: input, shape index: {}]   ;;  %s1283_s2 = inlined_call_operand.vmem [shape: f32[32,1], index: 2, kind: input, shape index: {}]   ;;  %s1284_s3 = inlined_call_operand.vmem [shape: f32[32,1], index: 3, kind: input, shape index: {}]   ;;  %s1285_s4 = inlined_call_operand.vmem [shape: f32[2,32,16], index: 4, kind: output, shape index: {}]  }
   0x1   :  { %v52_v0 = vld [vmem:[%s1281_s0 + $0x78] sm:$0xff]  ;;  %v51_v2 = vld [vmem:[%s1281_s0 + $0x70] sm:$0xff]  ;;  %v50_v7 = vld [vmem:[%s1281_s0 + $0x68] sm:$0xff] }
   0x2   :  { %v68_v1 = vld [vmem:[%s1281_s0 + $0xf8] sm:$0xff]  ;;  %v88_v3 = vmax.f32 %v52_v0, 0.0  ;;  %v87_v5 = vmax.f32 %v51_v2, 0.0  ;;  %v67_v6 = vld [vmem:[%s1281_s0 + $0xf0] sm:$0xff]  ;;  %v66_v8 = vld [vmem:[%s1281_s0 + $0xe8] sm:$0xff]  ;;  %v86_v13 = vmax.f32 %v50_v7, 0.0 }
   0x3   :  { %v104_v4 = vmax.f32 %v68_v1, 0.0  ;;  %v103_v9 = vmax.f32 %v67_v6, 0.0  ;;  %v72_v10 = vld [vmem:[%s1281_s0 + $0x118] sm:$0xff]  ;;  %v49_v11 = vld [vmem:[%s1281_s0 + $0x60] sm:$0xff]  ;;  %v102_v14 = vmax.f32 %v66_v8, 0.0  ;;  %v71_v16 = vld [vmem:[%s1281_s0 + $0x110] sm:$0xff] }
   0x4   :  { %v65_v12 = vld [vmem:[%s1281_s0 + $0xe0] sm:$0xff]  ;;  %122 = vmatpush.msra.mxu0 %v88_v3  ;;  %v108_v15 = vmax.f32 %v72_v10, 0.0  ;;  %v721_v17 = vld [vmem:[%s1281_s0 + $0x198] sm:$0xff]  ;;  %v107_v19 = vmax.f32 %v71_v16, 0.0  ;;  %v70_v22 = vld [vmem:[%s1281_s0 + $0x108] sm:$0xff]  ;;  %v85_v24 = vmax.f32 %v49_v11, 0.0 }
   0x5   :  { %151 = vmatpush.msra.mxu1 %v104_v4  ;;  %v48_v18 = vld [vmem:[%s1281_s0 + $0x58] sm:$0xff]  ;;  %v429_v20 = vmax.f32 %v721_v17, 0.0  ;;  %v720_v23 = vld [vmem:[%s1281_s0 + $0x190] sm:$0xff]  ;;  %v101_v25 = vmax.f32 %v65_v12, 0.0  ;;  %v69_v27 = vld [vmem:[%s1281_s0 + $0x100] sm:$0xff]  ;;  %v106_v28 = vmax.f32 %v70_v22, 0.0 }
   0x6   :  { %v64_v21 = vld [vmem:[%s1281_s0 + $0xd8] sm:$0xff]  ;;  %123 = vmatpush.msra.mxu0 %v87_v5  ;;  %v428_v26 = vmax.f32 %v720_v23, 0.0  ;;  %192 = vmatpush.msra.mxu2 %v108_v15  ;;  %v47_v29 = vld [vmem:[%s1281_s0 + $0x50] sm:$0xff]  ;;  %v719_v31 = vld [vmem:[%s1281_s0 + $0x188] sm:$0xff]  ;;  %v84_v32 = vmax.f32 %v48_v18, 0.0  ;;  %v105_v36 = vmax.f32 %v69_v27, 0.0 }
   0x7   :  { %152 = vmatpush.msra.mxu1 %v103_v9  ;;  %450 = vmatpush.msra.mxu3 %v429_v20  ;;  %v63_v30 = vld [vmem:[%s1281_s0 + $0xd0] sm:$0xff]  ;;  %v100_v33 = vmax.f32 %v64_v21, 0.0  ;;  %v427_v34 = vmax.f32 %v719_v31, 0.0  ;;  %v718_v35 = vld [vmem:[%s1281_s0 + $0x180] sm:$0xff]  ;;  %v46_v37 = vld [vmem:[%s1281_s0 + $0x48] sm:$0xff]  ;;  %v83_v41 = vmax.f32 %v47_v29, 0.0 }
   0x8   :  { %124 = vmatpush.msra.mxu0 %v86_v13  ;;  %193 = vmatpush.msra.mxu2 %v107_v19  ;;  %v62_v38 = vld [vmem:[%s1281_s0 + $0xc8] sm:$0xff]  ;;  %v426_v39 = vmax.f32 %v718_v35, 0.0  ;;  %v717_v40 = vld [vmem:[%s1281_s0 + $0x178] sm:$0xff]  ;;  %v99_v42 = vmax.f32 %v63_v30, 0.0  ;;  %v45_v44 = vld [vmem:[%s1281_s0 + $0x40] sm:$0xff]  ;;  %v82_v49 = vmax.f32 %v46_v37, 0.0 }
   0x9   :  { %153 = vmatpush.msra.mxu1 %v102_v14  ;;  %451 = vmatpush.msra.mxu3 %v428_v26  ;;  %v737_v43 = vld [vmem:[%s1281_s0 + $0x218] sm:$0xff]  ;;  %v61_v45 = vld [vmem:[%s1281_s0 + $0xc0] sm:$0xff]  ;;  %v425_v46 = vmax.f32 %v717_v40, 0.0  ;;  %v716_v47 = vld [vmem:[%s1281_s0 + $0x170] sm:$0xff]  ;;  %v98_v50 = vmax.f32 %v62_v38, 0.0  ;;  %v81_v57 = vmax.f32 %v45_v44, 0.0 }
   0xa   :  { %125 = vmatpush.msra.mxu0 %v85_v24  ;;  %194 = vmatpush.msra.mxu2 %v106_v28  ;;  %v892_v48 = vld [vmem:[%s1282_s1 + $0x10] sm:$0xff]  ;;  %v715_v52 = vld [vmem:[%s1281_s0 + $0x168] sm:$0xff]  ;;  %v445_v53 = vmax.f32 %v737_v43, 0.0  ;;  %v44_v54 = vld [vmem:[%s1281_s0 + $0x38] sm:$0xff]  ;;  %v424_v56 = vmax.f32 %v716_v47, 0.0  ;;  %v97_v58 = vmax.f32 %v61_v45, 0.0 }
   0xb   :  { %154 = vmatpush.msra.mxu1 %v101_v25  ;;  %452 = vmatpush.msra.mxu3 %v427_v34  ;;  %v736_v51 = vld [vmem:[%s1281_s0 + $0x210] sm:$0xff]  ;;  %v60_v55 = vld [vmem:[%s1281_s0 + $0xb8] sm:$0xff]  ;;  %v735_v59 = vld [vmem:[%s1281_s0 + $0x208] sm:$0xff]  ;;  %v423_v0 = vmax.f32 %v715_v52, 0.0  ;;  %v80_v1 = vmax.f32 %v44_v54, 0.0 }
   0xc   :  { %126 = vmatpush.msra.mxu0 %v84_v32  ;;  %195 = vmatpush.msra.mxu2 %v105_v36  ;;  %v714_v60 = vld [vmem:[%s1281_s0 + $0x160] sm:$0xff]  ;;  %v444_v61 = vmax.f32 %v736_v51, 0.0  ;;  %v43_v62 = vld [vmem:[%s1281_s0 + $0x30] sm:$0xff]  ;;  %v96_v2 = vmax.f32 %v60_v55, 0.0  ;;  %v713_v4 = vld [vmem:[%s1281_s0 + $0x158] sm:$0xff]  ;;  %v443_v5 = vmax.f32 %v735_v59, 0.0 }
   0xd   :  { %155 = vmatpush.msra.mxu1 %v100_v33  ;;  %453 = vmatpush.msra.mxu3 %v426_v39  ;;  %v59_v63 = vld [vmem:[%s1281_s0 + $0xb0] sm:$0xff]  ;;  %v734_v3 = vld [vmem:[%s1281_s0 + $0x200] sm:$0xff]  ;;  %v42_v6 = vld [vmem:[%s1281_s0 + $0x28] sm:$0xff]  ;;  %v422_v7 = vmax.f32 %v714_v60, 0.0  ;;  %v79_v8 = vmax.f32 %v43_v62, 0.0  ;;  %v421_v14 = vmax.f32 %v713_v4, 0.0 }
   0xe   :  { %127 = vmatpush.msra.mxu0 %v83_v41  ;;  %702 = vmatmul.msk.f32.vlgmr.msra.gmra.mxu2 %vm109_vm0, %v892_v48  ;;  %v95_v9 = vmax.f32 %v59_v63, 0.0  ;;  %v58_v10 = vld [vmem:[%s1281_s0 + $0xa8] sm:$0xff]  ;;  %v733_v11 = vld [vmem:[%s1281_s0 + $0x1f8] sm:$0xff]  ;;  %v442_v12 = vmax.f32 %v734_v3, 0.0  ;;  %v41_v13 = vld [vmem:[%s1281_s0 + $0x20] sm:$0xff]  ;;  %v78_v16 = vmax.f32 %v42_v6, 0.0 }
   0xf   :  { %156 = vmatpush.msra.mxu1 %v99_v42  ;;  %454 = vmatpush.msra.mxu3 %v425_v46  ;;  %v712_v15 = vld [vmem:[%s1281_s0 + $0x150] sm:$0xff]  ;;  %v57_v17 = vld [vmem:[%s1281_s0 + $0xa0] sm:$0xff]  ;;  %v950_v19 = vld [vmem:[%s1282_s1 + $0x28] sm:$0xff]  ;;  %v94_v20 = vmax.f32 %v58_v10, 0.0  ;;  %v441_v21 = vmax.f32 %v733_v11, 0.0  ;;  %v77_v24 = vmax.f32 %v41_v13, 0.0 }
  0x10   :  { %128 = vmatpush.msra.mxu0 %v82_v49  ;;  %479 = vmatpush.msrb.mxu2 %v445_v53  ;;  %v732_v18 = vld [vmem:[%s1281_s0 + $0x1f0] sm:$0xff]  ;;  %v40_v22 = vld [vmem:[%s1281_s0 + $0x18] sm:$0xff]  ;;  %v711_v23 = vld [vmem:[%s1281_s0 + $0x148] sm:$0xff]  ;;  %v420_v26 = vmax.f32 %v712_v15, 0.0  ;;  %v93_v28 = vmax.f32 %v57_v17, 0.0 }
  0x11   :  { %157 = vmatpush.msra.mxu1 %v98_v50  ;;  %455 = vmatpush.msra.mxu3 %v424_v56  ;;  %v56_v25 = vld [vmem:[%s1281_s0 + $0x98] sm:$0xff]  ;;  %v731_v27 = vld [vmem:[%s1281_s0 + $0x1e8] sm:$0xff]  ;;  %v440_v29 = vmax.f32 %v732_v18, 0.0  ;;  %v39_v30 = vld [vmem:[%s1281_s0 + $0x10] sm:$0xff]  ;;  %v76_v32 = vmax.f32 %v40_v22, 0.0  ;;  %v419_v34 = vmax.f32 %v711_v23, 0.0 }
  0x12   :  { %129 = vmatpush.msra.mxu0 %v81_v57  ;;  %480 = vmatpush.msrb.mxu2 %v444_v61  ;;  %v710_v31 = vld [vmem:[%s1281_s0 + $0x140] sm:$0xff]  ;;  %v55_v33 = vld [vmem:[%s1281_s0 + $0x90] sm:$0xff]  ;;  %v92_v36 = vmax.f32 %v56_v25, 0.0  ;;  %v439_v37 = vmax.f32 %v731_v27, 0.0  ;;  %v38_v38 = vld [vmem:[%s1281_s0 + $0x8] sm:$0xff]  ;;  %v75_v39 = vmax.f32 %v39_v30, 0.0 }
  0x13   :  { %158 = vmatpush.msra.mxu1 %v97_v58  ;;  %456 = vmatpush.msra.mxu3 %v423_v0  ;;  %v730_v35 = vld [vmem:[%s1281_s0 + $0x1e0] sm:$0xff]  ;;  %v54_v40 = vld [vmem:[%s1281_s0 + $0x88] sm:$0xff]  ;;  %v418_v41 = vmax.f32 %v710_v31, 0.0  ;;  %v729_v42 = vld [vmem:[%s1281_s0 + $0x1d8] sm:$0xff]  ;;  %v91_v43 = vmax.f32 %v55_v33, 0.0  ;;  %v74_v47 = vmax.f32 %v38_v38, 0.0 }
  0x14   :  { %130 = vmatpush.msra.mxu0 %v80_v1  ;;  %481 = vmatpush.msrb.mxu2 %v443_v5  ;;  %v438_v44 = vmax.f32 %v730_v35, 0.0  ;;  %v37_v45 = vld [vmem:[%s1281_s0] sm:$0xff]  ;;  %v709_v46 = vld [vmem:[%s1281_s0 + $0x138] sm:$0xff]  ;;  %v728_v50 = vld [vmem:[%s1281_s0 + $0x1d0] sm:$0xff]  ;;  %v90_v52 = vmax.f32 %v54_v40, 0.0  ;;  %v437_v53 = vmax.f32 %v729_v42, 0.0 }
  0x15   :  { %159 = vmatpush.msra.mxu1 %v96_v2  ;;  %457 = vmatpush.msra.mxu3 %v422_v7  ;;  %v53_v49 = vld [vmem:[%s1281_s0 + $0x80] sm:$0xff]  ;;  %v73_v54 = vmax.f32 %v37_v45, 0.0  ;;  %v417_v55 = vmax.f32 %v709_v46, 0.0  ;;  %v708_v56 = vld [vmem:[%s1281_s0 + $0x130] sm:$0xff]  ;;  %v727_v57 = vld [vmem:[%s1281_s0 + $0x1c8] sm:$0xff]  ;;  %v436_v59 = vmax.f32 %v728_v50, 0.0 }
  0x16   :  { %131 = vmatpush.msra.mxu0 %v79_v8  ;;  %482 = vmatpush.msrb.mxu2 %v442_v12  ;;  %v1002_v51 = vld [vmem:[%s1282_s1 + $0x40] sm:$0xff]  ;;  %v89_v58 = vmax.f32 %v53_v49, 0.0  ;;  %v741_v60 = vld [vmem:[%s1281_s0 + $0x238] sm:$0xff]  ;;  %v707_v61 = vld [vmem:[%s1281_s0 + $0x128] sm:$0xff]  ;;  %v416_v1 = vmax.f32 %v708_v56, 0.0  ;;  %v435_v2 = vmax.f32 %v727_v57, 0.0 }
  0x17   :  { %160 = vmatpush.msra.mxu1 %v95_v9  ;;  %458 = vmatpush.msra.mxu3 %v421_v14  ;;  %v726_v62 = vld [vmem:[%s1281_s0 + $0x1c0] sm:$0xff]  ;;  %v18_v0 = vld [vmem:[%s1282_s1 + $0x8] sm:$0xff]  ;;  %v740_v3 = vld [vmem:[%s1281_s0 + $0x230] sm:$0xff]  ;;  %v449_v4 = vmax.f32 %v741_v60, 0.0  ;;  %v415_v7 = vmax.f32 %v707_v61, 0.0 }
  0x18   :  { %703 = vmatmul.msk.f32.gmra.mxu2 %vm109_vm0, %v950_v19  ;;  %132 = vmatpush.msra.mxu0 %v78_v16  ;;  %v17_v63 = vld [vmem:[%s1282_s1] sm:$0xff]  ;;  %v725_v6 = vld [vmem:[%s1281_s0 + $0x1b8] sm:$0xff]  ;;  %v434_v8 = vmax.f32 %v726_v62, 0.0  ;;  %v724_v9 = vld [vmem:[%s1281_s0 + $0x1b0] sm:$0xff]  ;;  %v448_v10 = vmax.f32 %v740_v3, 0.0 }
  0x19   :  { %161 = vmatpush.msra.mxu1 %v94_v20  ;;  %483 = vmatpush.msrb.mxu2 %v441_v21  ;;  %v706_v5 = vld [vmem:[%s1281_s0 + $0x120] sm:$0xff]  ;;  %v28_v11 = vld [vmem:[%s1282_s1 + $0x58] sm:$0xff]  ;;  %v433_v13 = vmax.f32 %v725_v6, 0.0  ;;  %v723_v14 = vld [vmem:[%s1281_s0 + $0x1a8] sm:$0xff]  ;;  %v432_v16 = vmax.f32 %v724_v9, 0.0 }
  0x1a   :  { %133 = vmatpush.msra.mxu0 %v77_v24  ;;  %459 = vmatpush.msra.mxu3 %v420_v26  ;;  %v414_v12 = vmax.f32 %v706_v5, 0.0  ;;  %v739_v15 = vld [vmem:[%s1281_s0 + $0x228] sm:$0xff]  ;;  %v722_v17 = vld [vmem:[%s1281_s0 + $0x1a0] sm:$0xff]  ;;  %v20_v20 = vld [vmem:[%s1282_s1 + $0x18] sm:$0xff]  ;;  %v431_v22 = vmax.f32 %v723_v14, 0.0 }
  0x1b   :  { %162 = vmatpush.msra.mxu1 %v93_v28  ;;  %484 = vmatpush.msrb.mxu2 %v440_v29  ;;  %v738_v18 = vld [vmem:[%s1281_s0 + $0x220] sm:$0xff]  ;;  %v447_v23 = vmax.f32 %v739_v15, 0.0  ;;  %v430_v24 = vmax.f32 %v722_v17, 0.0  ;;  %v23_v26 = vld [vmem:[%s1282_s1 + $0x30] sm:$0xff]  ;;  %v24_v27 = vld [vmem:[%s1282_s1 + $0x38] sm:$0xff] }
  0x1c   :  { %134 = vmatpush.msra.mxu0 %v76_v32  ;;  %460 = vmatpush.msra.mxu3 %v419_v34  ;;  %v21_v21 = vld [vmem:[%s1282_s1 + $0x20] sm:$0xff]  ;;  %v446_v25 = vmax.f32 %v738_v18, 0.0  ;;  %v26_v28 = vld [vmem:[%s1282_s1 + $0x48] sm:$0xff]  ;;  %v27_v29 = vld [vmem:[%s1282_s1 + $0x50] sm:$0xff] }
  0x1d   :  { %163 = vmatpush.msra.mxu1 %v92_v36  ;;  %485 = vmatpush.msrb.mxu2 %v439_v37 }
  0x1e   :  { %135 = vmatpush.msra.mxu0 %v75_v39  ;;  %461 = vmatpush.msra.mxu3 %v418_v41 }
  0x1f   :  { %164 = vmatpush.msra.mxu1 %v91_v43  ;;  %486 = vmatpush.msrb.mxu2 %v438_v44 }
  0x20   :  { %704 = vmatmul.msk.f32.gmra.mxu2 %vm109_vm0, %v1002_v51  ;;  %136 = vmatpush.msra.mxu0 %v74_v47 }
  0x21   :  { %165 = vmatpush.msra.mxu1 %v90_v52  ;;  %487 = vmatpush.msrb.mxu2 %v437_v53 }
  0x22   :  { %137 = vmatpush.msra.mxu0 %v73_v54  ;;  %462 = vmatpush.msra.mxu3 %v417_v55 }
  0x23   :  { %166 = vmatpush.msra.mxu1 %v89_v58  ;;  %488 = vmatpush.msrb.mxu2 %v436_v59 }
  0x24   :  { %138 = vmatmul.f32.vlgmr.msra.gmra.mxu0 %v17_v63  ;;  %167 = vmatmul.f32.vlgmr.msra.gmra.mxu1 %v18_v0 }
  0x25   :  { %463 = vmatpush.msra.mxu3 %v416_v1  ;;  %489 = vmatpush.msrb.mxu2 %v435_v2 }
  0x26   :  { %520 = vmatpush.msrb.mxu0 %v449_v4  ;;  %750 = vmatpush.msrb.mxu1 %v449_v4 }
  0x27   :  { %464 = vmatpush.msra.mxu3 %v415_v7  ;;  %490 = vmatpush.msrb.mxu2 %v434_v8 }
  0x28   :  { %705 = vmatmul.msk.f32.gmra.mxu2 %vm109_vm0, %v28_v11  ;;  %521 = vmatpush.msrb.mxu0 %v448_v10 }
  0x29   :  { %465 = vmatpush.msra.mxu3 %v414_v12  ;;  %491 = vmatpush.msrb.mxu2 %v433_v13 }
  0x2a   :  { %466 = vmatmul.f32.vlgmr.msra.gmra.mxu3 %v17_v63  ;;  %752 = vmatpush.msrb.mxu1 %v448_v10 }
  0x2b   :  { %492 = vmatpush.msrb.mxu2 %v432_v16  ;;  %751 = vmatpush.msrb.mxu3 %v449_v4 }
  0x2c   :  { %141 = vmatmul.f32.gmra.mxu0 %v20_v20  ;;  %170 = vmatmul.f32.gmra.mxu1 %v21_v21 }
  0x2d   :  { %493 = vmatpush.msrb.mxu2 %v431_v22  ;;  %522 = vmatpush.msrb.mxu0 %v447_v23 }
  0x2e   :  { %753 = vmatpush.msrb.mxu3 %v448_v10  ;;  %754 = vmatpush.msrb.mxu1 %v447_v23 }
  0x2f   :  { %494 = vmatpush.msrb.mxu2 %v430_v24  ;;  %523 = vmatpush.msrb.mxu0 %v446_v25 }
  0x30   :  { %495 = vmatmul.f32.vlgmr.msrb.gmra.mxu2 %v18_v0  ;;  %755 = vmatpush.msrb.mxu3 %v447_v23 }
  0x31   :  { %756 = vmatpush.msrb.mxu1 %v446_v25 }
  0x32   :  { %469 = vmatmul.f32.gmra.mxu3 %v20_v20 }
  0x33   :  { %757 = vmatpush.msrb.mxu3 %v446_v25 }
  0x34   :  { %144 = vmatmul.f32.gmra.mxu0 %v23_v26  ;;  %173 = vmatmul.f32.gmra.mxu1 %v24_v27 }
  0x38   :  { %498 = vmatmul.f32.gmra.mxu2 %v21_v21 }
  0x3a   :  { %472 = vmatmul.f32.gmra.mxu3 %v23_v26 }
  0x3c   :  { %147 = vmatmul.f32.gmra.mxu0 %v26_v28  ;;  %176 = vmatmul.f32.gmra.mxu1 %v27_v29 }
  0x40   :  { %501 = vmatmul.f32.gmra.mxu2 %v24_v27 }
  0x42   :  { %475 = vmatmul.f32.gmra.mxu3 %v26_v28 }
  0x44   :  { %742 = vmatmul.msk.f32.vlgmr.msrb.gmra.mxu0 %vm109_vm0, %v892_v48  ;;  %743 = vmatmul.msk.f32.vlgmr.msrb.gmra.mxu1 %vm109_vm0, %v950_v19 }
  0x48   :  { %504 = vmatmul.f32.gmra.mxu2 %v27_v29 }
  0x4a   :  { %745 = vmatmul.msk.f32.vlgmr.msrb.gmra.mxu3 %vm109_vm0, %v28_v11 }
  0x4c   :  { %744 = vmatmul.msk.f32.gmra.mxu1 %vm109_vm0, %v1002_v51 }
  0x91   :  { %v197_v30 = vpop.f32.mrf.mxu2 }
  0x9b   :  { %v200_v31 = vpop.f32.mrf.mxu2 }
  0xa1   :  { %v139_v32 = vpop.f32.mrf.mxu0  ;;  %v168_v33 = vpop.f32.mrf.mxu1 }
  0xa2   :  { %v169_v34 = vadd.f32 %v168_v33, %v139_v32 }
  0xa3   :  { %v203_v35 = vpop.f32.mrf.mxu2 }
  0xa4   :  { %v1080_v36 = vadd.f32 %v197_v30, %v169_v34  ;;  %v781_v30 = vmov 16.0  }
  0xa5   :  { %763 = vrcp.f32 %v781_v30 }
  0xa6   :  { %v210_v48 = vsel %vm209_vm1, %v1080_v36, 0.0  ;;  %v233_v19 = vmul.f32 %v1080_v36, %v1080_v36 }
  0xa7   :  { %211 = vadd.xlane.f32.xlu0 %v210_v48 }
  0xa8   :  { %v237_v37 = vsel %vm209_vm1, %v233_v19, 0.0  ;;  %v782_v19 = vmov 0  }
  0xa9   :  { %v171_v38 = vpop.f32.mrf.mxu1  ;;  %238 = vadd.xlane.f32.xlu2 %v237_v37  ;;  %v142_v39 = vpop.f32.mrf.mxu0  ;;  %761 = vset.pattern.permute.xlu0 %v782_v19 }
  0xaa   :  { %v172_v40 = vadd.f32 %v171_v38, %v142_v39  ;;  %760 = vset.pattern.permute.xlu2 %v782_v19  ;;  %762 = vset.pattern.permute.xlu1 %v782_v19 }
  0xab   :  { %v206_v41 = vpop.f32.mrf.mxu2 }
  0xac   :  { %v1087_v42 = vadd.f32 %v200_v31, %v172_v40  ;;  %v764_v31 = vpop.eup %763 }
  0xad   :  { %v467_v43 = vpop.f32.mrf.mxu3  ;;  %v223_v32 = vmul.f32 16.0, %v764_v31  ;;  %vm227_vm2 = vweird.f32 %v764_v31 }
  0xae   :  { %v213_v44 = vsel %vm209_vm1, %v1087_v42, 0.0  ;;  %v234_v45 = vmul.f32 %v1087_v42, %v1087_v42 }
  0xaf   :  { %214 = vadd.xlane.f32.xlu0 %v213_v44  ;;  %v224_v33 = vsub.f32 1.0, %v223_v32 }
  0xb0   :  { %v240_v46 = vsel %vm209_vm1, %v234_v45, 0.0 }
  0xb1   :  { %v174_v47 = vpop.f32.mrf.mxu1  ;;  %241 = vadd.xlane.f32.xlu2 %v240_v46  ;;  %v145_v49 = vpop.f32.mrf.mxu0  ;;  %v225_v34 = vmul.f32 %v764_v31, %v224_v33 }
  0xb2   :  { %v175_v50 = vadd.f32 %v174_v47, %v145_v49 }
  0xb3   :  { %v496_v51 = vpop.f32.mrf.mxu2 }
  0xb4   :  { %v1094_v52 = vadd.f32 %v203_v35, %v175_v50  ;;  %v497_v0 = vadd.f32 %v496_v51, %v467_v43  ;;  %v226_v35 = vadd.f32 %v764_v31, %v225_v34 }
  0xb5   :  { %v470_v53 = vpop.f32.mrf.mxu3 }
  0xb6   :  { %v216_v54 = vsel %vm209_vm1, %v1094_v52, 0.0  ;;  %v235_v55 = vmul.f32 %v1094_v52, %v1094_v52  ;;  %v1136_v48 = vsel %vm227_vm2, %v764_v31, %v226_v35  ;;  %v1173_v31 = vld [vmem:[%s1283_s2 + $0x8] sm:$0xff] }
  0xb7   :  { %217 = vadd.xlane.f32.xlu1 %v216_v54 }
  0xb8   :  { %v243_v56 = vsel %vm209_vm1, %v235_v55, 0.0 }
  0xb9   :  { %v177_v57 = vpop.f32.mrf.mxu1  ;;  %244 = vadd.xlane.f32.xlu0 %v243_v56  ;;  %v148_v58 = vpop.f32.mrf.mxu0 }
  0xba   :  { %v178_v59 = vadd.f32 %v177_v57, %v148_v58 }
  0xbb   :  { %v499_v60 = vpop.f32.mrf.mxu2 }
  0xbc   :  { %v1101_v61 = vadd.f32 %v206_v41, %v178_v59  ;;  %v500_v3 = vadd.f32 %v499_v60, %v470_v53 }
  0xbd   :  { %v473_v62 = vpop.f32.mrf.mxu3 }
  0xbe   :  { %v219_v63 = vsel %vm209_vm1, %v1101_v61, 0.0  ;;  %v236_v5 = vmul.f32 %v1101_v61, %v1101_v61 }
  0xbf   :  { %220 = vadd.xlane.f32.xlu1 %v219_v63 }
  0xc0   :  { %v246_v10 = vsel %vm209_vm1, %v236_v5, 0.0 }
  0xc1   :  { %v525_v1 = vpop.f32.mrf.mxu0  ;;  %v528_v2 = vpop.f32.mrf.mxu1 }
  0xc2   :  { %v1105_v4 = vadd.f32 %v525_v1, %v497_v0  ;;  %v1109_v7 = vadd.f32 %v528_v2, %v500_v3 }
  0xc3   :  { %v502_v6 = vpop.f32.mrf.mxu2 }
  0xc4   :  { %v537_v8 = vsel %vm209_vm1, %v1105_v4, 0.0  ;;  %v503_v11 = vadd.f32 %v502_v6, %v473_v62  ;;  %v554_v12 = vmul.f32 %v1109_v7, %v1109_v7  ;;  %v540_v21 = vsel %vm209_vm1, %v1109_v7, 0.0 }
  0xc5   :  { %v476_v9 = vpop.f32.mrf.mxu3  ;;  %538 = vadd.xlane.f32.xlu2 %v537_v8  ;;  %v553_v23 = vmul.f32 %v1105_v4, %v1105_v4 }
  0xc6   :  { %v560_v18 = vsel %vm209_vm1, %v554_v12, 0.0 }
  0xc7   :  { %247 = vadd.xlane.f32.xlu1 %v246_v10  ;;  %v557_v25 = vsel %vm209_vm1, %v553_v23, 0.0 }
  0xc9   :  { %v531_v13 = vpop.f32.mrf.mxu1 }
  0xca   :  { %v1116_v14 = vadd.f32 %v531_v13, %v503_v11  ;;  %v1155_v11 = vld [vmem:[%s1283_s2] sm:$0xff] }
  0xcb   :  { %v505_v15 = vpop.f32.mrf.mxu2 }
  0xcc   :  { %v506_v16 = vadd.f32 %v505_v15, %v476_v9  ;;  %v543_v17 = vsel %vm209_vm1, %v1116_v14, 0.0  ;;  %v555_v27 = vmul.f32 %v1116_v14, %v1116_v14 }
  0xcd   :  { %v534_v20 = vpop.f32.mrf.mxu3  ;;  %544 = vadd.xlane.f32.xlu0 %v543_v17  ;;  %561 = vadd.xlane.f32.xlu2 %v560_v18 }
  0xce   :  { %v1123_v22 = vadd.f32 %v534_v20, %v506_v16  ;;  %v563_v29 = vsel %vm209_vm1, %v555_v27, 0.0 }
  0xcf   :  { %541 = vadd.xlane.f32.xlu1 %v540_v21  ;;  %v1164_v21 = vld [vmem:[%s1284_s3] sm:$0xff] }
  0xd0   :  { %v546_v24 = vsel %vm209_vm1, %v1123_v22, 0.0  ;;  %v556_v26 = vmul.f32 %v1123_v22, %v1123_v22 }
  0xd2   :  { %v566_v28 = vsel %vm209_vm1, %v556_v26, 0.0 }
  0xd5   :  { %547 = vadd.xlane.f32.xlu2 %v546_v24 }
  0xd7   :  { %558 = vadd.xlane.f32.xlu1 %v557_v25 }
  0xdd   :  { %567 = vadd.xlane.f32.xlu2 %v566_v28 }
  0xdf   :  { %564 = vadd.xlane.f32.xlu1 %v563_v29 }
 0x11a   :  { %v212_v37 = vpop.xlane.xlu0 %211 }
 0x11b   :  { %v229_v38 = vmul.f32 %v1136_v48, %v212_v37 }
 0x11c   :  { %v239_v39 = vpop.xlane.xlu2 %238 }
 0x11d   :  { %v253_v40 = vmul.f32 %v229_v38, %v229_v38  ;;  %v249_v41 = vmul.f32 %v239_v39, %v1136_v48 }
 0x11f   :  { %v257_v43 = vsub.f32 %v249_v41, %v253_v40  ;;  %v1179_v41 = vld [vmem:[%s1284_s3 + $0x8] sm:$0xff] }
 0x121   :  { %v261_v44 = vmax.f32 %v257_v43, 0.0 }
 0x122   :  { %v215_v45 = vpop.xlane.xlu0 %214 }
 0x123   :  { %v265_v46 = vadd.f32 1e-05, %v261_v44  ;;  %v1141_v47 = vmul.f32 %v1136_v48, %v215_v45 }
 0x124   :  { %v242_v49 = vpop.xlane.xlu2 %241 }
 0x125   :  { %765 = vrsqrt.f32 %v265_v46  ;;  %v254_v50 = vmul.f32 %v1141_v47, %v1141_v47  ;;  %v250_v51 = vmul.f32 %v242_v49, %v1136_v48  ;;  %vm275_vm4 = vweird.f32 %v265_v46 }
 0x127   :  { %v258_v53 = vsub.f32 %v250_v51, %v254_v50  ;;  %v1189_v51 = vld [vmem:[%s1283_s2 + $0x10] sm:$0xff] }
 0x129   :  { %v262_v54 = vmax.f32 %v258_v53, 0.0 }
 0x12a   :  { %v218_v55 = vpop.xlane.xlu1 %217 }
 0x12b   :  { %v766_v56 = vpop.eup %765  ;;  %v266_v57 = vadd.f32 1e-05, %v262_v54  ;;  %v1147_v58 = vmul.f32 %v1136_v48, %v218_v55 }
 0x12c   :  { %v270_v59 = vmul.f32 %v766_v56, %v265_v46  ;;  %v245_v60 = vpop.xlane.xlu0 %244  ;;  %vm276_vm3 = vweird.f32 %v766_v56 }
 0x12d   :  { %767 = vrsqrt.f32 %v266_v57  ;;  %v255_v62 = vmul.f32 %v1147_v58, %v1147_v58  ;;  %v251_v63 = vmul.f32 %v245_v60, %v1136_v48  ;;  %vm277_vm5 = vmor %vm275_vm4, %vm276_vm3  ;;  %vm285_vm7 = vweird.f32 %v266_v57  ;;  %v1201_v60 = vld [vmem:[%s1284_s3 + $0x10] sm:$0xff] }
 0x12e   :  { %v271_v0 = vmul.f32 %v766_v56, %v270_v59 }
 0x12f   :  { %v259_v1 = vsub.f32 %v251_v63, %v255_v62 }
 0x130   :  { %v272_v2 = vmul.f32 0.5, %v271_v0 }
 0x131   :  { %v263_v3 = vmax.f32 %v259_v1, 0.0 }
 0x132   :  { %v273_v5 = vsub.f32 1.5, %v272_v2  ;;  %v221_v6 = vpop.xlane.xlu1 %220 }
 0x133   :  { %v768_v8 = vpop.eup %767  ;;  %v267_v9 = vadd.f32 1e-05, %v263_v3  ;;  %v1158_v16 = vmul.f32 %v1136_v48, %v221_v6 }
 0x134   :  { %v280_v10 = vmul.f32 %v768_v8, %v266_v57  ;;  %v274_v12 = vmul.f32 %v766_v56, %v273_v5  ;;  %vm286_vm6 = vweird.f32 %v768_v8 }
 0x135   :  { %769 = vrsqrt.f32 %v267_v9  ;;  %v256_v27 = vmul.f32 %v1158_v16, %v1158_v16  ;;  %vm287_vm8 = vmor %vm285_vm7, %vm286_vm6  ;;  %vm295_vm10 = vweird.f32 %v267_v9 }
 0x136   :  { %v281_v13 = vmul.f32 %v768_v8, %v280_v10  ;;  %v278_v15 = vsel %vm277_vm5, %v766_v56, %v274_v12 }
 0x137   :  { %v309_v17 = vmul.f32 %v278_v15, %v1155_v11 }
 0x138   :  { %v282_v18 = vmul.f32 0.5, %v281_v13  ;;  %v539_v20 = vpop.xlane.xlu2 %538 }
 0x139   :  { %323 = vperm.xlu2 %760, %v309_v17   ;;  %v313_v23 = vmul.f32 %v309_v17, %v229_v38  ;;  %v1195_v55 = vmul.f32 %v539_v20, %v1136_v48 }
 0x13a   :  { %v283_v24 = vsub.f32 1.5, %v282_v18  ;;  %v248_v25 = vpop.xlane.xlu1 %247 }
 0x13b   :  { %v770_v26 = vpop.eup %769  ;;  %v252_v28 = vmul.f32 %v248_v25, %v1136_v48  ;;  %v317_v29 = vsub.f32 %v1164_v21, %v313_v23  ;;  %v573_v3 = vmul.f32 %v1195_v55, %v1195_v55 }
 0x13c   :  { %v290_v30 = vmul.f32 %v770_v26, %v267_v9  ;;  %v284_v32 = vmul.f32 %v768_v8, %v283_v24  ;;  %vm296_vm9 = vweird.f32 %v770_v26 }
 0x13d   :  { %v260_v33 = vsub.f32 %v252_v28, %v256_v27  ;;  %347 = vperm.xlu0 %761, %v317_v29   ;;  %vm297_vm11 = vmor %vm295_vm10, %vm296_vm9  ;;  %v1220_v27 = vld [vmem:[%s1283_s2 + $0x18] sm:$0xff] }
 0x13e   :  { %v291_v34 = vmul.f32 %v770_v26, %v290_v30  ;;  %v288_v35 = vsel %vm287_vm8, %v768_v8, %v284_v32 }
 0x13f   :  { %v264_v19 = vmax.f32 %v260_v33, 0.0  ;;  %v310_v37 = vmul.f32 %v288_v35, %v1173_v31 }
 0x140   :  { %v292_v38 = vmul.f32 0.5, %v291_v34  ;;  %v562_v39 = vpop.xlane.xlu2 %561  ;;  %v545_v10 = vpop.xlane.xlu0 %544 }
 0x141   :  { %v268_v40 = vadd.f32 1e-05, %v264_v19  ;;  %v314_v43 = vmul.f32 %v310_v37, %v1141_v47  ;;  %v570_v53 = vmul.f32 %v562_v39, %v1136_v48 }
 0x142   :  { %v293_v44 = vsub.f32 1.5, %v292_v38  ;;  %v542_v45 = vpop.xlane.xlu1 %541 }
 0x143   :  { %771 = vrsqrt.f32 %v268_v40  ;;  %v1183_v46 = vmul.f32 %v542_v45, %v1136_v48  ;;  %v318_v50 = vsub.f32 %v1179_v41, %v314_v43  ;;  %vm305_vm13 = vweird.f32 %v268_v40 }
 0x144   :  { %v294_v49 = vmul.f32 %v770_v26, %v293_v44 }
 0x145   :  { %v574_v47 = vmul.f32 %v1183_v46, %v1183_v46  ;;  %328 = vperm.xlu0 %761, %v310_v37   ;;  %352 = vperm.xlu1 %762, %v318_v50  }
 0x146   :  { %v298_v54 = vsel %vm297_vm11, %v770_v26, %v294_v49 }
 0x147   :  { %v578_v56 = vsub.f32 %v570_v53, %v574_v47  ;;  %v311_v57 = vmul.f32 %v298_v54, %v1189_v51 }
 0x148   :  { %v548_v59 = vpop.xlane.xlu2 %547 }
 0x149   :  { %v772_v62 = vpop.eup %771  ;;  %v582_v63 = vmax.f32 %v578_v56, 0.0  ;;  %v315_v0 = vmul.f32 %v311_v57, %v1147_v58  ;;  %v1209_v12 = vmul.f32 %v548_v59, %v1136_v48  ;;  %v1212_v58 = vmul.f32 %v545_v10, %v1136_v48 }
 0x14a   :  { %v300_v1 = vmul.f32 %v772_v62, %v268_v40  ;;  %v559_v2 = vpop.xlane.xlu1 %558  ;;  %vm306_vm12 = vweird.f32 %v772_v62  ;;  %v36_v40 = vld [vmem:[%s1284_s3 + $0x18] sm:$0xff] }
 0x14b   :  { %v586_v5 = vadd.f32 1e-05, %v582_v63  ;;  %v569_v6 = vmul.f32 %v559_v2, %v1136_v48  ;;  %v319_v8 = vsub.f32 %v1201_v60, %v315_v0  ;;  %v576_v23 = vmul.f32 %v1209_v12, %v1209_v12  ;;  %vm307_vm14 = vmor %vm305_vm13, %vm306_vm12 }
 0x14c   :  { %v301_v9 = vmul.f32 %v772_v62, %v300_v1  ;;  %v575_v30 = vmul.f32 %v1212_v58, %v1212_v58 }
 0x14d   :  { %773 = vrsqrt.f32 %v586_v5  ;;  %v577_v13 = vsub.f32 %v569_v6, %v573_v3  ;;  %357 = vperm.xlu2 %760, %v319_v8   ;;  %333 = vperm.xlu1 %762, %v311_v57   ;;  %vm605_vm0 = vweird.f32 %v586_v5 }
 0x14e   :  { %v302_v15 = vmul.f32 0.5, %v301_v9 }
 0x14f   :  { %v581_v17 = vmax.f32 %v577_v13, 0.0 }
 0x150   :  { %v303_v18 = vsub.f32 1.5, %v302_v15  ;;  %v568_v20 = vpop.xlane.xlu2 %567 }
 0x151   :  { %v585_v24 = vadd.f32 1e-05, %v581_v17  ;;  %v572_v25 = vmul.f32 %v568_v20, %v1136_v48 }
 0x152   :  { %v565_v26 = vpop.xlane.xlu1 %564  ;;  %v304_v28 = vmul.f32 %v772_v62, %v303_v18 }
 0x153   :  { %v774_v29 = vpop.eup %773  ;;  %775 = vrsqrt.f32 %v585_v24  ;;  %v580_v32 = vsub.f32 %v572_v25, %v576_v23  ;;  %v571_v33 = vmul.f32 %v565_v26, %v1136_v48  ;;  %vm595_vm4 = vweird.f32 %v585_v24 }
 0x154   :  { %v600_v34 = vmul.f32 %v774_v29, %v586_v5  ;;  %v308_v35 = vsel %vm307_vm14, %v772_v62, %v304_v28  ;;  %vm606_vm15 = vweird.f32 %v774_v29 }
 0x155   :  { %v584_v19 = vmax.f32 %v580_v32, 0.0  ;;  %v579_v37 = vsub.f32 %v571_v33, %v575_v30  ;;  %v312_v38 = vmul.f32 %v308_v35, %v1220_v27  ;;  %vm607_vm2 = vmor %vm605_vm0, %vm606_vm15 }
 0x156   :  { %v601_v39 = vmul.f32 %v774_v29, %v600_v34 }
 0x157   :  { %v588_v43 = vadd.f32 1e-05, %v584_v19  ;;  %v583_v44 = vmax.f32 %v579_v37, 0.0  ;;  %338 = vperm.xlu2 %760, %v312_v38   ;;  %v316_v45 = vmul.f32 %v312_v38, %v1158_v16 }
 0x158   :  { %v602_v49 = vmul.f32 0.5, %v601_v39 }
 0x159   :  { %v776_v50 = vpop.eup %775  ;;  %777 = vrsqrt.f32 %v588_v43  ;;  %v587_v48 = vadd.f32 1e-05, %v583_v44  ;;  %v320_v53 = vsub.f32 %v36_v40, %v316_v45  ;;  %vm625_vm7 = vweird.f32 %v588_v43 }
 0x15a   :  { %v603_v47 = vsub.f32 1.5, %v602_v49  ;;  %v590_v54 = vmul.f32 %v776_v50, %v585_v24  ;;  %vm596_vm3 = vweird.f32 %v776_v50 }
 0x15b   :  { %779 = vrsqrt.f32 %v587_v48  ;;  %362 = vperm.xlu0 %761, %v320_v53   ;;  %vm597_vm5 = vmor %vm595_vm4, %vm596_vm3  ;;  %vm615_vm10 = vweird.f32 %v587_v48 }
 0x15c   :  { %v604_v56 = vmul.f32 %v774_v29, %v603_v47  ;;  %v591_v57 = vmul.f32 %v776_v50, %v590_v54 }
 0x15e   :  { %v608_v59 = vsel %vm607_vm2, %v774_v29, %v604_v56  ;;  %v592_v62 = vmul.f32 0.5, %v591_v57 }
 0x15f   :  { %v778_v63 = vpop.eup %777  ;;  %v630_v2 = vmul.f32 %v608_v59, %v1173_v31 }
 0x160   :  { %v593_v0 = vsub.f32 1.5, %v592_v62  ;;  %v620_v1 = vmul.f32 %v778_v63, %v588_v43  ;;  %vm626_vm6 = vweird.f32 %v778_v63 }
 0x161   :  { %v780_v16 = vpop.eup %779  ;;  %vm627_vm9 = vmor %vm625_vm7, %vm626_vm6 }
 0x162   :  { %v621_v3 = vmul.f32 %v778_v63, %v620_v1  ;;  %v610_v6 = vmul.f32 %v780_v16, %v587_v48  ;;  %v594_v8 = vmul.f32 %v776_v50, %v593_v0  ;;  %vm616_vm8 = vweird.f32 %v780_v16 }
 0x163   :  { %648 = vperm.xlu0 %761, %v630_v2   ;;  %vm617_vm11 = vmor %vm615_vm10, %vm616_vm8 }
 0x164   :  { %v622_v9 = vmul.f32 0.5, %v621_v3  ;;  %v611_v10 = vmul.f32 %v780_v16, %v610_v6  ;;  %v598_v5 = vsel %vm597_vm5, %v776_v50, %v594_v8 }
 0x165   :  { %v629_v13 = vmul.f32 %v598_v5, %v1155_v11 }
 0x166   :  { %v623_v15 = vsub.f32 1.5, %v622_v9  ;;  %v612_v17 = vmul.f32 0.5, %v611_v10 }
 0x167   :  { %643 = vperm.xlu1 %762, %v629_v13   ;;  %v633_v18 = vmul.f32 %v629_v13, %v1195_v55  ;;  %v634_v55 = vmul.f32 %v630_v2, %v1183_v46 }
 0x168   :  { %v613_v20 = vsub.f32 1.5, %v612_v17  ;;  %v624_v31 = vmul.f32 %v778_v63, %v623_v15 }
 0x169   :  { %v637_v23 = vsub.f32 %v1164_v21, %v633_v18  ;;  %v638_v32 = vsub.f32 %v1179_v41, %v634_v55 }
 0x16a   :  { %v628_v24 = vsel %vm627_vm9, %v778_v63, %v624_v31  ;;  %v614_v25 = vmul.f32 %v780_v16, %v613_v20 }
 0x16b   :  { %667 = vperm.xlu0 %761, %v637_v23   ;;  %v632_v26 = vmul.f32 %v628_v24, %v1220_v27 }
 0x16c   :  { %v618_v11 = vsel %vm617_vm11, %v780_v16, %v614_v25 }
 0x16d   :  { %v631_v28 = vmul.f32 %v618_v11, %v1189_v51  ;;  %v636_v29 = vmul.f32 %v632_v26, %v1209_v12 }
 0x16f   :  { %658 = vperm.xlu1 %762, %v632_v26   ;;  %653 = vperm.xlu2 %760, %v631_v28   ;;  %v640_v30 = vsub.f32 %v36_v40, %v636_v29  ;;  %v635_v21 = vmul.f32 %v631_v28, %v1212_v58 }
 0x171   :  { %v639_v33 = vsub.f32 %v1201_v60, %v635_v21 }
 0x173   :  { %682 = vperm.xlu0 %761, %v640_v30  }
 0x177   :  { %672 = vperm.xlu2 %760, %v638_v32   ;;  %677 = vperm.xlu1 %762, %v639_v33  }
 0x193   :  { %v324_v27 = vpop.permute.xlu2 %323 }
 0x194   :  { %v341_v34 = vmul.f32 %v324_v27, %v1080_v36 }
 0x1a7   :  { %v358_v60 = vpop.permute.xlu2 %357 }
 0x1af   :  { %v348_v51 = vpop.permute.xlu0 %347 }
 0x1b0   :  { %v365_v35 = vadd.f32 %v348_v51, %v341_v34 }
 0x1b1   :  { %v339_v40 = vpop.permute.xlu2 %338 }
 0x1b2   :  { %v369_v12 = vmax.f32 %v365_v35, 0.0 }
 0x1b4   :  { %373 = vst.msk [vmem:[%s1285_s4] sm:$0xff] %vm209_vm1, %v369_v12 }
 0x1b7   :  { %v329_v46 = vpop.permute.xlu0 %328  ;;  %v353_v19 = vpop.permute.xlu1 %352 }
 0x1b8   :  { %v342_v58 = vmul.f32 %v329_v46, %v1087_v42  ;;  %v344_v42 = vmul.f32 %v339_v40, %v1101_v61 }
 0x1ba   :  { %v366_v41 = vadd.f32 %v353_v19, %v342_v58 }
 0x1bc   :  { %v370_v37 = vmax.f32 %v366_v41, 0.0 }
 0x1be   :  { %374 = vst.msk [vmem:[%s1285_s4 + $0x8] sm:$0xff] %vm209_vm1, %v370_v37 }
 0x1bf   :  { %v334_v36 = vpop.permute.xlu1 %333 }
 0x1c0   :  { %v343_v38 = vmul.f32 %v334_v36, %v1094_v52 }
 0x1c2   :  { %v367_v39 = vadd.f32 %v358_v60, %v343_v38 }
 0x1c4   :  { %v371_v43 = vmax.f32 %v367_v39, 0.0 }
 0x1c6   :  { %375 = vst.msk [vmem:[%s1285_s4 + $0x10] sm:$0xff] %vm209_vm1, %v371_v43 }
 0x1c9   :  { %v654_v44 = vpop.permute.xlu2 %653 }
 0x1ca   :  { %v663_v16 = vmul.f32 %v654_v44, %v1116_v14 }
 0x1cd   :  { %v363_v45 = vpop.permute.xlu0 %362 }
 0x1ce   :  { %v368_v49 = vadd.f32 %v363_v45, %v344_v42 }
 0x1d0   :  { %v372_v50 = vmax.f32 %v368_v49, 0.0 }
 0x1d1   :  { %v673_v53 = vpop.permute.xlu2 %672 }
 0x1d2   :  { %376 = vst.msk [vmem:[%s1285_s4 + $0x18] sm:$0xff] %vm209_vm1, %v372_v50 }
 0x1d5   :  { %v649_v52 = vpop.permute.xlu0 %648 }
 0x1d6   :  { %v662_v48 = vmul.f32 %v649_v52, %v1109_v7 }
 0x1d8   :  { %v686_v47 = vadd.f32 %v673_v53, %v662_v48 }
 0x1d9   :  { %v644_v54 = vpop.permute.xlu1 %643 }
 0x1da   :  { %v690_v56 = vmax.f32 %v686_v47, 0.0  ;;  %v661_v61 = vmul.f32 %v644_v54, %v1105_v4 }
 0x1dc   :  { %747 = vst.msk [vmem:[%s1285_s4 + $0x28] sm:$0xff] %vm209_vm1, %v690_v56 }
 0x1dd   :  { %v668_v57 = vpop.permute.xlu0 %667 }
 0x1de   :  { %v685_v59 = vadd.f32 %v668_v57, %v661_v61 }
 0x1e0   :  { %v689_v62 = vmax.f32 %v685_v59, 0.0 }
 0x1e1   :  { %v659_v63 = vpop.permute.xlu1 %658 }
 0x1e2   :  { %746 = vst.msk [vmem:[%s1285_s4 + $0x20] sm:$0xff] %vm209_vm1, %v689_v62  ;;  %v664_v7 = vmul.f32 %v659_v63, %v1123_v22 }
 0x1e5   :  { %v683_v0 = vpop.permute.xlu0 %682 }
 0x1e6   :  { %v688_v1 = vadd.f32 %v683_v0, %v664_v7 }
 0x1e8   :  { %v692_v2 = vmax.f32 %v688_v1, 0.0 }
 0x1e9   :  { %v678_v3 = vpop.permute.xlu1 %677 }
 0x1ea   :  { %749 = vst.msk [vmem:[%s1285_s4 + $0x38] sm:$0xff] %vm209_vm1, %v692_v2  ;;  %v687_v4 = vadd.f32 %v678_v3, %v663_v16 }
 0x1ec   :  { %v691_v6 = vmax.f32 %v687_v4, 0.0 }
 0x1ee   :  { %748 = vst.msk [vmem:[%s1285_s4 + $0x30] sm:$0xff] %vm209_vm1, %v691_v6 }

// kernel: _lambda_.23
= control target key start
LH: loop header
LB: loop body
LE: loop exit
PB: predicated region body
PF: predicated region fallthrough
CT: control target
= control target key end

     0   :  { %vm76_vm0 = vcmask 261120   ;;  %vm176_vm1 = vcmask 130048   ;;  %s1270_s0 = inlined_call_operand.vmem [shape: f32[2,288,16], index: 0, kind: input, shape index: {}]   ;;  %s1271_s1 = inlined_call_operand.vmem [shape: f32[32,288], index: 1, kind: input, shape index: {}]   ;;  %s1272_s2 = inlined_call_operand.vmem [shape: f32[32,1], index: 2, kind: input, shape index: {}]   ;;  %s1273_s3 = inlined_call_operand.vmem [shape: f32[32,1], index: 3, kind: input, shape index: {}]   ;;  %s1274_s4 = inlined_call_operand.vmem [shape: f32[2,32,16], index: 4, kind: input, shape index: {}]   ;;  %s1275_s5 = inlined_call_operand.vmem [shape: f32[2,32,16], index: 5, kind: output, shape index: {}]  }
   0x1   :  { %v55_v0 = vld [vmem:[%s1270_s0 + $0x78] sm:$0xff]  ;;  %v54_v2 = vld [vmem:[%s1270_s0 + $0x70] sm:$0xff]  ;;  %v53_v4 = vld [vmem:[%s1270_s0 + $0x68] sm:$0xff] }
   0x2   :  { %v71_v1 = vld [vmem:[%s1270_s0 + $0xf8] sm:$0xff]  ;;  %89 = vmatpush.msra.mxu0 %v55_v0  ;;  %v70_v3 = vld [vmem:[%s1270_s0 + $0xf0] sm:$0xff]  ;;  %v69_v5 = vld [vmem:[%s1270_s0 + $0xe8] sm:$0xff] }
   0x3   :  { %118 = vmatpush.msra.mxu1 %v71_v1  ;;  %v75_v6 = vld [vmem:[%s1270_s0 + $0x118] sm:$0xff]  ;;  %v74_v7 = vld [vmem:[%s1270_s0 + $0x110] sm:$0xff]  ;;  %v52_v9 = vld [vmem:[%s1270_s0 + $0x60] sm:$0xff] }
   0x4   :  { %90 = vmatpush.msra.mxu0 %v54_v2  ;;  %v677_v8 = vld [vmem:[%s1270_s0 + $0x198] sm:$0xff]  ;;  %159 = vmatpush.msra.mxu2 %v75_v6  ;;  %v68_v10 = vld [vmem:[%s1270_s0 + $0xe0] sm:$0xff]  ;;  %v676_v11 = vld [vmem:[%s1270_s0 + $0x190] sm:$0xff] }
   0x5   :  { %119 = vmatpush.msra.mxu1 %v70_v3  ;;  %393 = vmatpush.msra.mxu3 %v677_v8  ;;  %v73_v12 = vld [vmem:[%s1270_s0 + $0x108] sm:$0xff]  ;;  %v51_v13 = vld [vmem:[%s1270_s0 + $0x58] sm:$0xff]  ;;  %v72_v16 = vld [vmem:[%s1270_s0 + $0x100] sm:$0xff] }
   0x6   :  { %91 = vmatpush.msra.mxu0 %v53_v4  ;;  %160 = vmatpush.msra.mxu2 %v74_v7  ;;  %v67_v14 = vld [vmem:[%s1270_s0 + $0xd8] sm:$0xff]  ;;  %v675_v15 = vld [vmem:[%s1270_s0 + $0x188] sm:$0xff]  ;;  %v674_v17 = vld [vmem:[%s1270_s0 + $0x180] sm:$0xff] }
   0x7   :  { %120 = vmatpush.msra.mxu1 %v69_v5  ;;  %394 = vmatpush.msra.mxu3 %v676_v11  ;;  %v50_v18 = vld [vmem:[%s1270_s0 + $0x50] sm:$0xff]  ;;  %v673_v21 = vld [vmem:[%s1270_s0 + $0x178] sm:$0xff]  ;;  %v49_v22 = vld [vmem:[%s1270_s0 + $0x48] sm:$0xff] }
   0x8   :  { %92 = vmatpush.msra.mxu0 %v52_v9  ;;  %161 = vmatpush.msra.mxu2 %v73_v12  ;;  %v66_v19 = vld [vmem:[%s1270_s0 + $0xd0] sm:$0xff]  ;;  %v65_v23 = vld [vmem:[%s1270_s0 + $0xc8] sm:$0xff]  ;;  %v693_v24 = vld [vmem:[%s1270_s0 + $0x218] sm:$0xff] }
   0x9   :  { %121 = vmatpush.msra.mxu1 %v68_v10  ;;  %395 = vmatpush.msra.mxu3 %v675_v15  ;;  %v836_v20 = vld [vmem:[%s1271_s1 + $0x10] sm:$0xff]  ;;  %v48_v26 = vld [vmem:[%s1270_s0 + $0x40] sm:$0xff]  ;;  %v671_v29 = vld [vmem:[%s1270_s0 + $0x168] sm:$0xff] }
   0xa   :  { %93 = vmatpush.msra.mxu0 %v51_v13  ;;  %162 = vmatpush.msra.mxu2 %v72_v16  ;;  %v672_v25 = vld [vmem:[%s1270_s0 + $0x170] sm:$0xff]  ;;  %v64_v27 = vld [vmem:[%s1270_s0 + $0xc0] sm:$0xff]  ;;  %v47_v30 = vld [vmem:[%s1270_s0 + $0x38] sm:$0xff] }
   0xb   :  { %122 = vmatpush.msra.mxu1 %v67_v14  ;;  %396 = vmatpush.msra.mxu3 %v674_v17  ;;  %v692_v28 = vld [vmem:[%s1270_s0 + $0x210] sm:$0xff]  ;;  %v63_v31 = vld [vmem:[%s1270_s0 + $0xb8] sm:$0xff]  ;;  %v691_v32 = vld [vmem:[%s1270_s0 + $0x208] sm:$0xff] }
   0xc   :  { %94 = vmatpush.msra.mxu0 %v50_v18  ;;  %658 = vmatmul.msk.f32.vlgmr.msra.gmra.mxu2 %vm76_vm0, %v836_v20  ;;  %v670_v33 = vld [vmem:[%s1270_s0 + $0x160] sm:$0xff]  ;;  %v46_v34 = vld [vmem:[%s1270_s0 + $0x30] sm:$0xff]  ;;  %v669_v37 = vld [vmem:[%s1270_s0 + $0x158] sm:$0xff] }
   0xd   :  { %123 = vmatpush.msra.mxu1 %v66_v19  ;;  %397 = vmatpush.msra.mxu3 %v673_v21  ;;  %v62_v35 = vld [vmem:[%s1270_s0 + $0xb0] sm:$0xff]  ;;  %v690_v36 = vld [vmem:[%s1270_s0 + $0x200] sm:$0xff]  ;;  %v894_v38 = vld [vmem:[%s1271_s1 + $0x28] sm:$0xff] }
   0xe   :  { %95 = vmatpush.msra.mxu0 %v49_v22  ;;  %422 = vmatpush.msrb.mxu2 %v693_v24  ;;  %v45_v39 = vld [vmem:[%s1270_s0 + $0x28] sm:$0xff]  ;;  %v689_v41 = vld [vmem:[%s1270_s0 + $0x1f8] sm:$0xff]  ;;  %v44_v42 = vld [vmem:[%s1270_s0 + $0x20] sm:$0xff] }
   0xf   :  { %124 = vmatpush.msra.mxu1 %v65_v23  ;;  %398 = vmatpush.msra.mxu3 %v672_v25  ;;  %v61_v40 = vld [vmem:[%s1270_s0 + $0xa8] sm:$0xff]  ;;  %v668_v43 = vld [vmem:[%s1270_s0 + $0x150] sm:$0xff]  ;;  %v60_v44 = vld [vmem:[%s1270_s0 + $0xa0] sm:$0xff] }
  0x10   :  { %96 = vmatpush.msra.mxu0 %v48_v26  ;;  %423 = vmatpush.msrb.mxu2 %v692_v28  ;;  %v688_v45 = vld [vmem:[%s1270_s0 + $0x1f0] sm:$0xff]  ;;  %v43_v46 = vld [vmem:[%s1270_s0 + $0x18] sm:$0xff]  ;;  %v667_v47 = vld [vmem:[%s1270_s0 + $0x148] sm:$0xff] }
  0x11   :  { %125 = vmatpush.msra.mxu1 %v64_v27  ;;  %399 = vmatpush.msra.mxu3 %v671_v29  ;;  %v59_v48 = vld [vmem:[%s1270_s0 + $0x98] sm:$0xff]  ;;  %v687_v49 = vld [vmem:[%s1270_s0 + $0x1e8] sm:$0xff]  ;;  %v42_v50 = vld [vmem:[%s1270_s0 + $0x10] sm:$0xff] }
  0x12   :  { %97 = vmatpush.msra.mxu0 %v47_v30  ;;  %424 = vmatpush.msrb.mxu2 %v691_v32  ;;  %v666_v51 = vld [vmem:[%s1270_s0 + $0x140] sm:$0xff]  ;;  %v58_v52 = vld [vmem:[%s1270_s0 + $0x90] sm:$0xff]  ;;  %v41_v55 = vld [vmem:[%s1270_s0 + $0x8] sm:$0xff] }
  0x13   :  { %126 = vmatpush.msra.mxu1 %v63_v31  ;;  %400 = vmatpush.msra.mxu3 %v670_v33  ;;  %v686_v53 = vld [vmem:[%s1270_s0 + $0x1e0] sm:$0xff]  ;;  %v57_v56 = vld [vmem:[%s1270_s0 + $0x88] sm:$0xff]  ;;  %v685_v57 = vld [vmem:[%s1270_s0 + $0x1d8] sm:$0xff] }
  0x14   :  { %98 = vmatpush.msra.mxu0 %v46_v34  ;;  %425 = vmatpush.msrb.mxu2 %v690_v36  ;;  %v946_v54 = vld [vmem:[%s1271_s1 + $0x40] sm:$0xff]  ;;  %v665_v59 = vld [vmem:[%s1270_s0 + $0x138] sm:$0xff]  ;;  %v684_v61 = vld [vmem:[%s1270_s0 + $0x1d0] sm:$0xff] }
  0x15   :  { %127 = vmatpush.msra.mxu1 %v62_v35  ;;  %401 = vmatpush.msra.mxu3 %v669_v37  ;;  %v40_v58 = vld [vmem:[%s1270_s0] sm:$0xff]  ;;  %v21_v63 = vld [vmem:[%s1271_s1 + $0x8] sm:$0xff]  ;;  %v664_v0 = vld [vmem:[%s1270_s0 + $0x130] sm:$0xff] }
  0x16   :  { %659 = vmatmul.msk.f32.gmra.mxu2 %vm76_vm0, %v894_v38  ;;  %99 = vmatpush.msra.mxu0 %v45_v39  ;;  %v56_v60 = vld [vmem:[%s1270_s0 + $0x80] sm:$0xff]  ;;  %v683_v1 = vld [vmem:[%s1270_s0 + $0x1c8] sm:$0xff]  ;;  %v697_v2 = vld [vmem:[%s1270_s0 + $0x238] sm:$0xff] }
  0x17   :  { %128 = vmatpush.msra.mxu1 %v61_v40  ;;  %426 = vmatpush.msrb.mxu2 %v689_v41  ;;  %v20_v62 = vld [vmem:[%s1271_s1] sm:$0xff]  ;;  %v663_v3 = vld [vmem:[%s1270_s0 + $0x128] sm:$0xff]  ;;  %v31_v5 = vld [vmem:[%s1271_s1 + $0x58] sm:$0xff] }
  0x18   :  { %100 = vmatpush.msra.mxu0 %v44_v42  ;;  %402 = vmatpush.msra.mxu3 %v668_v43  ;;  %v682_v4 = vld [vmem:[%s1270_s0 + $0x1c0] sm:$0xff]  ;;  %v696_v6 = vld [vmem:[%s1270_s0 + $0x230] sm:$0xff]  ;;  %v681_v8 = vld [vmem:[%s1270_s0 + $0x1b8] sm:$0xff] }
  0x19   :  { %129 = vmatpush.msra.mxu1 %v60_v44  ;;  %427 = vmatpush.msrb.mxu2 %v688_v45  ;;  %v662_v7 = vld [vmem:[%s1270_s0 + $0x120] sm:$0xff]  ;;  %v680_v9 = vld [vmem:[%s1270_s0 + $0x1b0] sm:$0xff]  ;;  %v23_v10 = vld [vmem:[%s1271_s1 + $0x18] sm:$0xff] }
  0x1a   :  { %101 = vmatpush.msra.mxu0 %v43_v46  ;;  %403 = vmatpush.msra.mxu3 %v667_v47  ;;  %v24_v11 = vld [vmem:[%s1271_s1 + $0x20] sm:$0xff]  ;;  %v679_v12 = vld [vmem:[%s1270_s0 + $0x1a8] sm:$0xff]  ;;  %v26_v16 = vld [vmem:[%s1271_s1 + $0x30] sm:$0xff] }
  0x1b   :  { %130 = vmatpush.msra.mxu1 %v59_v48  ;;  %428 = vmatpush.msrb.mxu2 %v687_v49  ;;  %v695_v13 = vld [vmem:[%s1270_s0 + $0x228] sm:$0xff]  ;;  %v678_v14 = vld [vmem:[%s1270_s0 + $0x1a0] sm:$0xff]  ;;  %v27_v17 = vld [vmem:[%s1271_s1 + $0x38] sm:$0xff] }
  0x1c   :  { %102 = vmatpush.msra.mxu0 %v42_v50  ;;  %404 = vmatpush.msra.mxu3 %v666_v51  ;;  %v694_v15 = vld [vmem:[%s1270_s0 + $0x220] sm:$0xff]  ;;  %v29_v18 = vld [vmem:[%s1271_s1 + $0x48] sm:$0xff]  ;;  %v30_v19 = vld [vmem:[%s1271_s1 + $0x50] sm:$0xff] }
  0x1d   :  { %131 = vmatpush.msra.mxu1 %v58_v52  ;;  %429 = vmatpush.msrb.mxu2 %v686_v53 }
  0x1e   :  { %660 = vmatmul.msk.f32.gmra.mxu2 %vm76_vm0, %v946_v54  ;;  %103 = vmatpush.msra.mxu0 %v41_v55 }
  0x1f   :  { %132 = vmatpush.msra.mxu1 %v57_v56  ;;  %430 = vmatpush.msrb.mxu2 %v685_v57 }
  0x20   :  { %104 = vmatpush.msra.mxu0 %v40_v58  ;;  %405 = vmatpush.msra.mxu3 %v665_v59 }
  0x21   :  { %133 = vmatpush.msra.mxu1 %v56_v60  ;;  %431 = vmatpush.msrb.mxu2 %v684_v61 }
  0x22   :  { %105 = vmatmul.f32.vlgmr.msra.gmra.mxu0 %v20_v62  ;;  %134 = vmatmul.f32.vlgmr.msra.gmra.mxu1 %v21_v63 }
  0x23   :  { %406 = vmatpush.msra.mxu3 %v664_v0  ;;  %432 = vmatpush.msrb.mxu2 %v683_v1 }
  0x24   :  { %463 = vmatpush.msrb.mxu0 %v697_v2  ;;  %710 = vmatpush.msrb.mxu1 %v697_v2 }
  0x25   :  { %407 = vmatpush.msra.mxu3 %v663_v3  ;;  %433 = vmatpush.msrb.mxu2 %v682_v4 }
  0x26   :  { %661 = vmatmul.msk.f32.gmra.mxu2 %vm76_vm0, %v31_v5  ;;  %464 = vmatpush.msrb.mxu0 %v696_v6 }
  0x27   :  { %408 = vmatpush.msra.mxu3 %v662_v7  ;;  %434 = vmatpush.msrb.mxu2 %v681_v8 }
  0x28   :  { %409 = vmatmul.f32.vlgmr.msra.gmra.mxu3 %v20_v62  ;;  %712 = vmatpush.msrb.mxu1 %v696_v6 }
  0x29   :  { %435 = vmatpush.msrb.mxu2 %v680_v9  ;;  %711 = vmatpush.msrb.mxu3 %v697_v2 }
  0x2a   :  { %108 = vmatmul.f32.gmra.mxu0 %v23_v10  ;;  %137 = vmatmul.f32.gmra.mxu1 %v24_v11 }
  0x2b   :  { %436 = vmatpush.msrb.mxu2 %v679_v12  ;;  %465 = vmatpush.msrb.mxu0 %v695_v13 }
  0x2c   :  { %713 = vmatpush.msrb.mxu3 %v696_v6  ;;  %714 = vmatpush.msrb.mxu1 %v695_v13 }
  0x2d   :  { %437 = vmatpush.msrb.mxu2 %v678_v14  ;;  %466 = vmatpush.msrb.mxu0 %v694_v15 }
  0x2e   :  { %438 = vmatmul.f32.vlgmr.msrb.gmra.mxu2 %v21_v63  ;;  %715 = vmatpush.msrb.mxu3 %v695_v13 }
  0x2f   :  { %716 = vmatpush.msrb.mxu1 %v694_v15 }
  0x30   :  { %412 = vmatmul.f32.gmra.mxu3 %v23_v10 }
  0x31   :  { %717 = vmatpush.msrb.mxu3 %v694_v15 }
  0x32   :  { %111 = vmatmul.f32.gmra.mxu0 %v26_v16  ;;  %140 = vmatmul.f32.gmra.mxu1 %v27_v17 }
  0x36   :  { %441 = vmatmul.f32.gmra.mxu2 %v24_v11 }
  0x38   :  { %415 = vmatmul.f32.gmra.mxu3 %v26_v16 }
  0x3a   :  { %114 = vmatmul.f32.gmra.mxu0 %v29_v18  ;;  %143 = vmatmul.f32.gmra.mxu1 %v30_v19 }
  0x3e   :  { %444 = vmatmul.f32.gmra.mxu2 %v27_v17 }
  0x40   :  { %418 = vmatmul.f32.gmra.mxu3 %v29_v18 }
  0x42   :  { %698 = vmatmul.msk.f32.vlgmr.msrb.gmra.mxu0 %vm76_vm0, %v836_v20  ;;  %699 = vmatmul.msk.f32.vlgmr.msrb.gmra.mxu1 %vm76_vm0, %v894_v38 }
  0x46   :  { %447 = vmatmul.f32.gmra.mxu2 %v30_v19 }
  0x48   :  { %701 = vmatmul.msk.f32.vlgmr.msrb.gmra.mxu3 %vm76_vm0, %v31_v5 }
  0x4a   :  { %700 = vmatmul.msk.f32.gmra.mxu1 %vm76_vm0, %v946_v54 }
  0x8f   :  { %v164_v21 = vpop.f32.mrf.mxu2 }
  0x99   :  { %v167_v22 = vpop.f32.mrf.mxu2 }
  0x9f   :  { %v106_v23 = vpop.f32.mrf.mxu0  ;;  %v135_v24 = vpop.f32.mrf.mxu1 }
  0xa0   :  { %v136_v25 = vadd.f32 %v135_v24, %v106_v23 }
  0xa1   :  { %v170_v26 = vpop.f32.mrf.mxu2 }
  0xa2   :  { %v1045_v27 = vadd.f32 %v164_v21, %v136_v25  ;;  %v741_v21 = vmov 16.0  }
  0xa3   :  { %723 = vrcp.f32 %v741_v21 }
  0xa4   :  { %v177_v20 = vsel %vm176_vm1, %v1045_v27, 0.0  ;;  %v200_v28 = vmul.f32 %v1045_v27, %v1045_v27 }
  0xa5   :  { %178 = vadd.xlane.f32.xlu0 %v177_v20 }
  0xa6   :  { %v204_v29 = vsel %vm176_vm1, %v200_v28, 0.0  ;;  %v742_v28 = vmov 0  }
  0xa7   :  { %v138_v30 = vpop.f32.mrf.mxu1  ;;  %205 = vadd.xlane.f32.xlu2 %v204_v29  ;;  %v109_v31 = vpop.f32.mrf.mxu0  ;;  %721 = vset.pattern.permute.xlu0 %v742_v28 }
  0xa8   :  { %v139_v32 = vadd.f32 %v138_v30, %v109_v31  ;;  %720 = vset.pattern.permute.xlu2 %v742_v28  ;;  %722 = vset.pattern.permute.xlu1 %v742_v28 }
  0xa9   :  { %v173_v33 = vpop.f32.mrf.mxu2 }
  0xaa   :  { %v1052_v34 = vadd.f32 %v167_v22, %v139_v32  ;;  %v724_v22 = vpop.eup %723 }
  0xab   :  { %v410_v35 = vpop.f32.mrf.mxu3  ;;  %v190_v23 = vmul.f32 16.0, %v724_v22  ;;  %vm194_vm2 = vweird.f32 %v724_v22 }
  0xac   :  { %v180_v36 = vsel %vm176_vm1, %v1052_v34, 0.0  ;;  %v201_v37 = vmul.f32 %v1052_v34, %v1052_v34 }
  0xad   :  { %181 = vadd.xlane.f32.xlu0 %v180_v36  ;;  %v191_v24 = vsub.f32 1.0, %v190_v23 }
  0xae   :  { %v207_v38 = vsel %vm176_vm1, %v201_v37, 0.0 }
  0xaf   :  { %v141_v39 = vpop.f32.mrf.mxu1  ;;  %208 = vadd.xlane.f32.xlu2 %v207_v38  ;;  %v112_v40 = vpop.f32.mrf.mxu0  ;;  %v192_v25 = vmul.f32 %v724_v22, %v191_v24 }
  0xb0   :  { %v142_v41 = vadd.f32 %v141_v39, %v112_v40 }
  0xb1   :  { %v439_v42 = vpop.f32.mrf.mxu2 }
  0xb2   :  { %v1059_v43 = vadd.f32 %v170_v26, %v142_v41  ;;  %v440_v55 = vadd.f32 %v439_v42, %v410_v35  ;;  %v193_v26 = vadd.f32 %v724_v22, %v192_v25 }
  0xb3   :  { %v413_v44 = vpop.f32.mrf.mxu3 }
  0xb4   :  { %v183_v45 = vsel %vm176_vm1, %v1059_v43, 0.0  ;;  %v202_v46 = vmul.f32 %v1059_v43, %v1059_v43  ;;  %v1101_v20 = vsel %vm194_vm2, %v724_v22, %v193_v26  ;;  %v1138_v22 = vld [vmem:[%s1272_s2 + $0x8] sm:$0xff] }
  0xb5   :  { %184 = vadd.xlane.f32.xlu1 %v183_v45 }
  0xb6   :  { %v210_v47 = vsel %vm176_vm1, %v202_v46, 0.0 }
  0xb7   :  { %v144_v48 = vpop.f32.mrf.mxu1  ;;  %211 = vadd.xlane.f32.xlu0 %v210_v47  ;;  %v115_v49 = vpop.f32.mrf.mxu0 }
  0xb8   :  { %v145_v50 = vadd.f32 %v144_v48, %v115_v49 }
  0xb9   :  { %v442_v51 = vpop.f32.mrf.mxu2 }
  0xba   :  { %v1066_v52 = vadd.f32 %v173_v33, %v145_v50  ;;  %v443_v58 = vadd.f32 %v442_v51, %v413_v44 }
  0xbb   :  { %v416_v53 = vpop.f32.mrf.mxu3 }
  0xbc   :  { %v186_v54 = vsel %vm176_vm1, %v1066_v52, 0.0  ;;  %v203_v60 = vmul.f32 %v1066_v52, %v1066_v52 }
  0xbd   :  { %187 = vadd.xlane.f32.xlu1 %v186_v54 }
  0xbe   :  { %v213_v1 = vsel %vm176_vm1, %v203_v60, 0.0 }
  0xbf   :  { %v468_v56 = vpop.f32.mrf.mxu0  ;;  %v471_v57 = vpop.f32.mrf.mxu1 }
  0xc0   :  { %v1070_v59 = vadd.f32 %v468_v56, %v440_v55  ;;  %v1074_v62 = vadd.f32 %v471_v57, %v443_v58 }
  0xc1   :  { %v445_v61 = vpop.f32.mrf.mxu2 }
  0xc2   :  { %v480_v63 = vsel %vm176_vm1, %v1070_v59, 0.0  ;;  %v446_v2 = vadd.f32 %v445_v61, %v416_v53  ;;  %v497_v3 = vmul.f32 %v1074_v62, %v1074_v62  ;;  %v483_v11 = vsel %vm176_vm1, %v1074_v62, 0.0 }
  0xc3   :  { %v419_v0 = vpop.f32.mrf.mxu3  ;;  %481 = vadd.xlane.f32.xlu2 %v480_v63  ;;  %v496_v13 = vmul.f32 %v1070_v59, %v1070_v59 }
  0xc4   :  { %v503_v9 = vsel %vm176_vm1, %v497_v3, 0.0 }
  0xc5   :  { %214 = vadd.xlane.f32.xlu1 %v213_v1  ;;  %v500_v15 = vsel %vm176_vm1, %v496_v13, 0.0 }
  0xc7   :  { %v474_v4 = vpop.f32.mrf.mxu1 }
  0xc8   :  { %v1081_v5 = vadd.f32 %v474_v4, %v446_v2  ;;  %v1120_v2 = vld [vmem:[%s1272_s2] sm:$0xff] }
  0xc9   :  { %v448_v6 = vpop.f32.mrf.mxu2 }
  0xca   :  { %v449_v7 = vadd.f32 %v448_v6, %v419_v0  ;;  %v486_v8 = vsel %vm176_vm1, %v1081_v5, 0.0  ;;  %v498_v17 = vmul.f32 %v1081_v5, %v1081_v5 }
  0xcb   :  { %v477_v10 = vpop.f32.mrf.mxu3  ;;  %487 = vadd.xlane.f32.xlu0 %v486_v8  ;;  %504 = vadd.xlane.f32.xlu2 %v503_v9 }
  0xcc   :  { %v1088_v12 = vadd.f32 %v477_v10, %v449_v7  ;;  %v506_v19 = vsel %vm176_vm1, %v498_v17, 0.0 }
  0xcd   :  { %484 = vadd.xlane.f32.xlu1 %v483_v11  ;;  %v1129_v11 = vld [vmem:[%s1273_s3] sm:$0xff] }
  0xce   :  { %v489_v14 = vsel %vm176_vm1, %v1088_v12, 0.0  ;;  %v499_v16 = vmul.f32 %v1088_v12, %v1088_v12 }
  0xd0   :  { %v509_v18 = vsel %vm176_vm1, %v499_v16, 0.0 }
  0xd3   :  { %490 = vadd.xlane.f32.xlu2 %v489_v14 }
  0xd5   :  { %501 = vadd.xlane.f32.xlu1 %v500_v15 }
  0xdb   :  { %510 = vadd.xlane.f32.xlu2 %v509_v18 }
  0xdd   :  { %507 = vadd.xlane.f32.xlu1 %v506_v19 }
 0x118   :  { %v179_v29 = vpop.xlane.xlu0 %178 }
 0x119   :  { %v196_v30 = vmul.f32 %v1101_v20, %v179_v29 }
 0x11a   :  { %v206_v31 = vpop.xlane.xlu2 %205 }
 0x11b   :  { %v220_v32 = vmul.f32 %v196_v30, %v196_v30  ;;  %v216_v33 = vmul.f32 %v206_v31, %v1101_v20 }
 0x11d   :  { %v224_v35 = vsub.f32 %v216_v33, %v220_v32  ;;  %v1144_v33 = vld [vmem:[%s1273_s3 + $0x8] sm:$0xff] }
 0x11f   :  { %v228_v36 = vmax.f32 %v224_v35, 0.0 }
 0x120   :  { %v182_v37 = vpop.xlane.xlu0 %181 }
 0x121   :  { %v232_v38 = vadd.f32 1e-05, %v228_v36  ;;  %v1106_v39 = vmul.f32 %v1101_v20, %v182_v37 }
 0x122   :  { %v209_v40 = vpop.xlane.xlu2 %208 }
 0x123   :  { %725 = vrsqrt.f32 %v232_v38  ;;  %v221_v41 = vmul.f32 %v1106_v39, %v1106_v39  ;;  %v217_v42 = vmul.f32 %v209_v40, %v1101_v20  ;;  %vm242_vm4 = vweird.f32 %v232_v38 }
 0x125   :  { %v225_v44 = vsub.f32 %v217_v42, %v221_v41  ;;  %v1154_v42 = vld [vmem:[%s1272_s2 + $0x10] sm:$0xff] }
 0x127   :  { %v229_v45 = vmax.f32 %v225_v44, 0.0 }
 0x128   :  { %v185_v46 = vpop.xlane.xlu1 %184 }
 0x129   :  { %v726_v47 = vpop.eup %725  ;;  %v233_v48 = vadd.f32 1e-05, %v229_v45  ;;  %v1112_v49 = vmul.f32 %v1101_v20, %v185_v46 }
 0x12a   :  { %v237_v50 = vmul.f32 %v726_v47, %v232_v38  ;;  %v212_v51 = vpop.xlane.xlu0 %211  ;;  %vm243_vm3 = vweird.f32 %v726_v47 }
 0x12b   :  { %727 = vrsqrt.f32 %v233_v48  ;;  %v222_v53 = vmul.f32 %v1112_v49, %v1112_v49  ;;  %v218_v54 = vmul.f32 %v212_v51, %v1101_v20  ;;  %vm244_vm5 = vmor %vm242_vm4, %vm243_vm3  ;;  %vm252_vm7 = vweird.f32 %v233_v48  ;;  %v1166_v51 = vld [vmem:[%s1273_s3 + $0x10] sm:$0xff] }
 0x12c   :  { %v238_v55 = vmul.f32 %v726_v47, %v237_v50 }
 0x12d   :  { %v226_v56 = vsub.f32 %v218_v54, %v222_v53 }
 0x12e   :  { %v239_v57 = vmul.f32 0.5, %v238_v55 }
 0x12f   :  { %v230_v58 = vmax.f32 %v226_v56, 0.0 }
 0x130   :  { %v240_v60 = vsub.f32 1.5, %v239_v57  ;;  %v188_v61 = vpop.xlane.xlu1 %187 }
 0x131   :  { %v728_v63 = vpop.eup %727  ;;  %v234_v0 = vadd.f32 1e-05, %v230_v58  ;;  %v1123_v7 = vmul.f32 %v1101_v20, %v188_v61 }
 0x132   :  { %v247_v1 = vmul.f32 %v728_v63, %v233_v48  ;;  %v241_v3 = vmul.f32 %v726_v47, %v240_v60  ;;  %vm253_vm6 = vweird.f32 %v728_v63 }
 0x133   :  { %729 = vrsqrt.f32 %v234_v0  ;;  %v223_v17 = vmul.f32 %v1123_v7, %v1123_v7  ;;  %vm254_vm8 = vmor %vm252_vm7, %vm253_vm6  ;;  %vm262_vm10 = vweird.f32 %v234_v0 }
 0x134   :  { %v248_v4 = vmul.f32 %v728_v63, %v247_v1  ;;  %v245_v6 = vsel %vm244_vm5, %v726_v47, %v241_v3 }
 0x135   :  { %v276_v8 = vmul.f32 %v245_v6, %v1120_v2 }
 0x136   :  { %v249_v9 = vmul.f32 0.5, %v248_v4  ;;  %v482_v10 = vpop.xlane.xlu2 %481 }
 0x137   :  { %290 = vperm.xlu2 %720, %v276_v8   ;;  %v280_v13 = vmul.f32 %v276_v8, %v196_v30  ;;  %v1160_v46 = vmul.f32 %v482_v10, %v1101_v20 }
 0x138   :  { %v250_v14 = vsub.f32 1.5, %v249_v9  ;;  %v215_v15 = vpop.xlane.xlu1 %214 }
 0x139   :  { %v730_v16 = vpop.eup %729  ;;  %v219_v18 = vmul.f32 %v215_v15, %v1101_v20  ;;  %v284_v19 = vsub.f32 %v1129_v11, %v280_v13  ;;  %v516_v58 = vmul.f32 %v1160_v46, %v1160_v46 }
 0x13a   :  { %v257_v21 = vmul.f32 %v730_v16, %v234_v0  ;;  %v251_v23 = vmul.f32 %v728_v63, %v250_v14  ;;  %vm263_vm9 = vweird.f32 %v730_v16 }
 0x13b   :  { %v227_v24 = vsub.f32 %v219_v18, %v223_v17  ;;  %314 = vperm.xlu0 %721, %v284_v19   ;;  %vm264_vm11 = vmor %vm262_vm10, %vm263_vm9  ;;  %v1185_v17 = vld [vmem:[%s1272_s2 + $0x18] sm:$0xff] }
 0x13c   :  { %v258_v25 = vmul.f32 %v730_v16, %v257_v21  ;;  %v255_v26 = vsel %vm254_vm8, %v728_v63, %v251_v23 }
 0x13d   :  { %v231_v28 = vmax.f32 %v227_v24, 0.0  ;;  %v277_v29 = vmul.f32 %v255_v26, %v1138_v22 }
 0x13e   :  { %v259_v30 = vmul.f32 0.5, %v258_v25  ;;  %v505_v31 = vpop.xlane.xlu2 %504  ;;  %v488_v1 = vpop.xlane.xlu0 %487 }
 0x13f   :  { %v235_v32 = vadd.f32 1e-05, %v231_v28  ;;  %v281_v35 = vmul.f32 %v277_v29, %v1106_v39  ;;  %v513_v44 = vmul.f32 %v505_v31, %v1101_v20 }
 0x140   :  { %v260_v36 = vsub.f32 1.5, %v259_v30  ;;  %v485_v37 = vpop.xlane.xlu1 %484 }
 0x141   :  { %731 = vrsqrt.f32 %v235_v32  ;;  %v1148_v38 = vmul.f32 %v485_v37, %v1101_v20  ;;  %v285_v41 = vsub.f32 %v1144_v33, %v281_v35  ;;  %vm272_vm13 = vweird.f32 %v235_v32 }
 0x142   :  { %v261_v40 = vmul.f32 %v730_v16, %v260_v36 }
 0x143   :  { %v517_v39 = vmul.f32 %v1148_v38, %v1148_v38  ;;  %295 = vperm.xlu0 %721, %v277_v29   ;;  %319 = vperm.xlu1 %722, %v285_v41  }
 0x144   :  { %v265_v45 = vsel %vm264_vm11, %v730_v16, %v261_v40 }
 0x145   :  { %v521_v47 = vsub.f32 %v513_v44, %v517_v39  ;;  %v278_v48 = vmul.f32 %v265_v45, %v1154_v42 }
 0x146   :  { %v491_v50 = vpop.xlane.xlu2 %490 }
 0x147   :  { %v732_v53 = vpop.eup %731  ;;  %v525_v54 = vmax.f32 %v521_v47, 0.0  ;;  %v282_v55 = vmul.f32 %v278_v48, %v1112_v49  ;;  %v1174_v3 = vmul.f32 %v491_v50, %v1101_v20  ;;  %v1177_v49 = vmul.f32 %v488_v1, %v1101_v20 }
 0x148   :  { %v267_v56 = vmul.f32 %v732_v53, %v235_v32  ;;  %v502_v57 = vpop.xlane.xlu1 %501  ;;  %vm273_vm12 = vweird.f32 %v732_v53  ;;  %v39_v32 = vld [vmem:[%s1273_s3 + $0x18] sm:$0xff] }
 0x149   :  { %v529_v60 = vadd.f32 1e-05, %v525_v54  ;;  %v512_v61 = vmul.f32 %v502_v57, %v1101_v20  ;;  %v286_v63 = vsub.f32 %v1166_v51, %v282_v55  ;;  %v519_v13 = vmul.f32 %v1174_v3, %v1174_v3  ;;  %vm274_vm14 = vmor %vm272_vm13, %vm273_vm12 }
 0x14a   :  { %v268_v0 = vmul.f32 %v732_v53, %v267_v56  ;;  %v518_v21 = vmul.f32 %v1177_v49, %v1177_v49 }
 0x14b   :  { %733 = vrsqrt.f32 %v529_v60  ;;  %v520_v4 = vsub.f32 %v512_v61, %v516_v58  ;;  %324 = vperm.xlu2 %720, %v286_v63   ;;  %300 = vperm.xlu1 %722, %v278_v48   ;;  %vm548_vm0 = vweird.f32 %v529_v60 }
 0x14c   :  { %v269_v6 = vmul.f32 0.5, %v268_v0 }
 0x14d   :  { %v524_v8 = vmax.f32 %v520_v4, 0.0 }
 0x14e   :  { %v270_v9 = vsub.f32 1.5, %v269_v6  ;;  %v511_v10 = vpop.xlane.xlu2 %510 }
 0x14f   :  { %v528_v14 = vadd.f32 1e-05, %v524_v8  ;;  %v515_v15 = vmul.f32 %v511_v10, %v1101_v20 }
 0x150   :  { %v508_v16 = vpop.xlane.xlu1 %507  ;;  %v271_v18 = vmul.f32 %v732_v53, %v270_v9 }
 0x151   :  { %v734_v19 = vpop.eup %733  ;;  %735 = vrsqrt.f32 %v528_v14  ;;  %v523_v23 = vsub.f32 %v515_v15, %v519_v13  ;;  %v514_v24 = vmul.f32 %v508_v16, %v1101_v20  ;;  %vm538_vm4 = vweird.f32 %v528_v14 }
 0x152   :  { %v543_v25 = vmul.f32 %v734_v19, %v529_v60  ;;  %v275_v26 = vsel %vm274_vm14, %v732_v53, %v271_v18  ;;  %vm549_vm15 = vweird.f32 %v734_v19 }
 0x153   :  { %v527_v28 = vmax.f32 %v523_v23, 0.0  ;;  %v522_v29 = vsub.f32 %v514_v24, %v518_v21  ;;  %v279_v30 = vmul.f32 %v275_v26, %v1185_v17  ;;  %vm550_vm2 = vmor %vm548_vm0, %vm549_vm15 }
 0x154   :  { %v544_v31 = vmul.f32 %v734_v19, %v543_v25 }
 0x155   :  { %v531_v35 = vadd.f32 1e-05, %v527_v28  ;;  %v526_v36 = vmax.f32 %v522_v29, 0.0  ;;  %305 = vperm.xlu2 %720, %v279_v30   ;;  %v283_v37 = vmul.f32 %v279_v30, %v1123_v7 }
 0x156   :  { %v545_v40 = vmul.f32 0.5, %v544_v31 }
 0x157   :  { %v736_v41 = vpop.eup %735  ;;  %737 = vrsqrt.f32 %v531_v35  ;;  %v530_v20 = vadd.f32 1e-05, %v526_v36  ;;  %v287_v44 = vsub.f32 %v39_v32, %v283_v37  ;;  %vm568_vm7 = vweird.f32 %v531_v35  ;;  %v338_v37 = vld [vmem:[%s1274_s4 + $0x10] sm:$0xff] }
 0x158   :  { %v546_v39 = vsub.f32 1.5, %v545_v40  ;;  %v533_v45 = vmul.f32 %v736_v41, %v528_v14  ;;  %vm539_vm3 = vweird.f32 %v736_v41 }
 0x159   :  { %739 = vrsqrt.f32 %v530_v20  ;;  %329 = vperm.xlu0 %721, %v287_v44   ;;  %vm540_vm5 = vmor %vm538_vm4, %vm539_vm3  ;;  %vm558_vm10 = vweird.f32 %v530_v20 }
 0x15a   :  { %v547_v47 = vmul.f32 %v734_v19, %v546_v39  ;;  %v534_v48 = vmul.f32 %v736_v41, %v533_v45 }
 0x15c   :  { %v551_v50 = vsel %vm550_vm2, %v734_v19, %v547_v47  ;;  %v535_v53 = vmul.f32 0.5, %v534_v48  ;;  %v339_v47 = vld [vmem:[%s1274_s4 + $0x18] sm:$0xff] }
 0x15d   :  { %v738_v54 = vpop.eup %737  ;;  %v573_v57 = vmul.f32 %v551_v50, %v1138_v22  ;;  %v343_v50 = vmax.f32 %v339_v47, 0.0 }
 0x15e   :  { %v536_v55 = vsub.f32 1.5, %v535_v53  ;;  %v563_v56 = vmul.f32 %v738_v54, %v531_v35  ;;  %vm569_vm6 = vweird.f32 %v738_v54 }
 0x15f   :  { %v740_v7 = vpop.eup %739  ;;  %vm570_vm9 = vmor %vm568_vm7, %vm569_vm6 }
 0x160   :  { %v564_v58 = vmul.f32 %v738_v54, %v563_v56  ;;  %v553_v61 = vmul.f32 %v740_v7, %v530_v20  ;;  %v537_v63 = vmul.f32 %v736_v41, %v536_v55  ;;  %vm559_vm8 = vweird.f32 %v740_v7 }
 0x161   :  { %591 = vperm.xlu0 %721, %v573_v57   ;;  %vm560_vm11 = vmor %vm558_vm10, %vm559_vm8 }
 0x162   :  { %v565_v0 = vmul.f32 0.5, %v564_v58  ;;  %v554_v1 = vmul.f32 %v740_v7, %v553_v61  ;;  %v541_v60 = vsel %vm540_vm5, %v736_v41, %v537_v63  ;;  %v342_v41 = vmax.f32 %v338_v37, 0.0 }
 0x163   :  { %v572_v4 = vmul.f32 %v541_v60, %v1120_v2 }
 0x164   :  { %v566_v6 = vsub.f32 1.5, %v565_v0  ;;  %v555_v8 = vmul.f32 0.5, %v554_v1  ;;  %v702_v1 = vld [vmem:[%s1274_s4 + $0x20] sm:$0xff] }
 0x165   :  { %586 = vperm.xlu1 %722, %v572_v4   ;;  %v576_v9 = vmul.f32 %v572_v4, %v1160_v46  ;;  %v577_v46 = vmul.f32 %v573_v57, %v1148_v38 }
 0x166   :  { %v556_v10 = vsub.f32 1.5, %v555_v8  ;;  %v567_v22 = vmul.f32 %v738_v54, %v566_v6  ;;  %v637_v8 = vmax.f32 %v702_v1, 0.0 }
 0x167   :  { %v580_v13 = vsub.f32 %v1129_v11, %v576_v9  ;;  %v581_v23 = vsub.f32 %v1144_v33, %v577_v46  ;;  %v337_v33 = vld [vmem:[%s1274_s4 + $0x8] sm:$0xff] }
 0x168   :  { %v571_v14 = vsel %vm570_vm9, %v738_v54, %v567_v22  ;;  %v557_v15 = vmul.f32 %v740_v7, %v556_v10  ;;  %v341_v30 = vmax.f32 %v337_v33, 0.0 }
 0x169   :  { %610 = vperm.xlu0 %721, %v580_v13   ;;  %v575_v16 = vmul.f32 %v571_v14, %v1185_v17  ;;  %v705_v13 = vld [vmem:[%s1274_s4 + $0x38] sm:$0xff] }
 0x16a   :  { %v561_v2 = vsel %vm560_vm11, %v740_v7, %v557_v15  ;;  %v703_v7 = vld [vmem:[%s1274_s4 + $0x28] sm:$0xff]  ;;  %v640_v15 = vmax.f32 %v705_v13, 0.0 }
 0x16b   :  { %v574_v18 = vmul.f32 %v561_v2, %v1154_v42  ;;  %v579_v19 = vmul.f32 %v575_v16, %v1174_v3  ;;  %v336_v42 = vld [vmem:[%s1274_s4] sm:$0xff]  ;;  %v638_v58 = vmax.f32 %v703_v7, 0.0  ;;  %v704_v2 = vld [vmem:[%s1274_s4 + $0x30] sm:$0xff] }
 0x16c   :  { %v340_v25 = vmax.f32 %v336_v42, 0.0 }
 0x16d   :  { %601 = vperm.xlu1 %722, %v575_v16   ;;  %596 = vperm.xlu2 %720, %v574_v18   ;;  %v583_v21 = vsub.f32 %v39_v32, %v579_v19  ;;  %v578_v11 = vmul.f32 %v574_v18, %v1177_v49 }
 0x16f   :  { %v582_v24 = vsub.f32 %v1166_v51, %v578_v11 }
 0x171   :  { %625 = vperm.xlu0 %721, %v583_v21   ;;  %v639_v21 = vmax.f32 %v704_v2, 0.0 }
 0x175   :  { %615 = vperm.xlu2 %720, %v581_v23   ;;  %620 = vperm.xlu1 %722, %v582_v24  }
 0x191   :  { %v291_v17 = vpop.permute.xlu2 %290 }
 0x192   :  { %v308_v3 = vmul.f32 %v291_v17, %v1045_v27 }
 0x1a5   :  { %v325_v35 = vpop.permute.xlu2 %324 }
 0x1ad   :  { %v315_v26 = vpop.permute.xlu0 %314 }
 0x1ae   :  { %v332_v38 = vadd.f32 %v315_v26, %v308_v3 }
 0x1af   :  { %v306_v44 = vpop.permute.xlu2 %305 }
 0x1b0   :  { %v344_v28 = vadd.f32 %v340_v25, %v332_v38  ;;  %v311_v48 = vmul.f32 %v306_v44, %v1066_v52 }
 0x1b2   :  { %v348_v29 = vmax.f32 %v344_v28, 0.0 }
 0x1b4   :  { %352 = vst.msk [vmem:[%s1275_s5] sm:$0xff] %vm176_vm1, %v348_v29 }
 0x1b5   :  { %v296_v51 = vpop.permute.xlu0 %295  ;;  %v320_v31 = vpop.permute.xlu1 %319 }
 0x1b6   :  { %v309_v49 = vmul.f32 %v296_v51, %v1052_v34 }
 0x1b8   :  { %v333_v27 = vadd.f32 %v320_v31, %v309_v49 }
 0x1ba   :  { %v345_v32 = vadd.f32 %v341_v30, %v333_v27 }
 0x1bc   :  { %v349_v36 = vmax.f32 %v345_v32, 0.0 }
 0x1bd   :  { %v301_v40 = vpop.permute.xlu1 %300 }
 0x1be   :  { %353 = vst.msk [vmem:[%s1275_s5 + $0x8] sm:$0xff] %vm176_vm1, %v349_v36  ;;  %v310_v20 = vmul.f32 %v301_v40, %v1059_v43 }
 0x1c0   :  { %v334_v34 = vadd.f32 %v325_v35, %v310_v20 }
 0x1c2   :  { %v346_v39 = vadd.f32 %v342_v41, %v334_v34 }
 0x1c4   :  { %v350_v45 = vmax.f32 %v346_v39, 0.0 }
 0x1c6   :  { %354 = vst.msk [vmem:[%s1275_s5 + $0x10] sm:$0xff] %vm176_vm1, %v350_v45 }
 0x1c7   :  { %v597_v53 = vpop.permute.xlu2 %596 }
 0x1c8   :  { %v606_v19 = vmul.f32 %v597_v53, %v1081_v5 }
 0x1cb   :  { %v330_v54 = vpop.permute.xlu0 %329 }
 0x1cc   :  { %v335_v55 = vadd.f32 %v330_v54, %v311_v48 }
 0x1ce   :  { %v347_v43 = vadd.f32 %v343_v50, %v335_v55 }
 0x1cf   :  { %v616_v52 = vpop.permute.xlu2 %615 }
 0x1d0   :  { %v351_v56 = vmax.f32 %v347_v43, 0.0 }
 0x1d2   :  { %355 = vst.msk [vmem:[%s1275_s5 + $0x18] sm:$0xff] %vm176_vm1, %v351_v56 }
 0x1d3   :  { %v592_v57 = vpop.permute.xlu0 %591 }
 0x1d4   :  { %v605_v61 = vmul.f32 %v592_v57, %v1074_v62 }
 0x1d6   :  { %v629_v63 = vadd.f32 %v616_v52, %v605_v61 }
 0x1d7   :  { %v587_v0 = vpop.permute.xlu1 %586 }
 0x1d8   :  { %v642_v60 = vadd.f32 %v638_v58, %v629_v63  ;;  %v604_v6 = vmul.f32 %v587_v0, %v1070_v59 }
 0x1da   :  { %v646_v4 = vmax.f32 %v642_v60, 0.0 }
 0x1db   :  { %v611_v9 = vpop.permute.xlu0 %610 }
 0x1dc   :  { %707 = vst.msk [vmem:[%s1275_s5 + $0x28] sm:$0xff] %vm176_vm1, %v646_v4  ;;  %v628_v10 = vadd.f32 %v611_v9, %v604_v6 }
 0x1de   :  { %v641_v62 = vadd.f32 %v637_v8, %v628_v10 }
 0x1df   :  { %v602_v22 = vpop.permute.xlu1 %601 }
 0x1e0   :  { %v645_v14 = vmax.f32 %v641_v62, 0.0  ;;  %v607_v59 = vmul.f32 %v602_v22, %v1088_v12 }
 0x1e2   :  { %706 = vst.msk [vmem:[%s1275_s5 + $0x20] sm:$0xff] %vm176_vm1, %v645_v14 }
 0x1e3   :  { %v626_v16 = vpop.permute.xlu0 %625 }
 0x1e4   :  { %v631_v18 = vadd.f32 %v626_v16, %v607_v59 }
 0x1e6   :  { %v644_v46 = vadd.f32 %v640_v15, %v631_v18 }
 0x1e7   :  { %v621_v11 = vpop.permute.xlu1 %620 }
 0x1e8   :  { %v648_v23 = vmax.f32 %v644_v46, 0.0  ;;  %v630_v24 = vadd.f32 %v621_v11, %v606_v19 }
 0x1ea   :  { %709 = vst.msk [vmem:[%s1275_s5 + $0x38] sm:$0xff] %vm176_vm1, %v648_v23  ;;  %v643_v12 = vadd.f32 %v639_v21, %v630_v24 }
 0x1ec   :  { %v647_v17 = vmax.f32 %v643_v12, 0.0 }
 0x1ee   :  { %708 = vst.msk [vmem:[%s1275_s5 + $0x30] sm:$0xff] %vm176_vm1, %v647_v17 }

// kernel: _lambda_.24
= control target key start
LH: loop header
LB: loop body
LE: loop exit
PB: predicated region body
PF: predicated region fallthrough
CT: control target
= control target key end

     0   :  { %vm73_vm0 = vcmask 261120   ;;  %vm173_vm1 = vcmask 130048   ;;  %s1209_s0 = inlined_call_operand.vmem [shape: f32[2,288,16], index: 0, kind: input, shape index: {}]   ;;  %s1210_s1 = inlined_call_operand.vmem [shape: f32[32,288], index: 1, kind: input, shape index: {}]   ;;  %s1211_s2 = inlined_call_operand.vmem [shape: f32[32,1], index: 2, kind: input, shape index: {}]   ;;  %s1212_s3 = inlined_call_operand.vmem [shape: f32[32,1], index: 3, kind: input, shape index: {}]   ;;  %s1213_s4 = inlined_call_operand.vmem [shape: f32[2,32,16], index: 4, kind: output, shape index: {}]  }
   0x1   :  { %v52_v0 = vld [vmem:[%s1209_s0 + $0x78] sm:$0xff]  ;;  %v51_v2 = vld [vmem:[%s1209_s0 + $0x70] sm:$0xff]  ;;  %v50_v4 = vld [vmem:[%s1209_s0 + $0x68] sm:$0xff] }
   0x2   :  { %v68_v1 = vld [vmem:[%s1209_s0 + $0xf8] sm:$0xff]  ;;  %86 = vmatpush.msra.mxu0 %v52_v0  ;;  %v67_v3 = vld [vmem:[%s1209_s0 + $0xf0] sm:$0xff]  ;;  %v66_v5 = vld [vmem:[%s1209_s0 + $0xe8] sm:$0xff] }
   0x3   :  { %115 = vmatpush.msra.mxu1 %v68_v1  ;;  %v72_v6 = vld [vmem:[%s1209_s0 + $0x118] sm:$0xff]  ;;  %v71_v7 = vld [vmem:[%s1209_s0 + $0x110] sm:$0xff]  ;;  %v49_v9 = vld [vmem:[%s1209_s0 + $0x60] sm:$0xff] }
   0x4   :  { %87 = vmatpush.msra.mxu0 %v51_v2  ;;  %v649_v8 = vld [vmem:[%s1209_s0 + $0x198] sm:$0xff]  ;;  %156 = vmatpush.msra.mxu2 %v72_v6  ;;  %v65_v10 = vld [vmem:[%s1209_s0 + $0xe0] sm:$0xff]  ;;  %v648_v11 = vld [vmem:[%s1209_s0 + $0x190] sm:$0xff] }
   0x5   :  { %116 = vmatpush.msra.mxu1 %v67_v3  ;;  %378 = vmatpush.msra.mxu3 %v649_v8  ;;  %v70_v12 = vld [vmem:[%s1209_s0 + $0x108] sm:$0xff]  ;;  %v48_v13 = vld [vmem:[%s1209_s0 + $0x58] sm:$0xff]  ;;  %v69_v16 = vld [vmem:[%s1209_s0 + $0x100] sm:$0xff] }
   0x6   :  { %88 = vmatpush.msra.mxu0 %v50_v4  ;;  %157 = vmatpush.msra.mxu2 %v71_v7  ;;  %v64_v14 = vld [vmem:[%s1209_s0 + $0xd8] sm:$0xff]  ;;  %v647_v15 = vld [vmem:[%s1209_s0 + $0x188] sm:$0xff]  ;;  %v646_v17 = vld [vmem:[%s1209_s0 + $0x180] sm:$0xff] }
   0x7   :  { %117 = vmatpush.msra.mxu1 %v66_v5  ;;  %379 = vmatpush.msra.mxu3 %v648_v11  ;;  %v47_v18 = vld [vmem:[%s1209_s0 + $0x50] sm:$0xff]  ;;  %v645_v21 = vld [vmem:[%s1209_s0 + $0x178] sm:$0xff]  ;;  %v46_v22 = vld [vmem:[%s1209_s0 + $0x48] sm:$0xff] }
   0x8   :  { %89 = vmatpush.msra.mxu0 %v49_v9  ;;  %158 = vmatpush.msra.mxu2 %v70_v12  ;;  %v63_v19 = vld [vmem:[%s1209_s0 + $0xd0] sm:$0xff]  ;;  %v62_v23 = vld [vmem:[%s1209_s0 + $0xc8] sm:$0xff]  ;;  %v665_v24 = vld [vmem:[%s1209_s0 + $0x218] sm:$0xff] }
   0x9   :  { %118 = vmatpush.msra.mxu1 %v65_v10  ;;  %380 = vmatpush.msra.mxu3 %v647_v15  ;;  %v799_v20 = vld [vmem:[%s1210_s1 + $0x10] sm:$0xff]  ;;  %v45_v26 = vld [vmem:[%s1209_s0 + $0x40] sm:$0xff]  ;;  %v643_v29 = vld [vmem:[%s1209_s0 + $0x168] sm:$0xff] }
   0xa   :  { %90 = vmatpush.msra.mxu0 %v48_v13  ;;  %159 = vmatpush.msra.mxu2 %v69_v16  ;;  %v644_v25 = vld [vmem:[%s1209_s0 + $0x170] sm:$0xff]  ;;  %v61_v27 = vld [vmem:[%s1209_s0 + $0xc0] sm:$0xff]  ;;  %v44_v30 = vld [vmem:[%s1209_s0 + $0x38] sm:$0xff] }
   0xb   :  { %119 = vmatpush.msra.mxu1 %v64_v14  ;;  %381 = vmatpush.msra.mxu3 %v646_v17  ;;  %v664_v28 = vld [vmem:[%s1209_s0 + $0x210] sm:$0xff]  ;;  %v60_v31 = vld [vmem:[%s1209_s0 + $0xb8] sm:$0xff]  ;;  %v663_v32 = vld [vmem:[%s1209_s0 + $0x208] sm:$0xff] }
   0xc   :  { %91 = vmatpush.msra.mxu0 %v47_v18  ;;  %630 = vmatmul.msk.f32.vlgmr.msra.gmra.mxu2 %vm73_vm0, %v799_v20  ;;  %v642_v33 = vld [vmem:[%s1209_s0 + $0x160] sm:$0xff]  ;;  %v43_v34 = vld [vmem:[%s1209_s0 + $0x30] sm:$0xff]  ;;  %v641_v37 = vld [vmem:[%s1209_s0 + $0x158] sm:$0xff] }
   0xd   :  { %120 = vmatpush.msra.mxu1 %v63_v19  ;;  %382 = vmatpush.msra.mxu3 %v645_v21  ;;  %v59_v35 = vld [vmem:[%s1209_s0 + $0xb0] sm:$0xff]  ;;  %v662_v36 = vld [vmem:[%s1209_s0 + $0x200] sm:$0xff]  ;;  %v857_v38 = vld [vmem:[%s1210_s1 + $0x28] sm:$0xff] }
   0xe   :  { %92 = vmatpush.msra.mxu0 %v46_v22  ;;  %407 = vmatpush.msrb.mxu2 %v665_v24  ;;  %v42_v39 = vld [vmem:[%s1209_s0 + $0x28] sm:$0xff]  ;;  %v661_v41 = vld [vmem:[%s1209_s0 + $0x1f8] sm:$0xff]  ;;  %v41_v42 = vld [vmem:[%s1209_s0 + $0x20] sm:$0xff] }
   0xf   :  { %121 = vmatpush.msra.mxu1 %v62_v23  ;;  %383 = vmatpush.msra.mxu3 %v644_v25  ;;  %v58_v40 = vld [vmem:[%s1209_s0 + $0xa8] sm:$0xff]  ;;  %v640_v43 = vld [vmem:[%s1209_s0 + $0x150] sm:$0xff]  ;;  %v57_v44 = vld [vmem:[%s1209_s0 + $0xa0] sm:$0xff] }
  0x10   :  { %93 = vmatpush.msra.mxu0 %v45_v26  ;;  %408 = vmatpush.msrb.mxu2 %v664_v28  ;;  %v660_v45 = vld [vmem:[%s1209_s0 + $0x1f0] sm:$0xff]  ;;  %v40_v46 = vld [vmem:[%s1209_s0 + $0x18] sm:$0xff]  ;;  %v639_v47 = vld [vmem:[%s1209_s0 + $0x148] sm:$0xff] }
  0x11   :  { %122 = vmatpush.msra.mxu1 %v61_v27  ;;  %384 = vmatpush.msra.mxu3 %v643_v29  ;;  %v56_v48 = vld [vmem:[%s1209_s0 + $0x98] sm:$0xff]  ;;  %v659_v49 = vld [vmem:[%s1209_s0 + $0x1e8] sm:$0xff]  ;;  %v39_v50 = vld [vmem:[%s1209_s0 + $0x10] sm:$0xff] }
  0x12   :  { %94 = vmatpush.msra.mxu0 %v44_v30  ;;  %409 = vmatpush.msrb.mxu2 %v663_v32  ;;  %v638_v51 = vld [vmem:[%s1209_s0 + $0x140] sm:$0xff]  ;;  %v55_v52 = vld [vmem:[%s1209_s0 + $0x90] sm:$0xff]  ;;  %v38_v55 = vld [vmem:[%s1209_s0 + $0x8] sm:$0xff] }
  0x13   :  { %123 = vmatpush.msra.mxu1 %v60_v31  ;;  %385 = vmatpush.msra.mxu3 %v642_v33  ;;  %v658_v53 = vld [vmem:[%s1209_s0 + $0x1e0] sm:$0xff]  ;;  %v54_v56 = vld [vmem:[%s1209_s0 + $0x88] sm:$0xff]  ;;  %v657_v57 = vld [vmem:[%s1209_s0 + $0x1d8] sm:$0xff] }
  0x14   :  { %95 = vmatpush.msra.mxu0 %v43_v34  ;;  %410 = vmatpush.msrb.mxu2 %v662_v36  ;;  %v909_v54 = vld [vmem:[%s1210_s1 + $0x40] sm:$0xff]  ;;  %v637_v59 = vld [vmem:[%s1209_s0 + $0x138] sm:$0xff]  ;;  %v656_v61 = vld [vmem:[%s1209_s0 + $0x1d0] sm:$0xff] }
  0x15   :  { %124 = vmatpush.msra.mxu1 %v59_v35  ;;  %386 = vmatpush.msra.mxu3 %v641_v37  ;;  %v37_v58 = vld [vmem:[%s1209_s0] sm:$0xff]  ;;  %v18_v63 = vld [vmem:[%s1210_s1 + $0x8] sm:$0xff]  ;;  %v636_v0 = vld [vmem:[%s1209_s0 + $0x130] sm:$0xff] }
  0x16   :  { %631 = vmatmul.msk.f32.gmra.mxu2 %vm73_vm0, %v857_v38  ;;  %96 = vmatpush.msra.mxu0 %v42_v39  ;;  %v53_v60 = vld [vmem:[%s1209_s0 + $0x80] sm:$0xff]  ;;  %v655_v1 = vld [vmem:[%s1209_s0 + $0x1c8] sm:$0xff]  ;;  %v669_v2 = vld [vmem:[%s1209_s0 + $0x238] sm:$0xff] }
  0x17   :  { %125 = vmatpush.msra.mxu1 %v58_v40  ;;  %411 = vmatpush.msrb.mxu2 %v661_v41  ;;  %v17_v62 = vld [vmem:[%s1210_s1] sm:$0xff]  ;;  %v635_v3 = vld [vmem:[%s1209_s0 + $0x128] sm:$0xff]  ;;  %v28_v5 = vld [vmem:[%s1210_s1 + $0x58] sm:$0xff] }
  0x18   :  { %97 = vmatpush.msra.mxu0 %v41_v42  ;;  %387 = vmatpush.msra.mxu3 %v640_v43  ;;  %v654_v4 = vld [vmem:[%s1209_s0 + $0x1c0] sm:$0xff]  ;;  %v668_v6 = vld [vmem:[%s1209_s0 + $0x230] sm:$0xff]  ;;  %v653_v8 = vld [vmem:[%s1209_s0 + $0x1b8] sm:$0xff] }
  0x19   :  { %126 = vmatpush.msra.mxu1 %v57_v44  ;;  %412 = vmatpush.msrb.mxu2 %v660_v45  ;;  %v634_v7 = vld [vmem:[%s1209_s0 + $0x120] sm:$0xff]  ;;  %v652_v9 = vld [vmem:[%s1209_s0 + $0x1b0] sm:$0xff]  ;;  %v20_v10 = vld [vmem:[%s1210_s1 + $0x18] sm:$0xff] }
  0x1a   :  { %98 = vmatpush.msra.mxu0 %v40_v46  ;;  %388 = vmatpush.msra.mxu3 %v639_v47  ;;  %v21_v11 = vld [vmem:[%s1210_s1 + $0x20] sm:$0xff]  ;;  %v651_v12 = vld [vmem:[%s1209_s0 + $0x1a8] sm:$0xff]  ;;  %v23_v16 = vld [vmem:[%s1210_s1 + $0x30] sm:$0xff] }
  0x1b   :  { %127 = vmatpush.msra.mxu1 %v56_v48  ;;  %413 = vmatpush.msrb.mxu2 %v659_v49  ;;  %v667_v13 = vld [vmem:[%s1209_s0 + $0x228] sm:$0xff]  ;;  %v650_v14 = vld [vmem:[%s1209_s0 + $0x1a0] sm:$0xff]  ;;  %v24_v17 = vld [vmem:[%s1210_s1 + $0x38] sm:$0xff] }
  0x1c   :  { %99 = vmatpush.msra.mxu0 %v39_v50  ;;  %389 = vmatpush.msra.mxu3 %v638_v51  ;;  %v666_v15 = vld [vmem:[%s1209_s0 + $0x220] sm:$0xff]  ;;  %v26_v18 = vld [vmem:[%s1210_s1 + $0x48] sm:$0xff]  ;;  %v27_v19 = vld [vmem:[%s1210_s1 + $0x50] sm:$0xff] }
  0x1d   :  { %128 = vmatpush.msra.mxu1 %v55_v52  ;;  %414 = vmatpush.msrb.mxu2 %v658_v53 }
  0x1e   :  { %632 = vmatmul.msk.f32.gmra.mxu2 %vm73_vm0, %v909_v54  ;;  %100 = vmatpush.msra.mxu0 %v38_v55 }
  0x1f   :  { %129 = vmatpush.msra.mxu1 %v54_v56  ;;  %415 = vmatpush.msrb.mxu2 %v657_v57 }
  0x20   :  { %101 = vmatpush.msra.mxu0 %v37_v58  ;;  %390 = vmatpush.msra.mxu3 %v637_v59 }
  0x21   :  { %130 = vmatpush.msra.mxu1 %v53_v60  ;;  %416 = vmatpush.msrb.mxu2 %v656_v61 }
  0x22   :  { %102 = vmatmul.f32.vlgmr.msra.gmra.mxu0 %v17_v62  ;;  %131 = vmatmul.f32.vlgmr.msra.gmra.mxu1 %v18_v63 }
  0x23   :  { %391 = vmatpush.msra.mxu3 %v636_v0  ;;  %417 = vmatpush.msrb.mxu2 %v655_v1 }
  0x24   :  { %448 = vmatpush.msrb.mxu0 %v669_v2  ;;  %678 = vmatpush.msrb.mxu1 %v669_v2 }
  0x25   :  { %392 = vmatpush.msra.mxu3 %v635_v3  ;;  %418 = vmatpush.msrb.mxu2 %v654_v4 }
  0x26   :  { %633 = vmatmul.msk.f32.gmra.mxu2 %vm73_vm0, %v28_v5  ;;  %449 = vmatpush.msrb.mxu0 %v668_v6 }
  0x27   :  { %393 = vmatpush.msra.mxu3 %v634_v7  ;;  %419 = vmatpush.msrb.mxu2 %v653_v8 }
  0x28   :  { %394 = vmatmul.f32.vlgmr.msra.gmra.mxu3 %v17_v62  ;;  %680 = vmatpush.msrb.mxu1 %v668_v6 }
  0x29   :  { %420 = vmatpush.msrb.mxu2 %v652_v9  ;;  %679 = vmatpush.msrb.mxu3 %v669_v2 }
  0x2a   :  { %105 = vmatmul.f32.gmra.mxu0 %v20_v10  ;;  %134 = vmatmul.f32.gmra.mxu1 %v21_v11 }
  0x2b   :  { %421 = vmatpush.msrb.mxu2 %v651_v12  ;;  %450 = vmatpush.msrb.mxu0 %v667_v13 }
  0x2c   :  { %681 = vmatpush.msrb.mxu3 %v668_v6  ;;  %682 = vmatpush.msrb.mxu1 %v667_v13 }
  0x2d   :  { %422 = vmatpush.msrb.mxu2 %v650_v14  ;;  %451 = vmatpush.msrb.mxu0 %v666_v15 }
  0x2e   :  { %423 = vmatmul.f32.vlgmr.msrb.gmra.mxu2 %v18_v63  ;;  %683 = vmatpush.msrb.mxu3 %v667_v13 }
  0x2f   :  { %684 = vmatpush.msrb.mxu1 %v666_v15 }
  0x30   :  { %397 = vmatmul.f32.gmra.mxu3 %v20_v10 }
  0x31   :  { %685 = vmatpush.msrb.mxu3 %v666_v15 }
  0x32   :  { %108 = vmatmul.f32.gmra.mxu0 %v23_v16  ;;  %137 = vmatmul.f32.gmra.mxu1 %v24_v17 }
  0x36   :  { %426 = vmatmul.f32.gmra.mxu2 %v21_v11 }
  0x38   :  { %400 = vmatmul.f32.gmra.mxu3 %v23_v16 }
  0x3a   :  { %111 = vmatmul.f32.gmra.mxu0 %v26_v18  ;;  %140 = vmatmul.f32.gmra.mxu1 %v27_v19 }
  0x3e   :  { %429 = vmatmul.f32.gmra.mxu2 %v24_v17 }
  0x40   :  { %403 = vmatmul.f32.gmra.mxu3 %v26_v18 }
  0x42   :  { %670 = vmatmul.msk.f32.vlgmr.msrb.gmra.mxu0 %vm73_vm0, %v799_v20  ;;  %671 = vmatmul.msk.f32.vlgmr.msrb.gmra.mxu1 %vm73_vm0, %v857_v38 }
  0x46   :  { %432 = vmatmul.f32.gmra.mxu2 %v27_v19 }
  0x48   :  { %673 = vmatmul.msk.f32.vlgmr.msrb.gmra.mxu3 %vm73_vm0, %v28_v5 }
  0x4a   :  { %672 = vmatmul.msk.f32.gmra.mxu1 %vm73_vm0, %v909_v54 }
  0x8f   :  { %v161_v21 = vpop.f32.mrf.mxu2 }
  0x99   :  { %v164_v22 = vpop.f32.mrf.mxu2 }
  0x9f   :  { %v103_v23 = vpop.f32.mrf.mxu0  ;;  %v132_v24 = vpop.f32.mrf.mxu1 }
  0xa0   :  { %v133_v25 = vadd.f32 %v132_v24, %v103_v23 }
  0xa1   :  { %v167_v26 = vpop.f32.mrf.mxu2 }
  0xa2   :  { %v1008_v27 = vadd.f32 %v161_v21, %v133_v25  ;;  %v709_v21 = vmov 16.0  }
  0xa3   :  { %691 = vrcp.f32 %v709_v21 }
  0xa4   :  { %v174_v20 = vsel %vm173_vm1, %v1008_v27, 0.0  ;;  %v197_v28 = vmul.f32 %v1008_v27, %v1008_v27 }
  0xa5   :  { %175 = vadd.xlane.f32.xlu0 %v174_v20 }
  0xa6   :  { %v201_v29 = vsel %vm173_vm1, %v197_v28, 0.0  ;;  %v710_v28 = vmov 0  }
  0xa7   :  { %v135_v30 = vpop.f32.mrf.mxu1  ;;  %202 = vadd.xlane.f32.xlu2 %v201_v29  ;;  %v106_v31 = vpop.f32.mrf.mxu0  ;;  %689 = vset.pattern.permute.xlu0 %v710_v28 }
  0xa8   :  { %v136_v32 = vadd.f32 %v135_v30, %v106_v31  ;;  %688 = vset.pattern.permute.xlu2 %v710_v28  ;;  %690 = vset.pattern.permute.xlu1 %v710_v28 }
  0xa9   :  { %v170_v33 = vpop.f32.mrf.mxu2 }
  0xaa   :  { %v1015_v34 = vadd.f32 %v164_v22, %v136_v32  ;;  %v692_v22 = vpop.eup %691 }
  0xab   :  { %v395_v35 = vpop.f32.mrf.mxu3  ;;  %v187_v23 = vmul.f32 16.0, %v692_v22  ;;  %vm191_vm2 = vweird.f32 %v692_v22 }
  0xac   :  { %v177_v36 = vsel %vm173_vm1, %v1015_v34, 0.0  ;;  %v198_v37 = vmul.f32 %v1015_v34, %v1015_v34 }
  0xad   :  { %178 = vadd.xlane.f32.xlu0 %v177_v36  ;;  %v188_v24 = vsub.f32 1.0, %v187_v23 }
  0xae   :  { %v204_v38 = vsel %vm173_vm1, %v198_v37, 0.0 }
  0xaf   :  { %v138_v39 = vpop.f32.mrf.mxu1  ;;  %205 = vadd.xlane.f32.xlu2 %v204_v38  ;;  %v109_v40 = vpop.f32.mrf.mxu0  ;;  %v189_v25 = vmul.f32 %v692_v22, %v188_v24 }
  0xb0   :  { %v139_v41 = vadd.f32 %v138_v39, %v109_v40 }
  0xb1   :  { %v424_v42 = vpop.f32.mrf.mxu2 }
  0xb2   :  { %v1022_v43 = vadd.f32 %v167_v26, %v139_v41  ;;  %v425_v55 = vadd.f32 %v424_v42, %v395_v35  ;;  %v190_v26 = vadd.f32 %v692_v22, %v189_v25 }
  0xb3   :  { %v398_v44 = vpop.f32.mrf.mxu3 }
  0xb4   :  { %v180_v45 = vsel %vm173_vm1, %v1022_v43, 0.0  ;;  %v199_v46 = vmul.f32 %v1022_v43, %v1022_v43  ;;  %v1064_v20 = vsel %vm191_vm2, %v692_v22, %v190_v26  ;;  %v1101_v22 = vld [vmem:[%s1211_s2 + $0x8] sm:$0xff] }
  0xb5   :  { %181 = vadd.xlane.f32.xlu1 %v180_v45 }
  0xb6   :  { %v207_v47 = vsel %vm173_vm1, %v199_v46, 0.0 }
  0xb7   :  { %v141_v48 = vpop.f32.mrf.mxu1  ;;  %208 = vadd.xlane.f32.xlu0 %v207_v47  ;;  %v112_v49 = vpop.f32.mrf.mxu0 }
  0xb8   :  { %v142_v50 = vadd.f32 %v141_v48, %v112_v49 }
  0xb9   :  { %v427_v51 = vpop.f32.mrf.mxu2 }
  0xba   :  { %v1029_v52 = vadd.f32 %v170_v33, %v142_v50  ;;  %v428_v58 = vadd.f32 %v427_v51, %v398_v44 }
  0xbb   :  { %v401_v53 = vpop.f32.mrf.mxu3 }
  0xbc   :  { %v183_v54 = vsel %vm173_vm1, %v1029_v52, 0.0  ;;  %v200_v60 = vmul.f32 %v1029_v52, %v1029_v52 }
  0xbd   :  { %184 = vadd.xlane.f32.xlu1 %v183_v54 }
  0xbe   :  { %v210_v1 = vsel %vm173_vm1, %v200_v60, 0.0 }
  0xbf   :  { %v453_v56 = vpop.f32.mrf.mxu0  ;;  %v456_v57 = vpop.f32.mrf.mxu1 }
  0xc0   :  { %v1033_v59 = vadd.f32 %v453_v56, %v425_v55  ;;  %v1037_v62 = vadd.f32 %v456_v57, %v428_v58 }
  0xc1   :  { %v430_v61 = vpop.f32.mrf.mxu2 }
  0xc2   :  { %v465_v63 = vsel %vm173_vm1, %v1033_v59, 0.0  ;;  %v431_v2 = vadd.f32 %v430_v61, %v401_v53  ;;  %v482_v3 = vmul.f32 %v1037_v62, %v1037_v62  ;;  %v468_v11 = vsel %vm173_vm1, %v1037_v62, 0.0 }
  0xc3   :  { %v404_v0 = vpop.f32.mrf.mxu3  ;;  %466 = vadd.xlane.f32.xlu2 %v465_v63  ;;  %v481_v13 = vmul.f32 %v1033_v59, %v1033_v59 }
  0xc4   :  { %v488_v9 = vsel %vm173_vm1, %v482_v3, 0.0 }
  0xc5   :  { %211 = vadd.xlane.f32.xlu1 %v210_v1  ;;  %v485_v15 = vsel %vm173_vm1, %v481_v13, 0.0 }
  0xc7   :  { %v459_v4 = vpop.f32.mrf.mxu1 }
  0xc8   :  { %v1044_v5 = vadd.f32 %v459_v4, %v431_v2  ;;  %v1083_v2 = vld [vmem:[%s1211_s2] sm:$0xff] }
  0xc9   :  { %v433_v6 = vpop.f32.mrf.mxu2 }
  0xca   :  { %v434_v7 = vadd.f32 %v433_v6, %v404_v0  ;;  %v471_v8 = vsel %vm173_vm1, %v1044_v5, 0.0  ;;  %v483_v17 = vmul.f32 %v1044_v5, %v1044_v5 }
  0xcb   :  { %v462_v10 = vpop.f32.mrf.mxu3  ;;  %472 = vadd.xlane.f32.xlu0 %v471_v8  ;;  %489 = vadd.xlane.f32.xlu2 %v488_v9 }
  0xcc   :  { %v1051_v12 = vadd.f32 %v462_v10, %v434_v7  ;;  %v491_v19 = vsel %vm173_vm1, %v483_v17, 0.0 }
  0xcd   :  { %469 = vadd.xlane.f32.xlu1 %v468_v11  ;;  %v1092_v11 = vld [vmem:[%s1212_s3] sm:$0xff] }
  0xce   :  { %v474_v14 = vsel %vm173_vm1, %v1051_v12, 0.0  ;;  %v484_v16 = vmul.f32 %v1051_v12, %v1051_v12 }
  0xd0   :  { %v494_v18 = vsel %vm173_vm1, %v484_v16, 0.0 }
  0xd3   :  { %475 = vadd.xlane.f32.xlu2 %v474_v14 }
  0xd5   :  { %486 = vadd.xlane.f32.xlu1 %v485_v15 }
  0xdb   :  { %495 = vadd.xlane.f32.xlu2 %v494_v18 }
  0xdd   :  { %492 = vadd.xlane.f32.xlu1 %v491_v19 }
 0x118   :  { %v176_v29 = vpop.xlane.xlu0 %175 }
 0x119   :  { %v193_v30 = vmul.f32 %v1064_v20, %v176_v29 }
 0x11a   :  { %v203_v31 = vpop.xlane.xlu2 %202 }
 0x11b   :  { %v217_v32 = vmul.f32 %v193_v30, %v193_v30  ;;  %v213_v33 = vmul.f32 %v203_v31, %v1064_v20 }
 0x11d   :  { %v221_v35 = vsub.f32 %v213_v33, %v217_v32  ;;  %v1107_v33 = vld [vmem:[%s1212_s3 + $0x8] sm:$0xff] }
 0x11f   :  { %v225_v36 = vmax.f32 %v221_v35, 0.0 }
 0x120   :  { %v179_v37 = vpop.xlane.xlu0 %178 }
 0x121   :  { %v229_v38 = vadd.f32 1e-05, %v225_v36  ;;  %v1069_v39 = vmul.f32 %v1064_v20, %v179_v37 }
 0x122   :  { %v206_v40 = vpop.xlane.xlu2 %205 }
 0x123   :  { %693 = vrsqrt.f32 %v229_v38  ;;  %v218_v41 = vmul.f32 %v1069_v39, %v1069_v39  ;;  %v214_v42 = vmul.f32 %v206_v40, %v1064_v20  ;;  %vm239_vm4 = vweird.f32 %v229_v38 }
 0x125   :  { %v222_v44 = vsub.f32 %v214_v42, %v218_v41  ;;  %v1117_v42 = vld [vmem:[%s1211_s2 + $0x10] sm:$0xff] }
 0x127   :  { %v226_v45 = vmax.f32 %v222_v44, 0.0 }
 0x128   :  { %v182_v46 = vpop.xlane.xlu1 %181 }
 0x129   :  { %v694_v47 = vpop.eup %693  ;;  %v230_v48 = vadd.f32 1e-05, %v226_v45  ;;  %v1075_v49 = vmul.f32 %v1064_v20, %v182_v46 }
 0x12a   :  { %v234_v50 = vmul.f32 %v694_v47, %v229_v38  ;;  %v209_v51 = vpop.xlane.xlu0 %208  ;;  %vm240_vm3 = vweird.f32 %v694_v47 }
 0x12b   :  { %695 = vrsqrt.f32 %v230_v48  ;;  %v219_v53 = vmul.f32 %v1075_v49, %v1075_v49  ;;  %v215_v54 = vmul.f32 %v209_v51, %v1064_v20  ;;  %vm241_vm5 = vmor %vm239_vm4, %vm240_vm3  ;;  %vm249_vm7 = vweird.f32 %v230_v48  ;;  %v1129_v51 = vld [vmem:[%s1212_s3 + $0x10] sm:$0xff] }
 0x12c   :  { %v235_v55 = vmul.f32 %v694_v47, %v234_v50 }
 0x12d   :  { %v223_v56 = vsub.f32 %v215_v54, %v219_v53 }
 0x12e   :  { %v236_v57 = vmul.f32 0.5, %v235_v55 }
 0x12f   :  { %v227_v58 = vmax.f32 %v223_v56, 0.0 }
 0x130   :  { %v237_v60 = vsub.f32 1.5, %v236_v57  ;;  %v185_v61 = vpop.xlane.xlu1 %184 }
 0x131   :  { %v696_v63 = vpop.eup %695  ;;  %v231_v0 = vadd.f32 1e-05, %v227_v58  ;;  %v1086_v7 = vmul.f32 %v1064_v20, %v185_v61 }
 0x132   :  { %v244_v1 = vmul.f32 %v696_v63, %v230_v48  ;;  %v238_v3 = vmul.f32 %v694_v47, %v237_v60  ;;  %vm250_vm6 = vweird.f32 %v696_v63 }
 0x133   :  { %697 = vrsqrt.f32 %v231_v0  ;;  %v220_v17 = vmul.f32 %v1086_v7, %v1086_v7  ;;  %vm251_vm8 = vmor %vm249_vm7, %vm250_vm6  ;;  %vm259_vm10 = vweird.f32 %v231_v0 }
 0x134   :  { %v245_v4 = vmul.f32 %v696_v63, %v244_v1  ;;  %v242_v6 = vsel %vm241_vm5, %v694_v47, %v238_v3 }
 0x135   :  { %v273_v8 = vmul.f32 %v242_v6, %v1083_v2 }
 0x136   :  { %v246_v9 = vmul.f32 0.5, %v245_v4  ;;  %v467_v10 = vpop.xlane.xlu2 %466 }
 0x137   :  { %287 = vperm.xlu2 %688, %v273_v8   ;;  %v277_v13 = vmul.f32 %v273_v8, %v193_v30  ;;  %v1123_v46 = vmul.f32 %v467_v10, %v1064_v20 }
 0x138   :  { %v247_v14 = vsub.f32 1.5, %v246_v9  ;;  %v212_v15 = vpop.xlane.xlu1 %211 }
 0x139   :  { %v698_v16 = vpop.eup %697  ;;  %v216_v18 = vmul.f32 %v212_v15, %v1064_v20  ;;  %v281_v19 = vsub.f32 %v1092_v11, %v277_v13  ;;  %v501_v58 = vmul.f32 %v1123_v46, %v1123_v46 }
 0x13a   :  { %v254_v21 = vmul.f32 %v698_v16, %v231_v0  ;;  %v248_v23 = vmul.f32 %v696_v63, %v247_v14  ;;  %vm260_vm9 = vweird.f32 %v698_v16 }
 0x13b   :  { %v224_v24 = vsub.f32 %v216_v18, %v220_v17  ;;  %311 = vperm.xlu0 %689, %v281_v19   ;;  %vm261_vm11 = vmor %vm259_vm10, %vm260_vm9  ;;  %v1148_v17 = vld [vmem:[%s1211_s2 + $0x18] sm:$0xff] }
 0x13c   :  { %v255_v25 = vmul.f32 %v698_v16, %v254_v21  ;;  %v252_v26 = vsel %vm251_vm8, %v696_v63, %v248_v23 }
 0x13d   :  { %v228_v28 = vmax.f32 %v224_v24, 0.0  ;;  %v274_v29 = vmul.f32 %v252_v26, %v1101_v22 }
 0x13e   :  { %v256_v30 = vmul.f32 0.5, %v255_v25  ;;  %v490_v31 = vpop.xlane.xlu2 %489  ;;  %v473_v1 = vpop.xlane.xlu0 %472 }
 0x13f   :  { %v232_v32 = vadd.f32 1e-05, %v228_v28  ;;  %v278_v35 = vmul.f32 %v274_v29, %v1069_v39  ;;  %v498_v44 = vmul.f32 %v490_v31, %v1064_v20 }
 0x140   :  { %v257_v36 = vsub.f32 1.5, %v256_v30  ;;  %v470_v37 = vpop.xlane.xlu1 %469 }
 0x141   :  { %699 = vrsqrt.f32 %v232_v32  ;;  %v1111_v38 = vmul.f32 %v470_v37, %v1064_v20  ;;  %v282_v41 = vsub.f32 %v1107_v33, %v278_v35  ;;  %vm269_vm13 = vweird.f32 %v232_v32 }
 0x142   :  { %v258_v40 = vmul.f32 %v698_v16, %v257_v36 }
 0x143   :  { %v502_v39 = vmul.f32 %v1111_v38, %v1111_v38  ;;  %292 = vperm.xlu0 %689, %v274_v29   ;;  %316 = vperm.xlu1 %690, %v282_v41  }
 0x144   :  { %v262_v45 = vsel %vm261_vm11, %v698_v16, %v258_v40 }
 0x145   :  { %v506_v47 = vsub.f32 %v498_v44, %v502_v39  ;;  %v275_v48 = vmul.f32 %v262_v45, %v1117_v42 }
 0x146   :  { %v476_v50 = vpop.xlane.xlu2 %475 }
 0x147   :  { %v700_v53 = vpop.eup %699  ;;  %v510_v54 = vmax.f32 %v506_v47, 0.0  ;;  %v279_v55 = vmul.f32 %v275_v48, %v1075_v49  ;;  %v1137_v3 = vmul.f32 %v476_v50, %v1064_v20  ;;  %v1140_v49 = vmul.f32 %v473_v1, %v1064_v20 }
 0x148   :  { %v264_v56 = vmul.f32 %v700_v53, %v232_v32  ;;  %v487_v57 = vpop.xlane.xlu1 %486  ;;  %vm270_vm12 = vweird.f32 %v700_v53  ;;  %v36_v32 = vld [vmem:[%s1212_s3 + $0x18] sm:$0xff] }
 0x149   :  { %v514_v60 = vadd.f32 1e-05, %v510_v54  ;;  %v497_v61 = vmul.f32 %v487_v57, %v1064_v20  ;;  %v283_v63 = vsub.f32 %v1129_v51, %v279_v55  ;;  %v504_v13 = vmul.f32 %v1137_v3, %v1137_v3  ;;  %vm271_vm14 = vmor %vm269_vm13, %vm270_vm12 }
 0x14a   :  { %v265_v0 = vmul.f32 %v700_v53, %v264_v56  ;;  %v503_v21 = vmul.f32 %v1140_v49, %v1140_v49 }
 0x14b   :  { %701 = vrsqrt.f32 %v514_v60  ;;  %v505_v4 = vsub.f32 %v497_v61, %v501_v58  ;;  %321 = vperm.xlu2 %688, %v283_v63   ;;  %297 = vperm.xlu1 %690, %v275_v48   ;;  %vm533_vm0 = vweird.f32 %v514_v60 }
 0x14c   :  { %v266_v6 = vmul.f32 0.5, %v265_v0 }
 0x14d   :  { %v509_v8 = vmax.f32 %v505_v4, 0.0 }
 0x14e   :  { %v267_v9 = vsub.f32 1.5, %v266_v6  ;;  %v496_v10 = vpop.xlane.xlu2 %495 }
 0x14f   :  { %v513_v14 = vadd.f32 1e-05, %v509_v8  ;;  %v500_v15 = vmul.f32 %v496_v10, %v1064_v20 }
 0x150   :  { %v493_v16 = vpop.xlane.xlu1 %492  ;;  %v268_v18 = vmul.f32 %v700_v53, %v267_v9 }
 0x151   :  { %v702_v19 = vpop.eup %701  ;;  %703 = vrsqrt.f32 %v513_v14  ;;  %v508_v23 = vsub.f32 %v500_v15, %v504_v13  ;;  %v499_v24 = vmul.f32 %v493_v16, %v1064_v20  ;;  %vm523_vm4 = vweird.f32 %v513_v14 }
 0x152   :  { %v528_v25 = vmul.f32 %v702_v19, %v514_v60  ;;  %v272_v26 = vsel %vm271_vm14, %v700_v53, %v268_v18  ;;  %vm534_vm15 = vweird.f32 %v702_v19 }
 0x153   :  { %v512_v28 = vmax.f32 %v508_v23, 0.0  ;;  %v507_v29 = vsub.f32 %v499_v24, %v503_v21  ;;  %v276_v30 = vmul.f32 %v272_v26, %v1148_v17  ;;  %vm535_vm2 = vmor %vm533_vm0, %vm534_vm15 }
 0x154   :  { %v529_v31 = vmul.f32 %v702_v19, %v528_v25 }
 0x155   :  { %v516_v35 = vadd.f32 1e-05, %v512_v28  ;;  %v511_v36 = vmax.f32 %v507_v29, 0.0  ;;  %302 = vperm.xlu2 %688, %v276_v30   ;;  %v280_v37 = vmul.f32 %v276_v30, %v1086_v7 }
 0x156   :  { %v530_v40 = vmul.f32 0.5, %v529_v31 }
 0x157   :  { %v704_v41 = vpop.eup %703  ;;  %705 = vrsqrt.f32 %v516_v35  ;;  %v515_v20 = vadd.f32 1e-05, %v511_v36  ;;  %v284_v44 = vsub.f32 %v36_v32, %v280_v37  ;;  %vm553_vm7 = vweird.f32 %v516_v35 }
 0x158   :  { %v531_v39 = vsub.f32 1.5, %v530_v40  ;;  %v518_v45 = vmul.f32 %v704_v41, %v513_v14  ;;  %vm524_vm3 = vweird.f32 %v704_v41 }
 0x159   :  { %707 = vrsqrt.f32 %v515_v20  ;;  %326 = vperm.xlu0 %689, %v284_v44   ;;  %vm525_vm5 = vmor %vm523_vm4, %vm524_vm3  ;;  %vm543_vm10 = vweird.f32 %v515_v20 }
 0x15a   :  { %v532_v47 = vmul.f32 %v702_v19, %v531_v39  ;;  %v519_v48 = vmul.f32 %v704_v41, %v518_v45 }
 0x15c   :  { %v536_v50 = vsel %vm535_vm2, %v702_v19, %v532_v47  ;;  %v520_v53 = vmul.f32 0.5, %v519_v48 }
 0x15d   :  { %v706_v54 = vpop.eup %705  ;;  %v558_v57 = vmul.f32 %v536_v50, %v1101_v22 }
 0x15e   :  { %v521_v55 = vsub.f32 1.5, %v520_v53  ;;  %v548_v56 = vmul.f32 %v706_v54, %v516_v35  ;;  %vm554_vm6 = vweird.f32 %v706_v54 }
 0x15f   :  { %v708_v7 = vpop.eup %707  ;;  %vm555_vm9 = vmor %vm553_vm7, %vm554_vm6 }
 0x160   :  { %v549_v58 = vmul.f32 %v706_v54, %v548_v56  ;;  %v538_v61 = vmul.f32 %v708_v7, %v515_v20  ;;  %v522_v63 = vmul.f32 %v704_v41, %v521_v55  ;;  %vm544_vm8 = vweird.f32 %v708_v7 }
 0x161   :  { %576 = vperm.xlu0 %689, %v558_v57   ;;  %vm545_vm11 = vmor %vm543_vm10, %vm544_vm8 }
 0x162   :  { %v550_v0 = vmul.f32 0.5, %v549_v58  ;;  %v539_v1 = vmul.f32 %v708_v7, %v538_v61  ;;  %v526_v60 = vsel %vm525_vm5, %v704_v41, %v522_v63 }
 0x163   :  { %v557_v4 = vmul.f32 %v526_v60, %v1083_v2 }
 0x164   :  { %v551_v6 = vsub.f32 1.5, %v550_v0  ;;  %v540_v8 = vmul.f32 0.5, %v539_v1 }
 0x165   :  { %571 = vperm.xlu1 %690, %v557_v4   ;;  %v561_v9 = vmul.f32 %v557_v4, %v1123_v46  ;;  %v562_v46 = vmul.f32 %v558_v57, %v1111_v38 }
 0x166   :  { %v541_v10 = vsub.f32 1.5, %v540_v8  ;;  %v552_v22 = vmul.f32 %v706_v54, %v551_v6 }
 0x167   :  { %v565_v13 = vsub.f32 %v1092_v11, %v561_v9  ;;  %v566_v23 = vsub.f32 %v1107_v33, %v562_v46 }
 0x168   :  { %v556_v14 = vsel %vm555_vm9, %v706_v54, %v552_v22  ;;  %v542_v15 = vmul.f32 %v708_v7, %v541_v10 }
 0x169   :  { %595 = vperm.xlu0 %689, %v565_v13   ;;  %v560_v16 = vmul.f32 %v556_v14, %v1148_v17 }
 0x16a   :  { %v546_v2 = vsel %vm545_vm11, %v708_v7, %v542_v15 }
 0x16b   :  { %v559_v18 = vmul.f32 %v546_v2, %v1117_v42  ;;  %v564_v19 = vmul.f32 %v560_v16, %v1137_v3 }
 0x16d   :  { %586 = vperm.xlu1 %690, %v560_v16   ;;  %581 = vperm.xlu2 %688, %v559_v18   ;;  %v568_v21 = vsub.f32 %v36_v32, %v564_v19  ;;  %v563_v11 = vmul.f32 %v559_v18, %v1140_v49 }
 0x16f   :  { %v567_v24 = vsub.f32 %v1129_v51, %v563_v11 }
 0x171   :  { %610 = vperm.xlu0 %689, %v568_v21  }
 0x175   :  { %600 = vperm.xlu2 %688, %v566_v23   ;;  %605 = vperm.xlu1 %690, %v567_v24  }
 0x191   :  { %v288_v17 = vpop.permute.xlu2 %287 }
 0x192   :  { %v305_v25 = vmul.f32 %v288_v17, %v1008_v27 }
 0x1a5   :  { %v322_v51 = vpop.permute.xlu2 %321 }
 0x1ad   :  { %v312_v42 = vpop.permute.xlu0 %311 }
 0x1ae   :  { %v329_v26 = vadd.f32 %v312_v42, %v305_v25 }
 0x1af   :  { %v303_v32 = vpop.permute.xlu2 %302 }
 0x1b0   :  { %v333_v3 = vmax.f32 %v329_v26, 0.0 }
 0x1b2   :  { %337 = vst.msk [vmem:[%s1213_s4] sm:$0xff] %vm173_vm1, %v333_v3 }
 0x1b5   :  { %v293_v38 = vpop.permute.xlu0 %292  ;;  %v317_v28 = vpop.permute.xlu1 %316 }
 0x1b6   :  { %v306_v49 = vmul.f32 %v293_v38, %v1015_v34  ;;  %v308_v34 = vmul.f32 %v303_v32, %v1029_v52 }
 0x1b8   :  { %v330_v33 = vadd.f32 %v317_v28, %v306_v49 }
 0x1ba   :  { %v334_v29 = vmax.f32 %v330_v33, 0.0 }
 0x1bc   :  { %338 = vst.msk [vmem:[%s1213_s4 + $0x8] sm:$0xff] %vm173_vm1, %v334_v29 }
 0x1bd   :  { %v298_v27 = vpop.permute.xlu1 %297 }
 0x1be   :  { %v307_v30 = vmul.f32 %v298_v27, %v1022_v43 }
 0x1c0   :  { %v331_v31 = vadd.f32 %v322_v51, %v307_v30 }
 0x1c2   :  { %v335_v35 = vmax.f32 %v331_v31, 0.0 }
 0x1c4   :  { %339 = vst.msk [vmem:[%s1213_s4 + $0x10] sm:$0xff] %vm173_vm1, %v335_v35 }
 0x1c7   :  { %v582_v36 = vpop.permute.xlu2 %581 }
 0x1c8   :  { %v591_v7 = vmul.f32 %v582_v36, %v1044_v5 }
 0x1cb   :  { %v327_v37 = vpop.permute.xlu0 %326 }
 0x1cc   :  { %v332_v40 = vadd.f32 %v327_v37, %v308_v34 }
 0x1ce   :  { %v336_v41 = vmax.f32 %v332_v40, 0.0 }
 0x1cf   :  { %v601_v44 = vpop.permute.xlu2 %600 }
 0x1d0   :  { %340 = vst.msk [vmem:[%s1213_s4 + $0x18] sm:$0xff] %vm173_vm1, %v336_v41 }
 0x1d3   :  { %v577_v43 = vpop.permute.xlu0 %576 }
 0x1d4   :  { %v590_v20 = vmul.f32 %v577_v43, %v1037_v62 }
 0x1d6   :  { %v614_v39 = vadd.f32 %v601_v44, %v590_v20 }
 0x1d7   :  { %v572_v45 = vpop.permute.xlu1 %571 }
 0x1d8   :  { %v618_v47 = vmax.f32 %v614_v39, 0.0  ;;  %v589_v52 = vmul.f32 %v572_v45, %v1033_v59 }
 0x1da   :  { %675 = vst.msk [vmem:[%s1213_s4 + $0x28] sm:$0xff] %vm173_vm1, %v618_v47 }
 0x1db   :  { %v596_v48 = vpop.permute.xlu0 %595 }
 0x1dc   :  { %v613_v50 = vadd.f32 %v596_v48, %v589_v52 }
 0x1de   :  { %v617_v53 = vmax.f32 %v613_v50, 0.0 }
 0x1df   :  { %v587_v54 = vpop.permute.xlu1 %586 }
 0x1e0   :  { %674 = vst.msk [vmem:[%s1213_s4 + $0x20] sm:$0xff] %vm173_vm1, %v617_v53  ;;  %v592_v62 = vmul.f32 %v587_v54, %v1051_v12 }
 0x1e3   :  { %v611_v55 = vpop.permute.xlu0 %610 }
 0x1e4   :  { %v616_v56 = vadd.f32 %v611_v55, %v592_v62 }
 0x1e6   :  { %v620_v57 = vmax.f32 %v616_v56, 0.0 }
 0x1e7   :  { %v606_v58 = vpop.permute.xlu1 %605 }
 0x1e8   :  { %677 = vst.msk [vmem:[%s1213_s4 + $0x38] sm:$0xff] %vm173_vm1, %v620_v57  ;;  %v615_v59 = vadd.f32 %v606_v58, %v591_v7 }
 0x1ea   :  { %v619_v61 = vmax.f32 %v615_v59, 0.0 }
 0x1ec   :  { %676 = vst.msk [vmem:[%s1213_s4 + $0x30] sm:$0xff] %vm173_vm1, %v619_v61 }

// kernel: _lambda_.25
= control target key start
LH: loop header
LB: loop body
LE: loop exit
PB: predicated region body
PF: predicated region fallthrough
CT: control target
= control target key end

     0   :  { %vm76_vm0 = vcmask 261120   ;;  %vm176_vm1 = vcmask 130048   ;;  %s1262_s0 = inlined_call_operand.vmem [shape: f32[2,288,16], index: 0, kind: input, shape index: {}]   ;;  %s1263_s1 = inlined_call_operand.vmem [shape: f32[32,288], index: 1, kind: input, shape index: {}]   ;;  %s1264_s2 = inlined_call_operand.vmem [shape: f32[32,1], index: 2, kind: input, shape index: {}]   ;;  %s1265_s3 = inlined_call_operand.vmem [shape: f32[32,1], index: 3, kind: input, shape index: {}]   ;;  %s1266_s4 = inlined_call_operand.vmem [shape: f32[2,32,16], index: 4, kind: input, shape index: {}]   ;;  %s1267_s5 = inlined_call_operand.vmem [shape: f32[2,32,16], index: 5, kind: output, shape index: {}]  }
   0x1   :  { %v55_v0 = vld [vmem:[%s1262_s0 + $0x78] sm:$0xff]  ;;  %v54_v2 = vld [vmem:[%s1262_s0 + $0x70] sm:$0xff]  ;;  %v53_v4 = vld [vmem:[%s1262_s0 + $0x68] sm:$0xff] }
   0x2   :  { %v71_v1 = vld [vmem:[%s1262_s0 + $0xf8] sm:$0xff]  ;;  %89 = vmatpush.msra.mxu0 %v55_v0  ;;  %v70_v3 = vld [vmem:[%s1262_s0 + $0xf0] sm:$0xff]  ;;  %v69_v5 = vld [vmem:[%s1262_s0 + $0xe8] sm:$0xff] }
   0x3   :  { %118 = vmatpush.msra.mxu1 %v71_v1  ;;  %v75_v6 = vld [vmem:[%s1262_s0 + $0x118] sm:$0xff]  ;;  %v74_v7 = vld [vmem:[%s1262_s0 + $0x110] sm:$0xff]  ;;  %v52_v9 = vld [vmem:[%s1262_s0 + $0x60] sm:$0xff] }
   0x4   :  { %90 = vmatpush.msra.mxu0 %v54_v2  ;;  %v669_v8 = vld [vmem:[%s1262_s0 + $0x198] sm:$0xff]  ;;  %159 = vmatpush.msra.mxu2 %v75_v6  ;;  %v68_v10 = vld [vmem:[%s1262_s0 + $0xe0] sm:$0xff]  ;;  %v668_v11 = vld [vmem:[%s1262_s0 + $0x190] sm:$0xff] }
   0x5   :  { %119 = vmatpush.msra.mxu1 %v70_v3  ;;  %389 = vmatpush.msra.mxu3 %v669_v8  ;;  %v73_v12 = vld [vmem:[%s1262_s0 + $0x108] sm:$0xff]  ;;  %v51_v13 = vld [vmem:[%s1262_s0 + $0x58] sm:$0xff]  ;;  %v72_v16 = vld [vmem:[%s1262_s0 + $0x100] sm:$0xff] }
   0x6   :  { %91 = vmatpush.msra.mxu0 %v53_v4  ;;  %160 = vmatpush.msra.mxu2 %v74_v7  ;;  %v67_v14 = vld [vmem:[%s1262_s0 + $0xd8] sm:$0xff]  ;;  %v667_v15 = vld [vmem:[%s1262_s0 + $0x188] sm:$0xff]  ;;  %v666_v17 = vld [vmem:[%s1262_s0 + $0x180] sm:$0xff] }
   0x7   :  { %120 = vmatpush.msra.mxu1 %v69_v5  ;;  %390 = vmatpush.msra.mxu3 %v668_v11  ;;  %v50_v18 = vld [vmem:[%s1262_s0 + $0x50] sm:$0xff]  ;;  %v665_v21 = vld [vmem:[%s1262_s0 + $0x178] sm:$0xff]  ;;  %v49_v22 = vld [vmem:[%s1262_s0 + $0x48] sm:$0xff] }
   0x8   :  { %92 = vmatpush.msra.mxu0 %v52_v9  ;;  %161 = vmatpush.msra.mxu2 %v73_v12  ;;  %v66_v19 = vld [vmem:[%s1262_s0 + $0xd0] sm:$0xff]  ;;  %v65_v23 = vld [vmem:[%s1262_s0 + $0xc8] sm:$0xff]  ;;  %v685_v24 = vld [vmem:[%s1262_s0 + $0x218] sm:$0xff] }
   0x9   :  { %121 = vmatpush.msra.mxu1 %v68_v10  ;;  %391 = vmatpush.msra.mxu3 %v667_v15  ;;  %v828_v20 = vld [vmem:[%s1263_s1 + $0x10] sm:$0xff]  ;;  %v48_v26 = vld [vmem:[%s1262_s0 + $0x40] sm:$0xff]  ;;  %v663_v29 = vld [vmem:[%s1262_s0 + $0x168] sm:$0xff] }
   0xa   :  { %93 = vmatpush.msra.mxu0 %v51_v13  ;;  %162 = vmatpush.msra.mxu2 %v72_v16  ;;  %v664_v25 = vld [vmem:[%s1262_s0 + $0x170] sm:$0xff]  ;;  %v64_v27 = vld [vmem:[%s1262_s0 + $0xc0] sm:$0xff]  ;;  %v47_v30 = vld [vmem:[%s1262_s0 + $0x38] sm:$0xff] }
   0xb   :  { %122 = vmatpush.msra.mxu1 %v67_v14  ;;  %392 = vmatpush.msra.mxu3 %v666_v17  ;;  %v684_v28 = vld [vmem:[%s1262_s0 + $0x210] sm:$0xff]  ;;  %v63_v31 = vld [vmem:[%s1262_s0 + $0xb8] sm:$0xff]  ;;  %v683_v32 = vld [vmem:[%s1262_s0 + $0x208] sm:$0xff] }
   0xc   :  { %94 = vmatpush.msra.mxu0 %v50_v18  ;;  %650 = vmatmul.msk.f32.vlgmr.msra.gmra.mxu2 %vm76_vm0, %v828_v20  ;;  %v662_v33 = vld [vmem:[%s1262_s0 + $0x160] sm:$0xff]  ;;  %v46_v34 = vld [vmem:[%s1262_s0 + $0x30] sm:$0xff]  ;;  %v661_v37 = vld [vmem:[%s1262_s0 + $0x158] sm:$0xff] }
   0xd   :  { %123 = vmatpush.msra.mxu1 %v66_v19  ;;  %393 = vmatpush.msra.mxu3 %v665_v21  ;;  %v62_v35 = vld [vmem:[%s1262_s0 + $0xb0] sm:$0xff]  ;;  %v682_v36 = vld [vmem:[%s1262_s0 + $0x200] sm:$0xff]  ;;  %v886_v38 = vld [vmem:[%s1263_s1 + $0x28] sm:$0xff] }
   0xe   :  { %95 = vmatpush.msra.mxu0 %v49_v22  ;;  %418 = vmatpush.msrb.mxu2 %v685_v24  ;;  %v45_v39 = vld [vmem:[%s1262_s0 + $0x28] sm:$0xff]  ;;  %v681_v41 = vld [vmem:[%s1262_s0 + $0x1f8] sm:$0xff]  ;;  %v44_v42 = vld [vmem:[%s1262_s0 + $0x20] sm:$0xff] }
   0xf   :  { %124 = vmatpush.msra.mxu1 %v65_v23  ;;  %394 = vmatpush.msra.mxu3 %v664_v25  ;;  %v61_v40 = vld [vmem:[%s1262_s0 + $0xa8] sm:$0xff]  ;;  %v660_v43 = vld [vmem:[%s1262_s0 + $0x150] sm:$0xff]  ;;  %v60_v44 = vld [vmem:[%s1262_s0 + $0xa0] sm:$0xff] }
  0x10   :  { %96 = vmatpush.msra.mxu0 %v48_v26  ;;  %419 = vmatpush.msrb.mxu2 %v684_v28  ;;  %v680_v45 = vld [vmem:[%s1262_s0 + $0x1f0] sm:$0xff]  ;;  %v43_v46 = vld [vmem:[%s1262_s0 + $0x18] sm:$0xff]  ;;  %v659_v47 = vld [vmem:[%s1262_s0 + $0x148] sm:$0xff] }
  0x11   :  { %125 = vmatpush.msra.mxu1 %v64_v27  ;;  %395 = vmatpush.msra.mxu3 %v663_v29  ;;  %v59_v48 = vld [vmem:[%s1262_s0 + $0x98] sm:$0xff]  ;;  %v679_v49 = vld [vmem:[%s1262_s0 + $0x1e8] sm:$0xff]  ;;  %v42_v50 = vld [vmem:[%s1262_s0 + $0x10] sm:$0xff] }
  0x12   :  { %97 = vmatpush.msra.mxu0 %v47_v30  ;;  %420 = vmatpush.msrb.mxu2 %v683_v32  ;;  %v658_v51 = vld [vmem:[%s1262_s0 + $0x140] sm:$0xff]  ;;  %v58_v52 = vld [vmem:[%s1262_s0 + $0x90] sm:$0xff]  ;;  %v41_v55 = vld [vmem:[%s1262_s0 + $0x8] sm:$0xff] }
  0x13   :  { %126 = vmatpush.msra.mxu1 %v63_v31  ;;  %396 = vmatpush.msra.mxu3 %v662_v33  ;;  %v678_v53 = vld [vmem:[%s1262_s0 + $0x1e0] sm:$0xff]  ;;  %v57_v56 = vld [vmem:[%s1262_s0 + $0x88] sm:$0xff]  ;;  %v677_v57 = vld [vmem:[%s1262_s0 + $0x1d8] sm:$0xff] }
  0x14   :  { %98 = vmatpush.msra.mxu0 %v46_v34  ;;  %421 = vmatpush.msrb.mxu2 %v682_v36  ;;  %v938_v54 = vld [vmem:[%s1263_s1 + $0x40] sm:$0xff]  ;;  %v657_v59 = vld [vmem:[%s1262_s0 + $0x138] sm:$0xff]  ;;  %v676_v61 = vld [vmem:[%s1262_s0 + $0x1d0] sm:$0xff] }
  0x15   :  { %127 = vmatpush.msra.mxu1 %v62_v35  ;;  %397 = vmatpush.msra.mxu3 %v661_v37  ;;  %v40_v58 = vld [vmem:[%s1262_s0] sm:$0xff]  ;;  %v21_v63 = vld [vmem:[%s1263_s1 + $0x8] sm:$0xff]  ;;  %v656_v0 = vld [vmem:[%s1262_s0 + $0x130] sm:$0xff] }
  0x16   :  { %651 = vmatmul.msk.f32.gmra.mxu2 %vm76_vm0, %v886_v38  ;;  %99 = vmatpush.msra.mxu0 %v45_v39  ;;  %v56_v60 = vld [vmem:[%s1262_s0 + $0x80] sm:$0xff]  ;;  %v675_v1 = vld [vmem:[%s1262_s0 + $0x1c8] sm:$0xff]  ;;  %v689_v2 = vld [vmem:[%s1262_s0 + $0x238] sm:$0xff] }
  0x17   :  { %128 = vmatpush.msra.mxu1 %v61_v40  ;;  %422 = vmatpush.msrb.mxu2 %v681_v41  ;;  %v20_v62 = vld [vmem:[%s1263_s1] sm:$0xff]  ;;  %v655_v3 = vld [vmem:[%s1262_s0 + $0x128] sm:$0xff]  ;;  %v31_v5 = vld [vmem:[%s1263_s1 + $0x58] sm:$0xff] }
  0x18   :  { %100 = vmatpush.msra.mxu0 %v44_v42  ;;  %398 = vmatpush.msra.mxu3 %v660_v43  ;;  %v674_v4 = vld [vmem:[%s1262_s0 + $0x1c0] sm:$0xff]  ;;  %v688_v6 = vld [vmem:[%s1262_s0 + $0x230] sm:$0xff]  ;;  %v673_v8 = vld [vmem:[%s1262_s0 + $0x1b8] sm:$0xff] }
  0x19   :  { %129 = vmatpush.msra.mxu1 %v60_v44  ;;  %423 = vmatpush.msrb.mxu2 %v680_v45  ;;  %v654_v7 = vld [vmem:[%s1262_s0 + $0x120] sm:$0xff]  ;;  %v672_v9 = vld [vmem:[%s1262_s0 + $0x1b0] sm:$0xff]  ;;  %v23_v10 = vld [vmem:[%s1263_s1 + $0x18] sm:$0xff] }
  0x1a   :  { %101 = vmatpush.msra.mxu0 %v43_v46  ;;  %399 = vmatpush.msra.mxu3 %v659_v47  ;;  %v24_v11 = vld [vmem:[%s1263_s1 + $0x20] sm:$0xff]  ;;  %v671_v12 = vld [vmem:[%s1262_s0 + $0x1a8] sm:$0xff]  ;;  %v26_v16 = vld [vmem:[%s1263_s1 + $0x30] sm:$0xff] }
  0x1b   :  { %130 = vmatpush.msra.mxu1 %v59_v48  ;;  %424 = vmatpush.msrb.mxu2 %v679_v49  ;;  %v687_v13 = vld [vmem:[%s1262_s0 + $0x228] sm:$0xff]  ;;  %v670_v14 = vld [vmem:[%s1262_s0 + $0x1a0] sm:$0xff]  ;;  %v27_v17 = vld [vmem:[%s1263_s1 + $0x38] sm:$0xff] }
  0x1c   :  { %102 = vmatpush.msra.mxu0 %v42_v50  ;;  %400 = vmatpush.msra.mxu3 %v658_v51  ;;  %v686_v15 = vld [vmem:[%s1262_s0 + $0x220] sm:$0xff]  ;;  %v29_v18 = vld [vmem:[%s1263_s1 + $0x48] sm:$0xff]  ;;  %v30_v19 = vld [vmem:[%s1263_s1 + $0x50] sm:$0xff] }
  0x1d   :  { %131 = vmatpush.msra.mxu1 %v58_v52  ;;  %425 = vmatpush.msrb.mxu2 %v678_v53 }
  0x1e   :  { %652 = vmatmul.msk.f32.gmra.mxu2 %vm76_vm0, %v938_v54  ;;  %103 = vmatpush.msra.mxu0 %v41_v55 }
  0x1f   :  { %132 = vmatpush.msra.mxu1 %v57_v56  ;;  %426 = vmatpush.msrb.mxu2 %v677_v57 }
  0x20   :  { %104 = vmatpush.msra.mxu0 %v40_v58  ;;  %401 = vmatpush.msra.mxu3 %v657_v59 }
  0x21   :  { %133 = vmatpush.msra.mxu1 %v56_v60  ;;  %427 = vmatpush.msrb.mxu2 %v676_v61 }
  0x22   :  { %105 = vmatmul.f32.vlgmr.msra.gmra.mxu0 %v20_v62  ;;  %134 = vmatmul.f32.vlgmr.msra.gmra.mxu1 %v21_v63 }
  0x23   :  { %402 = vmatpush.msra.mxu3 %v656_v0  ;;  %428 = vmatpush.msrb.mxu2 %v675_v1 }
  0x24   :  { %459 = vmatpush.msrb.mxu0 %v689_v2  ;;  %702 = vmatpush.msrb.mxu1 %v689_v2 }
  0x25   :  { %403 = vmatpush.msra.mxu3 %v655_v3  ;;  %429 = vmatpush.msrb.mxu2 %v674_v4 }
  0x26   :  { %653 = vmatmul.msk.f32.gmra.mxu2 %vm76_vm0, %v31_v5  ;;  %460 = vmatpush.msrb.mxu0 %v688_v6 }
  0x27   :  { %404 = vmatpush.msra.mxu3 %v654_v7  ;;  %430 = vmatpush.msrb.mxu2 %v673_v8 }
  0x28   :  { %405 = vmatmul.f32.vlgmr.msra.gmra.mxu3 %v20_v62  ;;  %704 = vmatpush.msrb.mxu1 %v688_v6 }
  0x29   :  { %431 = vmatpush.msrb.mxu2 %v672_v9  ;;  %703 = vmatpush.msrb.mxu3 %v689_v2 }
  0x2a   :  { %108 = vmatmul.f32.gmra.mxu0 %v23_v10  ;;  %137 = vmatmul.f32.gmra.mxu1 %v24_v11 }
  0x2b   :  { %432 = vmatpush.msrb.mxu2 %v671_v12  ;;  %461 = vmatpush.msrb.mxu0 %v687_v13 }
  0x2c   :  { %705 = vmatpush.msrb.mxu3 %v688_v6  ;;  %706 = vmatpush.msrb.mxu1 %v687_v13 }
  0x2d   :  { %433 = vmatpush.msrb.mxu2 %v670_v14  ;;  %462 = vmatpush.msrb.mxu0 %v686_v15 }
  0x2e   :  { %434 = vmatmul.f32.vlgmr.msrb.gmra.mxu2 %v21_v63  ;;  %707 = vmatpush.msrb.mxu3 %v687_v13 }
  0x2f   :  { %708 = vmatpush.msrb.mxu1 %v686_v15 }
  0x30   :  { %408 = vmatmul.f32.gmra.mxu3 %v23_v10 }
  0x31   :  { %709 = vmatpush.msrb.mxu3 %v686_v15 }
  0x32   :  { %111 = vmatmul.f32.gmra.mxu0 %v26_v16  ;;  %140 = vmatmul.f32.gmra.mxu1 %v27_v17 }
  0x36   :  { %437 = vmatmul.f32.gmra.mxu2 %v24_v11 }
  0x38   :  { %411 = vmatmul.f32.gmra.mxu3 %v26_v16 }
  0x3a   :  { %114 = vmatmul.f32.gmra.mxu0 %v29_v18  ;;  %143 = vmatmul.f32.gmra.mxu1 %v30_v19 }
  0x3e   :  { %440 = vmatmul.f32.gmra.mxu2 %v27_v17 }
  0x40   :  { %414 = vmatmul.f32.gmra.mxu3 %v29_v18 }
  0x42   :  { %690 = vmatmul.msk.f32.vlgmr.msrb.gmra.mxu0 %vm76_vm0, %v828_v20  ;;  %691 = vmatmul.msk.f32.vlgmr.msrb.gmra.mxu1 %vm76_vm0, %v886_v38 }
  0x46   :  { %443 = vmatmul.f32.gmra.mxu2 %v30_v19 }
  0x48   :  { %693 = vmatmul.msk.f32.vlgmr.msrb.gmra.mxu3 %vm76_vm0, %v31_v5 }
  0x4a   :  { %692 = vmatmul.msk.f32.gmra.mxu1 %vm76_vm0, %v938_v54 }
  0x8f   :  { %v164_v21 = vpop.f32.mrf.mxu2 }
  0x99   :  { %v167_v22 = vpop.f32.mrf.mxu2 }
  0x9f   :  { %v106_v23 = vpop.f32.mrf.mxu0  ;;  %v135_v24 = vpop.f32.mrf.mxu1 }
  0xa0   :  { %v136_v25 = vadd.f32 %v135_v24, %v106_v23 }
  0xa1   :  { %v170_v26 = vpop.f32.mrf.mxu2 }
  0xa2   :  { %v1037_v27 = vadd.f32 %v164_v21, %v136_v25  ;;  %v733_v21 = vmov 16.0  }
  0xa3   :  { %715 = vrcp.f32 %v733_v21 }
  0xa4   :  { %v177_v20 = vsel %vm176_vm1, %v1037_v27, 0.0  ;;  %v200_v28 = vmul.f32 %v1037_v27, %v1037_v27 }
  0xa5   :  { %178 = vadd.xlane.f32.xlu0 %v177_v20 }
  0xa6   :  { %v204_v29 = vsel %vm176_vm1, %v200_v28, 0.0  ;;  %v734_v28 = vmov 0  }
  0xa7   :  { %v138_v30 = vpop.f32.mrf.mxu1  ;;  %205 = vadd.xlane.f32.xlu2 %v204_v29  ;;  %v109_v31 = vpop.f32.mrf.mxu0  ;;  %713 = vset.pattern.permute.xlu0 %v734_v28 }
  0xa8   :  { %v139_v32 = vadd.f32 %v138_v30, %v109_v31  ;;  %712 = vset.pattern.permute.xlu2 %v734_v28  ;;  %714 = vset.pattern.permute.xlu1 %v734_v28 }
  0xa9   :  { %v173_v33 = vpop.f32.mrf.mxu2 }
  0xaa   :  { %v1044_v34 = vadd.f32 %v167_v22, %v139_v32  ;;  %v716_v22 = vpop.eup %715 }
  0xab   :  { %v406_v35 = vpop.f32.mrf.mxu3  ;;  %v190_v23 = vmul.f32 16.0, %v716_v22  ;;  %vm194_vm2 = vweird.f32 %v716_v22 }
  0xac   :  { %v180_v36 = vsel %vm176_vm1, %v1044_v34, 0.0  ;;  %v201_v37 = vmul.f32 %v1044_v34, %v1044_v34 }
  0xad   :  { %181 = vadd.xlane.f32.xlu0 %v180_v36  ;;  %v191_v24 = vsub.f32 1.0, %v190_v23 }
  0xae   :  { %v207_v38 = vsel %vm176_vm1, %v201_v37, 0.0 }
  0xaf   :  { %v141_v39 = vpop.f32.mrf.mxu1  ;;  %208 = vadd.xlane.f32.xlu2 %v207_v38  ;;  %v112_v40 = vpop.f32.mrf.mxu0  ;;  %v192_v25 = vmul.f32 %v716_v22, %v191_v24 }
  0xb0   :  { %v142_v41 = vadd.f32 %v141_v39, %v112_v40 }
  0xb1   :  { %v435_v42 = vpop.f32.mrf.mxu2 }
  0xb2   :  { %v1051_v43 = vadd.f32 %v170_v26, %v142_v41  ;;  %v436_v55 = vadd.f32 %v435_v42, %v406_v35  ;;  %v193_v26 = vadd.f32 %v716_v22, %v192_v25 }
  0xb3   :  { %v409_v44 = vpop.f32.mrf.mxu3 }
  0xb4   :  { %v183_v45 = vsel %vm176_vm1, %v1051_v43, 0.0  ;;  %v202_v46 = vmul.f32 %v1051_v43, %v1051_v43  ;;  %v1093_v20 = vsel %vm194_vm2, %v716_v22, %v193_v26  ;;  %v1130_v22 = vld [vmem:[%s1264_s2 + $0x8] sm:$0xff] }
  0xb5   :  { %184 = vadd.xlane.f32.xlu1 %v183_v45 }
  0xb6   :  { %v210_v47 = vsel %vm176_vm1, %v202_v46, 0.0 }
  0xb7   :  { %v144_v48 = vpop.f32.mrf.mxu1  ;;  %211 = vadd.xlane.f32.xlu0 %v210_v47  ;;  %v115_v49 = vpop.f32.mrf.mxu0 }
  0xb8   :  { %v145_v50 = vadd.f32 %v144_v48, %v115_v49 }
  0xb9   :  { %v438_v51 = vpop.f32.mrf.mxu2 }
  0xba   :  { %v1058_v52 = vadd.f32 %v173_v33, %v145_v50  ;;  %v439_v58 = vadd.f32 %v438_v51, %v409_v44 }
  0xbb   :  { %v412_v53 = vpop.f32.mrf.mxu3 }
  0xbc   :  { %v186_v54 = vsel %vm176_vm1, %v1058_v52, 0.0  ;;  %v203_v60 = vmul.f32 %v1058_v52, %v1058_v52 }
  0xbd   :  { %187 = vadd.xlane.f32.xlu1 %v186_v54 }
  0xbe   :  { %v213_v1 = vsel %vm176_vm1, %v203_v60, 0.0 }
  0xbf   :  { %v464_v56 = vpop.f32.mrf.mxu0  ;;  %v467_v57 = vpop.f32.mrf.mxu1 }
  0xc0   :  { %v1062_v59 = vadd.f32 %v464_v56, %v436_v55  ;;  %v1066_v62 = vadd.f32 %v467_v57, %v439_v58 }
  0xc1   :  { %v441_v61 = vpop.f32.mrf.mxu2 }
  0xc2   :  { %v476_v63 = vsel %vm176_vm1, %v1062_v59, 0.0  ;;  %v442_v2 = vadd.f32 %v441_v61, %v412_v53  ;;  %v493_v3 = vmul.f32 %v1066_v62, %v1066_v62  ;;  %v479_v11 = vsel %vm176_vm1, %v1066_v62, 0.0 }
  0xc3   :  { %v415_v0 = vpop.f32.mrf.mxu3  ;;  %477 = vadd.xlane.f32.xlu2 %v476_v63  ;;  %v492_v13 = vmul.f32 %v1062_v59, %v1062_v59 }
  0xc4   :  { %v499_v9 = vsel %vm176_vm1, %v493_v3, 0.0 }
  0xc5   :  { %214 = vadd.xlane.f32.xlu1 %v213_v1  ;;  %v496_v15 = vsel %vm176_vm1, %v492_v13, 0.0 }
  0xc7   :  { %v470_v4 = vpop.f32.mrf.mxu1 }
  0xc8   :  { %v1073_v5 = vadd.f32 %v470_v4, %v442_v2  ;;  %v1112_v2 = vld [vmem:[%s1264_s2] sm:$0xff] }
  0xc9   :  { %v444_v6 = vpop.f32.mrf.mxu2 }
  0xca   :  { %v445_v7 = vadd.f32 %v444_v6, %v415_v0  ;;  %v482_v8 = vsel %vm176_vm1, %v1073_v5, 0.0  ;;  %v494_v17 = vmul.f32 %v1073_v5, %v1073_v5 }
  0xcb   :  { %v473_v10 = vpop.f32.mrf.mxu3  ;;  %483 = vadd.xlane.f32.xlu0 %v482_v8  ;;  %500 = vadd.xlane.f32.xlu2 %v499_v9 }
  0xcc   :  { %v1080_v12 = vadd.f32 %v473_v10, %v445_v7  ;;  %v502_v19 = vsel %vm176_vm1, %v494_v17, 0.0 }
  0xcd   :  { %480 = vadd.xlane.f32.xlu1 %v479_v11  ;;  %v1121_v11 = vld [vmem:[%s1265_s3] sm:$0xff] }
  0xce   :  { %v485_v14 = vsel %vm176_vm1, %v1080_v12, 0.0  ;;  %v495_v16 = vmul.f32 %v1080_v12, %v1080_v12 }
  0xd0   :  { %v505_v18 = vsel %vm176_vm1, %v495_v16, 0.0 }
  0xd3   :  { %486 = vadd.xlane.f32.xlu2 %v485_v14 }
  0xd5   :  { %497 = vadd.xlane.f32.xlu1 %v496_v15 }
  0xdb   :  { %506 = vadd.xlane.f32.xlu2 %v505_v18 }
  0xdd   :  { %503 = vadd.xlane.f32.xlu1 %v502_v19 }
 0x118   :  { %v179_v29 = vpop.xlane.xlu0 %178 }
 0x119   :  { %v196_v30 = vmul.f32 %v1093_v20, %v179_v29 }
 0x11a   :  { %v206_v31 = vpop.xlane.xlu2 %205 }
 0x11b   :  { %v220_v32 = vmul.f32 %v196_v30, %v196_v30  ;;  %v216_v33 = vmul.f32 %v206_v31, %v1093_v20 }
 0x11d   :  { %v224_v35 = vsub.f32 %v216_v33, %v220_v32  ;;  %v1136_v33 = vld [vmem:[%s1265_s3 + $0x8] sm:$0xff] }
 0x11f   :  { %v228_v36 = vmax.f32 %v224_v35, 0.0 }
 0x120   :  { %v182_v37 = vpop.xlane.xlu0 %181 }
 0x121   :  { %v232_v38 = vadd.f32 1e-05, %v228_v36  ;;  %v1098_v39 = vmul.f32 %v1093_v20, %v182_v37 }
 0x122   :  { %v209_v40 = vpop.xlane.xlu2 %208 }
 0x123   :  { %717 = vrsqrt.f32 %v232_v38  ;;  %v221_v41 = vmul.f32 %v1098_v39, %v1098_v39  ;;  %v217_v42 = vmul.f32 %v209_v40, %v1093_v20  ;;  %vm242_vm4 = vweird.f32 %v232_v38 }
 0x125   :  { %v225_v44 = vsub.f32 %v217_v42, %v221_v41  ;;  %v1146_v42 = vld [vmem:[%s1264_s2 + $0x10] sm:$0xff] }
 0x127   :  { %v229_v45 = vmax.f32 %v225_v44, 0.0 }
 0x128   :  { %v185_v46 = vpop.xlane.xlu1 %184 }
 0x129   :  { %v718_v47 = vpop.eup %717  ;;  %v233_v48 = vadd.f32 1e-05, %v229_v45  ;;  %v1104_v49 = vmul.f32 %v1093_v20, %v185_v46 }
 0x12a   :  { %v237_v50 = vmul.f32 %v718_v47, %v232_v38  ;;  %v212_v51 = vpop.xlane.xlu0 %211  ;;  %vm243_vm3 = vweird.f32 %v718_v47 }
 0x12b   :  { %719 = vrsqrt.f32 %v233_v48  ;;  %v222_v53 = vmul.f32 %v1104_v49, %v1104_v49  ;;  %v218_v54 = vmul.f32 %v212_v51, %v1093_v20  ;;  %vm244_vm5 = vmor %vm242_vm4, %vm243_vm3  ;;  %vm252_vm7 = vweird.f32 %v233_v48  ;;  %v1158_v51 = vld [vmem:[%s1265_s3 + $0x10] sm:$0xff] }
 0x12c   :  { %v238_v55 = vmul.f32 %v718_v47, %v237_v50 }
 0x12d   :  { %v226_v56 = vsub.f32 %v218_v54, %v222_v53 }
 0x12e   :  { %v239_v57 = vmul.f32 0.5, %v238_v55 }
 0x12f   :  { %v230_v58 = vmax.f32 %v226_v56, 0.0 }
 0x130   :  { %v240_v60 = vsub.f32 1.5, %v239_v57  ;;  %v188_v61 = vpop.xlane.xlu1 %187 }
 0x131   :  { %v720_v63 = vpop.eup %719  ;;  %v234_v0 = vadd.f32 1e-05, %v230_v58  ;;  %v1115_v7 = vmul.f32 %v1093_v20, %v188_v61 }
 0x132   :  { %v247_v1 = vmul.f32 %v720_v63, %v233_v48  ;;  %v241_v3 = vmul.f32 %v718_v47, %v240_v60  ;;  %vm253_vm6 = vweird.f32 %v720_v63 }
 0x133   :  { %721 = vrsqrt.f32 %v234_v0  ;;  %v223_v17 = vmul.f32 %v1115_v7, %v1115_v7  ;;  %vm254_vm8 = vmor %vm252_vm7, %vm253_vm6  ;;  %vm262_vm10 = vweird.f32 %v234_v0 }
 0x134   :  { %v248_v4 = vmul.f32 %v720_v63, %v247_v1  ;;  %v245_v6 = vsel %vm244_vm5, %v718_v47, %v241_v3 }
 0x135   :  { %v276_v8 = vmul.f32 %v245_v6, %v1112_v2 }
 0x136   :  { %v249_v9 = vmul.f32 0.5, %v248_v4  ;;  %v478_v10 = vpop.xlane.xlu2 %477 }
 0x137   :  { %290 = vperm.xlu2 %712, %v276_v8   ;;  %v280_v13 = vmul.f32 %v276_v8, %v196_v30  ;;  %v1152_v46 = vmul.f32 %v478_v10, %v1093_v20 }
 0x138   :  { %v250_v14 = vsub.f32 1.5, %v249_v9  ;;  %v215_v15 = vpop.xlane.xlu1 %214 }
 0x139   :  { %v722_v16 = vpop.eup %721  ;;  %v219_v18 = vmul.f32 %v215_v15, %v1093_v20  ;;  %v284_v19 = vsub.f32 %v1121_v11, %v280_v13  ;;  %v512_v58 = vmul.f32 %v1152_v46, %v1152_v46 }
 0x13a   :  { %v257_v21 = vmul.f32 %v722_v16, %v234_v0  ;;  %v251_v23 = vmul.f32 %v720_v63, %v250_v14  ;;  %vm263_vm9 = vweird.f32 %v722_v16 }
 0x13b   :  { %v227_v24 = vsub.f32 %v219_v18, %v223_v17  ;;  %314 = vperm.xlu0 %713, %v284_v19   ;;  %vm264_vm11 = vmor %vm262_vm10, %vm263_vm9  ;;  %v1177_v17 = vld [vmem:[%s1264_s2 + $0x18] sm:$0xff] }
 0x13c   :  { %v258_v25 = vmul.f32 %v722_v16, %v257_v21  ;;  %v255_v26 = vsel %vm254_vm8, %v720_v63, %v251_v23 }
 0x13d   :  { %v231_v28 = vmax.f32 %v227_v24, 0.0  ;;  %v277_v29 = vmul.f32 %v255_v26, %v1130_v22 }
 0x13e   :  { %v259_v30 = vmul.f32 0.5, %v258_v25  ;;  %v501_v31 = vpop.xlane.xlu2 %500  ;;  %v484_v1 = vpop.xlane.xlu0 %483 }
 0x13f   :  { %v235_v32 = vadd.f32 1e-05, %v231_v28  ;;  %v281_v35 = vmul.f32 %v277_v29, %v1098_v39  ;;  %v509_v44 = vmul.f32 %v501_v31, %v1093_v20 }
 0x140   :  { %v260_v36 = vsub.f32 1.5, %v259_v30  ;;  %v481_v37 = vpop.xlane.xlu1 %480 }
 0x141   :  { %723 = vrsqrt.f32 %v235_v32  ;;  %v1140_v38 = vmul.f32 %v481_v37, %v1093_v20  ;;  %v285_v41 = vsub.f32 %v1136_v33, %v281_v35  ;;  %vm272_vm13 = vweird.f32 %v235_v32 }
 0x142   :  { %v261_v40 = vmul.f32 %v722_v16, %v260_v36 }
 0x143   :  { %v513_v39 = vmul.f32 %v1140_v38, %v1140_v38  ;;  %295 = vperm.xlu0 %713, %v277_v29   ;;  %319 = vperm.xlu1 %714, %v285_v41  }
 0x144   :  { %v265_v45 = vsel %vm264_vm11, %v722_v16, %v261_v40 }
 0x145   :  { %v517_v47 = vsub.f32 %v509_v44, %v513_v39  ;;  %v278_v48 = vmul.f32 %v265_v45, %v1146_v42 }
 0x146   :  { %v487_v50 = vpop.xlane.xlu2 %486 }
 0x147   :  { %v724_v53 = vpop.eup %723  ;;  %v521_v54 = vmax.f32 %v517_v47, 0.0  ;;  %v282_v55 = vmul.f32 %v278_v48, %v1104_v49  ;;  %v1166_v3 = vmul.f32 %v487_v50, %v1093_v20  ;;  %v1169_v49 = vmul.f32 %v484_v1, %v1093_v20 }
 0x148   :  { %v267_v56 = vmul.f32 %v724_v53, %v235_v32  ;;  %v498_v57 = vpop.xlane.xlu1 %497  ;;  %vm273_vm12 = vweird.f32 %v724_v53  ;;  %v39_v32 = vld [vmem:[%s1265_s3 + $0x18] sm:$0xff] }
 0x149   :  { %v525_v60 = vadd.f32 1e-05, %v521_v54  ;;  %v508_v61 = vmul.f32 %v498_v57, %v1093_v20  ;;  %v286_v63 = vsub.f32 %v1158_v51, %v282_v55  ;;  %v515_v13 = vmul.f32 %v1166_v3, %v1166_v3  ;;  %vm274_vm14 = vmor %vm272_vm13, %vm273_vm12 }
 0x14a   :  { %v268_v0 = vmul.f32 %v724_v53, %v267_v56  ;;  %v514_v21 = vmul.f32 %v1169_v49, %v1169_v49 }
 0x14b   :  { %725 = vrsqrt.f32 %v525_v60  ;;  %v516_v4 = vsub.f32 %v508_v61, %v512_v58  ;;  %324 = vperm.xlu2 %712, %v286_v63   ;;  %300 = vperm.xlu1 %714, %v278_v48   ;;  %vm544_vm0 = vweird.f32 %v525_v60 }
 0x14c   :  { %v269_v6 = vmul.f32 0.5, %v268_v0 }
 0x14d   :  { %v520_v8 = vmax.f32 %v516_v4, 0.0 }
 0x14e   :  { %v270_v9 = vsub.f32 1.5, %v269_v6  ;;  %v507_v10 = vpop.xlane.xlu2 %506 }
 0x14f   :  { %v524_v14 = vadd.f32 1e-05, %v520_v8  ;;  %v511_v15 = vmul.f32 %v507_v10, %v1093_v20 }
 0x150   :  { %v504_v16 = vpop.xlane.xlu1 %503  ;;  %v271_v18 = vmul.f32 %v724_v53, %v270_v9 }
 0x151   :  { %v726_v19 = vpop.eup %725  ;;  %727 = vrsqrt.f32 %v524_v14  ;;  %v519_v23 = vsub.f32 %v511_v15, %v515_v13  ;;  %v510_v24 = vmul.f32 %v504_v16, %v1093_v20  ;;  %vm534_vm4 = vweird.f32 %v524_v14 }
 0x152   :  { %v539_v25 = vmul.f32 %v726_v19, %v525_v60  ;;  %v275_v26 = vsel %vm274_vm14, %v724_v53, %v271_v18  ;;  %vm545_vm15 = vweird.f32 %v726_v19 }
 0x153   :  { %v523_v28 = vmax.f32 %v519_v23, 0.0  ;;  %v518_v29 = vsub.f32 %v510_v24, %v514_v21  ;;  %v279_v30 = vmul.f32 %v275_v26, %v1177_v17  ;;  %vm546_vm2 = vmor %vm544_vm0, %vm545_vm15 }
 0x154   :  { %v540_v31 = vmul.f32 %v726_v19, %v539_v25 }
 0x155   :  { %v527_v35 = vadd.f32 1e-05, %v523_v28  ;;  %v522_v36 = vmax.f32 %v518_v29, 0.0  ;;  %305 = vperm.xlu2 %712, %v279_v30   ;;  %v283_v37 = vmul.f32 %v279_v30, %v1115_v7 }
 0x156   :  { %v541_v40 = vmul.f32 0.5, %v540_v31 }
 0x157   :  { %v728_v41 = vpop.eup %727  ;;  %729 = vrsqrt.f32 %v527_v35  ;;  %v526_v20 = vadd.f32 1e-05, %v522_v36  ;;  %v287_v44 = vsub.f32 %v39_v32, %v283_v37  ;;  %vm564_vm7 = vweird.f32 %v527_v35 }
 0x158   :  { %v542_v39 = vsub.f32 1.5, %v541_v40  ;;  %v529_v45 = vmul.f32 %v728_v41, %v524_v14  ;;  %vm535_vm3 = vweird.f32 %v728_v41 }
 0x159   :  { %731 = vrsqrt.f32 %v526_v20  ;;  %329 = vperm.xlu0 %713, %v287_v44   ;;  %vm536_vm5 = vmor %vm534_vm4, %vm535_vm3  ;;  %vm554_vm10 = vweird.f32 %v526_v20 }
 0x15a   :  { %v543_v47 = vmul.f32 %v726_v19, %v542_v39  ;;  %v530_v48 = vmul.f32 %v728_v41, %v529_v45 }
 0x15c   :  { %v547_v50 = vsel %vm546_vm2, %v726_v19, %v543_v47  ;;  %v531_v53 = vmul.f32 0.5, %v530_v48 }
 0x15d   :  { %v730_v54 = vpop.eup %729  ;;  %v569_v57 = vmul.f32 %v547_v50, %v1130_v22 }
 0x15e   :  { %v532_v55 = vsub.f32 1.5, %v531_v53  ;;  %v559_v56 = vmul.f32 %v730_v54, %v527_v35  ;;  %vm565_vm6 = vweird.f32 %v730_v54 }
 0x15f   :  { %v732_v7 = vpop.eup %731  ;;  %vm566_vm9 = vmor %vm564_vm7, %vm565_vm6 }
 0x160   :  { %v560_v58 = vmul.f32 %v730_v54, %v559_v56  ;;  %v549_v61 = vmul.f32 %v732_v7, %v526_v20  ;;  %v533_v63 = vmul.f32 %v728_v41, %v532_v55  ;;  %vm555_vm8 = vweird.f32 %v732_v7 }
 0x161   :  { %587 = vperm.xlu0 %713, %v569_v57   ;;  %vm556_vm11 = vmor %vm554_vm10, %vm555_vm8 }
 0x162   :  { %v561_v0 = vmul.f32 0.5, %v560_v58  ;;  %v550_v1 = vmul.f32 %v732_v7, %v549_v61  ;;  %v537_v60 = vsel %vm536_vm5, %v728_v41, %v533_v63  ;;  %v694_v63 = vld [vmem:[%s1266_s4 + $0x20] sm:$0xff] }
 0x163   :  { %v568_v4 = vmul.f32 %v537_v60, %v1112_v2 }
 0x164   :  { %v562_v6 = vsub.f32 1.5, %v561_v0  ;;  %v551_v8 = vmul.f32 0.5, %v550_v1 }
 0x165   :  { %582 = vperm.xlu1 %714, %v568_v4   ;;  %v572_v9 = vmul.f32 %v568_v4, %v1152_v46  ;;  %v573_v46 = vmul.f32 %v569_v57, %v1140_v38 }
 0x166   :  { %v552_v10 = vsub.f32 1.5, %v551_v8  ;;  %v563_v22 = vmul.f32 %v730_v54, %v562_v6  ;;  %v697_v6 = vld [vmem:[%s1266_s4 + $0x38] sm:$0xff] }
 0x167   :  { %v576_v13 = vsub.f32 %v1121_v11, %v572_v9  ;;  %v577_v23 = vsub.f32 %v1136_v33, %v573_v46 }
 0x168   :  { %v567_v14 = vsel %vm566_vm9, %v730_v54, %v563_v22  ;;  %v553_v15 = vmul.f32 %v732_v7, %v552_v10 }
 0x169   :  { %606 = vperm.xlu0 %713, %v576_v13   ;;  %v571_v16 = vmul.f32 %v567_v14, %v1177_v17  ;;  %v696_v13 = vld [vmem:[%s1266_s4 + $0x30] sm:$0xff] }
 0x16a   :  { %v557_v2 = vsel %vm556_vm11, %v732_v7, %v553_v15 }
 0x16b   :  { %v570_v18 = vmul.f32 %v557_v2, %v1146_v42  ;;  %v575_v19 = vmul.f32 %v571_v16, %v1166_v3  ;;  %v336_v42 = vld [vmem:[%s1266_s4] sm:$0xff] }
 0x16d   :  { %597 = vperm.xlu1 %714, %v571_v16   ;;  %592 = vperm.xlu2 %712, %v570_v18   ;;  %v579_v21 = vsub.f32 %v39_v32, %v575_v19  ;;  %v574_v11 = vmul.f32 %v570_v18, %v1169_v49 }
 0x16f   :  { %v578_v24 = vsub.f32 %v1158_v51, %v574_v11 }
 0x171   :  { %621 = vperm.xlu0 %713, %v579_v21  }
 0x175   :  { %611 = vperm.xlu2 %712, %v577_v23   ;;  %616 = vperm.xlu1 %714, %v578_v24  }
 0x191   :  { %v291_v17 = vpop.permute.xlu2 %290 }
 0x192   :  { %v308_v25 = vmul.f32 %v291_v17, %v1037_v27  ;;  %v337_v27 = vld [vmem:[%s1266_s4 + $0x8] sm:$0xff] }
 0x1a5   :  { %v325_v31 = vpop.permute.xlu2 %324 }
 0x1ad   :  { %v315_v3 = vpop.permute.xlu0 %314 }
 0x1ae   :  { %v332_v26 = vadd.f32 %v315_v3, %v308_v25 }
 0x1af   :  { %v306_v40 = vpop.permute.xlu2 %305 }
 0x1b0   :  { %v340_v38 = vadd.f32 %v336_v42, %v332_v26  ;;  %v311_v44 = vmul.f32 %v306_v40, %v1058_v52  ;;  %v695_v52 = vld [vmem:[%s1266_s4 + $0x28] sm:$0xff] }
 0x1b2   :  { %v344_v28 = vmax.f32 %v340_v38, 0.0 }
 0x1b4   :  { %348 = vst.msk [vmem:[%s1267_s5] sm:$0xff] %vm176_vm1, %v344_v28 }
 0x1b5   :  { %v296_v33 = vpop.permute.xlu0 %295  ;;  %v320_v49 = vpop.permute.xlu1 %319 }
 0x1b6   :  { %v309_v51 = vmul.f32 %v296_v33, %v1044_v34  ;;  %v338_v34 = vld [vmem:[%s1266_s4 + $0x10] sm:$0xff] }
 0x1b8   :  { %v333_v29 = vadd.f32 %v320_v49, %v309_v51 }
 0x1ba   :  { %v341_v30 = vadd.f32 %v337_v27, %v333_v29 }
 0x1bc   :  { %v345_v32 = vmax.f32 %v341_v30, 0.0 }
 0x1bd   :  { %v301_v35 = vpop.permute.xlu1 %300 }
 0x1be   :  { %349 = vst.msk [vmem:[%s1267_s5 + $0x8] sm:$0xff] %vm176_vm1, %v345_v32  ;;  %v310_v36 = vmul.f32 %v301_v35, %v1051_v43  ;;  %v339_v43 = vld [vmem:[%s1266_s4 + $0x18] sm:$0xff] }
 0x1c0   :  { %v334_v37 = vadd.f32 %v325_v31, %v310_v36 }
 0x1c2   :  { %v342_v41 = vadd.f32 %v338_v34, %v334_v37 }
 0x1c4   :  { %v346_v20 = vmax.f32 %v342_v41, 0.0 }
 0x1c6   :  { %350 = vst.msk [vmem:[%s1267_s5 + $0x10] sm:$0xff] %vm176_vm1, %v346_v20 }
 0x1c7   :  { %v593_v39 = vpop.permute.xlu2 %592 }
 0x1c8   :  { %v602_v10 = vmul.f32 %v593_v39, %v1073_v5 }
 0x1cb   :  { %v330_v45 = vpop.permute.xlu0 %329 }
 0x1cc   :  { %v335_v47 = vadd.f32 %v330_v45, %v311_v44 }
 0x1ce   :  { %v343_v48 = vadd.f32 %v339_v43, %v335_v47 }
 0x1cf   :  { %v612_v55 = vpop.permute.xlu2 %611 }
 0x1d0   :  { %v347_v50 = vmax.f32 %v343_v48, 0.0 }
 0x1d2   :  { %351 = vst.msk [vmem:[%s1267_s5 + $0x18] sm:$0xff] %vm176_vm1, %v347_v50 }
 0x1d3   :  { %v588_v53 = vpop.permute.xlu0 %587 }
 0x1d4   :  { %v601_v54 = vmul.f32 %v588_v53, %v1066_v62 }
 0x1d6   :  { %v625_v56 = vadd.f32 %v612_v55, %v601_v54 }
 0x1d7   :  { %v583_v7 = vpop.permute.xlu1 %582 }
 0x1d8   :  { %v634_v57 = vadd.f32 %v695_v52, %v625_v56  ;;  %v600_v61 = vmul.f32 %v583_v7, %v1062_v59 }
 0x1da   :  { %v638_v58 = vmax.f32 %v634_v57, 0.0 }
 0x1db   :  { %v607_v0 = vpop.permute.xlu0 %606 }
 0x1dc   :  { %699 = vst.msk [vmem:[%s1267_s5 + $0x28] sm:$0xff] %vm176_vm1, %v638_v58  ;;  %v624_v62 = vadd.f32 %v607_v0, %v600_v61 }
 0x1de   :  { %v633_v1 = vadd.f32 %v694_v63, %v624_v62 }
 0x1df   :  { %v598_v60 = vpop.permute.xlu1 %597 }
 0x1e0   :  { %v637_v4 = vmax.f32 %v633_v1, 0.0  ;;  %v603_v59 = vmul.f32 %v598_v60, %v1080_v12 }
 0x1e2   :  { %698 = vst.msk [vmem:[%s1267_s5 + $0x20] sm:$0xff] %vm176_vm1, %v637_v4 }
 0x1e3   :  { %v622_v8 = vpop.permute.xlu0 %621 }
 0x1e4   :  { %v627_v9 = vadd.f32 %v622_v8, %v603_v59 }
 0x1e6   :  { %v636_v22 = vadd.f32 %v697_v6, %v627_v9 }
 0x1e7   :  { %v617_v14 = vpop.permute.xlu1 %616 }
 0x1e8   :  { %v640_v15 = vmax.f32 %v636_v22, 0.0  ;;  %v626_v16 = vadd.f32 %v617_v14, %v602_v10 }
 0x1ea   :  { %701 = vst.msk [vmem:[%s1267_s5 + $0x38] sm:$0xff] %vm176_vm1, %v640_v15  ;;  %v635_v12 = vadd.f32 %v696_v13, %v626_v16 }
 0x1ec   :  { %v639_v2 = vmax.f32 %v635_v12, 0.0 }
 0x1ee   :  { %700 = vst.msk [vmem:[%s1267_s5 + $0x30] sm:$0xff] %vm176_vm1, %v639_v2 }

// kernel: _lambda_.26
= control target key start
LH: loop header
LB: loop body
LE: loop exit
PB: predicated region body
PF: predicated region fallthrough
CT: control target
= control target key end

     0   :  { %vm103_vm0 = vcmask 523264   ;;  %vm225_vm1 = vcmask 130048   ;;  %s1282_s0 = inlined_call_operand.vmem [shape: f32[2,576,16], index: 0, kind: input, shape index: {}]   ;;  %s1283_s1 = inlined_call_operand.vmem [shape: f32[16,576], index: 1, kind: input, shape index: {}]   ;;  %s1284_s2 = inlined_call_operand.vmem [shape: f32[16,1], index: 2, kind: input, shape index: {}]   ;;  %s1285_s3 = inlined_call_operand.vmem [shape: f32[16,1], index: 3, kind: input, shape index: {}]   ;;  %s1286_s4 = inlined_call_operand.vmem [shape: f32[2,16,16], index: 4, kind: output, shape index: {}]  }
   0x1   :  { %v46_v0 = vld [vmem:[%s1282_s0 + $0x78] sm:$0xff]  ;;  %v45_v3 = vld [vmem:[%s1282_s0 + $0x70] sm:$0xff]  ;;  %v44_v7 = vld [vmem:[%s1282_s0 + $0x68] sm:$0xff] }
   0x2   :  { %v78_v1 = vld [vmem:[%s1282_s0 + $0x178] sm:$0xff]  ;;  %110 = vmatpush.msra.mxu0 %v46_v0  ;;  %v77_v4 = vld [vmem:[%s1282_s0 + $0x170] sm:$0xff]  ;;  %v76_v8 = vld [vmem:[%s1282_s0 + $0x168] sm:$0xff] }
   0x3   :  { %v62_v2 = vld [vmem:[%s1282_s0 + $0xf8] sm:$0xff]  ;;  %156 = vmatpush.msra.mxu2 %v78_v1  ;;  %v61_v6 = vld [vmem:[%s1282_s0 + $0xf0] sm:$0xff]  ;;  %v60_v10 = vld [vmem:[%s1282_s0 + $0xe8] sm:$0xff] }
   0x4   :  { %v94_v5 = vld [vmem:[%s1282_s0 + $0x1f8] sm:$0xff]  ;;  %133 = vmatpush.msra.mxu1 %v62_v2  ;;  %111 = vmatpush.msra.mxu0 %v45_v3  ;;  %v93_v9 = vld [vmem:[%s1282_s0 + $0x1f0] sm:$0xff]  ;;  %v43_v11 = vld [vmem:[%s1282_s0 + $0x60] sm:$0xff] }
   0x5   :  { %179 = vmatpush.msra.mxu3 %v94_v5  ;;  %157 = vmatpush.msra.mxu2 %v77_v4  ;;  %v75_v12 = vld [vmem:[%s1282_s0 + $0x160] sm:$0xff]  ;;  %v92_v13 = vld [vmem:[%s1282_s0 + $0x1e8] sm:$0xff]  ;;  %v42_v16 = vld [vmem:[%s1282_s0 + $0x58] sm:$0xff] }
   0x6   :  { %134 = vmatpush.msra.mxu1 %v61_v6  ;;  %112 = vmatpush.msra.mxu0 %v44_v7  ;;  %v59_v14 = vld [vmem:[%s1282_s0 + $0xe0] sm:$0xff]  ;;  %v74_v17 = vld [vmem:[%s1282_s0 + $0x158] sm:$0xff]  ;;  %v41_v20 = vld [vmem:[%s1282_s0 + $0x50] sm:$0xff] }
   0x7   :  { %180 = vmatpush.msra.mxu3 %v93_v9  ;;  %158 = vmatpush.msra.mxu2 %v76_v8  ;;  %v91_v15 = vld [vmem:[%s1282_s0 + $0x1e0] sm:$0xff]  ;;  %v58_v18 = vld [vmem:[%s1282_s0 + $0xd8] sm:$0xff]  ;;  %v73_v21 = vld [vmem:[%s1282_s0 + $0x150] sm:$0xff] }
   0x8   :  { %135 = vmatpush.msra.mxu1 %v60_v10  ;;  %113 = vmatpush.msra.mxu0 %v43_v11  ;;  %v90_v19 = vld [vmem:[%s1282_s0 + $0x1d8] sm:$0xff]  ;;  %v57_v22 = vld [vmem:[%s1282_s0 + $0xd0] sm:$0xff]  ;;  %v40_v24 = vld [vmem:[%s1282_s0 + $0x48] sm:$0xff] }
   0x9   :  { %181 = vmatpush.msra.mxu3 %v92_v13  ;;  %159 = vmatpush.msra.mxu2 %v75_v12  ;;  %v89_v23 = vld [vmem:[%s1282_s0 + $0x1d0] sm:$0xff]  ;;  %v72_v25 = vld [vmem:[%s1282_s0 + $0x148] sm:$0xff]  ;;  %v39_v28 = vld [vmem:[%s1282_s0 + $0x40] sm:$0xff] }
   0xa   :  { %136 = vmatpush.msra.mxu1 %v59_v14  ;;  %114 = vmatpush.msra.mxu0 %v42_v16  ;;  %v56_v26 = vld [vmem:[%s1282_s0 + $0xc8] sm:$0xff]  ;;  %v71_v29 = vld [vmem:[%s1282_s0 + $0x140] sm:$0xff]  ;;  %v38_v32 = vld [vmem:[%s1282_s0 + $0x38] sm:$0xff] }
   0xb   :  { %182 = vmatpush.msra.mxu3 %v91_v15  ;;  %160 = vmatpush.msra.mxu2 %v74_v17  ;;  %v88_v27 = vld [vmem:[%s1282_s0 + $0x1c8] sm:$0xff]  ;;  %v55_v30 = vld [vmem:[%s1282_s0 + $0xc0] sm:$0xff]  ;;  %v70_v33 = vld [vmem:[%s1282_s0 + $0x138] sm:$0xff] }
   0xc   :  { %137 = vmatpush.msra.mxu1 %v58_v18  ;;  %115 = vmatpush.msra.mxu0 %v41_v20  ;;  %v87_v31 = vld [vmem:[%s1282_s0 + $0x1c0] sm:$0xff]  ;;  %v54_v34 = vld [vmem:[%s1282_s0 + $0xb8] sm:$0xff]  ;;  %v37_v36 = vld [vmem:[%s1282_s0 + $0x30] sm:$0xff] }
   0xd   :  { %183 = vmatpush.msra.mxu3 %v90_v19  ;;  %161 = vmatpush.msra.mxu2 %v73_v21  ;;  %v86_v35 = vld [vmem:[%s1282_s0 + $0x1b8] sm:$0xff]  ;;  %v69_v37 = vld [vmem:[%s1282_s0 + $0x130] sm:$0xff]  ;;  %v36_v40 = vld [vmem:[%s1282_s0 + $0x28] sm:$0xff] }
   0xe   :  { %138 = vmatpush.msra.mxu1 %v57_v22  ;;  %116 = vmatpush.msra.mxu0 %v40_v24  ;;  %v53_v38 = vld [vmem:[%s1282_s0 + $0xb0] sm:$0xff]  ;;  %v68_v41 = vld [vmem:[%s1282_s0 + $0x128] sm:$0xff]  ;;  %v35_v44 = vld [vmem:[%s1282_s0 + $0x20] sm:$0xff] }
   0xf   :  { %184 = vmatpush.msra.mxu3 %v89_v23  ;;  %162 = vmatpush.msra.mxu2 %v72_v25  ;;  %v85_v39 = vld [vmem:[%s1282_s0 + $0x1b0] sm:$0xff]  ;;  %v52_v42 = vld [vmem:[%s1282_s0 + $0xa8] sm:$0xff]  ;;  %v67_v45 = vld [vmem:[%s1282_s0 + $0x120] sm:$0xff] }
  0x10   :  { %139 = vmatpush.msra.mxu1 %v56_v26  ;;  %117 = vmatpush.msra.mxu0 %v39_v28  ;;  %v84_v43 = vld [vmem:[%s1282_s0 + $0x1a8] sm:$0xff]  ;;  %v51_v46 = vld [vmem:[%s1282_s0 + $0xa0] sm:$0xff]  ;;  %v34_v48 = vld [vmem:[%s1282_s0 + $0x18] sm:$0xff] }
  0x11   :  { %185 = vmatpush.msra.mxu3 %v88_v27  ;;  %163 = vmatpush.msra.mxu2 %v71_v29  ;;  %v83_v47 = vld [vmem:[%s1282_s0 + $0x1a0] sm:$0xff]  ;;  %v66_v49 = vld [vmem:[%s1282_s0 + $0x118] sm:$0xff]  ;;  %v33_v52 = vld [vmem:[%s1282_s0 + $0x10] sm:$0xff] }
  0x12   :  { %140 = vmatpush.msra.mxu1 %v55_v30  ;;  %118 = vmatpush.msra.mxu0 %v38_v32  ;;  %v50_v50 = vld [vmem:[%s1282_s0 + $0x98] sm:$0xff]  ;;  %v65_v53 = vld [vmem:[%s1282_s0 + $0x110] sm:$0xff]  ;;  %v32_v56 = vld [vmem:[%s1282_s0 + $0x8] sm:$0xff] }
  0x13   :  { %186 = vmatpush.msra.mxu3 %v87_v31  ;;  %164 = vmatpush.msra.mxu2 %v70_v33  ;;  %v82_v51 = vld [vmem:[%s1282_s0 + $0x198] sm:$0xff]  ;;  %v49_v54 = vld [vmem:[%s1282_s0 + $0x90] sm:$0xff]  ;;  %v64_v57 = vld [vmem:[%s1282_s0 + $0x108] sm:$0xff] }
  0x14   :  { %141 = vmatpush.msra.mxu1 %v54_v34  ;;  %119 = vmatpush.msra.mxu0 %v37_v36  ;;  %v81_v55 = vld [vmem:[%s1282_s0 + $0x190] sm:$0xff]  ;;  %v48_v58 = vld [vmem:[%s1282_s0 + $0x88] sm:$0xff]  ;;  %v31_v60 = vld [vmem:[%s1282_s0] sm:$0xff] }
  0x15   :  { %187 = vmatpush.msra.mxu3 %v86_v35  ;;  %165 = vmatpush.msra.mxu2 %v69_v37  ;;  %v80_v59 = vld [vmem:[%s1282_s0 + $0x188] sm:$0xff]  ;;  %v63_v61 = vld [vmem:[%s1282_s0 + $0x100] sm:$0xff]  ;;  %v102_v0 = vld [vmem:[%s1282_s0 + $0x238] sm:$0xff] }
  0x16   :  { %142 = vmatpush.msra.mxu1 %v53_v38  ;;  %120 = vmatpush.msra.mxu0 %v36_v40  ;;  %v895_v62 = vld [vmem:[%s1283_s1] sm:$0xff]  ;;  %v619_v1 = vld [vmem:[%s1282_s0 + $0x338] sm:$0xff]  ;;  %v101_v4 = vld [vmem:[%s1282_s0 + $0x230] sm:$0xff] }
  0x17   :  { %188 = vmatpush.msra.mxu3 %v85_v39  ;;  %166 = vmatpush.msra.mxu2 %v68_v41  ;;  %v47_v63 = vld [vmem:[%s1282_s0 + $0x80] sm:$0xff]  ;;  %v603_v3 = vld [vmem:[%s1282_s0 + $0x2b8] sm:$0xff]  ;;  %v618_v5 = vld [vmem:[%s1282_s0 + $0x330] sm:$0xff] }
  0x18   :  { %143 = vmatpush.msra.mxu1 %v52_v42  ;;  %121 = vmatpush.msra.mxu0 %v35_v44  ;;  %v79_v2 = vld [vmem:[%s1282_s0 + $0x180] sm:$0xff]  ;;  %v635_v6 = vld [vmem:[%s1282_s0 + $0x3b8] sm:$0xff]  ;;  %v602_v7 = vld [vmem:[%s1282_s0 + $0x2b0] sm:$0xff] }
  0x19   :  { %189 = vmatpush.msra.mxu3 %v84_v43  ;;  %167 = vmatpush.msra.mxu2 %v67_v45  ;;  %v100_v8 = vld [vmem:[%s1282_s0 + $0x228] sm:$0xff]  ;;  %v634_v10 = vld [vmem:[%s1282_s0 + $0x3b0] sm:$0xff]  ;;  %v99_v13 = vld [vmem:[%s1282_s0 + $0x220] sm:$0xff] }
  0x1a   :  { %144 = vmatpush.msra.mxu1 %v51_v46  ;;  %122 = vmatpush.msra.mxu0 %v34_v48  ;;  %v617_v9 = vld [vmem:[%s1282_s0 + $0x328] sm:$0xff]  ;;  %v940_v12 = vld [vmem:[%s1283_s1 + $0x10] sm:$0xff]  ;;  %v616_v14 = vld [vmem:[%s1282_s0 + $0x320] sm:$0xff] }
  0x1b   :  { %190 = vmatpush.msra.mxu3 %v83_v47  ;;  %168 = vmatpush.msra.mxu2 %v66_v49  ;;  %v601_v11 = vld [vmem:[%s1282_s0 + $0x2a8] sm:$0xff]  ;;  %v600_v16 = vld [vmem:[%s1282_s0 + $0x2a0] sm:$0xff]  ;;  %v963_v18 = vld [vmem:[%s1283_s1 + $0x18] sm:$0xff] }
  0x1c   :  { %145 = vmatpush.msra.mxu1 %v50_v50  ;;  %123 = vmatpush.msra.mxu0 %v33_v52  ;;  %v633_v15 = vld [vmem:[%s1282_s0 + $0x3a8] sm:$0xff]  ;;  %v98_v19 = vld [vmem:[%s1282_s0 + $0x218] sm:$0xff]  ;;  %v632_v21 = vld [vmem:[%s1282_s0 + $0x3a0] sm:$0xff] }
  0x1d   :  { %191 = vmatpush.msra.mxu3 %v82_v51  ;;  %169 = vmatpush.msra.mxu2 %v65_v53  ;;  %v957_v17 = vld [vmem:[%s1283_s1 + $0x28] sm:$0xff]  ;;  %v615_v20 = vld [vmem:[%s1282_s0 + $0x318] sm:$0xff]  ;;  %v97_v23 = vld [vmem:[%s1282_s0 + $0x210] sm:$0xff] }
  0x1e   :  { %146 = vmatpush.msra.mxu1 %v49_v54  ;;  %124 = vmatpush.msra.mxu0 %v32_v56  ;;  %v599_v22 = vld [vmem:[%s1282_s0 + $0x298] sm:$0xff]  ;;  %v985_v24 = vld [vmem:[%s1283_s1 + $0x8] sm:$0xff]  ;;  %v614_v25 = vld [vmem:[%s1282_s0 + $0x310] sm:$0xff] }
  0x1f   :  { %192 = vmatpush.msra.mxu3 %v81_v55  ;;  %170 = vmatpush.msra.mxu2 %v64_v57  ;;  %v631_v26 = vld [vmem:[%s1282_s0 + $0x398] sm:$0xff]  ;;  %v598_v27 = vld [vmem:[%s1282_s0 + $0x290] sm:$0xff]  ;;  %v96_v28 = vld [vmem:[%s1282_s0 + $0x208] sm:$0xff] }
  0x20   :  { %147 = vmatpush.msra.mxu1 %v48_v58  ;;  %125 = vmatpush.msra.mxu0 %v31_v60  ;;  %v613_v29 = vld [vmem:[%s1282_s0 + $0x308] sm:$0xff]  ;;  %v630_v30 = vld [vmem:[%s1282_s0 + $0x390] sm:$0xff]  ;;  %v1012_v32 = vld [vmem:[%s1283_s1 + $0x38] sm:$0xff] }
  0x21   :  { %193 = vmatpush.msra.mxu3 %v80_v59  ;;  %171 = vmatpush.msra.mxu2 %v63_v61  ;;  %v597_v31 = vld [vmem:[%s1282_s0 + $0x288] sm:$0xff]  ;;  %v95_v33 = vld [vmem:[%s1282_s0 + $0x200] sm:$0xff]  ;;  %v651_v37 = vld [vmem:[%s1282_s0 + $0x438] sm:$0xff] }
  0x22   :  { %126 = vmatmul.f32.vlgmr.msra.gmra.mxu0 %v895_v62  ;;  %148 = vmatpush.msra.mxu1 %v47_v63  ;;  %v612_v34 = vld [vmem:[%s1282_s0 + $0x300] sm:$0xff]  ;;  %v629_v35 = vld [vmem:[%s1282_s0 + $0x388] sm:$0xff]  ;;  %v611_v40 = vld [vmem:[%s1282_s0 + $0x2f8] sm:$0xff] }
  0x23   :  { %210 = vmatpush.msrb.mxu0 %v102_v0  ;;  %409 = vmatpush.msrb.mxu2 %v619_v1  ;;  %v596_v36 = vld [vmem:[%s1282_s0 + $0x280] sm:$0xff]  ;;  %v595_v42 = vld [vmem:[%s1282_s0 + $0x278] sm:$0xff]  ;;  %v650_v43 = vld [vmem:[%s1282_s0 + $0x430] sm:$0xff] }
  0x24   :  { %194 = vmatpush.msra.mxu3 %v79_v2  ;;  %386 = vmatpush.msrb.mxu1 %v603_v3  ;;  %v1033_v38 = vld [vmem:[%s1283_s1 + $0x40] sm:$0xff]  ;;  %v1058_v44 = vld [vmem:[%s1283_s1 + $0x30] sm:$0xff]  ;;  %v627_v46 = vld [vmem:[%s1282_s0 + $0x378] sm:$0xff] }
  0x25   :  { %211 = vmatpush.msrb.mxu0 %v101_v4  ;;  %410 = vmatpush.msrb.mxu2 %v618_v5  ;;  %v1038_v39 = vld [vmem:[%s1283_s1 + $0x20] sm:$0xff]  ;;  %v610_v45 = vld [vmem:[%s1282_s0 + $0x2f0] sm:$0xff]  ;;  %v649_v48 = vld [vmem:[%s1282_s0 + $0x428] sm:$0xff] }
  0x26   :  { %432 = vmatpush.msrb.mxu3 %v635_v6  ;;  %387 = vmatpush.msrb.mxu1 %v602_v7  ;;  %v628_v41 = vld [vmem:[%s1282_s0 + $0x380] sm:$0xff]  ;;  %v594_v47 = vld [vmem:[%s1282_s0 + $0x270] sm:$0xff]  ;;  %v609_v49 = vld [vmem:[%s1282_s0 + $0x2e8] sm:$0xff] }
  0x27   :  { %212 = vmatpush.msrb.mxu0 %v100_v8  ;;  %411 = vmatpush.msrb.mxu2 %v617_v9  ;;  %v626_v50 = vld [vmem:[%s1282_s0 + $0x370] sm:$0xff]  ;;  %v593_v51 = vld [vmem:[%s1282_s0 + $0x268] sm:$0xff]  ;;  %v648_v52 = vld [vmem:[%s1282_s0 + $0x420] sm:$0xff] }
  0x28   :  { %433 = vmatpush.msrb.mxu3 %v634_v10  ;;  %388 = vmatpush.msrb.mxu1 %v601_v11  ;;  %v608_v53 = vld [vmem:[%s1282_s0 + $0x2e0] sm:$0xff]  ;;  %v625_v54 = vld [vmem:[%s1282_s0 + $0x368] sm:$0xff]  ;;  %v647_v56 = vld [vmem:[%s1282_s0 + $0x418] sm:$0xff] }
  0x29   :  { %172 = vmatmul.f32.vlgmr.msra.gmra.mxu2 %v940_v12  ;;  %213 = vmatpush.msrb.mxu0 %v99_v13  ;;  %v592_v55 = vld [vmem:[%s1282_s0 + $0x260] sm:$0xff]  ;;  %v607_v57 = vld [vmem:[%s1282_s0 + $0x2d8] sm:$0xff]  ;;  %v1103_v58 = vld [vmem:[%s1283_s1 + $0x48] sm:$0xff] }
  0x2a   :  { %412 = vmatpush.msrb.mxu2 %v616_v14  ;;  %434 = vmatpush.msrb.mxu3 %v633_v15  ;;  %v624_v59 = vld [vmem:[%s1282_s0 + $0x360] sm:$0xff]  ;;  %v591_v60 = vld [vmem:[%s1282_s0 + $0x258] sm:$0xff]  ;;  %v646_v61 = vld [vmem:[%s1282_s0 + $0x410] sm:$0xff] }
  0x2b   :  { %389 = vmatpush.msrb.mxu1 %v600_v16  ;;  %129 = vmatmul.f32.gmra.mxu0 %v957_v17  ;;  %v606_v63 = vld [vmem:[%s1282_s0 + $0x2d0] sm:$0xff]  ;;  %v623_v0 = vld [vmem:[%s1282_s0 + $0x358] sm:$0xff]  ;;  %v645_v2 = vld [vmem:[%s1282_s0 + $0x408] sm:$0xff] }
  0x2c   :  { %195 = vmatmul.f32.vlgmr.msra.gmra.mxu3 %v963_v18  ;;  %214 = vmatpush.msrb.mxu0 %v98_v19  ;;  %v590_v1 = vld [vmem:[%s1282_s0 + $0x250] sm:$0xff]  ;;  %v605_v3 = vld [vmem:[%s1282_s0 + $0x2c8] sm:$0xff]  ;;  %v644_v6 = vld [vmem:[%s1282_s0 + $0x400] sm:$0xff] }
  0x2d   :  { %413 = vmatpush.msrb.mxu2 %v615_v20  ;;  %435 = vmatpush.msrb.mxu3 %v632_v21  ;;  %v622_v4 = vld [vmem:[%s1282_s0 + $0x350] sm:$0xff]  ;;  %v589_v5 = vld [vmem:[%s1282_s0 + $0x248] sm:$0xff]  ;;  %v604_v7 = vld [vmem:[%s1282_s0 + $0x2c0] sm:$0xff] }
  0x2e   :  { %390 = vmatpush.msrb.mxu1 %v599_v22  ;;  %215 = vmatpush.msrb.mxu0 %v97_v23  ;;  %v621_v8 = vld [vmem:[%s1282_s0 + $0x348] sm:$0xff]  ;;  %v588_v9 = vld [vmem:[%s1282_s0 + $0x240] sm:$0xff]  ;;  %v643_v10 = vld [vmem:[%s1282_s0 + $0x3f8] sm:$0xff] }
  0x2f   :  { %149 = vmatmul.f32.vlgmr.msra.gmra.mxu1 %v985_v24  ;;  %414 = vmatpush.msrb.mxu2 %v614_v25  ;;  %v620_v11 = vld [vmem:[%s1282_s0 + $0x340] sm:$0xff]  ;;  %v659_v13 = vld [vmem:[%s1282_s0 + $0x478] sm:$0xff]  ;;  %v642_v14 = vld [vmem:[%s1282_s0 + $0x3f0] sm:$0xff] }
  0x30   :  { %436 = vmatpush.msrb.mxu3 %v631_v26  ;;  %391 = vmatpush.msrb.mxu1 %v598_v27  ;;  %v658_v15 = vld [vmem:[%s1282_s0 + $0x470] sm:$0xff]  ;;  %v641_v16 = vld [vmem:[%s1282_s0 + $0x3e8] sm:$0xff]  ;;  %v656_v20 = vld [vmem:[%s1282_s0 + $0x460] sm:$0xff] }
  0x31   :  { %216 = vmatpush.msrb.mxu0 %v96_v28  ;;  %415 = vmatpush.msrb.mxu2 %v613_v29  ;;  %v657_v19 = vld [vmem:[%s1282_s0 + $0x468] sm:$0xff]  ;;  %v655_v21 = vld [vmem:[%s1282_s0 + $0x458] sm:$0xff]  ;;  %v638_v22 = vld [vmem:[%s1282_s0 + $0x3d0] sm:$0xff] }
  0x32   :  { %437 = vmatpush.msrb.mxu3 %v630_v30  ;;  %392 = vmatpush.msrb.mxu1 %v597_v31  ;;  %v654_v23 = vld [vmem:[%s1282_s0 + $0x450] sm:$0xff]  ;;  %v653_v25 = vld [vmem:[%s1282_s0 + $0x448] sm:$0xff]  ;;  %v652_v26 = vld [vmem:[%s1282_s0 + $0x440] sm:$0xff] }
  0x33   :  { %175 = vmatmul.f32.gmra.mxu2 %v1012_v32  ;;  %217 = vmatpush.msrb.mxu0 %v95_v33 }
  0x34   :  { %416 = vmatpush.msrb.mxu2 %v612_v34  ;;  %438 = vmatpush.msrb.mxu3 %v629_v35 }
  0x35   :  { %393 = vmatpush.msrb.mxu1 %v596_v36  ;;  %455 = vmatpush.msra.mxu0 %v651_v37 }
  0x36   :  { %198 = vmatmul.f32.gmra.mxu3 %v1033_v38  ;;  %586 = vmatmul.msk.f32.vlgmr.msrb.gmra.mxu0 %vm103_vm0, %v1038_v39 }
  0x37   :  { %417 = vmatpush.msrb.mxu2 %v611_v40  ;;  %439 = vmatpush.msrb.mxu3 %v628_v41 }
  0x38   :  { %394 = vmatpush.msrb.mxu1 %v595_v42  ;;  %456 = vmatpush.msra.mxu0 %v650_v43 }
  0x39   :  { %152 = vmatmul.f32.gmra.mxu1 %v1058_v44  ;;  %418 = vmatpush.msrb.mxu2 %v610_v45 }
  0x3a   :  { %440 = vmatpush.msrb.mxu3 %v627_v46  ;;  %395 = vmatpush.msrb.mxu1 %v594_v47 }
  0x3b   :  { %457 = vmatpush.msra.mxu0 %v649_v48  ;;  %419 = vmatpush.msrb.mxu2 %v609_v49 }
  0x3c   :  { %441 = vmatpush.msrb.mxu3 %v626_v50  ;;  %396 = vmatpush.msrb.mxu1 %v593_v51 }
  0x3d   :  { %458 = vmatpush.msra.mxu0 %v648_v52  ;;  %420 = vmatpush.msrb.mxu2 %v608_v53 }
  0x3e   :  { %442 = vmatpush.msrb.mxu3 %v625_v54  ;;  %397 = vmatpush.msrb.mxu1 %v592_v55 }
  0x3f   :  { %459 = vmatpush.msra.mxu0 %v647_v56  ;;  %421 = vmatpush.msrb.mxu2 %v607_v57 }
  0x40   :  { %587 = vmatmul.msk.f32.gmra.mxu0 %vm103_vm0, %v1103_v58  ;;  %443 = vmatpush.msrb.mxu3 %v624_v59 }
  0x41   :  { %398 = vmatpush.msrb.mxu1 %v591_v60  ;;  %460 = vmatpush.msra.mxu0 %v646_v61 }
  0x42   :  { %422 = vmatpush.msrb.mxu2 %v606_v63  ;;  %444 = vmatpush.msrb.mxu3 %v623_v0 }
  0x43   :  { %399 = vmatpush.msrb.mxu1 %v590_v1  ;;  %461 = vmatpush.msra.mxu0 %v645_v2 }
  0x44   :  { %423 = vmatpush.msrb.mxu2 %v605_v3  ;;  %445 = vmatpush.msrb.mxu3 %v622_v4 }
  0x45   :  { %400 = vmatpush.msrb.mxu1 %v589_v5  ;;  %462 = vmatpush.msra.mxu0 %v644_v6 }
  0x46   :  { %424 = vmatpush.msrb.mxu2 %v604_v7  ;;  %446 = vmatpush.msrb.mxu3 %v621_v8 }
  0x47   :  { %401 = vmatpush.msrb.mxu1 %v588_v9  ;;  %425 = vmatmul.f32.vlgmr.msrb.gmra.mxu2 %v985_v24  ;;  %v637_v24 = vld [vmem:[%s1282_s0 + $0x3c8] sm:$0xff] }
  0x48   :  { %463 = vmatpush.msra.mxu0 %v643_v10  ;;  %402 = vmatmul.f32.vlgmr.msrb.gmra.mxu1 %v895_v62  ;;  %v640_v62 = vld [vmem:[%s1282_s0 + $0x3e0] sm:$0xff] }
  0x49   :  { %447 = vmatpush.msrb.mxu3 %v620_v11  ;;  %486 = vmatpush.msra.mxu1 %v659_v13  ;;  %v679_v11 = vmov 16.0  }
  0x4a   :  { %448 = vmatmul.f32.vlgmr.msrb.gmra.mxu3 %v940_v12  ;;  %464 = vmatpush.msra.mxu0 %v642_v14  ;;  %v639_v12 = vld [vmem:[%s1282_s0 + $0x3d8] sm:$0xff]  ;;  %669 = vrcp.f32 %v679_v11 }
  0x4b   :  { %487 = vmatpush.msra.mxu1 %v658_v15 }
  0x4c   :  { %465 = vmatpush.msra.mxu0 %v641_v16 }
  0x4d   :  { %488 = vmatpush.msra.mxu1 %v657_v19 }
  0x4e   :  { %466 = vmatpush.msra.mxu0 %v640_v62 }
  0x4f   :  { %489 = vmatpush.msra.mxu1 %v656_v20  ;;  %428 = vmatmul.f32.gmra.mxu2 %v1058_v44 }
  0x50   :  { %467 = vmatpush.msra.mxu0 %v639_v12  ;;  %405 = vmatmul.f32.gmra.mxu1 %v957_v17  ;;  %v636_v17 = vld [vmem:[%s1282_s0 + $0x3c0] sm:$0xff]  ;;  %v670_v13 = vpop.eup %669 }
  0x51   :  { %490 = vmatpush.msra.mxu1 %v655_v21  ;;  %v233_v14 = vmul.f32 16.0, %v670_v13  ;;  %vm237_vm2 = vweird.f32 %v670_v13  ;;  %v680_v21 = vmov 0  }
  0x52   :  { %451 = vmatmul.f32.gmra.mxu3 %v1012_v32  ;;  %468 = vmatpush.msra.mxu0 %v638_v22 }
  0x53   :  { %491 = vmatpush.msra.mxu1 %v654_v23  ;;  %v234_v15 = vsub.f32 1.0, %v233_v14  ;;  %666 = vset.pattern.permute.xlu2 %v680_v21 }
  0x54   :  { %469 = vmatpush.msra.mxu0 %v637_v24  ;;  %668 = vset.pattern.permute.xlu1 %v680_v21 }
  0x55   :  { %492 = vmatpush.msra.mxu1 %v653_v25  ;;  %v235_v16 = vmul.f32 %v670_v13, %v234_v15  ;;  %667 = vset.pattern.permute.xlu0 %v680_v21 }
  0x56   :  { %470 = vmatpush.msra.mxu0 %v636_v17 }
  0x57   :  { %471 = vmatmul.f32.vlgmr.msra.gmra.mxu0 %v963_v18  ;;  %493 = vmatpush.msra.mxu1 %v652_v26  ;;  %v236_v19 = vadd.f32 %v670_v13, %v235_v16 }
  0x58   :  { %660 = vmatmul.msk.f32.vlgmr.msra.gmra.mxu1 %vm103_vm0, %v1038_v39 }
  0x59   :  { %v1240_v62 = vsel %vm237_vm2, %v670_v13, %v236_v19 }
  0x5f   :  { %474 = vmatmul.f32.gmra.mxu0 %v1033_v38 }
  0x60   :  { %661 = vmatmul.msk.f32.gmra.mxu1 %vm103_vm0, %v1103_v58 }
  0x9f   :  { %v127_v27 = vpop.f32.mrf.mxu0 }
  0xa8   :  { %v130_v28 = vpop.f32.mrf.mxu0 }
  0xac   :  { %v150_v29 = vpop.f32.mrf.mxu1  ;;  %v173_v30 = vpop.f32.mrf.mxu2 }
  0xad   :  { %v151_v31 = vadd.f32 %v150_v29, %v127_v27 }
  0xaf   :  { %v174_v32 = vadd.f32 %v173_v30, %v151_v31  ;;  %v196_v33 = vpop.f32.mrf.mxu3 }
  0xb1   :  { %v197_v34 = vadd.f32 %v196_v33, %v174_v32 }
  0xb3   :  { %v219_v35 = vpop.f32.mrf.mxu0 }
  0xb4   :  { %v1212_v18 = vadd.f32 %v219_v35, %v197_v34 }
  0xb6   :  { %v153_v36 = vpop.f32.mrf.mxu1  ;;  %v176_v37 = vpop.f32.mrf.mxu2  ;;  %v226_v38 = vsel %vm225_vm1, %v1212_v18, 0.0  ;;  %v241_v39 = vmul.f32 %v1212_v18, %v1212_v18 }
  0xb7   :  { %v154_v40 = vadd.f32 %v153_v36, %v130_v28  ;;  %227 = vadd.xlane.f32.xlu0 %v226_v38 }
  0xb8   :  { %v243_v41 = vsel %vm225_vm1, %v241_v39, 0.0 }
  0xb9   :  { %v177_v42 = vadd.f32 %v176_v37, %v154_v40  ;;  %v199_v43 = vpop.f32.mrf.mxu3  ;;  %244 = vadd.xlane.f32.xlu2 %v243_v41  ;;  %v27_v40 = vld [vmem:[%s1284_s2] sm:$0xff] }
  0xbb   :  { %v200_v44 = vadd.f32 %v199_v43, %v177_v42 }
  0xbd   :  { %v222_v45 = vpop.f32.mrf.mxu0 }
  0xbe   :  { %v1219_v46 = vadd.f32 %v222_v45, %v200_v44 }
  0xc0   :  { %v229_v47 = vsel %vm225_vm1, %v1219_v46, 0.0  ;;  %v242_v48 = vmul.f32 %v1219_v46, %v1219_v46 }
  0xc1   :  { %230 = vadd.xlane.f32.xlu0 %v229_v47 }
  0xc2   :  { %v246_v49 = vsel %vm225_vm1, %v242_v48, 0.0  ;;  %v29_v48 = vld [vmem:[%s1285_s3] sm:$0xff] }
  0xc3   :  { %247 = vadd.xlane.f32.xlu2 %v246_v49 }
  0xc5   :  { %v403_v50 = vpop.f32.mrf.mxu1 }
  0xca   :  { %v426_v51 = vpop.f32.mrf.mxu2 }
  0xcb   :  { %v427_v54 = vadd.f32 %v426_v51, %v403_v50 }
  0xcd   :  { %v406_v52 = vpop.f32.mrf.mxu1  ;;  %v449_v53 = vpop.f32.mrf.mxu3 }
  0xce   :  { %v450_v55 = vadd.f32 %v449_v53, %v427_v54 }
  0xd2   :  { %v429_v56 = vpop.f32.mrf.mxu2 }
  0xd3   :  { %v430_v60 = vadd.f32 %v429_v56, %v406_v52 }
  0xd4   :  { %v472_v57 = vpop.f32.mrf.mxu0 }
  0xd5   :  { %v473_v58 = vadd.f32 %v472_v57, %v450_v55  ;;  %v495_v59 = vpop.f32.mrf.mxu1  ;;  %v452_v63 = vpop.f32.mrf.mxu3  ;;  %v28_v55 = vld [vmem:[%s1284_s2 + $0x8] sm:$0xff] }
  0xd6   :  { %v453_v2 = vadd.f32 %v452_v63, %v430_v60 }
  0xd7   :  { %v1226_v61 = vadd.f32 %v495_v59, %v473_v58 }
  0xd9   :  { %v501_v0 = vsel %vm225_vm1, %v1226_v61, 0.0  ;;  %v509_v1 = vmul.f32 %v1226_v61, %v1226_v61 }
  0xda   :  { %502 = vadd.xlane.f32.xlu1 %v501_v0 }
  0xdb   :  { %v511_v3 = vsel %vm225_vm1, %v509_v1, 0.0  ;;  %v30_v1 = vld [vmem:[%s1285_s3 + $0x8] sm:$0xff] }
  0xdc   :  { %v475_v4 = vpop.f32.mrf.mxu0  ;;  %512 = vadd.xlane.f32.xlu0 %v511_v3 }
  0xdd   :  { %v476_v5 = vadd.f32 %v475_v4, %v453_v2  ;;  %v498_v6 = vpop.f32.mrf.mxu1 }
  0xdf   :  { %v1233_v7 = vadd.f32 %v498_v6, %v476_v5 }
  0xe1   :  { %v504_v8 = vsel %vm225_vm1, %v1233_v7, 0.0  ;;  %v510_v9 = vmul.f32 %v1233_v7, %v1233_v7 }
  0xe2   :  { %505 = vadd.xlane.f32.xlu1 %v504_v8 }
  0xe3   :  { %v514_v10 = vsel %vm225_vm1, %v510_v9, 0.0 }
  0xea   :  { %515 = vadd.xlane.f32.xlu1 %v514_v10 }
 0x12a   :  { %v228_v20 = vpop.xlane.xlu0 %227 }
 0x12b   :  { %v239_v12 = vmul.f32 %v1240_v62, %v228_v20 }
 0x12c   :  { %v245_v22 = vpop.xlane.xlu2 %244 }
 0x12d   :  { %v251_v23 = vmul.f32 %v239_v12, %v239_v12  ;;  %v249_v24 = vmul.f32 %v245_v22, %v1240_v62 }
 0x12f   :  { %v253_v25 = vsub.f32 %v249_v24, %v251_v23 }
 0x131   :  { %v255_v17 = vmax.f32 %v253_v25, 0.0 }
 0x133   :  { %v257_v26 = vadd.f32 1e-05, %v255_v17 }
 0x134   :  { %v231_v27 = vpop.xlane.xlu0 %230 }
 0x135   :  { %671 = vrsqrt.f32 %v257_v26  ;;  %v240_v28 = vmul.f32 %v1240_v62, %v231_v27  ;;  %vm265_vm4 = vweird.f32 %v257_v26 }
 0x136   :  { %v248_v29 = vpop.xlane.xlu2 %247 }
 0x137   :  { %v252_v30 = vmul.f32 %v240_v28, %v240_v28  ;;  %v250_v31 = vmul.f32 %v248_v29, %v1240_v62 }
 0x139   :  { %v254_v32 = vsub.f32 %v250_v31, %v252_v30 }
 0x13b   :  { %v672_v33 = vpop.eup %671  ;;  %v256_v34 = vmax.f32 %v254_v32, 0.0 }
 0x13c   :  { %v260_v35 = vmul.f32 %v672_v33, %v257_v26  ;;  %vm266_vm3 = vweird.f32 %v672_v33 }
 0x13d   :  { %v258_v36 = vadd.f32 1e-05, %v256_v34  ;;  %vm267_vm5 = vmor %vm265_vm4, %vm266_vm3 }
 0x13e   :  { %v261_v37 = vmul.f32 %v672_v33, %v260_v35 }
 0x13f   :  { %673 = vrsqrt.f32 %v258_v36  ;;  %vm275_vm7 = vweird.f32 %v258_v36 }
 0x140   :  { %v262_v38 = vmul.f32 0.5, %v261_v37 }
 0x142   :  { %v263_v39 = vsub.f32 1.5, %v262_v38 }
 0x144   :  { %v264_v41 = vmul.f32 %v672_v33, %v263_v39 }
 0x145   :  { %v674_v42 = vpop.eup %673 }
 0x146   :  { %v270_v43 = vmul.f32 %v674_v42, %v258_v36  ;;  %v268_v44 = vsel %vm267_vm5, %v672_v33, %v264_v41  ;;  %vm276_vm6 = vweird.f32 %v674_v42 }
 0x147   :  { %v279_v45 = vmul.f32 %v268_v44, %v27_v40  ;;  %vm277_vm8 = vmor %vm275_vm7, %vm276_vm6 }
 0x148   :  { %v271_v47 = vmul.f32 %v674_v42, %v270_v43 }
 0x149   :  { %287 = vperm.xlu2 %666, %v279_v45   ;;  %v281_v49 = vmul.f32 %v279_v45, %v239_v12 }
 0x14a   :  { %v272_v50 = vmul.f32 0.5, %v271_v47 }
 0x14b   :  { %v283_v51 = vsub.f32 %v29_v48, %v281_v49 }
 0x14c   :  { %v273_v52 = vsub.f32 1.5, %v272_v50 }
 0x14d   :  { %v503_v53 = vpop.xlane.xlu1 %502  ;;  %299 = vperm.xlu1 %668, %v283_v51  }
 0x14e   :  { %v507_v54 = vmul.f32 %v503_v53, %v1240_v62  ;;  %v274_v56 = vmul.f32 %v674_v42, %v273_v52 }
 0x14f   :  { %v513_v57 = vpop.xlane.xlu0 %512 }
 0x150   :  { %v519_v58 = vmul.f32 %v507_v54, %v507_v54  ;;  %v517_v59 = vmul.f32 %v513_v57, %v1240_v62  ;;  %v278_v60 = vsel %vm277_vm8, %v674_v42, %v274_v56 }
 0x151   :  { %v280_v63 = vmul.f32 %v278_v60, %v28_v55 }
 0x152   :  { %v521_v0 = vsub.f32 %v517_v59, %v519_v58 }
 0x153   :  { %292 = vperm.xlu0 %667, %v280_v63   ;;  %v282_v2 = vmul.f32 %v280_v63, %v240_v28 }
 0x154   :  { %v523_v3 = vmax.f32 %v521_v0, 0.0 }
 0x155   :  { %v506_v4 = vpop.xlane.xlu1 %505  ;;  %v284_v5 = vsub.f32 %v30_v1, %v282_v2 }
 0x156   :  { %v525_v6 = vadd.f32 1e-05, %v523_v3  ;;  %v508_v8 = vmul.f32 %v506_v4, %v1240_v62 }
 0x157   :  { %304 = vperm.xlu2 %666, %v284_v5  }
 0x158   :  { %675 = vrsqrt.f32 %v525_v6  ;;  %v520_v11 = vmul.f32 %v508_v8, %v508_v8  ;;  %vm533_vm10 = vweird.f32 %v525_v6 }
 0x15d   :  { %v516_v9 = vpop.xlane.xlu1 %515 }
 0x15e   :  { %v676_v10 = vpop.eup %675  ;;  %v518_v13 = vmul.f32 %v516_v9, %v1240_v62 }
 0x15f   :  { %v528_v14 = vmul.f32 %v676_v10, %v525_v6  ;;  %vm534_vm9 = vweird.f32 %v676_v10 }
 0x160   :  { %v522_v15 = vsub.f32 %v518_v13, %v520_v11  ;;  %vm535_vm11 = vmor %vm533_vm10, %vm534_vm9 }
 0x161   :  { %v529_v16 = vmul.f32 %v676_v10, %v528_v14 }
 0x162   :  { %v524_v19 = vmax.f32 %v522_v15, 0.0 }
 0x163   :  { %v530_v20 = vmul.f32 0.5, %v529_v16 }
 0x164   :  { %v526_v12 = vadd.f32 1e-05, %v524_v19 }
 0x165   :  { %v531_v21 = vsub.f32 1.5, %v530_v20 }
 0x166   :  { %677 = vrsqrt.f32 %v526_v12  ;;  %vm543_vm13 = vweird.f32 %v526_v12 }
 0x167   :  { %v532_v22 = vmul.f32 %v676_v10, %v531_v21 }
 0x169   :  { %v536_v23 = vsel %vm535_vm11, %v676_v10, %v532_v22 }
 0x16a   :  { %v547_v24 = vmul.f32 %v536_v23, %v27_v40 }
 0x16c   :  { %v678_v25 = vpop.eup %677  ;;  %555 = vperm.xlu2 %666, %v547_v24   ;;  %v549_v26 = vmul.f32 %v547_v24, %v507_v54 }
 0x16d   :  { %v538_v17 = vmul.f32 %v678_v25, %v526_v12  ;;  %vm544_vm12 = vweird.f32 %v678_v25 }
 0x16e   :  { %v551_v28 = vsub.f32 %v29_v48, %v549_v26  ;;  %vm545_vm14 = vmor %vm543_vm13, %vm544_vm12 }
 0x16f   :  { %v539_v27 = vmul.f32 %v678_v25, %v538_v17 }
 0x171   :  { %v540_v62 = vmul.f32 0.5, %v539_v27 }
 0x173   :  { %v541_v29 = vsub.f32 1.5, %v540_v62 }
 0x174   :  { %567 = vperm.xlu2 %666, %v551_v28  }
 0x175   :  { %v542_v30 = vmul.f32 %v678_v25, %v541_v29 }
 0x177   :  { %v546_v31 = vsel %vm545_vm14, %v678_v25, %v542_v30 }
 0x178   :  { %v548_v32 = vmul.f32 %v546_v31, %v28_v55 }
 0x17a   :  { %560 = vperm.xlu1 %668, %v548_v32   ;;  %v550_v33 = vmul.f32 %v548_v32, %v508_v8 }
 0x17c   :  { %v552_v34 = vsub.f32 %v30_v1, %v550_v33 }
 0x182   :  { %572 = vperm.xlu1 %668, %v552_v34  }
 0x1a3   :  { %v288_v35 = vpop.permute.xlu2 %287 }
 0x1a4   :  { %v295_v36 = vmul.f32 %v288_v35, %v1212_v18 }
 0x1b1   :  { %v305_v37 = vpop.permute.xlu2 %304 }
 0x1bf   :  { %v300_v38 = vpop.permute.xlu1 %299 }
 0x1c0   :  { %v307_v39 = vadd.f32 %v300_v38, %v295_v36 }
 0x1c2   :  { %v309_v40 = vmax.f32 %v307_v39, 0.0 }
 0x1c4   :  { %311 = vst.msk [vmem:[%s1286_s4] sm:$0xff] %vm225_vm1, %v309_v40 }
 0x1c5   :  { %v293_v41 = vpop.permute.xlu0 %292 }
 0x1c6   :  { %v556_v42 = vpop.permute.xlu2 %555  ;;  %v296_v43 = vmul.f32 %v293_v41, %v1219_v46 }
 0x1c7   :  { %v563_v18 = vmul.f32 %v556_v42, %v1226_v61 }
 0x1c8   :  { %v308_v44 = vadd.f32 %v305_v37, %v296_v43 }
 0x1ca   :  { %v310_v45 = vmax.f32 %v308_v44, 0.0 }
 0x1cc   :  { %312 = vst.msk [vmem:[%s1286_s4 + $0x8] sm:$0xff] %vm225_vm1, %v310_v45 }
 0x1ce   :  { %v568_v47 = vpop.permute.xlu2 %567 }
 0x1cf   :  { %v575_v48 = vadd.f32 %v568_v47, %v563_v18 }
 0x1d1   :  { %v577_v49 = vmax.f32 %v575_v48, 0.0 }
 0x1d3   :  { %662 = vst.msk [vmem:[%s1286_s4 + $0x10] sm:$0xff] %vm225_vm1, %v577_v49 }
 0x1ec   :  { %v561_v50 = vpop.permute.xlu1 %560 }
 0x1ed   :  { %v564_v46 = vmul.f32 %v561_v50, %v1233_v7 }
 0x1f4   :  { %v573_v51 = vpop.permute.xlu1 %572 }
 0x1f5   :  { %v576_v52 = vadd.f32 %v573_v51, %v564_v46 }
 0x1f7   :  { %v578_v53 = vmax.f32 %v576_v52, 0.0 }
 0x1f9   :  { %663 = vst.msk [vmem:[%s1286_s4 + $0x18] sm:$0xff] %vm225_vm1, %v578_v53 }

// kernel: _lambda_.27
= control target key start
LH: loop header
LB: loop body
LE: loop exit
PB: predicated region body
PF: predicated region fallthrough
CT: control target
= control target key end

     0   :  { %vm58_vm0 = vcmask 261120   ;;  %vm122_vm1 = vcmask 523264   ;;  %s646_s0 = inlined_call_operand.vmem [shape: f32[2,288,64], index: 0, kind: input, shape index: {}]   ;;  %s647_s1 = inlined_call_operand.vmem [shape: f32[8,288], index: 1, kind: input, shape index: {}]   ;;  %s648_s2 = inlined_call_operand.vmem [shape: f32[8,1], index: 2, kind: input, shape index: {}]   ;;  %s649_s3 = inlined_call_operand.vmem [shape: f32[8,1], index: 3, kind: input, shape index: {}]   ;;  %s650_s4 = inlined_call_operand.vmem [shape: f32[2,8,64], index: 4, kind: output, shape index: {}]  }
   0x1   :  { %v37_v0 = vld [vmem:[%s646_s0 + $0x78] sm:$0xff]  ;;  %v36_v3 = vld [vmem:[%s646_s0 + $0x70] sm:$0xff]  ;;  %v35_v6 = vld [vmem:[%s646_s0 + $0x68] sm:$0xff] }
   0x2   :  { %v53_v1 = vld [vmem:[%s646_s0 + $0xf8] sm:$0xff]  ;;  %62 = vmatpush.msra.mxu0 %v37_v0  ;;  %v52_v4 = vld [vmem:[%s646_s0 + $0xf0] sm:$0xff]  ;;  %v51_v7 = vld [vmem:[%s646_s0 + $0xe8] sm:$0xff] }
   0x3   :  { %v57_v2 = vld [vmem:[%s646_s0 + $0x118] sm:$0xff]  ;;  %82 = vmatpush.msra.mxu1 %v53_v1  ;;  %v56_v5 = vld [vmem:[%s646_s0 + $0x110] sm:$0xff]  ;;  %v55_v8 = vld [vmem:[%s646_s0 + $0x108] sm:$0xff] }
   0x4   :  { %114 = vmatpush.msra.mxu2 %v57_v2  ;;  %63 = vmatpush.msra.mxu0 %v36_v3  ;;  %v34_v9 = vld [vmem:[%s646_s0 + $0x60] sm:$0xff]  ;;  %v328_v11 = vld [vmem:[%s646_s0 + $0x198] sm:$0xff]  ;;  %v327_v13 = vld [vmem:[%s646_s0 + $0x190] sm:$0xff] }
   0x5   :  { %83 = vmatpush.msra.mxu1 %v52_v4  ;;  %v50_v10 = vld [vmem:[%s646_s0 + $0xe0] sm:$0xff]  ;;  %207 = vmatpush.msra.mxu3 %v328_v11  ;;  %v344_v14 = vld [vmem:[%s646_s0 + $0x218] sm:$0xff]  ;;  %v326_v17 = vld [vmem:[%s646_s0 + $0x188] sm:$0xff] }
   0x6   :  { %115 = vmatpush.msra.mxu2 %v56_v5  ;;  %64 = vmatpush.msra.mxu0 %v35_v6  ;;  %v54_v12 = vld [vmem:[%s646_s0 + $0x100] sm:$0xff]  ;;  %v33_v15 = vld [vmem:[%s646_s0 + $0x58] sm:$0xff]  ;;  %v343_v18 = vld [vmem:[%s646_s0 + $0x210] sm:$0xff] }
   0x7   :  { %84 = vmatpush.msra.mxu1 %v51_v7  ;;  %v49_v16 = vld [vmem:[%s646_s0 + $0xd8] sm:$0xff]  ;;  %208 = vmatpush.msra.mxu3 %v327_v13  ;;  %v32_v19 = vld [vmem:[%s646_s0 + $0x50] sm:$0xff]  ;;  %v325_v21 = vld [vmem:[%s646_s0 + $0x180] sm:$0xff] }
   0x8   :  { %116 = vmatpush.msra.mxu2 %v55_v8  ;;  %65 = vmatpush.msra.mxu0 %v34_v9  ;;  %v48_v20 = vld [vmem:[%s646_s0 + $0xd0] sm:$0xff]  ;;  %v342_v22 = vld [vmem:[%s646_s0 + $0x208] sm:$0xff]  ;;  %v324_v25 = vld [vmem:[%s646_s0 + $0x178] sm:$0xff] }
   0x9   :  { %85 = vmatpush.msra.mxu1 %v50_v10  ;;  %209 = vmatpush.msra.mxu3 %v326_v17  ;;  %v31_v23 = vld [vmem:[%s646_s0 + $0x48] sm:$0xff]  ;;  %v341_v26 = vld [vmem:[%s646_s0 + $0x200] sm:$0xff]  ;;  %v323_v29 = vld [vmem:[%s646_s0 + $0x170] sm:$0xff] }
   0xa   :  { %117 = vmatpush.msra.mxu2 %v54_v12  ;;  %66 = vmatpush.msra.mxu0 %v33_v15  ;;  %v47_v24 = vld [vmem:[%s646_s0 + $0xc8] sm:$0xff]  ;;  %v30_v27 = vld [vmem:[%s646_s0 + $0x40] sm:$0xff]  ;;  %v340_v30 = vld [vmem:[%s646_s0 + $0x1f8] sm:$0xff] }
   0xb   :  { %86 = vmatpush.msra.mxu1 %v49_v16  ;;  %210 = vmatpush.msra.mxu3 %v325_v21  ;;  %v46_v28 = vld [vmem:[%s646_s0 + $0xc0] sm:$0xff]  ;;  %v29_v31 = vld [vmem:[%s646_s0 + $0x38] sm:$0xff]  ;;  %v322_v33 = vld [vmem:[%s646_s0 + $0x168] sm:$0xff] }
   0xc   :  { %227 = vmatpush.msrb.mxu2 %v344_v14  ;;  %67 = vmatpush.msra.mxu0 %v32_v19  ;;  %v45_v32 = vld [vmem:[%s646_s0 + $0xb8] sm:$0xff]  ;;  %v339_v34 = vld [vmem:[%s646_s0 + $0x1f0] sm:$0xff]  ;;  %v321_v37 = vld [vmem:[%s646_s0 + $0x160] sm:$0xff] }
   0xd   :  { %87 = vmatpush.msra.mxu1 %v48_v20  ;;  %211 = vmatpush.msra.mxu3 %v324_v25  ;;  %v28_v35 = vld [vmem:[%s646_s0 + $0x30] sm:$0xff]  ;;  %v338_v38 = vld [vmem:[%s646_s0 + $0x1e8] sm:$0xff]  ;;  %v320_v41 = vld [vmem:[%s646_s0 + $0x158] sm:$0xff] }
   0xe   :  { %228 = vmatpush.msrb.mxu2 %v343_v18  ;;  %68 = vmatpush.msra.mxu0 %v31_v23  ;;  %v44_v36 = vld [vmem:[%s646_s0 + $0xb0] sm:$0xff]  ;;  %v27_v39 = vld [vmem:[%s646_s0 + $0x28] sm:$0xff]  ;;  %v337_v42 = vld [vmem:[%s646_s0 + $0x1e0] sm:$0xff] }
   0xf   :  { %88 = vmatpush.msra.mxu1 %v47_v24  ;;  %212 = vmatpush.msra.mxu3 %v323_v29  ;;  %v43_v40 = vld [vmem:[%s646_s0 + $0xa8] sm:$0xff]  ;;  %v26_v43 = vld [vmem:[%s646_s0 + $0x20] sm:$0xff]  ;;  %v319_v45 = vld [vmem:[%s646_s0 + $0x150] sm:$0xff] }
  0x10   :  { %229 = vmatpush.msrb.mxu2 %v342_v22  ;;  %69 = vmatpush.msra.mxu0 %v30_v27  ;;  %v42_v44 = vld [vmem:[%s646_s0 + $0xa0] sm:$0xff]  ;;  %v336_v46 = vld [vmem:[%s646_s0 + $0x1d8] sm:$0xff]  ;;  %v19_v49 = vld [vmem:[%s647_s1 + $0x10] sm:$0xff]  ;;  %v362_v27 = vmov 64.0  }
  0x11   :  { %89 = vmatpush.msra.mxu1 %v46_v28  ;;  %213 = vmatpush.msra.mxu3 %v322_v33  ;;  %v25_v47 = vld [vmem:[%s646_s0 + $0x18] sm:$0xff]  ;;  %v335_v50 = vld [vmem:[%s646_s0 + $0x1d0] sm:$0xff]  ;;  %v318_v53 = vld [vmem:[%s646_s0 + $0x148] sm:$0xff]  ;;  %356 = vrcp.f32 %v362_v27 }
  0x12   :  { %230 = vmatpush.msrb.mxu2 %v341_v26  ;;  %70 = vmatpush.msra.mxu0 %v29_v31  ;;  %v41_v48 = vld [vmem:[%s646_s0 + $0x98] sm:$0xff]  ;;  %v24_v51 = vld [vmem:[%s646_s0 + $0x10] sm:$0xff]  ;;  %v334_v54 = vld [vmem:[%s646_s0 + $0x1c8] sm:$0xff] }
  0x13   :  { %90 = vmatpush.msra.mxu1 %v45_v32  ;;  %214 = vmatpush.msra.mxu3 %v321_v37  ;;  %v40_v52 = vld [vmem:[%s646_s0 + $0x90] sm:$0xff]  ;;  %v23_v55 = vld [vmem:[%s646_s0 + $0x8] sm:$0xff]  ;;  %v317_v57 = vld [vmem:[%s646_s0 + $0x140] sm:$0xff] }
  0x14   :  { %231 = vmatpush.msrb.mxu2 %v340_v30  ;;  %71 = vmatpush.msra.mxu0 %v28_v35  ;;  %v39_v56 = vld [vmem:[%s646_s0 + $0x88] sm:$0xff]  ;;  %v333_v58 = vld [vmem:[%s646_s0 + $0x1c0] sm:$0xff]  ;;  %v316_v63 = vld [vmem:[%s646_s0 + $0x138] sm:$0xff] }
  0x15   :  { %91 = vmatpush.msra.mxu1 %v44_v36  ;;  %215 = vmatpush.msra.mxu3 %v320_v41  ;;  %v22_v59 = vld [vmem:[%s646_s0] sm:$0xff]  ;;  %v18_v62 = vld [vmem:[%s647_s1 + $0x8] sm:$0xff]  ;;  %v332_v0 = vld [vmem:[%s646_s0 + $0x1b8] sm:$0xff] }
  0x16   :  { %232 = vmatpush.msrb.mxu2 %v339_v34  ;;  %72 = vmatpush.msra.mxu0 %v27_v39  ;;  %v38_v60 = vld [vmem:[%s646_s0 + $0x80] sm:$0xff]  ;;  %v348_v1 = vld [vmem:[%s646_s0 + $0x238] sm:$0xff]  ;;  %v315_v2 = vld [vmem:[%s646_s0 + $0x130] sm:$0xff]  ;;  %v363_v34 = vmov 0  }
  0x17   :  { %92 = vmatpush.msra.mxu1 %v43_v40  ;;  %216 = vmatpush.msra.mxu3 %v319_v45  ;;  %v17_v61 = vld [vmem:[%s647_s1] sm:$0xff]  ;;  %v331_v3 = vld [vmem:[%s646_s0 + $0x1b0] sm:$0xff]  ;;  %v314_v5 = vld [vmem:[%s646_s0 + $0x128] sm:$0xff]  ;;  %v357_v28 = vpop.eup %356 }
  0x18   :  { %233 = vmatpush.msrb.mxu2 %v338_v38  ;;  %73 = vmatpush.msra.mxu0 %v26_v43  ;;  %v347_v4 = vld [vmem:[%s646_s0 + $0x230] sm:$0xff]  ;;  %v330_v6 = vld [vmem:[%s646_s0 + $0x1a8] sm:$0xff]  ;;  %v313_v8 = vld [vmem:[%s646_s0 + $0x120] sm:$0xff]  ;;  %v127_v29 = vmul.f32 64.0, %v357_v28  ;;  %vm131_vm2 = vweird.f32 %v357_v28 }
  0x19   :  { %93 = vmatpush.msra.mxu1 %v42_v44  ;;  %312 = vmatmul.msk.f32.vlgmr.msra.gmra.mxu2 %vm58_vm0, %v19_v49  ;;  %v346_v7 = vld [vmem:[%s646_s0 + $0x228] sm:$0xff]  ;;  %v329_v9 = vld [vmem:[%s646_s0 + $0x1a0] sm:$0xff] }
  0x1a   :  { %234 = vmatpush.msrb.mxu2 %v337_v42  ;;  %74 = vmatpush.msra.mxu0 %v25_v47  ;;  %v345_v10 = vld [vmem:[%s646_s0 + $0x220] sm:$0xff]  ;;  %v128_v30 = vsub.f32 1.0, %v127_v29 }
  0x1b   :  { %94 = vmatpush.msra.mxu1 %v41_v48  ;;  %217 = vmatpush.msra.mxu3 %v318_v53 }
  0x1c   :  { %235 = vmatpush.msrb.mxu2 %v336_v46  ;;  %75 = vmatpush.msra.mxu0 %v24_v51  ;;  %v129_v31 = vmul.f32 %v357_v28, %v128_v30 }
  0x1d   :  { %95 = vmatpush.msra.mxu1 %v40_v52  ;;  %218 = vmatpush.msra.mxu3 %v317_v57 }
  0x1e   :  { %236 = vmatpush.msrb.mxu2 %v335_v50  ;;  %76 = vmatpush.msra.mxu0 %v23_v55  ;;  %v130_v32 = vadd.f32 %v357_v28, %v129_v31 }
  0x1f   :  { %96 = vmatpush.msra.mxu1 %v39_v56  ;;  %219 = vmatpush.msra.mxu3 %v316_v63  ;;  %v20_v56 = vld [vmem:[%s648_s2] sm:$0xff] }
  0x20   :  { %237 = vmatpush.msrb.mxu2 %v334_v54  ;;  %77 = vmatpush.msra.mxu0 %v22_v59  ;;  %v132_v33 = vsel %vm131_vm2, %v357_v28, %v130_v32 }
  0x21   :  { %97 = vmatpush.msra.mxu1 %v38_v60  ;;  %78 = vmatmul.f32.vlgmr.msra.gmra.mxu0 %v17_v61  ;;  %v21_v60 = vld [vmem:[%s649_s3] sm:$0xff] }
  0x22   :  { %238 = vmatpush.msrb.mxu2 %v333_v58  ;;  %98 = vmatmul.f32.vlgmr.msra.gmra.mxu1 %v18_v62 }
  0x23   :  { %259 = vmatpush.msrb.mxu0 %v348_v1  ;;  %220 = vmatpush.msra.mxu3 %v315_v2 }
  0x24   :  { %239 = vmatpush.msrb.mxu2 %v332_v0  ;;  %353 = vset.pattern.permute.xlu2 %v363_v34 }
  0x25   :  { %260 = vmatpush.msrb.mxu0 %v347_v4  ;;  %221 = vmatpush.msra.mxu3 %v314_v5 }
  0x26   :  { %240 = vmatpush.msrb.mxu2 %v331_v3  ;;  %354 = vset.pattern.permute.xlu0 %v363_v34 }
  0x27   :  { %261 = vmatpush.msrb.mxu0 %v346_v7  ;;  %222 = vmatpush.msra.mxu3 %v313_v8 }
  0x28   :  { %241 = vmatpush.msrb.mxu2 %v330_v6  ;;  %223 = vmatmul.f32.vlgmr.msra.gmra.mxu3 %v17_v61 }
  0x29   :  { %262 = vmatpush.msrb.mxu0 %v345_v10  ;;  %355 = vset.pattern.permute.xlu1 %v363_v34 }
  0x2a   :  { %242 = vmatpush.msrb.mxu2 %v329_v9  ;;  %349 = vmatmul.msk.f32.vlgmr.msrb.gmra.mxu0 %vm58_vm0, %v19_v49 }
  0x2b   :  { %243 = vmatmul.f32.vlgmr.msrb.gmra.mxu2 %v18_v62 }
  0x9c   :  { %v119_v13 = vpop.f32.mrf.mxu2 }
  0x9e   :  { %v79_v11 = vpop.f32.mrf.mxu0 }
  0x9f   :  { %v99_v12 = vpop.f32.mrf.mxu1 }
  0xa0   :  { %v100_v14 = vadd.f32 %v99_v12, %v79_v11 }
  0xa2   :  { %v616_v15 = vadd.f32 %v119_v13, %v100_v14 }
  0xa4   :  { %v123_v16 = vsel %vm122_vm1, %v616_v15, 0.0  ;;  %v134_v17 = vmul.f32 %v616_v15, %v616_v15 }
  0xa5   :  { %124 = vadd.xlane.f32.xlu0 %v123_v16 }
  0xa6   :  { %v135_v18 = vsel %vm122_vm1, %v134_v17, 0.0 }
  0xa7   :  { %136 = vadd.xlane.f32.xlu1 %v135_v18  ;;  %v264_v21 = vpop.f32.mrf.mxu0 }
  0xab   :  { %v224_v19 = vpop.f32.mrf.mxu3 }
  0xae   :  { %v244_v20 = vpop.f32.mrf.mxu2 }
  0xaf   :  { %v245_v22 = vadd.f32 %v244_v20, %v224_v19 }
  0xb1   :  { %v623_v23 = vadd.f32 %v264_v21, %v245_v22 }
  0xb3   :  { %v267_v24 = vsel %vm122_vm1, %v623_v23, 0.0  ;;  %v271_v25 = vmul.f32 %v623_v23, %v623_v23 }
  0xb4   :  { %268 = vadd.xlane.f32.xlu0 %v267_v24 }
  0xb5   :  { %v272_v26 = vsel %vm122_vm1, %v271_v25, 0.0 }
  0xb6   :  { %273 = vadd.xlane.f32.xlu1 %v272_v26 }
 0x118   :  { %v125_v35 = vpop.xlane.xlu0 %124 }
 0x119   :  { %v133_v36 = vmul.f32 %v132_v33, %v125_v35 }
 0x11a   :  { %v137_v37 = vpop.xlane.xlu1 %136 }
 0x11b   :  { %v139_v38 = vmul.f32 %v133_v36, %v133_v36  ;;  %v138_v39 = vmul.f32 %v137_v37, %v132_v33 }
 0x11d   :  { %v140_v40 = vsub.f32 %v138_v39, %v139_v38 }
 0x11f   :  { %v141_v41 = vmax.f32 %v140_v40, 0.0 }
 0x121   :  { %v142_v42 = vadd.f32 1e-05, %v141_v41 }
 0x123   :  { %358 = vrsqrt.f32 %v142_v42  ;;  %vm149_vm4 = vweird.f32 %v142_v42 }
 0x127   :  { %v269_v43 = vpop.xlane.xlu0 %268 }
 0x128   :  { %v270_v44 = vmul.f32 %v269_v43, %v132_v33 }
 0x129   :  { %v274_v45 = vpop.xlane.xlu1 %273  ;;  %v359_v46 = vpop.eup %358 }
 0x12a   :  { %v276_v47 = vmul.f32 %v270_v44, %v270_v44  ;;  %v275_v48 = vmul.f32 %v274_v45, %v132_v33  ;;  %v144_v49 = vmul.f32 %v359_v46, %v142_v42  ;;  %vm150_vm3 = vweird.f32 %v359_v46 }
 0x12b   :  { %vm151_vm5 = vmor %vm149_vm4, %vm150_vm3 }
 0x12c   :  { %v277_v50 = vsub.f32 %v275_v48, %v276_v47  ;;  %v145_v51 = vmul.f32 %v359_v46, %v144_v49 }
 0x12e   :  { %v278_v52 = vmax.f32 %v277_v50, 0.0  ;;  %v146_v53 = vmul.f32 0.5, %v145_v51 }
 0x130   :  { %v279_v54 = vadd.f32 1e-05, %v278_v52  ;;  %v147_v55 = vsub.f32 1.5, %v146_v53 }
 0x132   :  { %360 = vrsqrt.f32 %v279_v54  ;;  %v148_v57 = vmul.f32 %v359_v46, %v147_v55  ;;  %vm286_vm7 = vweird.f32 %v279_v54 }
 0x134   :  { %v152_v58 = vsel %vm151_vm5, %v359_v46, %v148_v57 }
 0x135   :  { %v153_v59 = vmul.f32 %v152_v58, %v20_v56 }
 0x137   :  { %158 = vperm.xlu2 %353, %v153_v59   ;;  %v154_v62 = vmul.f32 %v153_v59, %v133_v36 }
 0x138   :  { %v361_v61 = vpop.eup %360 }
 0x139   :  { %v281_v63 = vmul.f32 %v361_v61, %v279_v54  ;;  %v155_v0 = vsub.f32 %v21_v60, %v154_v62  ;;  %vm287_vm6 = vweird.f32 %v361_v61 }
 0x13a   :  { %vm288_vm8 = vmor %vm286_vm7, %vm287_vm6 }
 0x13b   :  { %v282_v1 = vmul.f32 %v361_v61, %v281_v63  ;;  %164 = vperm.xlu0 %354, %v155_v0  }
 0x13d   :  { %v283_v2 = vmul.f32 0.5, %v282_v1 }
 0x13f   :  { %v284_v3 = vsub.f32 1.5, %v283_v2 }
 0x141   :  { %v285_v4 = vmul.f32 %v361_v61, %v284_v3 }
 0x143   :  { %v289_v5 = vsel %vm288_vm8, %v361_v61, %v285_v4 }
 0x144   :  { %v290_v6 = vmul.f32 %v289_v5, %v20_v56 }
 0x146   :  { %v291_v7 = vmul.f32 %v290_v6, %v270_v44  ;;  %295 = vperm.xlu2 %353, %v290_v6  }
 0x148   :  { %v292_v8 = vsub.f32 %v21_v60, %v291_v7 }
 0x14a   :  { %301 = vperm.xlu1 %355, %v292_v8  }
 0x191   :  { %v159_v9 = vpop.permute.xlu2 %158 }
 0x192   :  { %v161_v10 = vmul.f32 %v159_v9, %v616_v15 }
 0x1a0   :  { %v296_v14 = vpop.permute.xlu2 %295 }
 0x1a1   :  { %v298_v16 = vmul.f32 %v296_v14, %v623_v23 }
 0x1ad   :  { %v165_v11 = vpop.permute.xlu0 %164 }
 0x1ae   :  { %v167_v12 = vadd.f32 %v165_v11, %v161_v10 }
 0x1b0   :  { %v168_v13 = vmax.f32 %v167_v12, 0.0 }
 0x1b2   :  { %169 = vst.msk [vmem:[%s650_s4] sm:$0xff] %vm122_vm1, %v168_v13 }
 0x1bc   :  { %v302_v17 = vpop.permute.xlu1 %301 }
 0x1bd   :  { %v304_v18 = vadd.f32 %v302_v17, %v298_v16 }
 0x1bf   :  { %v305_v19 = vmax.f32 %v304_v18, 0.0 }
 0x1c1   :  { %350 = vst.msk [vmem:[%s650_s4 + $0x8] sm:$0xff] %vm122_vm1, %v305_v19 }

// kernel: _lambda_.28
= control target key start
LH: loop header
LB: loop body
LE: loop exit
PB: predicated region body
PF: predicated region fallthrough
CT: control target
= control target key end

     0   :  { %vm57_vm0 = vcmask 130048   ;;  %s704_s0 = inlined_call_operand.vmem [shape: f32[2,144,256], index: 0, kind: input, shape index: {}]   ;;  %s705_s1 = inlined_call_operand.vmem [shape: f32[8,144], index: 1, kind: input, shape index: {}]   ;;  %s706_s2 = inlined_call_operand.vmem [shape: f32[8,1], index: 2, kind: input, shape index: {}]   ;;  %s707_s3 = inlined_call_operand.vmem [shape: f32[8,1], index: 3, kind: input, shape index: {}]   ;;  %s708_s4 = inlined_call_operand.vmem [shape: f32[2,8,256], index: 4, kind: output, shape index: {}]  }
   0x1   :  { %v52_v0 = vld [vmem:[%s704_s0 + $0xf8] sm:$0xff]  ;;  %v50_v1 = vld [vmem:[%s704_s0 + $0xe8] sm:$0xff]  ;;  %v392_v2 = vld [vmem:[%s704_s0 + $0x230] sm:$0xff] }
   0x2   :  { %101 = vmatpush.msra.mxu2 %v52_v0  ;;  %v51_v3 = vld [vmem:[%s704_s0 + $0xf0] sm:$0xff]  ;;  %v48_v4 = vld [vmem:[%s704_s0 + $0xd8] sm:$0xff]  ;;  %262 = vmatpush.msra.mxu3 %v392_v2  ;;  %v390_v5 = vld [vmem:[%s704_s0 + $0x220] sm:$0xff] }
   0x3   :  { %61 = vmatpush.msra.mxu0 %v51_v3  ;;  %v49_v6 = vld [vmem:[%s704_s0 + $0xe0] sm:$0xff]  ;;  %v389_v7 = vld [vmem:[%s704_s0 + $0x218] sm:$0xff]  ;;  %v47_v8 = vld [vmem:[%s704_s0 + $0xd0] sm:$0xff] }
   0x4   :  { %102 = vmatpush.msra.mxu2 %v50_v1  ;;  %v46_v9 = vld [vmem:[%s704_s0 + $0xc8] sm:$0xff]  ;;  %263 = vmatpush.msra.mxu3 %v390_v5  ;;  %v55_v11 = vld [vmem:[%s704_s0 + $0x110] sm:$0xff]  ;;  %v45_v12 = vld [vmem:[%s704_s0 + $0xc0] sm:$0xff] }
   0x5   :  { %62 = vmatpush.msra.mxu0 %v49_v6  ;;  %v387_v10 = vld [vmem:[%s704_s0 + $0x208] sm:$0xff]  ;;  %v53_v13 = vld [vmem:[%s704_s0 + $0x100] sm:$0xff]  ;;  %v44_v14 = vld [vmem:[%s704_s0 + $0xb8] sm:$0xff]  ;;  %95 = vmatpush.msra.mxu1 %v55_v11 }
   0x6   :  { %103 = vmatpush.msra.mxu2 %v48_v4  ;;  %268 = vmatpush.msrb.mxu3 %v389_v7  ;;  %v385_v15 = vld [vmem:[%s704_s0 + $0x1f8] sm:$0xff]  ;;  %v43_v16 = vld [vmem:[%s704_s0 + $0xb0] sm:$0xff]  ;;  %v42_v18 = vld [vmem:[%s704_s0 + $0xa8] sm:$0xff] }
   0x7   :  { %63 = vmatpush.msra.mxu0 %v47_v8  ;;  %v388_v17 = vld [vmem:[%s704_s0 + $0x210] sm:$0xff]  ;;  %96 = vmatpush.msra.mxu1 %v53_v13  ;;  %v383_v19 = vld [vmem:[%s704_s0 + $0x1e8] sm:$0xff]  ;;  %v41_v20 = vld [vmem:[%s704_s0 + $0xa0] sm:$0xff] }
   0x8   :  { %104 = vmatpush.msra.mxu2 %v46_v9  ;;  %269 = vmatpush.msrb.mxu3 %v387_v10  ;;  %v386_v21 = vld [vmem:[%s704_s0 + $0x200] sm:$0xff]  ;;  %v40_v22 = vld [vmem:[%s704_s0 + $0x98] sm:$0xff]  ;;  %v39_v24 = vld [vmem:[%s704_s0 + $0x90] sm:$0xff] }
   0x9   :  { %64 = vmatpush.msra.mxu0 %v45_v12  ;;  %228 = vmatpush.msrb.mxu1 %v388_v17  ;;  %v381_v23 = vld [vmem:[%s704_s0 + $0x1d8] sm:$0xff]  ;;  %v384_v25 = vld [vmem:[%s704_s0 + $0x1f0] sm:$0xff]  ;;  %v38_v26 = vld [vmem:[%s704_s0 + $0x88] sm:$0xff] }
   0xa   :  { %105 = vmatpush.msra.mxu2 %v44_v14  ;;  %270 = vmatpush.msrb.mxu3 %v385_v15  ;;  %v379_v27 = vld [vmem:[%s704_s0 + $0x1c8] sm:$0xff]  ;;  %v37_v28 = vld [vmem:[%s704_s0 + $0x80] sm:$0xff]  ;;  %v36_v30 = vld [vmem:[%s704_s0 + $0x78] sm:$0xff] }
   0xb   :  { %65 = vmatpush.msra.mxu0 %v43_v16  ;;  %229 = vmatpush.msrb.mxu1 %v386_v21  ;;  %v382_v29 = vld [vmem:[%s704_s0 + $0x1e0] sm:$0xff]  ;;  %v377_v31 = vld [vmem:[%s704_s0 + $0x1b8] sm:$0xff]  ;;  %v35_v32 = vld [vmem:[%s704_s0 + $0x70] sm:$0xff] }
   0xc   :  { %106 = vmatpush.msra.mxu2 %v42_v18  ;;  %271 = vmatpush.msrb.mxu3 %v383_v19  ;;  %v380_v33 = vld [vmem:[%s704_s0 + $0x1d0] sm:$0xff]  ;;  %v34_v34 = vld [vmem:[%s704_s0 + $0x68] sm:$0xff]  ;;  %v33_v36 = vld [vmem:[%s704_s0 + $0x60] sm:$0xff] }
   0xd   :  { %66 = vmatpush.msra.mxu0 %v41_v20  ;;  %230 = vmatpush.msrb.mxu1 %v384_v25  ;;  %v375_v35 = vld [vmem:[%s704_s0 + $0x1a8] sm:$0xff]  ;;  %v378_v37 = vld [vmem:[%s704_s0 + $0x1c0] sm:$0xff]  ;;  %v32_v38 = vld [vmem:[%s704_s0 + $0x58] sm:$0xff] }
   0xe   :  { %107 = vmatpush.msra.mxu2 %v40_v22  ;;  %272 = vmatpush.msrb.mxu3 %v381_v23  ;;  %v373_v39 = vld [vmem:[%s704_s0 + $0x198] sm:$0xff]  ;;  %v31_v40 = vld [vmem:[%s704_s0 + $0x50] sm:$0xff]  ;;  %v30_v42 = vld [vmem:[%s704_s0 + $0x48] sm:$0xff] }
   0xf   :  { %67 = vmatpush.msra.mxu0 %v39_v24  ;;  %231 = vmatpush.msrb.mxu1 %v382_v29  ;;  %v376_v41 = vld [vmem:[%s704_s0 + $0x1b0] sm:$0xff]  ;;  %v371_v43 = vld [vmem:[%s704_s0 + $0x188] sm:$0xff]  ;;  %v29_v44 = vld [vmem:[%s704_s0 + $0x40] sm:$0xff] }
  0x10   :  { %108 = vmatpush.msra.mxu2 %v38_v26  ;;  %273 = vmatpush.msrb.mxu3 %v379_v27  ;;  %v374_v45 = vld [vmem:[%s704_s0 + $0x1a0] sm:$0xff]  ;;  %v28_v46 = vld [vmem:[%s704_s0 + $0x38] sm:$0xff]  ;;  %v27_v48 = vld [vmem:[%s704_s0 + $0x30] sm:$0xff] }
  0x11   :  { %68 = vmatpush.msra.mxu0 %v37_v28  ;;  %232 = vmatpush.msrb.mxu1 %v380_v33  ;;  %v369_v47 = vld [vmem:[%s704_s0 + $0x178] sm:$0xff]  ;;  %v372_v49 = vld [vmem:[%s704_s0 + $0x190] sm:$0xff]  ;;  %v26_v50 = vld [vmem:[%s704_s0 + $0x28] sm:$0xff] }
  0x12   :  { %109 = vmatpush.msra.mxu2 %v36_v30  ;;  %274 = vmatpush.msrb.mxu3 %v377_v31  ;;  %v367_v51 = vld [vmem:[%s704_s0 + $0x168] sm:$0xff]  ;;  %v25_v53 = vld [vmem:[%s704_s0 + $0x20] sm:$0xff]  ;;  %v24_v54 = vld [vmem:[%s704_s0 + $0x18] sm:$0xff]  ;;  %v409_v30 = vmov 256.0  }
  0x13   :  { %69 = vmatpush.msra.mxu0 %v35_v32  ;;  %233 = vmatpush.msrb.mxu1 %v378_v37  ;;  %v18_v52 = vld [vmem:[%s705_s1 + $0x8] sm:$0xff]  ;;  %v370_v55 = vld [vmem:[%s704_s0 + $0x180] sm:$0xff]  ;;  %v365_v56 = vld [vmem:[%s704_s0 + $0x158] sm:$0xff]  ;;  %403 = vrcp.f32 %v409_v30  ;;  %v410_v37 = vmov 0  }
  0x14   :  { %110 = vmatpush.msra.mxu2 %v34_v34  ;;  %275 = vmatpush.msrb.mxu3 %v375_v35  ;;  %v23_v57 = vld [vmem:[%s704_s0 + $0x10] sm:$0xff]  ;;  %v22_v58 = vld [vmem:[%s704_s0 + $0x8] sm:$0xff]  ;;  %v17_v60 = vld [vmem:[%s705_s1] sm:$0xff] }
  0x15   :  { %70 = vmatpush.msra.mxu0 %v33_v36  ;;  %234 = vmatpush.msrb.mxu1 %v376_v41  ;;  %v368_v59 = vld [vmem:[%s704_s0 + $0x170] sm:$0xff]  ;;  %v363_v61 = vld [vmem:[%s704_s0 + $0x148] sm:$0xff]  ;;  %v56_v62 = vld [vmem:[%s704_s0 + $0x118] sm:$0xff] }
  0x16   :  { %111 = vmatpush.msra.mxu2 %v32_v38  ;;  %276 = vmatpush.msrb.mxu3 %v373_v39  ;;  %v21_v63 = vld [vmem:[%s704_s0] sm:$0xff]  ;;  %v361_v1 = vld [vmem:[%s704_s0 + $0x138] sm:$0xff]  ;;  %v54_v2 = vld [vmem:[%s704_s0 + $0x108] sm:$0xff] }
  0x17   :  { %71 = vmatpush.msra.mxu0 %v31_v40  ;;  %235 = vmatpush.msrb.mxu1 %v374_v45  ;;  %v366_v0 = vld [vmem:[%s704_s0 + $0x160] sm:$0xff]  ;;  %v359_v3 = vld [vmem:[%s704_s0 + $0x128] sm:$0xff]  ;;  %v364_v4 = vld [vmem:[%s704_s0 + $0x150] sm:$0xff] }
  0x18   :  { %112 = vmatpush.msra.mxu2 %v30_v42  ;;  %277 = vmatpush.msrb.mxu3 %v371_v43  ;;  %v393_v5 = vld [vmem:[%s704_s0 + $0x238] sm:$0xff]  ;;  %v362_v6 = vld [vmem:[%s704_s0 + $0x140] sm:$0xff]  ;;  %v391_v7 = vld [vmem:[%s704_s0 + $0x228] sm:$0xff] }
  0x19   :  { %72 = vmatpush.msra.mxu0 %v29_v44  ;;  %236 = vmatpush.msrb.mxu1 %v372_v49  ;;  %v360_v8 = vld [vmem:[%s704_s0 + $0x130] sm:$0xff]  ;;  %v358_v9 = vld [vmem:[%s704_s0 + $0x120] sm:$0xff]  ;;  %v404_v31 = vpop.eup %403 }
  0x1a   :  { %113 = vmatpush.msra.mxu2 %v28_v46  ;;  %278 = vmatpush.msrb.mxu3 %v369_v47  ;;  %v145_v32 = vmul.f32 256.0, %v404_v31  ;;  %vm149_vm1 = vweird.f32 %v404_v31 }
  0x1b   :  { %73 = vmatpush.msra.mxu0 %v27_v48  ;;  %394 = vmatmul.msk.f32.vlgmr.msra.gmra.mxu3 %vm57_vm0, %v18_v52 }
  0x1c   :  { %114 = vmatpush.msra.mxu2 %v26_v50  ;;  %279 = vmatpush.msrb.mxu3 %v367_v51  ;;  %v146_v33 = vsub.f32 1.0, %v145_v32 }
  0x1d   :  { %74 = vmatpush.msra.mxu0 %v25_v53  ;;  %237 = vmatpush.msrb.mxu1 %v370_v55 }
  0x1e   :  { %115 = vmatpush.msra.mxu2 %v24_v54  ;;  %280 = vmatpush.msrb.mxu3 %v365_v56  ;;  %v147_v34 = vmul.f32 %v404_v31, %v146_v33 }
  0x1f   :  { %75 = vmatpush.msra.mxu0 %v23_v57  ;;  %238 = vmatpush.msrb.mxu1 %v368_v59 }
  0x20   :  { %116 = vmatpush.msra.mxu2 %v22_v58  ;;  %281 = vmatpush.msrb.mxu3 %v363_v61  ;;  %v148_v35 = vadd.f32 %v404_v31, %v147_v34  ;;  %v19_v61 = vld [vmem:[%s706_s2] sm:$0xff] }
  0x21   :  { %117 = vmatmul.f32.vlgmr.msra.gmra.mxu2 %v17_v60  ;;  %76 = vmatpush.msra.mxu0 %v21_v63 }
  0x22   :  { %135 = vmatpush.msrb.mxu2 %v56_v62  ;;  %239 = vmatpush.msrb.mxu1 %v366_v0  ;;  %v150_v36 = vsel %vm149_vm1, %v404_v31, %v148_v35 }
  0x23   :  { %282 = vmatpush.msrb.mxu3 %v361_v1  ;;  %77 = vmatmul.f32.vlgmr.msra.gmra.mxu0 %v17_v60 }
  0x24   :  { %136 = vmatpush.msrb.mxu2 %v54_v2  ;;  %356 = vmatmul.msk.f32.vlgmr.msra.gmra.mxu1 %vm57_vm0, %v18_v52 }
  0x25   :  { %283 = vmatpush.msrb.mxu3 %v359_v3  ;;  %240 = vmatpush.msrb.mxu1 %v364_v4  ;;  %v20_v3 = vld [vmem:[%s707_s3] sm:$0xff] }
  0x26   :  { %284 = vmatmul.f32.vlgmr.msrb.gmra.mxu3 %v17_v60  ;;  %302 = vmatpush.msrb.mxu0 %v393_v5 }
  0x27   :  { %241 = vmatpush.msrb.mxu1 %v362_v6  ;;  %400 = vset.pattern.permute.xlu2 %v410_v37 }
  0x28   :  { %303 = vmatpush.msrb.mxu0 %v391_v7  ;;  %401 = vset.pattern.permute.xlu0 %v410_v37 }
  0x29   :  { %357 = vmatmul.msk.f32.vlgmr.msrb.gmra.mxu2 %vm57_vm0, %v18_v52  ;;  %242 = vmatpush.msrb.mxu1 %v360_v8 }
  0x2a   :  { %402 = vset.pattern.permute.xlu1 %v410_v37 }
  0x2b   :  { %243 = vmatpush.msrb.mxu1 %v358_v9  ;;  %395 = vmatmul.msk.f32.vlgmr.msrb.gmra.mxu0 %vm57_vm0, %v18_v52 }
  0x2c   :  { %244 = vmatmul.f32.vlgmr.msrb.gmra.mxu1 %v17_v60 }
  0x9e   :  { %v265_v11 = vpop.f32.mrf.mxu3 }
  0xa0   :  { %v78_v10 = vpop.f32.mrf.mxu0 }
  0xa1   :  { %v98_v12 = vpop.f32.mrf.mxu1 }
  0xa2   :  { %v662_v14 = vadd.f32 %v98_v12, %v78_v10 }
  0xa4   :  { %v118_v13 = vpop.f32.mrf.mxu2  ;;  %v152_v18 = vmul.f32 %v662_v14, %v662_v14 }
  0xa8   :  { %v305_v20 = vpop.f32.mrf.mxu0 }
  0xa9   :  { %v285_v17 = vpop.f32.mrf.mxu3  ;;  %v245_v19 = vpop.f32.mrf.mxu1 }
  0xaa   :  { %v672_v23 = vadd.f32 %v265_v11, %v245_v19  ;;  %v674_v24 = vadd.f32 %v305_v20, %v285_v17 }
  0xac   :  { %v138_v15 = vpop.f32.mrf.mxu2  ;;  %v312_v26 = vmul.f32 %v672_v23, %v672_v23  ;;  %v313_v27 = vmul.f32 %v674_v24, %v674_v24  ;;  %v308_v28 = vadd.f32 %v674_v24, %v672_v23 }
  0xad   :  { %v664_v16 = vadd.f32 %v138_v15, %v118_v13 }
  0xae   :  { %v314_v29 = vadd.f32 %v313_v27, %v312_v26 }
  0xaf   :  { %v141_v21 = vadd.f32 %v664_v16, %v662_v14  ;;  %v153_v22 = vmul.f32 %v664_v16, %v664_v16 }
  0xb1   :  { %142 = vadd.xlane.f32.xlu0 %v141_v21  ;;  %v154_v25 = vadd.f32 %v153_v22, %v152_v18 }
  0xb3   :  { %155 = vadd.xlane.f32.xlu1 %v154_v25 }
  0xb9   :  { %309 = vadd.xlane.f32.xlu0 %v308_v28 }
  0xbb   :  { %315 = vadd.xlane.f32.xlu1 %v314_v29 }
 0x124   :  { %v143_v38 = vpop.xlane.xlu0 %142 }
 0x125   :  { %v151_v39 = vmul.f32 %v150_v36, %v143_v38 }
 0x126   :  { %v156_v40 = vpop.xlane.xlu1 %155 }
 0x127   :  { %v158_v41 = vmul.f32 %v151_v39, %v151_v39  ;;  %v157_v42 = vmul.f32 %v156_v40, %v150_v36 }
 0x129   :  { %v159_v43 = vsub.f32 %v157_v42, %v158_v41 }
 0x12b   :  { %v160_v44 = vmax.f32 %v159_v43, 0.0 }
 0x12c   :  { %v310_v45 = vpop.xlane.xlu0 %309 }
 0x12d   :  { %v161_v46 = vadd.f32 1e-05, %v160_v44  ;;  %v311_v47 = vmul.f32 %v310_v45, %v150_v36 }
 0x12e   :  { %v316_v48 = vpop.xlane.xlu1 %315 }
 0x12f   :  { %405 = vrsqrt.f32 %v161_v46  ;;  %v318_v49 = vmul.f32 %v311_v47, %v311_v47  ;;  %v317_v50 = vmul.f32 %v316_v48, %v150_v36  ;;  %vm168_vm3 = vweird.f32 %v161_v46 }
 0x131   :  { %v319_v51 = vsub.f32 %v317_v50, %v318_v49 }
 0x133   :  { %v320_v52 = vmax.f32 %v319_v51, 0.0 }
 0x135   :  { %v406_v53 = vpop.eup %405  ;;  %v321_v54 = vadd.f32 1e-05, %v320_v52 }
 0x136   :  { %v163_v55 = vmul.f32 %v406_v53, %v161_v46  ;;  %vm169_vm2 = vweird.f32 %v406_v53 }
 0x137   :  { %407 = vrsqrt.f32 %v321_v54  ;;  %vm170_vm4 = vmor %vm168_vm3, %vm169_vm2  ;;  %vm328_vm6 = vweird.f32 %v321_v54 }
 0x138   :  { %v164_v56 = vmul.f32 %v406_v53, %v163_v55 }
 0x13a   :  { %v165_v57 = vmul.f32 0.5, %v164_v56 }
 0x13c   :  { %v166_v58 = vsub.f32 1.5, %v165_v57 }
 0x13d   :  { %v408_v59 = vpop.eup %407 }
 0x13e   :  { %v323_v60 = vmul.f32 %v408_v59, %v321_v54  ;;  %v167_v62 = vmul.f32 %v406_v53, %v166_v58  ;;  %vm329_vm5 = vweird.f32 %v408_v59 }
 0x13f   :  { %vm330_vm7 = vmor %vm328_vm6, %vm329_vm5 }
 0x140   :  { %v324_v63 = vmul.f32 %v408_v59, %v323_v60  ;;  %v171_v0 = vsel %vm170_vm4, %v406_v53, %v167_v62 }
 0x141   :  { %v172_v1 = vmul.f32 %v171_v0, %v19_v61 }
 0x142   :  { %v325_v2 = vmul.f32 0.5, %v324_v63 }
 0x143   :  { %177 = vperm.xlu2 %400, %v172_v1   ;;  %v173_v4 = vmul.f32 %v172_v1, %v151_v39 }
 0x144   :  { %v326_v5 = vsub.f32 1.5, %v325_v2 }
 0x145   :  { %v174_v6 = vsub.f32 %v20_v3, %v173_v4 }
 0x146   :  { %v327_v7 = vmul.f32 %v408_v59, %v326_v5 }
 0x147   :  { %184 = vperm.xlu0 %401, %v174_v6  }
 0x148   :  { %v331_v8 = vsel %vm330_vm7, %v408_v59, %v327_v7 }
 0x149   :  { %v332_v9 = vmul.f32 %v331_v8, %v19_v61 }
 0x14b   :  { %v333_v10 = vmul.f32 %v332_v9, %v311_v47  ;;  %337 = vperm.xlu2 %400, %v332_v9  }
 0x14d   :  { %v334_v11 = vsub.f32 %v20_v3, %v333_v10 }
 0x14f   :  { %344 = vperm.xlu1 %402, %v334_v11  }
 0x19d   :  { %v178_v12 = vpop.permute.xlu2 %177 }
 0x19e   :  { %v180_v13 = vmul.f32 %v178_v12, %v662_v14  ;;  %v181_v15 = vmul.f32 %v178_v12, %v664_v16 }
 0x1a5   :  { %v338_v20 = vpop.permute.xlu2 %337 }
 0x1a6   :  { %v340_v21 = vmul.f32 %v338_v20, %v672_v23  ;;  %v341_v22 = vmul.f32 %v338_v20, %v674_v24 }
 0x1b9   :  { %v185_v17 = vpop.permute.xlu0 %184 }
 0x1ba   :  { %v187_v18 = vadd.f32 %v185_v17, %v180_v13  ;;  %v188_v19 = vadd.f32 %v185_v17, %v181_v15 }
 0x1bc   :  { %189 = vst [vmem:[%s708_s4] sm:$0xff] %v187_v18 }
 0x1bd   :  { %190 = vst [vmem:[%s708_s4 + $0x8] sm:$0xff] %v188_v19 }
 0x1c1   :  { %v345_v25 = vpop.permute.xlu1 %344 }
 0x1c2   :  { %v347_v14 = vadd.f32 %v345_v25, %v340_v21  ;;  %v348_v26 = vadd.f32 %v345_v25, %v341_v22 }
 0x1c4   :  { %396 = vst [vmem:[%s708_s4 + $0x10] sm:$0xff] %v347_v14 }
 0x1c5   :  { %397 = vst [vmem:[%s708_s4 + $0x18] sm:$0xff] %v348_v26 }

// kernel: _lambda_.29
= control target key start
LH: loop header
LB: loop body
LE: loop exit
PB: predicated region body
PF: predicated region fallthrough
CT: control target
= control target key end

     0   :  { %vm132_vm0 = vcmask 64512   ;;  %vm295_vm1 = vcmask 1040384   ;;  %s1538_s0 = inlined_call_operand.vmem [shape: f32[2,392,256], index: 0, kind: input, shape index: {}]   ;;  %s1539_s1 = inlined_call_operand.vmem [shape: f32[1,392], index: 1, kind: input, shape index: {}]   ;;  %s1540_s2 = inlined_call_operand.<no memory space> [shape: f32[1,1], index: 2, kind: input, shape index: {}]   ;;  %s1541_s3 = inlined_call_operand.<no memory space> [shape: f32[1,1], index: 3, kind: input, shape index: {}]   ;;  %s1542_s4 = inlined_call_operand.vmem [shape: f32[2,1,256], index: 4, kind: output, shape index: {0}]   ;;  %s1543_s5 = inlined_call_operand.vmem [shape: f32[2,1,256], index: 5, kind: output, shape index: {1}]  }
   0x1   :  { %v56_v0 = vld [vmem:[%s1538_s0 + $0xf0] sm:$0xff]  ;;  %v122_v2 = vld [vmem:[%s1538_s0 + $0x300] sm:$0xff]  ;;  %v57_v3 = vld [vmem:[%s1538_s0 + $0xf8] sm:$0xff] }
   0x2   :  { %v120_v1 = vld [vmem:[%s1538_s0 + $0x2f0] sm:$0xff]  ;;  %135 = vmatpush.msra.mxu0 %v56_v0  ;;  %v54_v4 = vld [vmem:[%s1538_s0 + $0xe0] sm:$0xff]  ;;  %210 = vmatpush.msra.mxu3 %v122_v2  ;;  %v55_v7 = vld [vmem:[%s1538_s0 + $0xe8] sm:$0xff] }
   0x3   :  { %175 = vmatpush.msra.mxu2 %v120_v1  ;;  %v88_v5 = vld [vmem:[%s1538_s0 + $0x1f0] sm:$0xff]  ;;  %v118_v6 = vld [vmem:[%s1538_s0 + $0x2e0] sm:$0xff]  ;;  %v53_v11 = vld [vmem:[%s1538_s0 + $0xd8] sm:$0xff] }
   0x4   :  { %155 = vmatpush.msra.mxu1 %v88_v5  ;;  %v52_v8 = vld [vmem:[%s1538_s0 + $0xd0] sm:$0xff]  ;;  %215 = vmatpush.msrb.mxu3 %v57_v3  ;;  %v86_v9 = vld [vmem:[%s1538_s0 + $0x1e0] sm:$0xff]  ;;  %v51_v16 = vld [vmem:[%s1538_s0 + $0xc8] sm:$0xff] }
   0x5   :  { %136 = vmatpush.msra.mxu0 %v54_v4  ;;  %v116_v10 = vld [vmem:[%s1538_s0 + $0x2d0] sm:$0xff]  ;;  %176 = vmatpush.msra.mxu2 %v118_v6  ;;  %v50_v12 = vld [vmem:[%s1538_s0 + $0xc0] sm:$0xff]  ;;  %v49_v20 = vld [vmem:[%s1538_s0 + $0xb8] sm:$0xff] }
   0x6   :  { %156 = vmatpush.msra.mxu1 %v86_v9  ;;  %v84_v13 = vld [vmem:[%s1538_s0 + $0x1d0] sm:$0xff]  ;;  %216 = vmatpush.msrb.mxu3 %v55_v7  ;;  %v114_v14 = vld [vmem:[%s1538_s0 + $0x2c0] sm:$0xff]  ;;  %v47_v24 = vld [vmem:[%s1538_s0 + $0xa8] sm:$0xff] }
   0x7   :  { %137 = vmatpush.msra.mxu0 %v52_v8  ;;  %v82_v15 = vld [vmem:[%s1538_s0 + $0x1c0] sm:$0xff]  ;;  %177 = vmatpush.msra.mxu2 %v116_v10  ;;  %v48_v17 = vld [vmem:[%s1538_s0 + $0xb0] sm:$0xff]  ;;  %v45_v28 = vld [vmem:[%s1538_s0 + $0x98] sm:$0xff] }
   0x8   :  { %157 = vmatpush.msra.mxu1 %v84_v13  ;;  %217 = vmatpush.msrb.mxu3 %v53_v11  ;;  %v112_v18 = vld [vmem:[%s1538_s0 + $0x2b0] sm:$0xff]  ;;  %v46_v21 = vld [vmem:[%s1538_s0 + $0xa0] sm:$0xff]  ;;  %v43_v32 = vld [vmem:[%s1538_s0 + $0x88] sm:$0xff] }
   0x9   :  { %138 = vmatpush.msra.mxu0 %v50_v12  ;;  %v80_v19 = vld [vmem:[%s1538_s0 + $0x1b0] sm:$0xff]  ;;  %178 = vmatpush.msra.mxu2 %v114_v14  ;;  %v110_v22 = vld [vmem:[%s1538_s0 + $0x2a0] sm:$0xff]  ;;  %v41_v36 = vld [vmem:[%s1538_s0 + $0x78] sm:$0xff] }
   0xa   :  { %158 = vmatpush.msra.mxu1 %v82_v15  ;;  %218 = vmatpush.msrb.mxu3 %v51_v16  ;;  %v78_v23 = vld [vmem:[%s1538_s0 + $0x1a0] sm:$0xff]  ;;  %v44_v25 = vld [vmem:[%s1538_s0 + $0x90] sm:$0xff]  ;;  %v39_v40 = vld [vmem:[%s1538_s0 + $0x68] sm:$0xff] }
   0xb   :  { %139 = vmatpush.msra.mxu0 %v48_v17  ;;  %179 = vmatpush.msra.mxu2 %v112_v18  ;;  %v108_v26 = vld [vmem:[%s1538_s0 + $0x290] sm:$0xff]  ;;  %v42_v29 = vld [vmem:[%s1538_s0 + $0x80] sm:$0xff]  ;;  %v37_v44 = vld [vmem:[%s1538_s0 + $0x58] sm:$0xff] }
   0xc   :  { %159 = vmatpush.msra.mxu1 %v80_v19  ;;  %219 = vmatpush.msrb.mxu3 %v49_v20  ;;  %v76_v27 = vld [vmem:[%s1538_s0 + $0x190] sm:$0xff]  ;;  %v106_v30 = vld [vmem:[%s1538_s0 + $0x280] sm:$0xff]  ;;  %v35_v48 = vld [vmem:[%s1538_s0 + $0x48] sm:$0xff] }
   0xd   :  { %140 = vmatpush.msra.mxu0 %v46_v21  ;;  %180 = vmatpush.msra.mxu2 %v110_v22  ;;  %v74_v31 = vld [vmem:[%s1538_s0 + $0x180] sm:$0xff]  ;;  %v40_v33 = vld [vmem:[%s1538_s0 + $0x70] sm:$0xff]  ;;  %v33_v52 = vld [vmem:[%s1538_s0 + $0x38] sm:$0xff] }
   0xe   :  { %160 = vmatpush.msra.mxu1 %v78_v23  ;;  %220 = vmatpush.msrb.mxu3 %v47_v24  ;;  %v104_v34 = vld [vmem:[%s1538_s0 + $0x270] sm:$0xff]  ;;  %v38_v37 = vld [vmem:[%s1538_s0 + $0x60] sm:$0xff]  ;;  %v31_v56 = vld [vmem:[%s1538_s0 + $0x28] sm:$0xff] }
   0xf   :  { %141 = vmatpush.msra.mxu0 %v44_v25  ;;  %181 = vmatpush.msra.mxu2 %v108_v26  ;;  %v72_v35 = vld [vmem:[%s1538_s0 + $0x170] sm:$0xff]  ;;  %v102_v38 = vld [vmem:[%s1538_s0 + $0x260] sm:$0xff]  ;;  %v29_v61 = vld [vmem:[%s1538_s0 + $0x18] sm:$0xff] }
  0x10   :  { %161 = vmatpush.msra.mxu1 %v76_v27  ;;  %221 = vmatpush.msrb.mxu3 %v45_v28  ;;  %v70_v39 = vld [vmem:[%s1538_s0 + $0x160] sm:$0xff]  ;;  %v36_v41 = vld [vmem:[%s1538_s0 + $0x50] sm:$0xff]  ;;  %v89_v1 = vld [vmem:[%s1538_s0 + $0x1f8] sm:$0xff] }
  0x11   :  { %142 = vmatpush.msra.mxu0 %v42_v29  ;;  %182 = vmatpush.msra.mxu2 %v106_v30  ;;  %v100_v42 = vld [vmem:[%s1538_s0 + $0x250] sm:$0xff]  ;;  %v34_v45 = vld [vmem:[%s1538_s0 + $0x40] sm:$0xff]  ;;  %v27_v2 = vld [vmem:[%s1538_s0 + $0x8] sm:$0xff] }
  0x12   :  { %162 = vmatpush.msra.mxu1 %v74_v31  ;;  %222 = vmatpush.msrb.mxu3 %v43_v32  ;;  %v68_v43 = vld [vmem:[%s1538_s0 + $0x150] sm:$0xff]  ;;  %v98_v46 = vld [vmem:[%s1538_s0 + $0x240] sm:$0xff]  ;;  %v87_v6 = vld [vmem:[%s1538_s0 + $0x1e8] sm:$0xff] }
  0x13   :  { %143 = vmatpush.msra.mxu0 %v40_v33  ;;  %183 = vmatpush.msra.mxu2 %v104_v34  ;;  %v66_v47 = vld [vmem:[%s1538_s0 + $0x140] sm:$0xff]  ;;  %v32_v49 = vld [vmem:[%s1538_s0 + $0x30] sm:$0xff]  ;;  %v121_v7 = vld [vmem:[%s1538_s0 + $0x2f8] sm:$0xff] }
  0x14   :  { %163 = vmatpush.msra.mxu1 %v72_v35  ;;  %223 = vmatpush.msrb.mxu3 %v41_v36  ;;  %v96_v50 = vld [vmem:[%s1538_s0 + $0x230] sm:$0xff]  ;;  %v30_v53 = vld [vmem:[%s1538_s0 + $0x20] sm:$0xff]  ;;  %v123_v8 = vld [vmem:[%s1538_s0 + $0x308] sm:$0xff] }
  0x15   :  { %144 = vmatpush.msra.mxu0 %v38_v37  ;;  %184 = vmatpush.msra.mxu2 %v102_v38  ;;  %v64_v51 = vld [vmem:[%s1538_s0 + $0x130] sm:$0xff]  ;;  %v94_v54 = vld [vmem:[%s1538_s0 + $0x220] sm:$0xff]  ;;  %v85_v13 = vld [vmem:[%s1538_s0 + $0x1d8] sm:$0xff] }
  0x16   :  { %164 = vmatpush.msra.mxu1 %v70_v39  ;;  %224 = vmatpush.msrb.mxu3 %v39_v40  ;;  %v62_v55 = vld [vmem:[%s1538_s0 + $0x120] sm:$0xff]  ;;  %v28_v57 = vld [vmem:[%s1538_s0 + $0x10] sm:$0xff]  ;;  %v119_v14 = vld [vmem:[%s1538_s0 + $0x2e8] sm:$0xff] }
  0x17   :  { %145 = vmatpush.msra.mxu0 %v36_v41  ;;  %185 = vmatpush.msra.mxu2 %v100_v42  ;;  %v23_v58 = vld [vmem:[%s1539_s1] sm:$0xf]  ;;  %v92_v59 = vld [vmem:[%s1538_s0 + $0x210] sm:$0xff]  ;;  %v83_v17 = vld [vmem:[%s1538_s0 + $0x1c8] sm:$0xff] }
  0x18   :  { %165 = vmatpush.msra.mxu1 %v68_v43  ;;  %225 = vmatpush.msrb.mxu3 %v37_v44  ;;  %v60_v60 = vld [vmem:[%s1538_s0 + $0x110] sm:$0xff]  ;;  %v26_v62 = vld [vmem:[%s1538_s0] sm:$0xff]  ;;  %v1045_v0 = vperm.slane %v23_v58, 2  ;;  %v1053_v3 = vperm.slane %v23_v58, 3  ;;  %v1079_v11 = vperm.slane %v23_v58, 0  ;;  %v1081_v12 = vperm.slane %v23_v58, 1 }
  0x19   :  { %146 = vmatpush.msra.mxu0 %v34_v45  ;;  %186 = vmatpush.msra.mxu2 %v98_v46  ;;  %v90_v63 = vld [vmem:[%s1538_s0 + $0x200] sm:$0xff]  ;;  %v728_v9 = vld [vmem:[%s1538_s0 + $0x3f0] sm:$0xff]  ;;  %v117_v18 = vld [vmem:[%s1538_s0 + $0x2d8] sm:$0xff] }
  0x1a   :  { %166 = vmatpush.msra.mxu1 %v66_v47  ;;  %226 = vmatpush.msrb.mxu3 %v35_v48  ;;  %v58_v4 = vld [vmem:[%s1538_s0 + $0x100] sm:$0xff]  ;;  %v760_v16 = vld [vmem:[%s1538_s0 + $0x4f0] sm:$0xff]  ;;  %v81_v21 = vld [vmem:[%s1538_s0 + $0x1b8] sm:$0xff] }
  0x1b   :  { %147 = vmatpush.msra.mxu0 %v32_v49  ;;  %187 = vmatpush.msra.mxu2 %v96_v50  ;;  %v730_v5 = vld [vmem:[%s1538_s0 + $0x400] sm:$0xff]  ;;  %v724_v19 = vld [vmem:[%s1538_s0 + $0x3d0] sm:$0xff]  ;;  %v115_v22 = vld [vmem:[%s1538_s0 + $0x2c8] sm:$0xff] }
  0x1c   :  { %167 = vmatpush.msra.mxu1 %v64_v51  ;;  %227 = vmatpush.msrb.mxu3 %v33_v52  ;;  %v762_v10 = vld [vmem:[%s1538_s0 + $0x500] sm:$0xff]  ;;  %v756_v24 = vld [vmem:[%s1538_s0 + $0x4d0] sm:$0xff]  ;;  %v79_v25 = vld [vmem:[%s1538_s0 + $0x1a8] sm:$0xff] }
  0x1d   :  { %148 = vmatpush.msra.mxu0 %v30_v53  ;;  %188 = vmatpush.msra.mxu2 %v94_v54  ;;  %v726_v15 = vld [vmem:[%s1538_s0 + $0x3e0] sm:$0xff]  ;;  %v113_v26 = vld [vmem:[%s1538_s0 + $0x2b8] sm:$0xff]  ;;  %v720_v27 = vld [vmem:[%s1538_s0 + $0x3b0] sm:$0xff] }
  0x1e   :  { %168 = vmatpush.msra.mxu1 %v62_v55  ;;  %228 = vmatpush.msrb.mxu3 %v31_v56  ;;  %v758_v20 = vld [vmem:[%s1538_s0 + $0x4e0] sm:$0xff]  ;;  %v77_v29 = vld [vmem:[%s1538_s0 + $0x198] sm:$0xff]  ;;  %v111_v30 = vld [vmem:[%s1538_s0 + $0x2a8] sm:$0xff] }
  0x1f   :  { %149 = vmatpush.msra.mxu0 %v28_v57  ;;  %189 = vmatpush.msra.mxu2 %v92_v59  ;;  %v722_v23 = vld [vmem:[%s1538_s0 + $0x3c0] sm:$0xff]  ;;  %v752_v32 = vld [vmem:[%s1538_s0 + $0x4b0] sm:$0xff]  ;;  %v75_v33 = vld [vmem:[%s1538_s0 + $0x188] sm:$0xff] }
  0x20   :  { %169 = vmatpush.msra.mxu1 %v60_v60  ;;  %229 = vmatpush.msrb.mxu3 %v29_v61  ;;  %v754_v28 = vld [vmem:[%s1538_s0 + $0x4c0] sm:$0xff]  ;;  %v109_v34 = vld [vmem:[%s1538_s0 + $0x298] sm:$0xff]  ;;  %v716_v35 = vld [vmem:[%s1538_s0 + $0x390] sm:$0xff] }
  0x21   :  { %150 = vmatpush.msra.mxu0 %v26_v62  ;;  %190 = vmatpush.msra.mxu2 %v90_v63  ;;  %v718_v31 = vld [vmem:[%s1538_s0 + $0x3a0] sm:$0xff]  ;;  %v73_v37 = vld [vmem:[%s1538_s0 + $0x178] sm:$0xff]  ;;  %v107_v38 = vld [vmem:[%s1538_s0 + $0x288] sm:$0xff] }
  0x22   :  { %191 = vmatmul.f32.vlgmr.msra.gmra.mxu2 %v1045_v0  ;;  %230 = vmatpush.msrb.mxu3 %v27_v2  ;;  %v750_v36 = vld [vmem:[%s1538_s0 + $0x4a0] sm:$0xff]  ;;  %v748_v40 = vld [vmem:[%s1538_s0 + $0x490] sm:$0xff]  ;;  %v71_v41 = vld [vmem:[%s1538_s0 + $0x168] sm:$0xff] }
  0x23   :  { %235 = vmatpush.msrb.mxu0 %v89_v1  ;;  %170 = vmatpush.msra.mxu1 %v58_v4  ;;  %v714_v39 = vld [vmem:[%s1538_s0 + $0x380] sm:$0xff]  ;;  %v105_v42 = vld [vmem:[%s1538_s0 + $0x278] sm:$0xff]  ;;  %v712_v43 = vld [vmem:[%s1538_s0 + $0x370] sm:$0xff] }
  0x24   :  { %698 = vmatmul.msk.f32.vlgmr.msra.gmra.mxu3 %vm132_vm0, %v1053_v3  ;;  %290 = vmatpush.msrb.mxu2 %v123_v8  ;;  %v746_v44 = vld [vmem:[%s1538_s0 + $0x480] sm:$0xff]  ;;  %v69_v45 = vld [vmem:[%s1538_s0 + $0x158] sm:$0xff]  ;;  %v103_v46 = vld [vmem:[%s1538_s0 + $0x268] sm:$0xff] }
  0x25   :  { %467 = vmatpush.msra.mxu3 %v730_v5  ;;  %236 = vmatpush.msrb.mxu0 %v87_v6  ;;  %v710_v47 = vld [vmem:[%s1538_s0 + $0x360] sm:$0xff]  ;;  %v744_v48 = vld [vmem:[%s1538_s0 + $0x470] sm:$0xff]  ;;  %v67_v49 = vld [vmem:[%s1538_s0 + $0x148] sm:$0xff] }
  0x26   :  { %255 = vmatpush.msrb.mxu1 %v121_v7  ;;  %487 = vmatpush.msra.mxu2 %v762_v10  ;;  %v101_v50 = vld [vmem:[%s1538_s0 + $0x258] sm:$0xff]  ;;  %v708_v51 = vld [vmem:[%s1538_s0 + $0x350] sm:$0xff]  ;;  %v742_v52 = vld [vmem:[%s1538_s0 + $0x460] sm:$0xff] }
  0x27   :  { %468 = vmatpush.msra.mxu3 %v728_v9  ;;  %151 = vmatmul.f32.vlgmr.msra.gmra.mxu0 %v1079_v11  ;;  %v65_v53 = vld [vmem:[%s1538_s0 + $0x138] sm:$0xff]  ;;  %v99_v54 = vld [vmem:[%s1538_s0 + $0x248] sm:$0xff]  ;;  %v740_v55 = vld [vmem:[%s1538_s0 + $0x450] sm:$0xff] }
  0x28   :  { %171 = vmatmul.f32.vlgmr.msra.gmra.mxu1 %v1081_v12  ;;  %237 = vmatpush.msrb.mxu0 %v85_v13  ;;  %v706_v56 = vld [vmem:[%s1538_s0 + $0x340] sm:$0xff]  ;;  %v63_v57 = vld [vmem:[%s1538_s0 + $0x128] sm:$0xff]  ;;  %v97_v58 = vld [vmem:[%s1538_s0 + $0x238] sm:$0xff] }
  0x29   :  { %256 = vmatpush.msrb.mxu1 %v119_v14  ;;  %469 = vmatpush.msra.mxu3 %v726_v15  ;;  %v738_v59 = vld [vmem:[%s1538_s0 + $0x440] sm:$0xff]  ;;  %v704_v60 = vld [vmem:[%s1538_s0 + $0x330] sm:$0xff]  ;;  %v61_v61 = vld [vmem:[%s1538_s0 + $0x118] sm:$0xff] }
  0x2a   :  { %488 = vmatpush.msra.mxu2 %v760_v16  ;;  %238 = vmatpush.msrb.mxu0 %v83_v17  ;;  %v95_v62 = vld [vmem:[%s1538_s0 + $0x228] sm:$0xff]  ;;  %v702_v63 = vld [vmem:[%s1538_s0 + $0x320] sm:$0xff]  ;;  %v736_v1 = vld [vmem:[%s1538_s0 + $0x430] sm:$0xff] }
  0x2b   :  { %257 = vmatpush.msrb.mxu1 %v117_v18  ;;  %470 = vmatpush.msra.mxu3 %v724_v19  ;;  %v59_v2 = vld [vmem:[%s1538_s0 + $0x108] sm:$0xff]  ;;  %v93_v4 = vld [vmem:[%s1538_s0 + $0x218] sm:$0xff]  ;;  %v700_v5 = vld [vmem:[%s1538_s0 + $0x310] sm:$0xff] }
  0x2c   :  { %489 = vmatpush.msra.mxu2 %v758_v20  ;;  %239 = vmatpush.msrb.mxu0 %v81_v21  ;;  %v734_v6 = vld [vmem:[%s1538_s0 + $0x420] sm:$0xff]  ;;  %v91_v8 = vld [vmem:[%s1538_s0 + $0x208] sm:$0xff]  ;;  %v732_v10 = vld [vmem:[%s1538_s0 + $0x410] sm:$0xff] }
  0x2d   :  { %258 = vmatpush.msrb.mxu1 %v115_v22  ;;  %471 = vmatpush.msra.mxu3 %v722_v23  ;;  %v794_v7 = vld [vmem:[%s1538_s0 + $0x600] sm:$0xff]  ;;  %v731_v9 = vld [vmem:[%s1538_s0 + $0x408] sm:$0xff]  ;;  %v792_v13 = vld [vmem:[%s1538_s0 + $0x5f0] sm:$0xff] }
  0x2e   :  { %490 = vmatpush.msra.mxu2 %v756_v24  ;;  %240 = vmatpush.msrb.mxu0 %v79_v25  ;;  %v729_v14 = vld [vmem:[%s1538_s0 + $0x3f8] sm:$0xff]  ;;  %v795_v15 = vld [vmem:[%s1538_s0 + $0x608] sm:$0xff]  ;;  %v796_v16 = vld [vmem:[%s1538_s0 + $0x610] sm:$0xff] }
  0x2f   :  { %259 = vmatpush.msrb.mxu1 %v113_v26  ;;  %472 = vmatpush.msra.mxu3 %v720_v27  ;;  %v790_v17 = vld [vmem:[%s1538_s0 + $0x5e0] sm:$0xff]  ;;  %v727_v18 = vld [vmem:[%s1538_s0 + $0x3e8] sm:$0xff]  ;;  %v793_v19 = vld [vmem:[%s1538_s0 + $0x5f8] sm:$0xff] }
  0x30   :  { %491 = vmatpush.msra.mxu2 %v754_v28  ;;  %241 = vmatpush.msrb.mxu0 %v77_v29  ;;  %v763_v20 = vld [vmem:[%s1538_s0 + $0x508] sm:$0xff]  ;;  %v788_v21 = vld [vmem:[%s1538_s0 + $0x5d0] sm:$0xff]  ;;  %v725_v22 = vld [vmem:[%s1538_s0 + $0x3d8] sm:$0xff] }
  0x31   :  { %260 = vmatpush.msrb.mxu1 %v111_v30  ;;  %473 = vmatpush.msra.mxu3 %v718_v31  ;;  %v791_v23 = vld [vmem:[%s1538_s0 + $0x5e8] sm:$0xff]  ;;  %v761_v24 = vld [vmem:[%s1538_s0 + $0x4f8] sm:$0xff]  ;;  %v786_v25 = vld [vmem:[%s1538_s0 + $0x5c0] sm:$0xff] }
  0x32   :  { %492 = vmatpush.msra.mxu2 %v752_v32  ;;  %242 = vmatpush.msrb.mxu0 %v75_v33  ;;  %v723_v26 = vld [vmem:[%s1538_s0 + $0x3c8] sm:$0xff]  ;;  %v789_v27 = vld [vmem:[%s1538_s0 + $0x5d8] sm:$0xff]  ;;  %v784_v29 = vld [vmem:[%s1538_s0 + $0x5b0] sm:$0xff] }
  0x33   :  { %261 = vmatpush.msrb.mxu1 %v109_v34  ;;  %474 = vmatpush.msra.mxu3 %v716_v35  ;;  %v759_v28 = vld [vmem:[%s1538_s0 + $0x4e8] sm:$0xff]  ;;  %v721_v30 = vld [vmem:[%s1538_s0 + $0x3b8] sm:$0xff]  ;;  %v782_v33 = vld [vmem:[%s1538_s0 + $0x5a0] sm:$0xff] }
  0x34   :  { %493 = vmatpush.msra.mxu2 %v750_v36  ;;  %243 = vmatpush.msrb.mxu0 %v73_v37  ;;  %v787_v31 = vld [vmem:[%s1538_s0 + $0x5c8] sm:$0xff]  ;;  %v757_v32 = vld [vmem:[%s1538_s0 + $0x4d8] sm:$0xff]  ;;  %v780_v37 = vld [vmem:[%s1538_s0 + $0x590] sm:$0xff] }
  0x35   :  { %262 = vmatpush.msrb.mxu1 %v107_v38  ;;  %475 = vmatpush.msra.mxu3 %v714_v39  ;;  %v719_v34 = vld [vmem:[%s1538_s0 + $0x3a8] sm:$0xff]  ;;  %v785_v35 = vld [vmem:[%s1538_s0 + $0x5b8] sm:$0xff] }
  0x36   :  { %494 = vmatpush.msra.mxu2 %v748_v40  ;;  %244 = vmatpush.msrb.mxu0 %v71_v41  ;;  %v755_v36 = vld [vmem:[%s1538_s0 + $0x4c8] sm:$0xff]  ;;  %v717_v38 = vld [vmem:[%s1538_s0 + $0x398] sm:$0xff]  ;;  %v778_v41 = vld [vmem:[%s1538_s0 + $0x580] sm:$0xff] }
  0x37   :  { %263 = vmatpush.msrb.mxu1 %v105_v42  ;;  %476 = vmatpush.msra.mxu3 %v712_v43  ;;  %v783_v39 = vld [vmem:[%s1538_s0 + $0x5a8] sm:$0xff]  ;;  %v753_v40 = vld [vmem:[%s1538_s0 + $0x4b8] sm:$0xff] }
  0x38   :  { %495 = vmatpush.msra.mxu2 %v746_v44  ;;  %245 = vmatpush.msrb.mxu0 %v69_v45  ;;  %v715_v42 = vld [vmem:[%s1538_s0 + $0x388] sm:$0xff]  ;;  %v781_v43 = vld [vmem:[%s1538_s0 + $0x598] sm:$0xff]  ;;  %v776_v45 = vld [vmem:[%s1538_s0 + $0x570] sm:$0xff] }
  0x39   :  { %264 = vmatpush.msrb.mxu1 %v103_v46  ;;  %477 = vmatpush.msra.mxu3 %v710_v47  ;;  %v751_v44 = vld [vmem:[%s1538_s0 + $0x4a8] sm:$0xff]  ;;  %v713_v46 = vld [vmem:[%s1538_s0 + $0x378] sm:$0xff] }
  0x3a   :  { %496 = vmatpush.msra.mxu2 %v744_v48  ;;  %246 = vmatpush.msrb.mxu0 %v67_v49  ;;  %v779_v47 = vld [vmem:[%s1538_s0 + $0x588] sm:$0xff]  ;;  %v749_v48 = vld [vmem:[%s1538_s0 + $0x498] sm:$0xff]  ;;  %v774_v49 = vld [vmem:[%s1538_s0 + $0x560] sm:$0xff] }
  0x3b   :  { %265 = vmatpush.msrb.mxu1 %v101_v50  ;;  %478 = vmatpush.msra.mxu3 %v708_v51  ;;  %v711_v50 = vld [vmem:[%s1538_s0 + $0x368] sm:$0xff]  ;;  %v777_v51 = vld [vmem:[%s1538_s0 + $0x578] sm:$0xff] }
  0x3c   :  { %497 = vmatpush.msra.mxu2 %v742_v52  ;;  %247 = vmatpush.msrb.mxu0 %v65_v53  ;;  %v772_v52 = vld [vmem:[%s1538_s0 + $0x550] sm:$0xff]  ;;  %v709_v53 = vld [vmem:[%s1538_s0 + $0x358] sm:$0xff] }
  0x3d   :  { %266 = vmatpush.msrb.mxu1 %v99_v54  ;;  %231 = vmatmul.f32.vlgmr.msrb.gmra.mxu3 %v1079_v11  ;;  %v747_v54 = vld [vmem:[%s1538_s0 + $0x488] sm:$0xff] }
  0x3e   :  { %498 = vmatpush.msra.mxu2 %v740_v55  ;;  %479 = vmatpush.msra.mxu3 %v706_v56  ;;  %v775_v55 = vld [vmem:[%s1538_s0 + $0x568] sm:$0xff]  ;;  %v770_v56 = vld [vmem:[%s1538_s0 + $0x540] sm:$0xff] }
  0x3f   :  { %248 = vmatpush.msrb.mxu0 %v63_v57  ;;  %267 = vmatpush.msrb.mxu1 %v97_v58  ;;  %v707_v57 = vld [vmem:[%s1538_s0 + $0x348] sm:$0xff]  ;;  %v745_v58 = vld [vmem:[%s1538_s0 + $0x478] sm:$0xff] }
  0x40   :  { %499 = vmatpush.msra.mxu2 %v738_v59  ;;  %480 = vmatpush.msra.mxu3 %v704_v60  ;;  %v773_v59 = vld [vmem:[%s1538_s0 + $0x558] sm:$0xff]  ;;  %v768_v60 = vld [vmem:[%s1538_s0 + $0x530] sm:$0xff] }
  0x41   :  { %249 = vmatpush.msrb.mxu0 %v61_v61  ;;  %268 = vmatpush.msrb.mxu1 %v95_v62  ;;  %v705_v61 = vld [vmem:[%s1538_s0 + $0x338] sm:$0xff]  ;;  %v743_v62 = vld [vmem:[%s1538_s0 + $0x468] sm:$0xff] }
  0x42   :  { %699 = vmatmul.msk.f32.vlgmr.msrb.gmra.mxu2 %vm132_vm0, %v1053_v3  ;;  %481 = vmatpush.msra.mxu3 %v702_v63  ;;  %v771_v63 = vld [vmem:[%s1538_s0 + $0x548] sm:$0xff] }
  0x43   :  { %500 = vmatpush.msra.mxu2 %v736_v1  ;;  %250 = vmatpush.msrb.mxu0 %v59_v2  ;;  %v766_v1 = vld [vmem:[%s1538_s0 + $0x520] sm:$0xff]  ;;  %v703_v2 = vld [vmem:[%s1538_s0 + $0x328] sm:$0xff] }
  0x44   :  { %269 = vmatpush.msrb.mxu1 %v93_v4  ;;  %251 = vmatmul.f32.vlgmr.msrb.gmra.mxu0 %v1081_v12  ;;  %v741_v4 = vld [vmem:[%s1538_s0 + $0x458] sm:$0xff] }
  0x45   :  { %482 = vmatpush.msra.mxu3 %v700_v5  ;;  %501 = vmatpush.msra.mxu2 %v734_v6  ;;  %v769_v5 = vld [vmem:[%s1538_s0 + $0x538] sm:$0xff]  ;;  %v764_v6 = vld [vmem:[%s1538_s0 + $0x510] sm:$0xff] }
  0x46   :  { %507 = vmatpush.msra.mxu0 %v794_v7  ;;  %270 = vmatpush.msrb.mxu1 %v91_v8  ;;  %v701_v7 = vld [vmem:[%s1538_s0 + $0x318] sm:$0xff]  ;;  %v739_v8 = vld [vmem:[%s1538_s0 + $0x448] sm:$0xff] }
  0x47   :  { %547 = vmatpush.msrb.mxu3 %v731_v9  ;;  %271 = vmatmul.f32.vlgmr.msrb.gmra.mxu1 %v1045_v0  ;;  %v767_v9 = vld [vmem:[%s1538_s0 + $0x528] sm:$0xff] }
  0x48   :  { %502 = vmatpush.msra.mxu2 %v732_v10  ;;  %508 = vmatpush.msra.mxu0 %v792_v13  ;;  %v737_v10 = vld [vmem:[%s1538_s0 + $0x438] sm:$0xff] }
  0x49   :  { %548 = vmatpush.msrb.mxu3 %v729_v14  ;;  %542 = vmatpush.msra.mxu1 %v796_v16  ;;  %v797_v13 = vld [vmem:[%s1538_s0 + $0x618] sm:$0xff] }
  0x4a   :  { %587 = vmatpush.msrb.mxu2 %v795_v15  ;;  %509 = vmatpush.msra.mxu0 %v790_v17  ;;  %v765_v14 = vld [vmem:[%s1538_s0 + $0x518] sm:$0xff]  ;;  %v735_v15 = vld [vmem:[%s1538_s0 + $0x428] sm:$0xff] }
  0x4b   :  { %549 = vmatpush.msrb.mxu3 %v727_v18  ;;  %567 = vmatpush.msrb.mxu1 %v763_v20  ;;  %v733_v16 = vld [vmem:[%s1538_s0 + $0x418] sm:$0xff] }
  0x4c   :  { %588 = vmatpush.msrb.mxu2 %v793_v19  ;;  %510 = vmatpush.msra.mxu0 %v788_v21 }
  0x4d   :  { %550 = vmatpush.msrb.mxu3 %v725_v22  ;;  %568 = vmatpush.msrb.mxu1 %v761_v24 }
  0x4e   :  { %589 = vmatpush.msrb.mxu2 %v791_v23  ;;  %511 = vmatpush.msra.mxu0 %v786_v25 }
  0x4f   :  { %551 = vmatpush.msrb.mxu3 %v723_v26  ;;  %569 = vmatpush.msrb.mxu1 %v759_v28 }
  0x50   :  { %590 = vmatpush.msrb.mxu2 %v789_v27  ;;  %512 = vmatpush.msra.mxu0 %v784_v29 }
  0x51   :  { %552 = vmatpush.msrb.mxu3 %v721_v30  ;;  %570 = vmatpush.msrb.mxu1 %v757_v32 }
  0x52   :  { %591 = vmatpush.msrb.mxu2 %v787_v31  ;;  %513 = vmatpush.msra.mxu0 %v782_v33 }
  0x53   :  { %553 = vmatpush.msrb.mxu3 %v719_v34  ;;  %571 = vmatpush.msrb.mxu1 %v755_v36 }
  0x54   :  { %592 = vmatpush.msrb.mxu2 %v785_v35  ;;  %514 = vmatpush.msra.mxu0 %v780_v37 }
  0x55   :  { %554 = vmatpush.msrb.mxu3 %v717_v38  ;;  %572 = vmatpush.msrb.mxu1 %v753_v40 }
  0x56   :  { %593 = vmatpush.msrb.mxu2 %v783_v39  ;;  %515 = vmatpush.msra.mxu0 %v778_v41 }
  0x57   :  { %555 = vmatpush.msrb.mxu3 %v715_v42  ;;  %573 = vmatpush.msrb.mxu1 %v751_v44 }
  0x58   :  { %594 = vmatpush.msrb.mxu2 %v781_v43  ;;  %516 = vmatpush.msra.mxu0 %v776_v45 }
  0x59   :  { %556 = vmatpush.msrb.mxu3 %v713_v46  ;;  %574 = vmatpush.msrb.mxu1 %v749_v48 }
  0x5a   :  { %595 = vmatpush.msrb.mxu2 %v779_v47  ;;  %517 = vmatpush.msra.mxu0 %v774_v49 }
  0x5b   :  { %557 = vmatpush.msrb.mxu3 %v711_v50  ;;  %503 = vmatmul.f32.vlgmr.msra.gmra.mxu2 %v1081_v12 }
  0x5c   :  { %596 = vmatpush.msrb.mxu2 %v777_v51  ;;  %483 = vmatmul.f32.vlgmr.msra.gmra.mxu3 %v1079_v11 }
  0x5d   :  { %518 = vmatpush.msra.mxu0 %v772_v52  ;;  %558 = vmatpush.msrb.mxu3 %v709_v53 }
  0x5e   :  { %575 = vmatpush.msrb.mxu1 %v747_v54  ;;  %597 = vmatpush.msrb.mxu2 %v775_v55 }
  0x5f   :  { %519 = vmatpush.msra.mxu0 %v770_v56  ;;  %559 = vmatpush.msrb.mxu3 %v707_v57  ;;  %v821_v57 = vmov 256.0  }
  0x60   :  { %576 = vmatpush.msrb.mxu1 %v745_v58  ;;  %598 = vmatpush.msrb.mxu2 %v773_v59  ;;  %807 = vrcp.f32 %v821_v57 }
  0x61   :  { %520 = vmatpush.msra.mxu0 %v768_v60  ;;  %560 = vmatpush.msrb.mxu3 %v705_v61  ;;  %v11_v61 = vstv %s1540_s2 }
  0x62   :  { %577 = vmatpush.msrb.mxu1 %v743_v62  ;;  %599 = vmatpush.msrb.mxu2 %v771_v63  ;;  %v822_v62 = vmov 0   ;;  %12 = vst [vmem:[#allocation2] sm:$0x1] %v11_v61 }
  0x63   :  { %521 = vmatpush.msra.mxu0 %v766_v1  ;;  %561 = vmatpush.msrb.mxu3 %v703_v2  ;;  %v13_v2 = vstv %s1541_s3 }
  0x64   :  { %578 = vmatpush.msrb.mxu1 %v741_v4  ;;  %600 = vmatpush.msrb.mxu2 %v769_v5  ;;  %14 = vst [vmem:[#allocation3] sm:$0x1] %v13_v2 }
  0x65   :  { %522 = vmatpush.msra.mxu0 %v764_v6  ;;  %798 = vmatmul.msk.f32.vlgmr.msra.gmra.mxu1 %vm132_vm0, %v1053_v3 }
  0x66   :  { %523 = vmatmul.f32.vlgmr.msra.gmra.mxu0 %v1045_v0  ;;  %562 = vmatpush.msrb.mxu3 %v701_v7  ;;  %v808_v58 = vpop.eup %807 }
  0x67   :  { %579 = vmatpush.msrb.mxu1 %v739_v8  ;;  %601 = vmatpush.msrb.mxu2 %v767_v9  ;;  %v302_v59 = vmul.f32 256.0, %v808_v58  ;;  %vm306_vm2 = vweird.f32 %v808_v58 }
  0x68   :  { %563 = vmatmul.f32.vlgmr.msrb.gmra.mxu3 %v1079_v11  ;;  %622 = vmatpush.msrb.mxu0 %v797_v13 }
  0x69   :  { %580 = vmatpush.msrb.mxu1 %v737_v10  ;;  %602 = vmatpush.msrb.mxu2 %v765_v14  ;;  %v303_v60 = vsub.f32 1.0, %v302_v59 }
  0x6a   :  { %603 = vmatmul.f32.vlgmr.msrb.gmra.mxu2 %v1045_v0  ;;  %804 = vset.pattern.permute.xlu2 %v822_v62 }
  0x6b   :  { %581 = vmatpush.msrb.mxu1 %v735_v15  ;;  %805 = vset.pattern.permute.xlu0 %v822_v62  ;;  %v304_v63 = vmul.f32 %v808_v58, %v303_v60 }
  0x6c   :  { %806 = vset.pattern.permute.xlu1 %v822_v62 }
  0x6d   :  { %582 = vmatpush.msrb.mxu1 %v733_v16  ;;  %v305_v1 = vadd.f32 %v808_v58, %v304_v63 }
  0x6e   :  { %583 = vmatmul.f32.vlgmr.msrb.gmra.mxu1 %v1081_v12  ;;  %799 = vmatmul.msk.f32.vlgmr.msrb.gmra.mxu0 %vm132_vm0, %v1053_v3 }
  0x6f   :  { %v307_v4 = vsel %vm306_vm2, %v808_v58, %v305_v1 }
  0xa4   :  { %v152_v11 = vpop.f32.mrf.mxu0 }
  0xa5   :  { %v172_v17 = vpop.f32.mrf.mxu1  ;;  %v192_v20 = vpop.f32.mrf.mxu2 }
  0xa6   :  { %v173_v19 = vadd.f32 %v172_v17, %v152_v11 }
  0xa7   :  { %v212_v18 = vpop.f32.mrf.mxu3 }
  0xa8   :  { %v193_v21 = vadd.f32 %v192_v20, %v173_v19  ;;  %v24_v19 = vld [vmem:[#allocation2] sm:$0x1] }
  0xaa   :  { %v1472_v25 = vadd.f32 %v212_v18, %v193_v21 }
  0xac   :  { %v309_v3 = vmul.f32 %v1472_v25, %v1472_v25  ;;  %v296_v12 = vsel %vm295_vm1, %v1472_v25, 0.0 }
  0xae   :  { %v311_v32 = vsel %vm295_vm1, %v309_v3, 0.0 }
  0xc0   :  { %v232_v22 = vpop.f32.mrf.mxu3 }
  0xc1   :  { %v252_v23 = vpop.f32.mrf.mxu0 }
  0xc2   :  { %v253_v24 = vadd.f32 %v252_v23, %v232_v22  ;;  %v25_v23 = vld [vmem:[#allocation3] sm:$0x1] }
  0xc4   :  { %v272_v26 = vpop.f32.mrf.mxu1 }
  0xc5   :  { %v292_v0 = vpop.f32.mrf.mxu2  ;;  %v273_v27 = vadd.f32 %v272_v26, %v253_v24 }
  0xc7   :  { %v1474_v28 = vadd.f32 %v292_v0, %v273_v27 }
  0xc9   :  { %v297_v29 = vsel %vm295_vm1, %v1474_v28, 0.0  ;;  %v310_v30 = vmul.f32 %v1474_v28, %v1474_v28 }
  0xca   :  { %v298_v31 = vadd.f32 %v297_v29, %v296_v12 }
  0xcb   :  { %v312_v33 = vsel %vm295_vm1, %v310_v30, 0.0 }
  0xcc   :  { %299 = vadd.xlane.f32.xlu0 %v298_v31  ;;  %v313_v34 = vadd.f32 %v312_v33, %v311_v32 }
  0xce   :  { %314 = vadd.xlane.f32.xlu1 %v313_v34 }
  0xde   :  { %v504_v36 = vpop.f32.mrf.mxu2 }
  0xdf   :  { %v484_v35 = vpop.f32.mrf.mxu3 }
  0xe0   :  { %v505_v38 = vadd.f32 %v504_v36, %v484_v35 }
  0xe2   :  { %v544_v37 = vpop.f32.mrf.mxu1 }
  0xe3   :  { %v524_v39 = vpop.f32.mrf.mxu0 }
  0xe4   :  { %v525_v40 = vadd.f32 %v524_v39, %v505_v38 }
  0xe6   :  { %v1486_v44 = vadd.f32 %v544_v37, %v525_v40 }
  0xe8   :  { %v633_v49 = vmul.f32 %v1486_v44, %v1486_v44  ;;  %v627_v50 = vsel %vm295_vm1, %v1486_v44, 0.0 }
  0xea   :  { %v635_v54 = vsel %vm295_vm1, %v633_v49, 0.0  ;;  %v355_v49 = vlaneseq }
  0xeb   :  { %v564_v41 = vpop.f32.mrf.mxu3  ;;  %v584_v42 = vpop.f32.mrf.mxu1 }
  0xec   :  { %v585_v43 = vadd.f32 %v584_v42, %v564_v41  ;;  %v624_v46 = vpop.f32.mrf.mxu0  ;;  %vm1508_vm9 = vcmp.lt.s32.totalorder %v355_v49, 256 }
  0xed   :  { %v604_v45 = vpop.f32.mrf.mxu2 }
  0xee   :  { %v605_v47 = vadd.f32 %v604_v45, %v585_v43 }
  0xf0   :  { %v1488_v48 = vadd.f32 %v624_v46, %v605_v47 }
  0xf2   :  { %v628_v51 = vsel %vm295_vm1, %v1488_v48, 0.0  ;;  %v634_v52 = vmul.f32 %v1488_v48, %v1488_v48 }
  0xf3   :  { %v629_v53 = vadd.f32 %v628_v51, %v627_v50 }
  0xf4   :  { %v636_v55 = vsel %vm295_vm1, %v634_v52, 0.0 }
  0xf5   :  { %630 = vadd.xlane.f32.xlu0 %v629_v53  ;;  %v637_v56 = vadd.f32 %v636_v55, %v635_v54 }
  0xf7   :  { %638 = vadd.xlane.f32.xlu1 %v637_v56 }
 0x13f   :  { %v300_v5 = vpop.xlane.xlu0 %299 }
 0x140   :  { %v308_v6 = vmul.f32 %v307_v4, %v300_v5 }
 0x141   :  { %v315_v7 = vpop.xlane.xlu1 %314 }
 0x142   :  { %v317_v8 = vmul.f32 %v308_v6, %v308_v6  ;;  %v316_v9 = vmul.f32 %v315_v7, %v307_v4 }
 0x144   :  { %v318_v10 = vsub.f32 %v316_v9, %v317_v8 }
 0x146   :  { %v319_v13 = vmax.f32 %v318_v10, 0.0 }
 0x148   :  { %v320_v14 = vadd.f32 1e-05, %v319_v13 }
 0x14a   :  { %809 = vrsqrt.f32 %v320_v14  ;;  %vm327_vm4 = vweird.f32 %v320_v14 }
 0x150   :  { %v810_v15 = vpop.eup %809 }
 0x151   :  { %v322_v16 = vmul.f32 %v810_v15, %v320_v14  ;;  %vm328_vm3 = vweird.f32 %v810_v15 }
 0x152   :  { %vm329_vm5 = vmor %vm327_vm4, %vm328_vm3 }
 0x153   :  { %v323_v11 = vmul.f32 %v810_v15, %v322_v16 }
 0x155   :  { %v324_v17 = vmul.f32 0.5, %v323_v11 }
 0x157   :  { %v325_v18 = vsub.f32 1.5, %v324_v17 }
 0x159   :  { %v326_v20 = vmul.f32 %v810_v15, %v325_v18 }
 0x15b   :  { %v330_v21 = vsel %vm329_vm5, %v810_v15, %v326_v20 }
 0x15c   :  { %v331_v22 = vmul.f32 %v330_v21, %v24_v19 }
 0x15e   :  { %336 = vperm.xlu2 %804, %v331_v22   ;;  %v332_v24 = vmul.f32 %v331_v22, %v308_v6 }
 0x160   :  { %v333_v26 = vsub.f32 %v25_v23, %v332_v24 }
 0x162   :  { %344 = vperm.xlu0 %805, %v333_v26  }
 0x168   :  { %v631_v0 = vpop.xlane.xlu0 %630 }
 0x169   :  { %v632_v27 = vmul.f32 %v631_v0, %v307_v4 }
 0x16a   :  { %v639_v3 = vpop.xlane.xlu1 %638 }
 0x16b   :  { %v641_v12 = vmul.f32 %v632_v27, %v632_v27  ;;  %v640_v29 = vmul.f32 %v639_v3, %v307_v4 }
 0x16d   :  { %v642_v30 = vsub.f32 %v640_v29, %v641_v12 }
 0x16f   :  { %v643_v31 = vmax.f32 %v642_v30, 0.0 }
 0x171   :  { %v644_v32 = vadd.f32 1e-05, %v643_v31 }
 0x173   :  { %811 = vrsqrt.f32 %v644_v32  ;;  %vm651_vm7 = vweird.f32 %v644_v32 }
 0x179   :  { %v812_v33 = vpop.eup %811 }
 0x17a   :  { %v646_v34 = vmul.f32 %v812_v33, %v644_v32  ;;  %vm652_vm6 = vweird.f32 %v812_v33 }
 0x17b   :  { %vm653_vm8 = vmor %vm651_vm7, %vm652_vm6 }
 0x17c   :  { %v647_v35 = vmul.f32 %v812_v33, %v646_v34 }
 0x17e   :  { %v648_v36 = vmul.f32 0.5, %v647_v35 }
 0x180   :  { %v649_v37 = vsub.f32 1.5, %v648_v36 }
 0x182   :  { %v650_v38 = vmul.f32 %v812_v33, %v649_v37 }
 0x184   :  { %v654_v39 = vsel %vm653_vm8, %v812_v33, %v650_v38 }
 0x185   :  { %v655_v40 = vmul.f32 %v654_v39, %v24_v19 }
 0x187   :  { %660 = vperm.xlu2 %804, %v655_v40   ;;  %v656_v41 = vmul.f32 %v655_v40, %v632_v27 }
 0x189   :  { %v657_v42 = vsub.f32 %v25_v23, %v656_v41 }
 0x18b   :  { %668 = vperm.xlu1 %806, %v657_v42  }
 0x1b8   :  { %v337_v43 = vpop.permute.xlu2 %336 }
 0x1b9   :  { %v339_v45 = vperm.slane %v337_v43, 0 }
 0x1bb   :  { %v341_v47 = vmul.f32 %v339_v45, %v1474_v28  ;;  %v340_v51 = vmul.f32 %v339_v45, %v1472_v25 }
 0x1d4   :  { %v345_v46 = vpop.permute.xlu0 %344 }
 0x1d5   :  { %v347_v50 = vperm.slane %v345_v46, 0 }
 0x1d7   :  { %v349_v52 = vadd.f32 %v347_v50, %v341_v47  ;;  %v348_v53 = vadd.f32 %v347_v50, %v340_v51 }
 0x1d9   :  { %v352_v55 = vrot.slane %v349_v52, 7  ;;  %813 = vtanh.f32 %v349_v52 }
 0x1da   :  { %815 = vtanh.f32 %v348_v53 }
 0x1db   :  { %v353_v56 = vsel %vm295_vm1, %v348_v53, %v352_v55 }
 0x1dc   :  { %359 = vst.msk [vmem:[%s1542_s4] sm:$0x3] %vm1508_vm9, %v353_v56 }
 0x1df   :  { %v814_v28 = vpop.eup %813 }
 0x1e0   :  { %v364_v57 = vrot.slane %v814_v28, 7  ;;  %v816_v25 = vpop.eup %815 }
 0x1e1   :  { %v661_v59 = vpop.permute.xlu2 %660 }
 0x1e2   :  { %v365_v58 = vsel %vm295_vm1, %v816_v25, %v364_v57  ;;  %v663_v60 = vperm.slane %v661_v59, 0 }
 0x1e3   :  { %367 = vst.msk [vmem:[%s1543_s5] sm:$0x3] %vm1508_vm9, %v365_v58 }
 0x1e4   :  { %v665_v62 = vmul.f32 %v663_v60, %v1488_v48  ;;  %v664_v1 = vmul.f32 %v663_v60, %v1486_v44 }
 0x1fd   :  { %v669_v61 = vpop.permute.xlu1 %668 }
 0x1fe   :  { %v671_v63 = vperm.slane %v669_v61, 0 }
 0x200   :  { %v673_v2 = vadd.f32 %v671_v63, %v665_v62  ;;  %v672_v4 = vadd.f32 %v671_v63, %v664_v1 }
 0x202   :  { %v676_v5 = vrot.slane %v673_v2, 7  ;;  %817 = vtanh.f32 %v673_v2 }
 0x203   :  { %819 = vtanh.f32 %v672_v4 }
 0x204   :  { %v677_v6 = vsel %vm295_vm1, %v672_v4, %v676_v5 }
 0x205   :  { %800 = vst.msk [vmem:[%s1542_s4 + $0x2] sm:$0x3] %vm1508_vm9, %v677_v6 }
 0x208   :  { %v818_v7 = vpop.eup %817 }
 0x209   :  { %v685_v8 = vrot.slane %v818_v7, 7  ;;  %v820_v9 = vpop.eup %819 }
 0x20b   :  { %v686_v48 = vsel %vm295_vm1, %v820_v9, %v685_v8 }
 0x20c   :  { %801 = vst.msk [vmem:[%s1543_s5 + $0x2] sm:$0x3] %vm1508_vm9, %v686_v48 }

</bundles_post_ra>
